<compile_context>
chip_gen: v7x
topology: tpu7x:2x2x1
jax: 0.10.0
libtpu: 0.0.40
codegen_flags: <defaults>
</compile_context>

<pallas_src>
import math
import jax
import jax.numpy as jnp
from jax import lax
from jax.experimental import pallas as pl
from jax.experimental.pallas import tpu as pltpu


def _gelu_exact(x):
    # PyTorch nnf.gelu default = exact erf formulation (computed in f32).
    # NOTE: lax.erf lowers to a VALU polynomial, not an EUP transcendental;
    # tanh-approximate GELU would move this to the EUP slot but changes numerics.
    return 0.5 * x * (1.0 + lax.erf(x * (1.0 / math.sqrt(2.0))))


def projection_kernel(x_ref, w1_ref, w2_ref, gb_ref, out_ref):
    # x tile: [TM, d_in]; weights resident in bf16.
    xb = x_ref[...].astype(jnp.bfloat16)            # MXU feed in bf16
    w1 = w1_ref[...]                                # [d_in, d_out]   bf16
    w2 = w2_ref[...]                                # [d_out, d_out]  bf16

    # embed1 = linear1(x): bf16 operands, f32 accumulate on the MXU.
    embed1 = jnp.dot(xb, w1, preferred_element_type=jnp.float32)   # [TM, d_out] f32

    # gelu in f32, cast to bf16 immediately so only {embed1, g} stay live.
    g = _gelu_exact(embed1).astype(jnp.bfloat16)

    # embed2 = dropout(linear2(g)); dropout is identity (eval semantics).
    # Residual: h = embed1 + embed2 (note: residual is linear1's output, not x,
    # exactly as in the PyTorch module).
    h = embed1 + jnp.dot(g, w2, preferred_element_type=jnp.float32)

    # LayerNorm over the feature (lane) axis, f32 math, eps = 1e-5.
    # mean and E[h^2] are independent -> the two XLU reductions can overlap.
    mean = jnp.mean(h, axis=-1, keepdims=True)
    msq = jnp.mean(h * h, axis=-1, keepdims=True)
    var = jnp.maximum(msq - mean * mean, 0.0)
    inv = lax.rsqrt(var + 1e-5)

    gb = gb_ref[...].astype(jnp.float32)            # [2, d_out]  (gamma; beta)
    gamma = gb[0:1, :]
    beta = gb[1:2, :]
    out_ref[...] = ((h - mean) * inv * gamma + beta).astype(out_ref.dtype)


def projection_forward(x, w1_t, w2_t, gamma, beta, *, tm=512, out_dtype=None,
                       vmem_limit_bytes=48 * 1024 * 1024):
    """x: [B, S, d_in]; w1_t: [d_in, d_out]; w2_t: [d_out, d_out] (row-major, rows @ W)."""
    B, S, d_in = x.shape
    d_out = w1_t.shape[1]
    M = B * S
    out_dtype = x.dtype if out_dtype is None else out_dtype

    x2d = x.reshape(M, d_in)
    # Pre-cast weights to bf16 once (halves resident footprint + feeds MXU).
    w1b = w1_t.astype(jnp.bfloat16)
    w2b = w2_t.astype(jnp.bfloat16)
    # Fold gamma/beta into one resident (2, d_out) operand.
    gb = jnp.stack([gamma, beta], axis=0).reshape(2, d_out).astype(jnp.float32)

    in_isz = x2d.dtype.itemsize
    out_isz = jnp.dtype(out_dtype).itemsize

    # Row tile: full M if it fits, else a multiple of 8; shrink until the
    # estimated VMEM footprint fits under ~90% of the limit (v7x 64 MiB safe).
    tm = min(tm, M)
    if tm < M:
        tm = max(8, (tm // 8) * 8)

    def vmem_estimate(t):
        return (2 * t * d_in * in_isz                     # 2x-buffered x tiles
                + 2 * t * d_out * out_isz                 # 2x-buffered out tiles
                + (d_in * d_out + d_out * d_out) * 2      # resident bf16 weights (1 buf)
                + 2 * d_out * 4                           # resident gamma/beta
                + 4 * t * d_out)                          # f32 intermediates headroom

    while tm > 8 and vmem_estimate(tm) > int(0.9 * vmem_limit_bytes):
        tm = max(8, (tm // 2 // 8) * 8)

    grid_m = pl.cdiv(M, tm)   # partial last block is per-row work -> safe

    flops = 2 * M * d_in * d_out + 2 * M * d_out * d_out
    bytes_accessed = (x2d.size * in_isz                   # x read
                      + w1b.size * 2 + w2b.size * 2       # bf16 weights
                      + 2 * d_out * 4                     # gamma/beta
                      + M * d_out * out_isz)              # output write

    def resident_specs(single_buffer):
        shapes = [(d_in, d_out), (d_out, d_out), (2, d_out)]
        specs = []
        for shp in shapes:
            if single_buffer:
                specs.append(pl.BlockSpec(shp, lambda i: (0, 0),
                                          pipeline_mode=pl.Buffered(1)))
            else:
                specs.append(pl.BlockSpec(shp, lambda i: (0, 0)))
        return specs

    def run(single_buffer):
        return pl.pallas_call(
            projection_kernel,
            out_shape=jax.ShapeDtypeStruct((M, d_out), out_dtype),
            grid_spec=pltpu.PrefetchScalarGridSpec(
                num_scalar_prefetch=0,
                grid=(grid_m,),
                in_specs=[pl.BlockSpec((tm, d_in), lambda i: (i, 0))]  # row-tiled
                         + resident_specs(single_buffer),              # resident
                out_specs=pl.BlockSpec((tm, d_out), lambda i: (i, 0)),
            ),
            compiler_params=pltpu.CompilerParams(
                dimension_semantics=("parallel",),   # shards rows across TCs on v7x
                vmem_limit_bytes=vmem_limit_bytes),
            cost_estimate=pl.CostEstimate(
                flops=flops,
                transcendentals=M * d_out,   # advisory only (erf is a VALU polynomial)
                bytes_accessed=bytes_accessed),
        )(x2d, w1b, w2b, gb)

    single_buffer_ok = hasattr(pl, "Buffered")
    try:
        out2d = run(single_buffer_ok)
    except Exception:
        if not single_buffer_ok:
            raise
        # Fallback: default double-buffered resident operands.
        out2d = run(False)
    return out2d.reshape(B, S, d_out)


def xavier_uniform(key, fan_out, fan_in, dtype=jnp.float32):
    # nn.init.xavier_uniform_ on a torch Linear weight of shape (out, in)
    bound = math.sqrt(6.0 / (fan_in + fan_out))
    return jax.random.uniform(key, (fan_out, fan_in), dtype=dtype,
                              minval=-bound, maxval=bound)


if __name__ == "__main__":
    # Lane-dense shapes: d_out multiple of 128, M = 1024 rows, tm = 512
    # -> 2 grid steps so the pipelined path is exercised with big tiles.
    B, S, d_in, d_out = 4, 256, 128, 256

    key = jax.random.PRNGKey(0)
    kx, k1, k2 = jax.random.split(key, 3)

    x = jax.random.normal(kx, (B, S, d_in), dtype=jnp.float32)

    # Deterministic parameter init matching Projection.init_weight():
    #   linear1/linear2: xavier_uniform, no bias; layer_norm: weight=1, bias=0
    w1 = xavier_uniform(k1, d_out, d_in)     # torch shape (d_out, d_in)
    w2 = xavier_uniform(k2, d_out, d_out)    # torch shape (d_out, d_out)
    w1_t = w1.T                              # [d_in, d_out] for rows @ W
    w2_t = w2.T                              # [d_out, d_out]
    gamma = jnp.ones((d_out,), dtype=jnp.float32)
    beta = jnp.zeros((d_out,), dtype=jnp.float32)

    out = projection_forward(x, w1_t, w2_t, gamma, beta)
    jax.block_until_ready(out)

    # Pure-JAX reference using the same bf16-operand / f32-accumulate numerics.
    M = B * S
    xb = x.reshape(M, d_in).astype(jnp.bfloat16)
    e1 = jnp.dot(xb, w1_t.astype(jnp.bfloat16), preferred_element_type=jnp.float32)
    g = (0.5 * e1 * (1.0 + lax.erf(e1 / jnp.sqrt(2.0)))).astype(jnp.bfloat16)
    e2 = jnp.dot(g, w2_t.astype(jnp.bfloat16), preferred_element_type=jnp.float32)
    h = e1 + e2
    mu = jnp.mean(h, axis=-1, keepdims=True)
    var = jnp.mean((h - mu) ** 2, axis=-1, keepdims=True)
    ref = ((h - mu) * lax.rsqrt(var + 1e-5) * gamma + beta).reshape(B, S, d_out)

    assert out.shape == (B, S, d_out)
    err = float(jnp.max(jnp.abs(out.astype(jnp.float32) - ref)))
    assert jnp.allclose(out, ref, atol=2e-3, rtol=2e-3), f"max abs err {err}"

    print("KERNEL_OK")
</pallas_src>

<mosaic_0001>
module attributes {stable_mosaic.version = 11 : i64} {
  func.func @projection_kernel(%arg0: i32, %arg1: memref<512x128xf32, #tpu.memory_space<vmem>>, %arg2: memref<128x256xbf16, #tpu.memory_space<vmem>>, %arg3: memref<256x256xbf16, #tpu.memory_space<vmem>>, %arg4: memref<2x256xf32, #tpu.memory_space<vmem>>, %arg5: memref<512x256xf32, #tpu.memory_space<vmem>>) attributes {dimension_semantics = [#tpu.dimension_semantics<parallel>], iteration_bounds = array<i64: 2>, scalar_prefetch = 0 : i64, scratch_operands = 0 : i64, tpu.core_type = #tpu.core_type<tc>, window_params = [{transform_indices = @transform_0, window_bounds = array<i64: 512, 128>}, {pipeline_mode = #tpu.pipeline_mode<synchronous>, transform_indices = @transform_1, window_bounds = array<i64: 128, 256>}, {pipeline_mode = #tpu.pipeline_mode<synchronous>, transform_indices = @transform_2, window_bounds = array<i64: 256, 256>}, {pipeline_mode = #tpu.pipeline_mode<synchronous>, transform_indices = @transform_3, window_bounds = array<i64: 2, 256>}, {transform_indices = @transform_4, window_bounds = array<i64: 512, 256>}]} {
    %c0 = arith.constant 0 : index
    %c0_0 = arith.constant 0 : index
    %0 = vector.load %arg1[%c0, %c0_0] : memref<512x128xf32, #tpu.memory_space<vmem>>, vector<512x128xf32>
    %1 = arith.truncf %0 : vector<512x128xf32> to vector<512x128xbf16>
    %c0_1 = arith.constant 0 : index
    %c0_2 = arith.constant 0 : index
    %2 = vector.load %arg2[%c0_1, %c0_2] : memref<128x256xbf16, #tpu.memory_space<vmem>>, vector<128x256xbf16>
    %c0_3 = arith.constant 0 : index
    %c0_4 = arith.constant 0 : index
    %3 = vector.load %arg3[%c0_3, %c0_4] : memref<256x256xbf16, #tpu.memory_space<vmem>>, vector<256x256xbf16>
    %cst = arith.constant dense<0.000000e+00> : vector<512x256xf32>
    %4 = tpu.matmul %1, %2, %cst {dimension_numbers = #tpu.dot_dimension_numbers<[1], [0], [0], [1], [0, 0, 1, 1], [], []>} : vector<512x128xbf16>, vector<128x256xbf16>, vector<512x256xf32> -> vector<512x256xf32>
    %cst_5 = arith.constant 5.000000e-01 : f32
    %5 = vector.broadcast %cst_5 : f32 to vector<512x256xf32>
    %6 = arith.mulf %5, %4 : vector<512x256xf32>
    %cst_6 = arith.constant 0.707106769 : f32
    %7 = vector.broadcast %cst_6 : f32 to vector<512x256xf32>
    %8 = arith.mulf %4, %7 : vector<512x256xf32>
    %9 = math.erf %8 : vector<512x256xf32>
    %cst_7 = arith.constant 1.000000e+00 : f32
    %10 = vector.broadcast %cst_7 : f32 to vector<512x256xf32>
    %11 = arith.addf %10, %9 : vector<512x256xf32>
    %12 = arith.mulf %6, %11 : vector<512x256xf32>
    %13 = arith.truncf %12 : vector<512x256xf32> to vector<512x256xbf16>
    %cst_8 = arith.constant dense<0.000000e+00> : vector<512x256xf32>
    %14 = tpu.matmul %13, %3, %cst_8 {dimension_numbers = #tpu.dot_dimension_numbers<[1], [0], [0], [1], [0, 0, 1, 1], [], []>} : vector<512x256xbf16>, vector<256x256xbf16>, vector<512x256xf32> -> vector<512x256xf32>
    %15 = arith.addf %4, %14 : vector<512x256xf32>
    %cst_9 = arith.constant dense<0.000000e+00> : vector<512xf32>
    %16 = vector.multi_reduction <add>, %15, %cst_9 [1] : vector<512x256xf32> to vector<512xf32>
    %17 = vector.shape_cast %16 : vector<512xf32> to vector<512x1xf32>
    %cst_10 = arith.constant 2.560000e+02 : f32
    %18 = vector.broadcast %cst_10 : f32 to vector<512x1xf32>
    %19 = arith.divf %17, %18 : vector<512x1xf32>
    %20 = arith.mulf %15, %15 : vector<512x256xf32>
    %cst_11 = arith.constant dense<0.000000e+00> : vector<512xf32>
    %21 = vector.multi_reduction <add>, %20, %cst_11 [1] : vector<512x256xf32> to vector<512xf32>
    %22 = vector.shape_cast %21 : vector<512xf32> to vector<512x1xf32>
    %cst_12 = arith.constant 2.560000e+02 : f32
    %23 = vector.broadcast %cst_12 : f32 to vector<512x1xf32>
    %24 = arith.divf %22, %23 : vector<512x1xf32>
    %25 = arith.mulf %19, %19 : vector<512x1xf32>
    %26 = arith.subf %24, %25 : vector<512x1xf32>
    %cst_13 = arith.constant 0.000000e+00 : f32
    %27 = vector.broadcast %cst_13 : f32 to vector<512x1xf32>
    %28 = arith.maximumf %26, %27 : vector<512x1xf32>
    %cst_14 = arith.constant 9.99999974E-6 : f32
    %29 = vector.broadcast %cst_14 : f32 to vector<512x1xf32>
    %30 = arith.addf %28, %29 : vector<512x1xf32>
    %31 = math.rsqrt %30 : vector<512x1xf32>
    %c0_15 = arith.constant 0 : index
    %c0_16 = arith.constant 0 : index
    %32 = vector.load %arg4[%c0_15, %c0_16] : memref<2x256xf32, #tpu.memory_space<vmem>>, vector<2x256xf32>
    %33 = vector.extract_strided_slice %32 {offsets = [0, 0], sizes = [1, 256], strides = [1, 1]} : vector<2x256xf32> to vector<1x256xf32>
    %34 = vector.extract_strided_slice %32 {offsets = [1, 0], sizes = [1, 256], strides = [1, 1]} : vector<2x256xf32> to vector<1x256xf32>
    %35 = vector.broadcast %19 : vector<512x1xf32> to vector<512x256xf32>
    %36 = arith.subf %15, %35 : vector<512x256xf32>
    %37 = vector.broadcast %31 : vector<512x1xf32> to vector<512x256xf32>
    %38 = arith.mulf %36, %37 : vector<512x256xf32>
    %39 = vector.broadcast %33 : vector<1x256xf32> to vector<512x256xf32>
    %40 = arith.mulf %38, %39 : vector<512x256xf32>
    %41 = vector.broadcast %34 : vector<1x256xf32> to vector<512x256xf32>
    %42 = arith.addf %40, %41 : vector<512x256xf32>
    %c0_17 = arith.constant 0 : index
    %c0_18 = arith.constant 0 : index
    %43 = vector.load %arg5[%c0_17, %c0_18] : memref<512x256xf32, #tpu.memory_space<vmem>>, vector<512x256xf32>
    tpu.vector_store %arg5[%c0_17, %c0_18], %42 {strides = array<i32>} : memref<512x256xf32, #tpu.memory_space<vmem>>, vector<512x256xf32>,
    return
  }
  func.func @transform_0(%arg0: i32) -> (i32, i32) {
    %c0_i32 = arith.constant 0 : i32
    %c0_i32_0 = arith.constant 0 : i32
    return %arg0, %c0_i32 : i32, i32
  }
  func.func @transform_1(%arg0: i32) -> (i32, i32) {
    %c0_i32 = arith.constant 0 : i32
    %c0_i32_0 = arith.constant 0 : i32
    %c0_i32_1 = arith.constant 0 : i32
    return %c0_i32, %c0_i32_0 : i32, i32
  }
  func.func @transform_2(%arg0: i32) -> (i32, i32) {
    %c0_i32 = arith.constant 0 : i32
    %c0_i32_0 = arith.constant 0 : i32
    %c0_i32_1 = arith.constant 0 : i32
    return %c0_i32, %c0_i32_0 : i32, i32
  }
  func.func @transform_3(%arg0: i32) -> (i32, i32) {
    %c0_i32 = arith.constant 0 : i32
    %c0_i32_0 = arith.constant 0 : i32
    %c0_i32_1 = arith.constant 0 : i32
    return %c0_i32, %c0_i32_0 : i32, i32
  }
  func.func @transform_4(%arg0: i32) -> (i32, i32) {
    %c0_i32 = arith.constant 0 : i32
    %c0_i32_0 = arith.constant 0 : i32
    return %arg0, %c0_i32 : i32, i32
  }
}

module attributes {stable_mosaic.version = 11 : i64} {
  func.func @projection_kernel(%arg0: i32, %arg1: memref<512x128xf32, #tpu.memory_space<vmem>>, %arg2: memref<128x256xbf16, #tpu.memory_space<vmem>>, %arg3: memref<256x256xbf16, #tpu.memory_space<vmem>>, %arg4: memref<2x256xf32, #tpu.memory_space<vmem>>, %arg5: memref<512x256xf32, #tpu.memory_space<vmem>>) attributes {dimension_semantics = [#tpu.dimension_semantics<parallel>], iteration_bounds = array<i64: 2>, scalar_prefetch = 0 : i64, scratch_operands = 0 : i64, tpu.core_type = #tpu.core_type<tc>, window_params = [{transform_indices = @transform_0, window_bounds = array<i64: 512, 128>}, {pipeline_mode = #tpu.pipeline_mode<synchronous>, transform_indices = @transform_1, window_bounds = array<i64: 128, 256>}, {pipeline_mode = #tpu.pipeline_mode<synchronous>, transform_indices = @transform_2, window_bounds = array<i64: 256, 256>}, {pipeline_mode = #tpu.pipeline_mode<synchronous>, transform_indices = @transform_3, window_bounds = array<i64: 2, 256>}, {transform_indices = @transform_4, window_bounds = array<i64: 512, 256>}]} {
    %c0 = arith.constant 0 : index
    %c0_0 = arith.constant 0 : index
    %0 = vector.load %arg1[%c0, %c0_0] : memref<512x128xf32, #tpu.memory_space<vmem>>, vector<512x128xf32>
    %1 = arith.truncf %0 : vector<512x128xf32> to vector<512x128xbf16>
    %c0_1 = arith.constant 0 : index
    %c0_2 = arith.constant 0 : index
    %2 = vector.load %arg2[%c0_1, %c0_2] : memref<128x256xbf16, #tpu.memory_space<vmem>>, vector<128x256xbf16>
    %c0_3 = arith.constant 0 : index
    %c0_4 = arith.constant 0 : index
    %3 = vector.load %arg3[%c0_3, %c0_4] : memref<256x256xbf16, #tpu.memory_space<vmem>>, vector<256x256xbf16>
    %cst = arith.constant dense<0.000000e+00> : vector<512x256xf32>
    %4 = tpu.matmul %1, %2, %cst {dimension_numbers = #tpu.dot_dimension_numbers<[1], [0], [0], [1], [0, 0, 1, 1], [], []>} : vector<512x128xbf16>, vector<128x256xbf16>, vector<512x256xf32> -> vector<512x256xf32>
    %cst_5 = arith.constant 5.000000e-01 : f32
    %5 = vector.broadcast %cst_5 : f32 to vector<512x256xf32>
    %6 = arith.mulf %5, %4 : vector<512x256xf32>
    %cst_6 = arith.constant 0.707106769 : f32
    %7 = vector.broadcast %cst_6 : f32 to vector<512x256xf32>
    %8 = arith.mulf %4, %7 : vector<512x256xf32>
    %9 = math.erf %8 : vector<512x256xf32>
    %cst_7 = arith.constant 1.000000e+00 : f32
    %10 = vector.broadcast %cst_7 : f32 to vector<512x256xf32>
    %11 = arith.addf %10, %9 : vector<512x256xf32>
    %12 = arith.mulf %6, %11 : vector<512x256xf32>
    %13 = arith.truncf %12 : vector<512x256xf32> to vector<512x256xbf16>
    %cst_8 = arith.constant dense<0.000000e+00> : vector<512x256xf32>
    %14 = tpu.matmul %13, %3, %cst_8 {dimension_numbers = #tpu.dot_dimension_numbers<[1], [0], [0], [1], [0, 0, 1, 1], [], []>} : vector<512x256xbf16>, vector<256x256xbf16>, vector<512x256xf32> -> vector<512x256xf32>
    %15 = arith.addf %4, %14 : vector<512x256xf32>
    %cst_9 = arith.constant dense<0.000000e+00> : vector<512xf32>
    %16 = vector.multi_reduction <add>, %15, %cst_9 [1] : vector<512x256xf32> to vector<512xf32>
    %17 = vector.shape_cast %16 : vector<512xf32> to vector<512x1xf32>
    %cst_10 = arith.constant 2.560000e+02 : f32
    %18 = vector.broadcast %cst_10 : f32 to vector<512x1xf32>
    %19 = arith.divf %17, %18 : vector<512x1xf32>
    %20 = arith.mulf %15, %15 : vector<512x256xf32>
    %cst_11 = arith.constant dense<0.000000e+00> : vector<512xf32>
    %21 = vector.multi_reduction <add>, %20, %cst_11 [1] : vector<512x256xf32> to vector<512xf32>
    %22 = vector.shape_cast %21 : vector<512xf32> to vector<512x1xf32>
    %cst_12 = arith.constant 2.560000e+02 : f32
    %23 = vector.broadcast %cst_12 : f32 to vector<512x1xf32>
    %24 = arith.divf %22, %23 : vector<512x1xf32>
    %25 = arith.mulf %19, %19 : vector<512x1xf32>
    %26 = arith.subf %24, %25 : vector<512x1xf32>
    %cst_13 = arith.constant 0.000000e+00 : f32
    %27 = vector.broadcast %cst_13 : f32 to vector<512x1xf32>
    %28 = arith.maximumf %26, %27 : vector<512x1xf32>
    %cst_14 = arith.constant 9.99999974E-6 : f32
    %29 = vector.broadcast %cst_14 : f32 to vector<512x1xf32>
    %30 = arith.addf %28, %29 : vector<512x1xf32>
    %31 = math.rsqrt %30 : vector<512x1xf32>
    %c0_15 = arith.constant 0 : index
    %c0_16 = arith.constant 0 : index
    %32 = vector.load %arg4[%c0_15, %c0_16] : memref<2x256xf32, #tpu.memory_space<vmem>>, vector<2x256xf32>
    %33 = vector.extract_strided_slice %32 {offsets = [0, 0], sizes = [1, 256], strides = [1, 1]} : vector<2x256xf32> to vector<1x256xf32>
    %34 = vector.extract_strided_slice %32 {offsets = [1, 0], sizes = [1, 256], strides = [1, 1]} : vector<2x256xf32> to vector<1x256xf32>
    %35 = vector.broadcast %19 : vector<512x1xf32> to vector<512x256xf32>
    %36 = arith.subf %15, %35 : vector<512x256xf32>
    %37 = vector.broadcast %31 : vector<512x1xf32> to vector<512x256xf32>
    %38 = arith.mulf %36, %37 : vector<512x256xf32>
    %39 = vector.broadcast %33 : vector<1x256xf32> to vector<512x256xf32>
    %40 = arith.mulf %38, %39 : vector<512x256xf32>
    %41 = vector.broadcast %34 : vector<1x256xf32> to vector<512x256xf32>
    %42 = arith.addf %40, %41 : vector<512x256xf32>
    %c0_17 = arith.constant 0 : index
    %c0_18 = arith.constant 0 : index
    %43 = vector.load %arg5[%c0_17, %c0_18] : memref<512x256xf32, #tpu.memory_space<vmem>>, vector<512x256xf32>
    tpu.vector_store %arg5[%c0_17, %c0_18], %42 {strides = array<i32>} : memref<512x256xf32, #tpu.memory_space<vmem>>, vector<512x256xf32>,
    return
  }
  func.func @transform_0(%arg0: i32) -> (i32, i32) {
    %c0_i32 = arith.constant 0 : i32
    %c0_i32_0 = arith.constant 0 : i32
    return %arg0, %c0_i32 : i32, i32
  }
  func.func @transform_1(%arg0: i32) -> (i32, i32) {
    %c0_i32 = arith.constant 0 : i32
    %c0_i32_0 = arith.constant 0 : i32
    %c0_i32_1 = arith.constant 0 : i32
    return %c0_i32, %c0_i32_0 : i32, i32
  }
  func.func @transform_2(%arg0: i32) -> (i32, i32) {
    %c0_i32 = arith.constant 0 : i32
    %c0_i32_0 = arith.constant 0 : i32
    %c0_i32_1 = arith.constant 0 : i32
    return %c0_i32, %c0_i32_0 : i32, i32
  }
  func.func @transform_3(%arg0: i32) -> (i32, i32) {
    %c0_i32 = arith.constant 0 : i32
    %c0_i32_0 = arith.constant 0 : i32
    %c0_i32_1 = arith.constant 0 : i32
    return %c0_i32, %c0_i32_0 : i32, i32
  }
  func.func @transform_4(%arg0: i32) -> (i32, i32) {
    %c0_i32 = arith.constant 0 : i32
    %c0_i32_0 = arith.constant 0 : i32
    return %arg0, %c0_i32 : i32, i32
  }
}

</mosaic_0001>

<bundles_post_ra>
// kernel: tpu_custom_call.1
= control target key start
LH: loop header
LB: loop body
LE: loop exit
PB: predicated region body
PF: predicated region fallthrough
CT: control target
= control target key end

     0   :  { %9 = vsyncpa [#allocation3], 0  ;;  %s7704_s0 = inlined_call_operand.hbm [shape: f32[1024,128], index: 0, kind: input, shape index: {}]   ;;  %s7705_s1 = inlined_call_operand.hbm [shape: bf16[128,256], index: 1, kind: input, shape index: {}]   ;;  %s7706_s2 = inlined_call_operand.hbm [shape: bf16[256,256], index: 2, kind: input, shape index: {}]   ;;  %s7707_s3 = inlined_call_operand.vmem [shape: f32[2,256], index: 3, kind: input, shape index: {}]   ;;  %s7708_s4 = inlined_call_operand.hbm [shape: f32[1024,256], index: 4, kind: output, shape index: {}]  }
   0x1   :  { %11 = vsyncpa [#allocation3 + $0x1], 0 }
   0x2   :  { %12 = vsyncpa [#allocation6], 0 }
   0x3   :  { %13 = vsyncpa [#allocation4], 0 }
   0x4   :  { %15 = vsyncpa [#allocation4 + $0x1], 0  ;;  %s4738_s15 = smov 0   ;;  %s4740_s16 = smov 0  }
   0x5   :  { %s4742_s17 = smov 0   ;;  %s4744_s18 = smov 0  }
   0x6 LB: > { %s4759_s19 = sadd.s32 4294967295, %s4702_s18   ;;  %s3916_s20 = sadd.s32 4294967294, %s4702_s18   ;;  %s4702_s18 = sphi %s4744_s18, %s8302_s18   ;;  %s4698_s17 = sphi %s4742_s17, %s8301_s17   ;;  %s4694_s16 = sphi %s4740_s16, %s8300_s16   ;;  %s4690_s15 = sphi %s4738_s15, %s8299_s15  }
   0x7   : > { %p41_p0 = scmp.ne.s32.totalorder %s4694_s16, %s4690_s15  ;;  %p7709_p1 = scmp.eq.s32.totalorder %s4759_s19, 0 }
   0x8   : > { %p134_p3 = scmp.eq.s32.totalorder %s3916_s20, 1  ;;  %p3917_p5 = scmp.ge.s32.totalorder %s4702_s18, 1 }
   0x9   : > { %p4768_p4 = por %p7709_p1, %p41_p0  ;;  %p141_p7 = scmp.lt.s32.totalorder %s4702_s18, 3 }
   0xa   : > { %p4773_p6 = por %p134_p3, %p41_p0  ;;  %s4704_s24 = smov [#allocation5]  }
   0xb   : > { %s7901_s21 = scalar_select %p4768_p4, 1, 0 }
   0xc   : > { %s7902_s22 = scalar_select %p4773_p6, 1, 0 }
   0xd   : > { %p4778_p8 = pnand %p3917_p5, %p141_p7  ;;  %s153_s25 = sshll.u32 %s4704_s24, 4  ;;  %s4782_s25 = int_to_ptr.vmem [resolvable:$true] %s153_s25 }
   0xe   : > { %s4705_s27 = smov [#allocation7]   ;;  %s4546_s5 = scalar_lea.hbm %s7705_s1, 2048 }
   0xf   : > { %p4030_p9 = pneg %p4778_p8  ;;  %s166_s28 = sshll.u32 %s4705_s27, 4  ;;  %s4793_s28 = int_to_ptr.vmem [resolvable:$true] %s166_s28 }
  0x10   : > { %p4547_p12 = scmp.ne.s32.totalorder %s7705_s1, %s4546_s5  ;;  %p4553_p5 = scmp.lt.u32.totalorder %s4546_s5, %s7705_s1 }
  0x11   : > { %p4789_p11 = pnand %p4030_p9, %p7709_p1 }
  0x13   : > { %p4548_p13 = pneg %p4789_p11 }
  0x15   : > { %p4549_p0 = pnand %p4548_p13, %p4547_p12 }
  0x17   : > { %p4550_p3 = pneg %p4549_p0 }
  0x19   : > { %p4555_p7 = pnand %p4553_p5, %p4550_p3 }
  0x1b   : > { %4558 = shalt.err (!%p4555_p7)
}
  0x1c   : > { %s4559_s10 = scalar_lea.vmem %s4782_s25, 2048  ;;  %p4567_p2 = scmp.lt.s32.totalorder %s4782_s25, %s4782_s25 }
  0x1d   : > { %p4560_p9 = scmp.ne.s32.totalorder %s4782_s25, %s4559_s10  ;;  %p4568_p12 = scmp.lt.s32.totalorder %s4559_s10, %s4559_s10 }
  0x1f   : > { %p4562_p10 = pnand %p4560_p9, %p4548_p13  ;;  %p4569_p0 = por %p4568_p12, %p4567_p2 }
  0x21   : > { %p4563_p1 = pneg %p4562_p10 }
  0x23   : > { %p4570_p6 = pnand %p4569_p0, %p4563_p1 }
  0x25   : > { %4573 = shalt.err (!%p4570_p6)
}
  0x26   : > { %s4706_s11 = smov 128   ;;  %s4707_s12 = smov 8  }
  0x27   : > { %4033 = dma.hbm_to_vmem [thread:$0]  (!%p4789_p11), %s7705_s1, 2048, %s4782_s25, [#allocation6], %s4706_s11, %s4706_s11, %s4707_s12  }
  0x28   : > { %s4574_s27 = scalar_lea.hbm %s7706_s2, 4096 }
  0x29   : > { %p4575_p1 = scmp.ne.s32.totalorder %s7706_s2, %s4574_s27  ;;  %p4581_p10 = scmp.lt.u32.totalorder %s4574_s27, %s7706_s2 }
  0x2b   : > { %p4577_p2 = pnand %p4575_p1, %p4548_p13 }
  0x2d   : > { %p4578_p6 = pneg %p4577_p2 }
  0x2f   : > { %p4583_p3 = pnand %p4581_p10, %p4578_p6 }
  0x31   : > { %4586 = shalt.err (!%p4583_p3)
}
  0x32   : > { %s4587_s25 = scalar_lea.vmem %s4793_s28, 4096  ;;  %p4595_p12 = scmp.lt.s32.totalorder %s4793_s28, %s4793_s28 }
  0x33   : > { %p4588_p5 = scmp.ne.s32.totalorder %s4793_s28, %s4587_s25  ;;  %p4596_p0 = scmp.lt.s32.totalorder %s4587_s25, %s4587_s25 }
  0x35   : > { %p4590_p7 = pnand %p4588_p5, %p4548_p13  ;;  %p4597_p1 = por %p4596_p0, %p4595_p12 }
  0x37   : > { %p4591_p9 = pneg %p4590_p7 }
  0x39   : > { %p4598_p2 = pnand %p4597_p1, %p4591_p9 }
  0x3b   : > { %4601 = shalt.err (!%p4598_p2)
}
  0x3c   : > { %4036 = dma.hbm_to_vmem [thread:$0]  (!%p4789_p11), %s7706_s2, 4096, %s4793_s28, [#allocation6], %s4706_s11, %s4706_s11, %s4707_s12  }
  0x3d   : > { %s4854_s26 = sadd.s32 1, %s4702_s18   ;;  %s28_s9 = sadd.s32 1, %s4698_s17 }
  0x3e   : > { %s25_s10 = ssub.s32 %s4702_s18, %s4854_s26  ;;  %p35_p13 = scmp.ne.s32.totalorder %s4698_s17, %s4694_s16 }
  0x3f   : > { %p26_p6 = scmp.eq.s32.totalorder %s25_s10, 0  ;;  %p36_p10 = scmp.eq.s32.totalorder %s4702_s18, 0 }
  0x40   : > { %p7905_p3 = scmp.eq.s32.totalorder %s4759_s19, 1  ;;  %p4047_p7 = scmp.lt.s32.totalorder %s4702_s18, 2 }
  0x41   : > { %s4870_s14 = scalar_select %p26_p6, %s4698_s17, %s28_s9  }
  0x42   : > { %p4864_p5 = por %p7905_p3, %p35_p13  ;;  %p37_p9 = por %p36_p10, %p35_p13 }
  0x43   : > { %s183_s20 = sand.u32 1, %s4698_s17   ;;  %s3983_s28 = sshll.u32 %s4702_s18, 13 }
  0x44   : > { %s7906_s13 = scalar_select %p4864_p5, 1, 0 }
  0x45   : > { %s3921_s24 = sshll.u32 %s183_s20, 9  ;;  %s4877_s30 = scalar_lea.hbm %s7704_s0, %s3983_s28 }
  0x46   : > { %s187_s5 = scalar_lea.vmem [#allocation2], %s3921_s24  ;;  %p4881_p11 = pnand %p4047_p7, %p37_p9 }
  0x47   : > { %s194_s6 = sshll.u32 %s187_s5, 4  ;;  %s4885_s7 = scalar_lea.sflag [#allocation3], %s183_s20  ;;  %s4879_s6 = int_to_ptr.vmem [resolvable:$true] %s194_s6 }
  0x48   : > { %s4602_s8 = scalar_lea.hbm %s4877_s30, 8192  ;;  %p4604_p0 = pneg %p4881_p11 }
  0x49   : > { %p4603_p12 = scmp.ne.s32.totalorder %s4877_s30, %s4602_s8  ;;  %s4607_s24 = scalar_lea.hbm %s7704_s0, 16384 }
  0x4a   : > { %p4608_p13 = scmp.lt.u32.totalorder %s4877_s30, %s7704_s0  ;;  %p4609_p6 = scmp.lt.u32.totalorder %s4607_s24, %s4602_s8 }
  0x4b   : > { %p4605_p1 = pnand %p4604_p0, %p4603_p12  ;;  %p4611_p3 = scmp.lt.u32.totalorder %s4602_s8, %s4877_s30 }
  0x4c   : > { %p4610_p10 = por %p4609_p6, %p4608_p13 }
  0x4d   : > { %p4606_p2 = pneg %p4605_p1 }
  0x4e   : > { %p4612_p7 = por %p4611_p3, %p4610_p10 }
  0x50   : > { %p4613_p9 = pnand %p4612_p7, %p4606_p2 }
  0x52   : > { %4616 = shalt.err (!%p4613_p9)
}
  0x53   : > { %s4617_s20 = scalar_lea.vmem %s4879_s6, 8192  ;;  %s4708_s29 = smov [#allocation2]  }
  0x54   : > { %p4618_p12 = scmp.ne.s32.totalorder %s4879_s6, %s4617_s20  ;;  %s4622_s5 = sshll.u32 %s4708_s29, 4  ;;  %s4623_s5 = int_to_ptr.vmem [resolvable:$false] %s4622_s5 }
  0x55   : > { %s4624_s9 = scalar_lea.vmem %s4623_s5, 16384  ;;  %p4625_p4 = scmp.lt.s32.totalorder %s4879_s6, %s4623_s5 }
  0x56   : > { %p4620_p1 = pnand %p4618_p12, %p4604_p0  ;;  %p4626_p13 = scmp.lt.s32.totalorder %s4624_s9, %s4617_s20 }
  0x58   : > { %p4621_p5 = pneg %p4620_p1  ;;  %p4627_p6 = por %p4626_p13, %p4625_p4 }
  0x5a   : > { %p4628_p10 = pnand %p4627_p6, %p4621_p5 }
  0x5c   : > { %4631 = shalt.err (!%p4628_p10)
}
  0x5d   : > { %4040 = dma.hbm_to_vmem [thread:$0]  (!%p4881_p11), %s4877_s30, 8192, %s4879_s6, %s4885_s7, %s4706_s11, %s4706_s11, %s4707_s12  }
  0x5e   : > { %206 = sbr.rel (%p4778_p8) target bundleno = 1073 (0x431), region = 36 }
  0x65   : > { %s4919_s8 = sand.u32 1, %s4694_s16   ;;  %p7908_p4 = scmp.ne.s32.totalorder %s7901_s21, 0 }
  0x66   : > { %s3925_s10 = sshll.u32 %s4919_s8, 9  ;;  %s209_s24 = scalar_lea.sflag [#allocation3], %s4919_s8 }
  0x67   : > { %s4923_s28 = scalar_lea.vmem [#allocation2], %s3925_s10 }
  0x68   : > { %4677 = dma.done.wait (%p7908_p4), %s209_s24, 8192  }
  0x69   : > { %4679 = vsyncadd (%p7908_p4), %s209_s24, 4294959104  ;;  %p7909_p5 = scmp.eq.s32.totalorder %s4759_s19, 0 }
  0x6b   : > { %4681 = dma.done.wait (%p7909_p5), [#allocation6], 6144   ;;  %p7910_p8 = pmov %p7909_p5 }
  0x6c   : > { %v4709_v0 = vmov 0   ;;  %v4090_v1 = vld [vmem:[#allocation5 + $0x4] ss:$8 sps:$4 sm:$0xff]   ;;  %v4092_v2 = vld [vmem:[#allocation5] ss:$8 sps:$4 sm:$0xff]   ;;  %v250_v33 = vld [vmem:[%s4923_s28 + $0x10] sm:$0xff] }
  0x6d   : > { %4683 = vsyncadd (%p7910_p8), [#allocation6], 4294961152  ;;  %504 = vmatprep.mubr.bf16.mxu0 %v4709_v0  ;;  %472 = vmatprep.subr.bf16.mxu0 %v4090_v1  ;;  %v4093_v3 = vld [vmem:[#allocation5 + $0x14] ss:$8 sps:$4 sm:$0xff]   ;;  %v4095_v4 = vld [vmem:[#allocation5 + $0x10] ss:$8 sps:$4 sm:$0xff]  }
  0x6e   : > { %473 = vmatpush1.bf16.msra.mxu0 %v4092_v2  ;;  %v4096_v5 = vld [vmem:[#allocation5 + $0x24] ss:$8 sps:$4 sm:$0xff]   ;;  %v4098_v6 = vld [vmem:[#allocation5 + $0x20] ss:$8 sps:$4 sm:$0xff]   ;;  %v4099_v7 = vld [vmem:[#allocation5 + $0x34] ss:$8 sps:$4 sm:$0xff]  }
  0x6f   : > { %474 = vmatprep.subr.bf16.mxu0 %v4093_v3  ;;  %v4101_v8 = vld [vmem:[#allocation5 + $0x30] ss:$8 sps:$4 sm:$0xff]   ;;  %v4102_v9 = vld [vmem:[#allocation5 + $0x44] ss:$8 sps:$4 sm:$0xff]   ;;  %v4114_v10 = vld [vmem:[#allocation7] ss:$8 sps:$4 sm:$0xff]  }
  0x70   : > { %v4116_v11 = vld [vmem:[#allocation7 + $0x4] ss:$8 sps:$4 sm:$0xff]   ;;  %v4104_v12 = vld [vmem:[#allocation5 + $0x40] ss:$8 sps:$4 sm:$0xff]   ;;  %v4117_v13 = vld [vmem:[#allocation7 + $0x10] ss:$8 sps:$4 sm:$0xff]  }
  0x71   : > { %3986 = vmatprep.subr.bf16.mxu1 %v4116_v11  ;;  %v4119_v14 = vld [vmem:[#allocation7 + $0x14] ss:$8 sps:$4 sm:$0xff]   ;;  %v4122_v16 = vld [vmem:[#allocation7 + $0x24] ss:$8 sps:$4 sm:$0xff]   ;;  %v4107_v17 = vld [vmem:[#allocation5 + $0x50] ss:$8 sps:$4 sm:$0xff]  }
  0x72   : > { %475 = vmatpush1.bf16.msra.mxu0 %v4095_v4  ;;  %4002 = vmatpush1.bf16.msra.mxu1 %v4114_v10  ;;  %v4105_v15 = vld [vmem:[#allocation5 + $0x54] ss:$8 sps:$4 sm:$0xff]   ;;  %v4120_v18 = vld [vmem:[#allocation7 + $0x20] ss:$8 sps:$4 sm:$0xff]   ;;  %v4108_v19 = vld [vmem:[#allocation5 + $0x64] ss:$8 sps:$4 sm:$0xff]  }
  0x73   : > { %476 = vmatprep.subr.bf16.mxu0 %v4096_v5  ;;  %3987 = vmatprep.subr.bf16.mxu1 %v4119_v14  ;;  %v4125_v20 = vld [vmem:[#allocation7 + $0x34] ss:$8 sps:$4 sm:$0xff]   ;;  %v4110_v21 = vld [vmem:[#allocation5 + $0x60] ss:$8 sps:$4 sm:$0xff]   ;;  %v4123_v22 = vld [vmem:[#allocation7 + $0x30] ss:$8 sps:$4 sm:$0xff]  }
  0x74   : > { %v4111_v23 = vld [vmem:[#allocation5 + $0x74] ss:$8 sps:$4 sm:$0xff]   ;;  %v4128_v24 = vld [vmem:[#allocation7 + $0x44] ss:$8 sps:$4 sm:$0xff]   ;;  %v4113_v25 = vld [vmem:[#allocation5 + $0x70] ss:$8 sps:$4 sm:$0xff]  }
  0x75   : > { %v248_v26 = vld [vmem:[%s4923_s28] sm:$0xff]  ;;  %v249_v27 = vld [vmem:[%s4923_s28 + $0x8] sm:$0xff]  ;;  %v4131_v29 = vld [vmem:[#allocation7 + $0x54] ss:$8 sps:$4 sm:$0xff]   ;;  %s3928_s11 = sshll.u32 %s4919_s8, 10  ;;  %s3985_s30 = sshll.u32 %s4759_s19, 14 }
  0x76   : > { %477 = vmatpush1.bf16.msra.mxu0 %v4098_v6  ;;  %4003 = vmatpush1.bf16.msra.mxu1 %v4117_v13  ;;  %v4126_v28 = vld [vmem:[#allocation7 + $0x40] ss:$8 sps:$4 sm:$0xff]   ;;  %v312_v30 = vpack.c.bf16 %v249_v27, %v248_v26  ;;  %v4129_v31 = vld [vmem:[#allocation7 + $0x50] ss:$8 sps:$4 sm:$0xff]   ;;  %v4134_v32 = vld [vmem:[#allocation7 + $0x64] ss:$8 sps:$4 sm:$0xff]   ;;  %s7652_s27 = scalar_lea.hbm %s7708_s4, %s3985_s30 }
  0x77   : > { %478 = vmatprep.subr.bf16.mxu0 %v4099_v7  ;;  %3988 = vmatprep.subr.bf16.mxu1 %v4122_v16  ;;  %v251_v34 = vld [vmem:[%s4923_s28 + $0x18] sm:$0xff]  ;;  %v4132_v35 = vld [vmem:[#allocation7 + $0x60] ss:$8 sps:$4 sm:$0xff]   ;;  %v4140_v39 = vld [vmem:[#allocation7 + $0x84] ss:$8 sps:$4 sm:$0xff]   ;;  %s6219_s12 = scalar_lea.vmem [#allocation8], %s3928_s11 }
  0x78   : > { %v4137_v36 = vld [vmem:[#allocation7 + $0x74] ss:$8 sps:$4 sm:$0xff]   ;;  %v313_v37 = vpack.c.bf16 %v251_v34, %v250_v33  ;;  %v4135_v38 = vld [vmem:[#allocation7 + $0x70] ss:$8 sps:$4 sm:$0xff]   ;;  %v252_v40 = vld [vmem:[%s4923_s28 + $0x20] sm:$0xff]  ;;  %s3824_s6 = sshll.u32 %s6219_s12, 4  ;;  %s7654_s6 = int_to_ptr.vmem [resolvable:$true] %s3824_s6 }
  0x79   : > { %v253_v41 = vld [vmem:[%s4923_s28 + $0x28] sm:$0xff]  ;;  %v4141_v44 = vld [vmem:[#allocation7 + $0x90] ss:$8 sps:$4 sm:$0xff]   ;;  %v4143_v45 = vld [vmem:[#allocation7 + $0x94] ss:$8 sps:$4 sm:$0xff]   ;;  %s3810_s19 = scalar_lea.sflag [#allocation4], %s4919_s8 }
  0x7a   : > { %479 = vmatpush1.bf16.msra.mxu0 %v4101_v8  ;;  %4004 = vmatpush1.bf16.msra.mxu1 %v4120_v18  ;;  %v4138_v42 = vld [vmem:[#allocation7 + $0x80] ss:$8 sps:$4 sm:$0xff]   ;;  %v314_v43 = vpack.c.bf16 %v253_v41, %v252_v40  ;;  %v254_v46 = vld [vmem:[%s4923_s28 + $0x30] sm:$0xff]  ;;  %v255_v47 = vld [vmem:[%s4923_s28 + $0x38] sm:$0xff]  ;;  %s4632_s20 = scalar_lea.vmem %s7654_s6, 16384  ;;  %p8296_p0 = scmp.ne.s32.totalorder %s7906_s13, 0 }
  0x7b   : > { %480 = vmatprep.subr.bf16.mxu0 %v4102_v9  ;;  %3989 = vmatprep.subr.bf16.mxu1 %v4125_v20  ;;  %v315_v48 = vpack.c.bf16 %v255_v47, %v254_v46  ;;  %v256_v49 = vld [vmem:[%s4923_s28 + $0x40] sm:$0xff]  ;;  %v257_v50 = vld [vmem:[%s4923_s28 + $0x48] sm:$0xff]  ;;  %v258_v54 = vld [vmem:[%s4923_s28 + $0x50] sm:$0xff]  ;;  %p4633_p11 = scmp.ne.s32.totalorder %s7654_s6, %s4632_s20  ;;  %s4710_s29 = smov [#allocation8]  }
  0x7c   : > { %v316_v51 = vpack.c.bf16 %v257_v50, %v256_v49  ;;  %v4144_v52 = vld [vmem:[#allocation7 + $0xa0] ss:$8 sps:$4 sm:$0xff]   ;;  %v4146_v53 = vld [vmem:[#allocation7 + $0xa4] ss:$8 sps:$4 sm:$0xff]   ;;  %v259_v55 = vld [vmem:[%s4923_s28 + $0x58] sm:$0xff]  ;;  %s4636_s5 = sshll.u32 %s4710_s29, 4  ;;  %s4637_s5 = int_to_ptr.vmem [resolvable:$false] %s4636_s5 }
  0x7d   : > { %v317_v56 = vpack.c.bf16 %v259_v55, %v258_v54  ;;  %v260_v57 = vld [vmem:[%s4923_s28 + $0x60] sm:$0xff]  ;;  %v261_v58 = vld [vmem:[%s4923_s28 + $0x68] sm:$0xff]  ;;  %v4147_v60 = vld [vmem:[#allocation7 + $0xb0] ss:$8 sps:$4 sm:$0xff]   ;;  %p4634_p2 = pnand %p4633_p11, %p8296_p0  ;;  %s4638_s9 = scalar_lea.vmem %s4637_s5, 32768 }
  0x7e   : > { %481 = vmatpush1.bf16.msra.mxu0 %v4104_v12  ;;  %4005 = vmatpush1.bf16.msra.mxu1 %v4123_v22  ;;  %v318_v59 = vpack.c.bf16 %v261_v58, %v260_v57  ;;  %v4149_v61 = vld [vmem:[#allocation7 + $0xb4] ss:$8 sps:$4 sm:$0xff]   ;;  %v264_v2 = vld [vmem:[%s4923_s28 + $0x80] sm:$0xff]  ;;  %v265_v3 = vld [vmem:[%s4923_s28 + $0x88] sm:$0xff]  ;;  %p4639_p7 = scmp.lt.s32.totalorder %s7654_s6, %s4637_s5  ;;  %p4640_p9 = scmp.lt.s32.totalorder %s4638_s9, %s4632_s20 }
  0x7f   : > { %482 = vmatprep.subr.bf16.mxu0 %v4105_v15  ;;  %3990 = vmatprep.subr.bf16.mxu1 %v4128_v24  ;;  %v262_v62 = vld [vmem:[%s4923_s28 + $0x70] sm:$0xff]  ;;  %v263_v63 = vld [vmem:[%s4923_s28 + $0x78] sm:$0xff]  ;;  %v320_v4 = vpack.c.bf16 %v265_v3, %v264_v2  ;;  %v4150_v5 = vld [vmem:[#allocation7 + $0xc0] ss:$8 sps:$4 sm:$0xff]   ;;  %p4635_p3 = pneg %p4634_p2 }
  0x80   : > { %v319_v1 = vpack.c.bf16 %v263_v63, %v262_v62  ;;  %v4152_v6 = vld [vmem:[#allocation7 + $0xc4] ss:$8 sps:$4 sm:$0xff]   ;;  %v266_v7 = vld [vmem:[%s4923_s28 + $0x90] sm:$0xff]  ;;  %v267_v8 = vld [vmem:[%s4923_s28 + $0x98] sm:$0xff]  ;;  %p4641_p12 = por %p4640_p9, %p4639_p7 }
  0x81   : > { %v321_v9 = vpack.c.bf16 %v267_v8, %v266_v7  ;;  %v270_v15 = vld [vmem:[%s4923_s28 + $0xb0] sm:$0xff]  ;;  %v4158_v27 = vld [vmem:[#allocation7 + $0xe4] ss:$8 sps:$4 sm:$0xff]   ;;  %v291_v50 = vld [vmem:[%s4923_s28 + $0x158] sm:$0xff] }
  0x82   : > { %483 = vmatpush1.bf16.msra.mxu0 %v4107_v17  ;;  %4006 = vmatpush1.bf16.msra.mxu1 %v4126_v28  ;;  %v4159_v33 = vld [vmem:[#allocation7 + $0xf0] ss:$8 sps:$4 sm:$0xff]   ;;  %v280_v34 = vld [vmem:[%s4923_s28 + $0x100] sm:$0xff]  ;;  %v285_v41 = vld [vmem:[%s4923_s28 + $0x128] sm:$0xff]  ;;  %p4642_p1 = pnand %p4641_p12, %p4635_p3 }
  0x83   : > { %484 = vmatprep.subr.bf16.mxu0 %v4108_v19  ;;  %3991 = vmatprep.subr.bf16.mxu1 %v4131_v29  ;;  %v273_v19 = vld [vmem:[%s4923_s28 + $0xc8] sm:$0xff]  ;;  %v284_v40 = vld [vmem:[%s4923_s28 + $0x120] sm:$0xff]  ;;  %v290_v49 = vld [vmem:[%s4923_s28 + $0x150] sm:$0xff] }
  0x84   : > { %v288_v46 = vld [vmem:[%s4923_s28 + $0x140] sm:$0xff]  ;;  %v289_v47 = vld [vmem:[%s4923_s28 + $0x148] sm:$0xff]  ;;  %v294_v55 = vld [vmem:[%s4923_s28 + $0x170] sm:$0xff] }
  0x85   : > { %v296_v58 = vld [vmem:[%s4923_s28 + $0x180] sm:$0xff]  ;;  %v299_v62 = vld [vmem:[%s4923_s28 + $0x198] sm:$0xff]  ;;  %v301_v2 = vld [vmem:[%s4923_s28 + $0x1a8] sm:$0xff] }
  0x86   : > { %485 = vmatpush1.bf16.msra.mxu0 %v4110_v21  ;;  %4007 = vmatpush1.bf16.msra.mxu1 %v4129_v31  ;;  %v274_v21 = vld [vmem:[%s4923_s28 + $0xd0] sm:$0xff] }
  0x87   : > { %486 = vmatprep.subr.bf16.mxu0 %v4111_v23  ;;  %3992 = vmatprep.subr.bf16.mxu1 %v4134_v32 }
  0x8a   : > { %487 = vmatpush1.bf16.msra.mxu0 %v4113_v25  ;;  %4008 = vmatpush1.bf16.msra.mxu1 %v4132_v35  ;;  %v277_v25 = vld [vmem:[%s4923_s28 + $0xe8] sm:$0xff] }
  0x8b   : > { %1689 = vmatprep.subr.bf16.mxu0 %v4116_v11  ;;  %3993 = vmatprep.subr.bf16.mxu1 %v4137_v36  ;;  %v269_v11 = vld [vmem:[%s4923_s28 + $0xa8] sm:$0xff] }
  0x8d   : > { %505 = vmatmul.mubr.bf16.vlgmr.msra.gmra.mrb[0].mxu0 %v312_v30  ;;  %v279_v30 = vld [vmem:[%s4923_s28 + $0xf8] sm:$0xff] }
  0x8e   : > { %1690 = vmatpush1.bf16.msra.mxu0 %v4114_v10  ;;  %514 = vmatprep.mubr.bf16.mxu0 %v4709_v0  ;;  %v268_v10 = vld [vmem:[%s4923_s28 + $0xa0] sm:$0xff] }
  0x8f   : > { %1691 = vmatprep.subr.bf16.mxu0 %v4119_v14  ;;  %4009 = vmatpush1.bf16.msra.mxu1 %v4135_v38  ;;  %v322_v12 = vpack.c.bf16 %v269_v11, %v268_v10  ;;  %v4155_v14 = vld [vmem:[#allocation7 + $0xd4] ss:$8 sps:$4 sm:$0xff]  }
  0x90   : > { %3994 = vmatprep.subr.bf16.mxu1 %v4140_v39 }
  0x92   : > { %1692 = vmatpush1.bf16.msra.mxu0 %v4117_v13  ;;  %v4153_v13 = vld [vmem:[#allocation7 + $0xd0] ss:$8 sps:$4 sm:$0xff]  }
  0x93   : > { %1693 = vmatprep.subr.bf16.mxu0 %v4122_v16  ;;  %4010 = vmatpush1.bf16.msra.mxu1 %v4138_v42  ;;  %v271_v16 = vld [vmem:[%s4923_s28 + $0xb8] sm:$0xff] }
  0x94   : > { %3995 = vmatprep.subr.bf16.mxu1 %v4143_v45  ;;  %v323_v17 = vpack.c.bf16 %v271_v16, %v270_v15  ;;  %v304_v15 = vld [vmem:[%s4923_s28 + $0x1c0] sm:$0xff]  ;;  %v305_v16 = vld [vmem:[%s4923_s28 + $0x1c8] sm:$0xff] }
  0x95   : > { %515 = vmatmul.mubr.bf16.gmra.mrb[4].mxu0 %v313_v37  ;;  %v282_v37 = vld [vmem:[%s4923_s28 + $0x110] sm:$0xff] }
  0x96   : > { %524 = vmatprep.mubr.bf16.mxu0 %v4709_v0  ;;  %1694 = vmatpush1.bf16.msra.mxu0 %v4120_v18  ;;  %v272_v18 = vld [vmem:[%s4923_s28 + $0xc0] sm:$0xff] }
  0x97   : > { %1695 = vmatprep.subr.bf16.mxu0 %v4125_v20  ;;  %4011 = vmatpush1.bf16.msra.mxu1 %v4141_v44  ;;  %v324_v20 = vpack.c.bf16 %v273_v19, %v272_v18 }
  0x98   : > { %3996 = vmatprep.subr.bf16.mxu1 %v4146_v53 }
  0x9a   : > { %1696 = vmatpush1.bf16.msra.mxu0 %v4123_v22  ;;  %v275_v22 = vld [vmem:[%s4923_s28 + $0xd8] sm:$0xff] }
  0x9b   : > { %1697 = vmatprep.subr.bf16.mxu0 %v4128_v24  ;;  %4012 = vmatpush1.bf16.msra.mxu1 %v4144_v52  ;;  %v325_v23 = vpack.c.bf16 %v275_v22, %v274_v21  ;;  %v276_v24 = vld [vmem:[%s4923_s28 + $0xe0] sm:$0xff] }
  0x9c   : > { %3997 = vmatprep.subr.bf16.mxu1 %v4149_v61  ;;  %v326_v26 = vpack.c.bf16 %v277_v25, %v276_v24 }
  0x9d   : > { %525 = vmatmul.mubr.bf16.gmra.mrb[8].mxu0 %v314_v43  ;;  %v286_v43 = vld [vmem:[%s4923_s28 + $0x130] sm:$0xff] }
  0x9e   : > { %534 = vmatprep.mubr.bf16.mxu0 %v4709_v0  ;;  %1698 = vmatpush1.bf16.msra.mxu0 %v4126_v28  ;;  %v4156_v28 = vld [vmem:[#allocation7 + $0xe0] ss:$8 sps:$4 sm:$0xff]  }
  0x9f   : > { %1699 = vmatprep.subr.bf16.mxu0 %v4131_v29  ;;  %4013 = vmatpush1.bf16.msra.mxu1 %v4147_v60  ;;  %v278_v29 = vld [vmem:[%s4923_s28 + $0xf0] sm:$0xff] }
  0xa0   : > { %3998 = vmatprep.subr.bf16.mxu1 %v4152_v6 }
  0xa2   : > { %1700 = vmatpush1.bf16.msra.mxu0 %v4129_v31  ;;  %v327_v31 = vpack.c.bf16 %v279_v30, %v278_v29 }
  0xa3   : > { %1701 = vmatprep.subr.bf16.mxu0 %v4134_v32  ;;  %4014 = vmatpush1.bf16.msra.mxu1 %v4150_v5  ;;  %v4161_v32 = vld [vmem:[#allocation7 + $0xf4] ss:$8 sps:$4 sm:$0xff]  }
  0xa4   : > { %3999 = vmatprep.subr.bf16.mxu1 %v4155_v14 }
  0xa5   : > { %535 = vmatmul.mubr.bf16.gmra.mrb[12].mxu0 %v315_v48  ;;  %v332_v48 = vpack.c.bf16 %v289_v47, %v288_v46 }
  0xa6   : > { %544 = vmatprep.mubr.bf16.mxu0 %v4709_v0  ;;  %1702 = vmatpush1.bf16.msra.mxu0 %v4132_v35  ;;  %v281_v35 = vld [vmem:[%s4923_s28 + $0x108] sm:$0xff] }
  0xa7   : > { %1703 = vmatprep.subr.bf16.mxu0 %v4137_v36  ;;  %4015 = vmatpush1.bf16.msra.mxu1 %v4153_v13  ;;  %v328_v36 = vpack.c.bf16 %v281_v35, %v280_v34 }
  0xa8   : > { %4000 = vmatprep.subr.bf16.mxu1 %v4158_v27 }
  0xaa   : > { %1704 = vmatpush1.bf16.msra.mxu0 %v4135_v38  ;;  %v283_v38 = vld [vmem:[%s4923_s28 + $0x118] sm:$0xff] }
  0xab   : > { %1705 = vmatprep.subr.bf16.mxu0 %v4140_v39  ;;  %4016 = vmatpush1.bf16.msra.mxu1 %v4156_v28  ;;  %v329_v39 = vpack.c.bf16 %v283_v38, %v282_v37 }
  0xac   : > { %4001 = vmatprep.subr.bf16.mxu1 %v4161_v32 }
  0xad   : > { %545 = vmatmul.mubr.bf16.gmra.mrb[16].mxu0 %v316_v51  ;;  %v333_v51 = vpack.c.bf16 %v291_v50, %v290_v49 }
  0xae   : > { %554 = vmatprep.mubr.bf16.mxu0 %v4709_v0  ;;  %1706 = vmatpush1.bf16.msra.mxu0 %v4138_v42  ;;  %v330_v42 = vpack.c.bf16 %v285_v41, %v284_v40 }
  0xaf   : > { %1707 = vmatprep.subr.bf16.mxu0 %v4143_v45  ;;  %4017 = vmatpush1.bf16.msra.mxu1 %v4159_v33 }
  0xb2   : > { %1708 = vmatpush1.bf16.msra.mxu0 %v4141_v44  ;;  %v287_v44 = vld [vmem:[%s4923_s28 + $0x138] sm:$0xff] }
  0xb3   : > { %1709 = vmatprep.subr.bf16.mxu0 %v4146_v53  ;;  %v331_v45 = vpack.c.bf16 %v287_v44, %v286_v43  ;;  %v293_v53 = vld [vmem:[%s4923_s28 + $0x168] sm:$0xff] }
  0xb5   : > { %555 = vmatmul.mubr.bf16.gmra.mrb[20].mxu0 %v317_v56  ;;  %v295_v56 = vld [vmem:[%s4923_s28 + $0x178] sm:$0xff] }
  0xb6   : > { %564 = vmatprep.mubr.bf16.mxu0 %v4709_v0  ;;  %1710 = vmatpush1.bf16.msra.mxu0 %v4144_v52  ;;  %v292_v52 = vld [vmem:[%s4923_s28 + $0x160] sm:$0xff]  ;;  %v335_v57 = vpack.c.bf16 %v295_v56, %v294_v55  ;;  %v309_v56 = vld [vmem:[%s4923_s28 + $0x1e8] sm:$0xff] }
  0xb7   : > { %1711 = vmatprep.subr.bf16.mxu0 %v4149_v61  ;;  %v334_v54 = vpack.c.bf16 %v293_v53, %v292_v52  ;;  %v298_v61 = vld [vmem:[%s4923_s28 + $0x190] sm:$0xff]  ;;  %v308_v55 = vld [vmem:[%s4923_s28 + $0x1e0] sm:$0xff] }
  0xb8   : > { %v337_v63 = vpack.c.bf16 %v299_v62, %v298_v61 }
  0xba   : > { %1712 = vmatpush1.bf16.msra.mxu0 %v4147_v60 }
  0xbb   : > { %1713 = vmatprep.subr.bf16.mxu0 %v4152_v6 }
  0xbd   : > { %565 = vmatmul.mubr.bf16.gmra.mrb[24].mxu0 %v318_v59  ;;  %v297_v59 = vld [vmem:[%s4923_s28 + $0x188] sm:$0xff] }
  0xbe   : > { %574 = vmatprep.mubr.bf16.mxu0 %v4709_v0  ;;  %1714 = vmatpush1.bf16.msra.mxu0 %v4150_v5  ;;  %v336_v60 = vpack.c.bf16 %v297_v59, %v296_v58  ;;  %v303_v5 = vld [vmem:[%s4923_s28 + $0x1b8] sm:$0xff] }
  0xbf   : > { %1715 = vmatprep.subr.bf16.mxu0 %v4155_v14 }
  0xc2   : > { %1716 = vmatpush1.bf16.msra.mxu0 %v4153_v13 }
  0xc3   : > { %1717 = vmatprep.subr.bf16.mxu0 %v4158_v27  ;;  %v306_v27 = vld [vmem:[%s4923_s28 + $0x1d0] sm:$0xff] }
  0xc5   : > { %575 = vmatmul.mubr.bf16.gmra.mrb[28].mxu0 %v319_v1  ;;  %v300_v1 = vld [vmem:[%s4923_s28 + $0x1a0] sm:$0xff] }
  0xc6   : > { %584 = vmatprep.mubr.bf16.mxu0 %v4709_v0  ;;  %1718 = vmatpush1.bf16.msra.mxu0 %v4156_v28  ;;  %v338_v3 = vpack.c.bf16 %v301_v2, %v300_v1  ;;  %v307_v28 = vld [vmem:[%s4923_s28 + $0x1d8] sm:$0xff] }
  0xc7   : > { %1719 = vmatprep.subr.bf16.mxu0 %v4161_v32  ;;  %v341_v38 = vpack.c.bf16 %v307_v28, %v306_v27 }
  0xca   : > { %1720 = vmatpush1.bf16.msra.mxu0 %v4159_v33 }
  0xcd   : > { %585 = vmatmul.mubr.bf16.gmra.mrb[32].mxu0 %v320_v4  ;;  %v302_v4 = vld [vmem:[%s4923_s28 + $0x1b0] sm:$0xff] }
  0xce   : > { %594 = vmatprep.mubr.bf16.mxu0 %v4709_v0 }
  0xd5   : > { %595 = vmatmul.mubr.bf16.gmra.mrb[36].mxu0 %v321_v9  ;;  %v339_v9 = vpack.c.bf16 %v303_v5, %v302_v4  ;;  %v342_v4 = vpack.c.bf16 %v309_v56, %v308_v55 }
  0xd6   : > { %604 = vmatprep.mubr.bf16.mxu0 %v4709_v0 }
  0xdd   : > { %605 = vmatmul.mubr.bf16.gmra.mrb[40].mxu0 %v322_v12 }
  0xde   : > { %614 = vmatprep.mubr.bf16.mxu0 %v4709_v0 }
  0xe5   : > { %615 = vmatmul.mubr.bf16.gmra.mrb[44].mxu0 %v323_v17 }
  0xe6   : > { %624 = vmatprep.mubr.bf16.mxu0 %v4709_v0 }
  0xed   : > { %625 = vmatmul.mubr.bf16.gmra.mrb[48].mxu0 %v324_v20  ;;  %v340_v20 = vpack.c.bf16 %v305_v16, %v304_v15 }
  0xee   : > { %634 = vmatprep.mubr.bf16.mxu0 %v4709_v0 }
  0xf5   : > { %635 = vmatmul.mubr.bf16.gmra.mrb[52].mxu0 %v325_v23 }
  0xf6   : > { %644 = vmatprep.mubr.bf16.mxu0 %v4709_v0 }
  0xfd   : > { %645 = vmatmul.mubr.bf16.gmra.mrb[56].mxu0 %v326_v26 }
  0xfe   : > { %654 = vmatprep.mubr.bf16.mxu0 %v4709_v0 }
 0x105   : > { %655 = vmatmul.mubr.bf16.gmra.mrb[60].mxu0 %v327_v31 }
 0x106   : > { %664 = vmatprep.mubr.bf16.mxu0 %v4709_v0 }
 0x10d   : > { %665 = vmatmul.mubr.bf16.gmra.mrb[64].mxu0 %v328_v36 }
 0x10e   : > { %674 = vmatprep.mubr.bf16.mxu0 %v4709_v0 }
 0x115   : > { %675 = vmatmul.mubr.bf16.gmra.mrb[68].mxu0 %v329_v39 }
 0x116   : > { %684 = vmatprep.mubr.bf16.mxu0 %v4709_v0 }
 0x11d   : > { %685 = vmatmul.mubr.bf16.gmra.mrb[72].mxu0 %v330_v42 }
 0x11e   : > { %694 = vmatprep.mubr.bf16.mxu0 %v4709_v0 }
 0x125   : > { %695 = vmatmul.mubr.bf16.gmra.mrb[76].mxu0 %v331_v45 }
 0x126   : > { %704 = vmatprep.mubr.bf16.mxu0 %v4709_v0 }
 0x12d   : > { %705 = vmatmul.mubr.bf16.gmra.mrb[80].mxu0 %v332_v48 }
 0x12e   : > { %714 = vmatprep.mubr.bf16.mxu0 %v4709_v0 }
 0x135   : > { %715 = vmatmul.mubr.bf16.gmra.mrb[84].mxu0 %v333_v51 }
 0x136   : > { %724 = vmatprep.mubr.bf16.mxu0 %v4709_v0 }
 0x13d   : > { %725 = vmatmul.mubr.bf16.gmra.mrb[88].mxu0 %v334_v54 }
 0x13e   : > { %734 = vmatprep.mubr.bf16.mxu0 %v4709_v0 }
 0x145   : > { %735 = vmatmul.mubr.bf16.gmra.mrb[92].mxu0 %v335_v57 }
 0x146   : > { %744 = vmatprep.mubr.bf16.mxu0 %v4709_v0 }
 0x14d   : > { %745 = vmatmul.mubr.bf16.gmra.mrb[96].mxu0 %v336_v60 }
 0x14e   : > { %754 = vmatprep.mubr.bf16.mxu0 %v4709_v0 }
 0x155   : > { %755 = vmatmul.mubr.bf16.gmra.mrb[100].mxu0 %v337_v63 }
 0x156   : > { %764 = vmatprep.mubr.bf16.mxu0 %v4709_v0 }
 0x15d   : > { %765 = vmatmul.mubr.bf16.gmra.mrb[104].mxu0 %v338_v3 }
 0x15e   : > { %774 = vmatprep.mubr.bf16.mxu0 %v4709_v0 }
 0x160   : > { %v5017_v6 = vpop.f32.mrb[0].mxu0 }
 0x161   : > { %v953_v7 = vmul.f32 0.70710677, %v5017_v6  ;;  %v5020_v8 = vpop.f32.mrb[1].mxu0  ;;  %v825_v34 = vmul.f32 0.5, %v5017_v6 }
 0x162   : > { %v954_v10 = vmul.f32 0.70710677, %v5020_v8  ;;  %v5023_v11 = vpop.f32.mrb[2].mxu0  ;;  %v826_v39 = vmul.f32 0.5, %v5020_v8 }
 0x163   : > { %4162 = verf.f32 %v953_v7  ;;  %v955_v12 = vmul.f32 0.70710677, %v5023_v11  ;;  %v5026_v13 = vpop.f32.mrb[3].mxu0  ;;  %v827_v35 = vmul.f32 0.5, %v5023_v11 }
 0x164   : > { %4164 = verf.f32 %v954_v10  ;;  %v956_v14 = vmul.f32 0.70710677, %v5026_v13  ;;  %v828_v40 = vmul.f32 0.5, %v5026_v13 }
 0x165   : > { %4166 = verf.f32 %v955_v12  ;;  %775 = vmatmul.mubr.bf16.gmra.mrb[108].mxu0 %v339_v9 }
 0x166   : > { %4168 = verf.f32 %v956_v14  ;;  %784 = vmatprep.mubr.bf16.mxu0 %v4709_v0 }
 0x168   : > { %v5032_v17 = vpop.f32.mrb[4].mxu0 }
 0x169   : > { %v957_v18 = vmul.f32 0.70710677, %v5032_v17  ;;  %v5035_v19 = vpop.f32.mrb[5].mxu0  ;;  %v829_v63 = vmul.f32 0.5, %v5032_v17 }
 0x16a   : > { %v958_v21 = vmul.f32 0.70710677, %v5035_v19  ;;  %v5038_v22 = vpop.f32.mrb[6].mxu0  ;;  %v830_v5 = vmul.f32 0.5, %v5035_v19 }
 0x16b   : > { %4170 = verf.f32 %v957_v18  ;;  %v959_v23 = vmul.f32 0.70710677, %v5038_v22  ;;  %v5041_v24 = vpop.f32.mrb[7].mxu0  ;;  %v831_v1 = vmul.f32 0.5, %v5038_v22 }
 0x16c   : > { %4172 = verf.f32 %v958_v21  ;;  %v960_v25 = vmul.f32 0.70710677, %v5041_v24  ;;  %v832_v7 = vmul.f32 0.5, %v5041_v24 }
 0x16d   : > { %v4163_v26 = vpop.eup %4162  ;;  %4174 = verf.f32 %v959_v23  ;;  %785 = vmatmul.mubr.bf16.gmra.mrb[112].mxu0 %v340_v20 }
 0x16e   : > { %v4165_v29 = vpop.eup %4164  ;;  %v1209_v30 = vadd.f32 1.0, %v4163_v26  ;;  %4176 = verf.f32 %v960_v25  ;;  %794 = vmatprep.mubr.bf16.mxu0 %v4709_v0 }
 0x16f   : > { %v4167_v31 = vpop.eup %4166  ;;  %v1210_v32 = vadd.f32 1.0, %v4165_v29  ;;  %v310_v29 = vld [vmem:[%s4923_s28 + $0x1f0] sm:$0xff] }
 0x170   : > { %v4169_v33 = vpop.eup %4168  ;;  %v1211_v36 = vadd.f32 1.0, %v4167_v31  ;;  %v5049_v37 = vpop.f32.mrb[8].mxu0  ;;  %v5056_v44 = vmul.f32 %v1209_v30, %v825_v34  ;;  %v311_v30 = vld [vmem:[%s4923_s28 + $0x1f8] sm:$0xff] }
 0x171   : > { %v1212_v41 = vadd.f32 1.0, %v4169_v33  ;;  %v961_v42 = vmul.f32 0.70710677, %v5049_v37  ;;  %v5054_v43 = vpop.f32.mrb[9].mxu0  ;;  %v5063_v48 = vmul.f32 %v1210_v32, %v826_v39 }
 0x172   : > { %v5058_v45 = vmul.f32 %v1211_v36, %v827_v35  ;;  %v962_v46 = vmul.f32 0.70710677, %v5054_v43  ;;  %v5061_v47 = vpop.f32.mrb[10].mxu0 }
 0x173   : > { %v5065_v49 = vmul.f32 %v1212_v41, %v828_v40  ;;  %4178 = verf.f32 %v961_v42  ;;  %v963_v50 = vmul.f32 0.70710677, %v5061_v47  ;;  %v5068_v51 = vpop.f32.mrb[11].mxu0  ;;  %v835_v39 = vmul.f32 0.5, %v5061_v47 }
 0x174   : > { %v1465_v52 = vpack.c.bf16 %v5058_v45, %v5056_v44  ;;  %4180 = verf.f32 %v962_v46  ;;  %v964_v53 = vmul.f32 0.70710677, %v5068_v51  ;;  %v343_v42 = vpack.c.bf16 %v311_v30, %v310_v29 }
 0x175   : > { %v4171_v54 = vpop.eup %4170  ;;  %4182 = verf.f32 %v963_v50  ;;  %795 = vmatmul.mubr.bf16.gmra.mrb[116].mxu0 %v341_v38  ;;  %v1466_v57 = vpack.c.bf16 %v5065_v49, %v5063_v48  ;;  %v833_v38 = vmul.f32 0.5, %v5049_v37  ;;  %v834_v46 = vmul.f32 0.5, %v5054_v43 }
 0x176   : > { %v4173_v58 = vpop.eup %4172  ;;  %v1213_v59 = vadd.f32 1.0, %v4171_v54  ;;  %4184 = verf.f32 %v964_v53  ;;  %804 = vmatprep.mubr.bf16.mxu0 %v4709_v0  ;;  %v836_v50 = vmul.f32 0.5, %v5068_v51 }
 0x177   : > { %v4175_v60 = vpop.eup %4174  ;;  %v1214_v61 = vadd.f32 1.0, %v4173_v58 }
 0x178   : > { %v4177_v62 = vpop.eup %4176  ;;  %v1215_v2 = vadd.f32 1.0, %v4175_v60  ;;  %v5080_v3 = vpop.f32.mrb[12].mxu0  ;;  %v5087_v14 = vmul.f32 %v1213_v59, %v829_v63 }
 0x179   : > { %v1216_v9 = vadd.f32 1.0, %v4177_v62  ;;  %v965_v10 = vmul.f32 0.70710677, %v5080_v3  ;;  %v5085_v12 = vpop.f32.mrb[13].mxu0  ;;  %v5094_v20 = vmul.f32 %v1214_v61, %v830_v5 }
 0x17a   : > { %v5089_v15 = vmul.f32 %v1215_v2, %v831_v1  ;;  %v966_v16 = vmul.f32 0.70710677, %v5085_v12  ;;  %v5092_v18 = vpop.f32.mrb[14].mxu0 }
 0x17b   : > { %v5096_v21 = vmul.f32 %v1216_v9, %v832_v7  ;;  %4186 = verf.f32 %v965_v10  ;;  %v967_v23 = vmul.f32 0.70710677, %v5092_v18  ;;  %v5099_v25 = vpop.f32.mrb[15].mxu0 }
 0x17c   : > { %4188 = verf.f32 %v966_v16  ;;  %v968_v26 = vmul.f32 0.70710677, %v5099_v25  ;;  %v1467_v27 = vpack.c.bf16 %v5089_v15, %v5087_v14 }
 0x17d   : > { %v4179_v28 = vpop.eup %4178  ;;  %4190 = verf.f32 %v967_v23  ;;  %805 = vmatmul.mubr.bf16.gmra.mrb[120].mxu0 %v342_v4  ;;  %v1468_v31 = vpack.c.bf16 %v5096_v21, %v5094_v20 }
 0x17e   : > { %v4181_v32 = vpop.eup %4180  ;;  %v1217_v33 = vadd.f32 1.0, %v4179_v28  ;;  %4192 = verf.f32 %v968_v26  ;;  %814 = vmatprep.mubr.bf16.mxu0 %v4709_v0  ;;  %v837_v26 = vmul.f32 0.5, %v5080_v3  ;;  %v839_v28 = vmul.f32 0.5, %v5092_v18 }
 0x17f   : > { %v4183_v34 = vpop.eup %4182  ;;  %v1218_v35 = vadd.f32 1.0, %v4181_v32  ;;  %v838_v32 = vmul.f32 0.5, %v5085_v12 }
 0x180   : > { %v4185_v36 = vpop.eup %4184  ;;  %v1219_v40 = vadd.f32 1.0, %v4183_v34  ;;  %v5111_v41 = vpop.f32.mrb[16].mxu0  ;;  %v1345_v55 = vmul.f32 %v1217_v33, %v833_v38  ;;  %v840_v33 = vmul.f32 0.5, %v5099_v25 }
 0x181   : > { %v969_v53 = vmul.f32 0.70710677, %v5111_v41  ;;  %v5116_v54 = vpop.f32.mrb[17].mxu0  ;;  %v1220_v0 = vadd.f32 1.0, %v4185_v36  ;;  %v1346_v62 = vmul.f32 %v1218_v35, %v834_v46 }
 0x182   : > { %v1347_v56 = vmul.f32 %v1219_v40, %v835_v39  ;;  %v970_v58 = vmul.f32 0.70710677, %v5116_v54  ;;  %v5119_v59 = vpop.f32.mrb[18].mxu0  ;;  %v842_v44 = vmul.f32 0.5, %v5116_v54 }
 0x183   : > { %4194 = verf.f32 %v969_v53  ;;  %v971_v60 = vmul.f32 0.70710677, %v5119_v59  ;;  %v5122_v61 = vpop.f32.mrb[19].mxu0  ;;  %v1348_v63 = vmul.f32 %v1220_v0, %v836_v50 }
 0x184   : > { %4196 = verf.f32 %v970_v58  ;;  %v972_v1 = vmul.f32 0.70710677, %v5122_v61  ;;  %v1469_v2 = vpack.c.bf16 %v1347_v56, %v1345_v55  ;;  %v844_v45 = vmul.f32 0.5, %v5122_v61 }
 0x185   : > { %v4187_v4 = vpop.eup %4186  ;;  %4198 = verf.f32 %v971_v60  ;;  %815 = vmatmul.mubr.bf16.gmra.mrb[124].mxu0 %v343_v42  ;;  %v1470_v5 = vpack.c.bf16 %v1348_v63, %v1346_v62 }
 0x186   : > { %v4189_v7 = vpop.eup %4188  ;;  %v1221_v9 = vadd.f32 1.0, %v4187_v4  ;;  %4200 = verf.f32 %v972_v1  ;;  %1721 = vmatprep.mubr.bf16.mxu0 %v1466_v57  ;;  %v841_v1 = vmul.f32 0.5, %v5111_v41 }
 0x187   : > { %v4191_v10 = vpop.eup %4190  ;;  %v1222_v16 = vadd.f32 1.0, %v4189_v7  ;;  %1741 = vmatprep.mubr.bf16.mxu1 %v1470_v5 }
 0x188   : > { %v4193_v23 = vpop.eup %4192  ;;  %v1223_v29 = vadd.f32 1.0, %v4191_v10  ;;  %v5130_v30 = vpop.f32.mrb[20].mxu0  ;;  %1742 = vmatmul.mubr.bf16.vlgmr.msra.gmra.mrb[0].mxu1 %v1469_v2  ;;  %v1349_v57 = vmul.f32 %v1221_v9, %v837_v26  ;;  %v843_v2 = vmul.f32 0.5, %v5119_v59 }
 0x189   : > { %v1224_v34 = vadd.f32 1.0, %v4193_v23  ;;  %v973_v48 = vmul.f32 0.70710677, %v5130_v30  ;;  %v5135_v49 = vpop.f32.mrb[21].mxu0  ;;  %v1350_v39 = vmul.f32 %v1222_v16, %v838_v32 }
 0x18a   : > { %v1351_v35 = vmul.f32 %v1223_v29, %v839_v28  ;;  %v974_v36 = vmul.f32 0.70710677, %v5135_v49  ;;  %v5138_v38 = vpop.f32.mrb[22].mxu0 }
 0x18b   : > { %v1352_v40 = vmul.f32 %v1224_v34, %v840_v33  ;;  %4202 = verf.f32 %v973_v48  ;;  %v975_v42 = vmul.f32 0.70710677, %v5138_v38  ;;  %v5141_v46 = vpop.f32.mrb[23].mxu0 }
 0x18c   : > { %4204 = verf.f32 %v974_v36  ;;  %v976_v50 = vmul.f32 0.70710677, %v5141_v46  ;;  %v1471_v53 = vpack.c.bf16 %v1351_v35, %v1349_v57  ;;  %v848_v14 = vmul.f32 0.5, %v5141_v46 }
 0x18d   : > { %v4195_v0 = vpop.eup %4194  ;;  %4206 = verf.f32 %v975_v42  ;;  %1722 = vmatmul.mubr.bf16.vlgmr.msra.gmra.mrb[128].mxu0 %v1465_v52  ;;  %v1472_v55 = vpack.c.bf16 %v1352_v40, %v1350_v39  ;;  %v845_v40 = vmul.f32 0.5, %v5130_v30  ;;  %v847_v42 = vmul.f32 0.5, %v5138_v38 }
 0x18e   : > { %v4197_v56 = vpop.eup %4196  ;;  %v1225_v58 = vadd.f32 1.0, %v4195_v0  ;;  %4208 = verf.f32 %v976_v50  ;;  %1731 = vmatprep.mubr.bf16.mxu0 %v1468_v31  ;;  %v846_v0 = vmul.f32 0.5, %v5135_v49 }
 0x18f   : > { %v4199_v60 = vpop.eup %4198  ;;  %v1226_v62 = vadd.f32 1.0, %v4197_v56  ;;  %1751 = vmatprep.mubr.bf16.mxu1 %v1472_v55 }
 0x190   : > { %v4201_v63 = vpop.eup %4200  ;;  %v1227_v4 = vadd.f32 1.0, %v4199_v60  ;;  %v5152_v5 = vpop.f32.mrb[24].mxu0  ;;  %1752 = vmatmul.mubr.bf16.gmra.mrb[4].mxu1 %v1471_v53  ;;  %v1353_v31 = vmul.f32 %v1225_v58, %v841_v1 }
 0x191   : > { %v1228_v52 = vadd.f32 1.0, %v4201_v63  ;;  %v977_v20 = vmul.f32 0.70710677, %v5152_v5  ;;  %v5157_v21 = vpop.f32.mrb[25].mxu0  ;;  %v1354_v16 = vmul.f32 %v1226_v62, %v842_v44 }
 0x192   : > { %v1355_v7 = vmul.f32 %v1227_v4, %v843_v2  ;;  %v978_v9 = vmul.f32 0.70710677, %v5157_v21  ;;  %v5160_v10 = vpop.f32.mrb[26].mxu0 }
 0x193   : > { %v1356_v23 = vmul.f32 %v1228_v52, %v844_v45  ;;  %4210 = verf.f32 %v977_v20  ;;  %v979_v26 = vmul.f32 0.70710677, %v5160_v10  ;;  %v5163_v28 = vpop.f32.mrb[27].mxu0 }
 0x194   : > { %4212 = verf.f32 %v978_v9  ;;  %v980_v29 = vmul.f32 0.70710677, %v5163_v28  ;;  %v1473_v32 = vpack.c.bf16 %v1355_v7, %v1353_v31 }
 0x195   : > { %v4203_v33 = vpop.eup %4202  ;;  %4214 = verf.f32 %v979_v26  ;;  %1732 = vmatmul.mubr.bf16.gmra.mrb[132].mxu0 %v1467_v27  ;;  %v1474_v34 = vpack.c.bf16 %v1356_v23, %v1354_v16  ;;  %v849_v26 = vmul.f32 0.5, %v5152_v5 }
 0x196   : > { %v4205_v48 = vpop.eup %4204  ;;  %v1229_v57 = vadd.f32 1.0, %v4203_v33  ;;  %4216 = verf.f32 %v980_v29  ;;  %v851_v29 = vmul.f32 0.5, %v5160_v10 }
 0x197   : > { %v4207_v35 = vpop.eup %4206  ;;  %v1230_v36 = vadd.f32 1.0, %v4205_v48  ;;  %1761 = vmatprep.mubr.bf16.mxu1 %v1474_v34  ;;  %v850_v34 = vmul.f32 0.5, %v5157_v21  ;;  %v852_v48 = vmul.f32 0.5, %v5163_v28 }
 0x198   : > { %v4209_v39 = vpop.eup %4208  ;;  %v1231_v50 = vadd.f32 1.0, %v4207_v35  ;;  %v5171_v53 = vpop.f32.mrb[28].mxu0  ;;  %1762 = vmatmul.mubr.bf16.gmra.mrb[8].mxu1 %v1473_v32  ;;  %v1357_v56 = vmul.f32 %v1229_v57, %v845_v40 }
 0x199   : > { %v1232_v15 = vadd.f32 1.0, %v4209_v39  ;;  %v981_v27 = vmul.f32 0.70710677, %v5171_v53  ;;  %v5176_v55 = vpop.f32.mrb[29].mxu0  ;;  %v1358_v63 = vmul.f32 %v1230_v36, %v846_v0 }
 0x19a   : > { %v1359_v58 = vmul.f32 %v1231_v50, %v847_v42  ;;  %v982_v60 = vmul.f32 0.70710677, %v5176_v55  ;;  %v5179_v62 = vpop.f32.mrb[30].mxu0 }
 0x19b   : > { %v1360_v1 = vmul.f32 %v1232_v15, %v848_v14  ;;  %4218 = verf.f32 %v981_v27  ;;  %v983_v2 = vmul.f32 0.70710677, %v5179_v62  ;;  %v5182_v4 = vpop.f32.mrb[31].mxu0 }
 0x19c   : > { %4220 = verf.f32 %v982_v60  ;;  %v984_v44 = vmul.f32 0.70710677, %v5182_v4  ;;  %v1475_v45 = vpack.c.bf16 %v1359_v58, %v1357_v56 }
 0x19d   : > { %v4211_v52 = vpop.eup %4210  ;;  %4222 = verf.f32 %v983_v2  ;;  %v1476_v20 = vpack.c.bf16 %v1360_v1, %v1358_v63 }
 0x19e   : > { %v4213_v31 = vpop.eup %4212  ;;  %v1233_v7 = vadd.f32 1.0, %v4211_v52  ;;  %4224 = verf.f32 %v984_v44 }
 0x19f   : > { %v4215_v9 = vpop.eup %4214  ;;  %v1234_v16 = vadd.f32 1.0, %v4213_v31  ;;  %1771 = vmatprep.mubr.bf16.mxu1 %v1476_v20  ;;  %v853_v20 = vmul.f32 0.5, %v5171_v53  ;;  %v855_v31 = vmul.f32 0.5, %v5179_v62 }
 0x1a0   : > { %v4217_v23 = vpop.eup %4216  ;;  %v1235_v32 = vadd.f32 1.0, %v4215_v9  ;;  %v5187_v33 = vpop.f32.mrb[32].mxu0  ;;  %1772 = vmatmul.mubr.bf16.gmra.mrb[12].mxu1 %v1475_v45  ;;  %v1361_v39 = vmul.f32 %v1233_v7, %v849_v26 }
 0x1a1   : > { %v1236_v57 = vadd.f32 1.0, %v4217_v23  ;;  %v985_v35 = vmul.f32 0.70710677, %v5187_v33  ;;  %v5192_v36 = vpop.f32.mrb[33].mxu0  ;;  %v1362_v0 = vmul.f32 %v1234_v16, %v850_v34  ;;  %v854_v16 = vmul.f32 0.5, %v5176_v55 }
 0x1a2   : > { %v1363_v40 = vmul.f32 %v1235_v32, %v851_v29  ;;  %v986_v42 = vmul.f32 0.70710677, %v5192_v36  ;;  %v5195_v50 = vpop.f32.mrb[34].mxu0  ;;  %v856_v23 = vmul.f32 0.5, %v5182_v4 }
 0x1a3   : > { %v1364_v14 = vmul.f32 %v1236_v57, %v852_v48  ;;  %4226 = verf.f32 %v985_v35  ;;  %v987_v15 = vmul.f32 0.70710677, %v5195_v50  ;;  %v5198_v27 = vpop.f32.mrb[35].mxu0 }
 0x1a4   : > { %4228 = verf.f32 %v986_v42  ;;  %v988_v56 = vmul.f32 0.70710677, %v5198_v27  ;;  %v1477_v58 = vpack.c.bf16 %v1363_v40, %v1361_v39 }
 0x1a5   : > { %v4219_v60 = vpop.eup %4218  ;;  %4230 = verf.f32 %v987_v15  ;;  %v1478_v63 = vpack.c.bf16 %v1364_v14, %v1362_v0 }
 0x1a6   : > { %v4221_v1 = vpop.eup %4220  ;;  %v1237_v2 = vadd.f32 1.0, %v4219_v60  ;;  %4232 = verf.f32 %v988_v56 }
 0x1a7   : > { %v4223_v44 = vpop.eup %4222  ;;  %v1238_v45 = vadd.f32 1.0, %v4221_v1  ;;  %1781 = vmatprep.mubr.bf16.mxu1 %v1478_v63 }
 0x1a8   : > { %v4225_v52 = vpop.eup %4224  ;;  %v1239_v7 = vadd.f32 1.0, %v4223_v44  ;;  %v5203_v9 = vpop.f32.mrb[36].mxu0  ;;  %1782 = vmatmul.mubr.bf16.gmra.mrb[16].mxu1 %v1477_v58  ;;  %v1365_v34 = vmul.f32 %v1237_v2, %v853_v20 }
 0x1a9   : > { %v1240_v26 = vadd.f32 1.0, %v4225_v52  ;;  %v989_v29 = vmul.f32 0.70710677, %v5203_v9  ;;  %v5208_v32 = vpop.f32.mrb[37].mxu0  ;;  %v1366_v39 = vmul.f32 %v1238_v45, %v854_v16  ;;  %v857_v45 = vmul.f32 0.5, %v5187_v33 }
 0x1aa   : > { %7911 = vst [vmem:[#allocation12_spill] sm:$0xff] %v5208_v32  ;;  %v1367_v48 = vmul.f32 %v1239_v7, %v855_v31  ;;  %v990_v57 = vmul.f32 0.70710677, %v5208_v32  ;;  %v5211_v35 = vpop.f32.mrb[38].mxu0  ;;  %v859_v52 = vmul.f32 0.5, %v5195_v50  ;;  %v858_v7 = vmul.f32 0.5, %v5192_v36 }
 0x1ab   : > { %7912 = vst [vmem:[#allocation13_spill] sm:$0xff] %v5211_v35  ;;  %v1368_v40 = vmul.f32 %v1240_v26, %v856_v23  ;;  %4234 = verf.f32 %v989_v29  ;;  %v991_v42 = vmul.f32 0.70710677, %v5211_v35  ;;  %v5214_v0 = vpop.f32.mrb[39].mxu0  ;;  %v860_v16 = vmul.f32 0.5, %v5198_v27 }
 0x1ac   : > { %7913 = vst [vmem:[#allocation14_spill] sm:$0xff] %v5214_v0  ;;  %4236 = verf.f32 %v990_v57  ;;  %v992_v14 = vmul.f32 0.70710677, %v5214_v0  ;;  %v1479_v15 = vpack.c.bf16 %v1367_v48, %v1365_v34 }
 0x1ad   : > { %v4227_v56 = vpop.eup %4226  ;;  %4238 = verf.f32 %v991_v42  ;;  %v1480_v58 = vpack.c.bf16 %v1368_v40, %v1366_v39 }
 0x1ae   : > { %v4229_v60 = vpop.eup %4228  ;;  %v1241_v63 = vadd.f32 1.0, %v4227_v56  ;;  %4240 = verf.f32 %v992_v14 }
 0x1af   : > { %v4231_v1 = vpop.eup %4230  ;;  %v1242_v2 = vadd.f32 1.0, %v4229_v60  ;;  %1791 = vmatprep.mubr.bf16.mxu1 %v1480_v58 }
 0x1b0   : > { %v4233_v44 = vpop.eup %4232  ;;  %v1243_v20 = vadd.f32 1.0, %v4231_v1  ;;  %v5219_v31 = vpop.f32.mrb[40].mxu0  ;;  %1792 = vmatmul.mubr.bf16.gmra.mrb[20].mxu1 %v1479_v15  ;;  %v1369_v34 = vmul.f32 %v1241_v63, %v857_v45 }
 0x1b1   : > { %7914 = vst [vmem:[#allocation15_spill] sm:$0xff] %v5219_v31  ;;  %v1244_v23 = vadd.f32 1.0, %v4233_v44  ;;  %v993_v26 = vmul.f32 0.70710677, %v5219_v31  ;;  %v5224_v29 = vpop.f32.mrb[41].mxu0  ;;  %v1370_v40 = vmul.f32 %v1242_v2, %v858_v7  ;;  %v863_v7 = vmul.f32 0.5, %v5211_v35 }
 0x1b2   : > { %7915 = vst [vmem:[#allocation16_spill] sm:$0xff] %v5224_v29  ;;  %v1371_v48 = vmul.f32 %v1243_v20, %v859_v52  ;;  %v994_v57 = vmul.f32 0.70710677, %v5224_v29  ;;  %v5227_v39 = vpop.f32.mrb[42].mxu0  ;;  %v861_v20 = vmul.f32 0.5, %v5203_v9 }
 0x1b3   : > { %7916 = vst [vmem:[#allocation17_spill] sm:$0xff] %v5227_v39  ;;  %v1372_v42 = vmul.f32 %v1244_v23, %v860_v16  ;;  %4242 = verf.f32 %v993_v26  ;;  %v995_v14 = vmul.f32 0.70710677, %v5227_v39  ;;  %v5230_v15 = vpop.f32.mrb[43].mxu0  ;;  %v862_v26 = vmul.f32 0.5, %v5208_v32 }
 0x1b4   : > { %7917 = vst [vmem:[#allocation18_spill] sm:$0xff] %v5230_v15  ;;  %4244 = verf.f32 %v994_v57  ;;  %v996_v56 = vmul.f32 0.70710677, %v5230_v15  ;;  %v1481_v58 = vpack.c.bf16 %v1371_v48, %v1369_v34  ;;  %v864_v34 = vmul.f32 0.5, %v5214_v0 }
 0x1b5   : > { %v4235_v60 = vpop.eup %4234  ;;  %4246 = verf.f32 %v995_v14  ;;  %v1482_v1 = vpack.c.bf16 %v1372_v42, %v1370_v40 }
 0x1b6   : > { %v4237_v63 = vpop.eup %4236  ;;  %v1245_v44 = vadd.f32 1.0, %v4235_v60  ;;  %4248 = verf.f32 %v996_v56 }
 0x1b7   : > { %v4239_v45 = vpop.eup %4238  ;;  %v1246_v52 = vadd.f32 1.0, %v4237_v63  ;;  %1801 = vmatprep.mubr.bf16.mxu1 %v1482_v1 }
 0x1b8   : > { %v4241_v2 = vpop.eup %4240  ;;  %v1247_v16 = vadd.f32 1.0, %v4239_v45  ;;  %v5235_v23 = vpop.f32.mrb[44].mxu0  ;;  %1802 = vmatmul.mubr.bf16.gmra.mrb[24].mxu1 %v1481_v58  ;;  %v1373_v42 = vmul.f32 %v1245_v44, %v861_v20 }
 0x1b9   : > { %7918 = vst [vmem:[#allocation19_spill] sm:$0xff] %v5235_v23  ;;  %v1248_v48 = vadd.f32 1.0, %v4241_v2  ;;  %v997_v57 = vmul.f32 0.70710677, %v5235_v23  ;;  %v5240_v40 = vpop.f32.mrb[45].mxu0  ;;  %v1374_v1 = vmul.f32 %v1246_v52, %v862_v26  ;;  %v865_v26 = vmul.f32 0.5, %v5219_v31 }
 0x1ba   : > { %7919 = vst [vmem:[#allocation20_spill] sm:$0xff] %v5240_v40  ;;  %v1375_v14 = vmul.f32 %v1247_v16, %v863_v7  ;;  %v998_v56 = vmul.f32 0.70710677, %v5240_v40  ;;  %v5243_v60 = vpop.f32.mrb[46].mxu0 }
 0x1bb   : > { %7920 = vst [vmem:[#allocation21_spill] sm:$0xff] %v5243_v60  ;;  %v1376_v63 = vmul.f32 %v1248_v48, %v864_v34  ;;  %4250 = verf.f32 %v997_v57  ;;  %v999_v58 = vmul.f32 0.70710677, %v5243_v60  ;;  %v5246_v45 = vpop.f32.mrb[47].mxu0  ;;  %v867_v34 = vmul.f32 0.5, %v5227_v39 }
 0x1bc   : > { %7921 = vst [vmem:[#allocation22_spill] sm:$0xff] %v5246_v45  ;;  %4252 = verf.f32 %v998_v56  ;;  %v1000_v2 = vmul.f32 0.70710677, %v5246_v45  ;;  %v1483_v0 = vpack.c.bf16 %v1375_v14, %v1373_v42  ;;  %v866_v42 = vmul.f32 0.5, %v5224_v29 }
 0x1bd   : > { %v4243_v35 = vpop.eup %4242  ;;  %4254 = verf.f32 %v999_v58  ;;  %v1484_v32 = vpack.c.bf16 %v1376_v63, %v1374_v1  ;;  %v868_v14 = vmul.f32 0.5, %v5230_v15 }
 0x1be   : > { %v4245_v44 = vpop.eup %4244  ;;  %v1249_v20 = vadd.f32 1.0, %v4243_v35  ;;  %4256 = verf.f32 %v1000_v2 }
 0x1bf   : > { %v4247_v7 = vpop.eup %4246  ;;  %v1250_v16 = vadd.f32 1.0, %v4245_v44  ;;  %1811 = vmatprep.mubr.bf16.mxu1 %v1484_v32 }
 0x1c0   : > { %v4249_v52 = vpop.eup %4248  ;;  %v1251_v48 = vadd.f32 1.0, %v4247_v7  ;;  %v5251_v57 = vpop.f32.mrb[48].mxu0  ;;  %1812 = vmatmul.mubr.bf16.gmra.mrb[28].mxu1 %v1483_v0  ;;  %v1377_v63 = vmul.f32 %v1249_v20, %v865_v26 }
 0x1c1   : > { %7922 = vst [vmem:[#allocation23_spill] sm:$0xff] %v5251_v57  ;;  %v1252_v56 = vadd.f32 1.0, %v4249_v52  ;;  %v1001_v35 = vmul.f32 0.70710677, %v5251_v57  ;;  %v5256_v1 = vpop.f32.mrb[49].mxu0  ;;  %v1378_v44 = vmul.f32 %v1250_v16, %v866_v42  ;;  %v869_v42 = vmul.f32 0.5, %v5235_v23 }
 0x1c2   : > { %7923 = vst [vmem:[#allocation24_spill] sm:$0xff] %v5256_v1  ;;  %v1379_v32 = vmul.f32 %v1251_v48, %v867_v34  ;;  %v1002_v58 = vmul.f32 0.70710677, %v5256_v1  ;;  %v5259_v2 = vpop.f32.mrb[50].mxu0 }
 0x1c3   : > { %7924 = vst [vmem:[#allocation25_spill] sm:$0xff] %v5259_v2  ;;  %v1380_v7 = vmul.f32 %v1252_v56, %v868_v14  ;;  %4258 = verf.f32 %v1001_v35  ;;  %v1003_v0 = vmul.f32 0.70710677, %v5259_v2  ;;  %v5262_v39 = vpop.f32.mrb[51].mxu0  ;;  %v871_v14 = vmul.f32 0.5, %v5243_v60 }
 0x1c4   : > { %7925 = vst [vmem:[#allocation26_spill] sm:$0xff] %v5262_v39  ;;  %4260 = verf.f32 %v1002_v58  ;;  %v1004_v52 = vmul.f32 0.70710677, %v5262_v39  ;;  %v1485_v15 = vpack.c.bf16 %v1379_v32, %v1377_v63  ;;  %v870_v63 = vmul.f32 0.5, %v5240_v40 }
 0x1c5   : > { %v4251_v29 = vpop.eup %4250  ;;  %4262 = verf.f32 %v1003_v0  ;;  %v1486_v31 = vpack.c.bf16 %v1380_v7, %v1378_v44  ;;  %v872_v32 = vmul.f32 0.5, %v5246_v45 }
 0x1c6   : > { %v4253_v20 = vpop.eup %4252  ;;  %v1253_v26 = vadd.f32 1.0, %v4251_v29  ;;  %4264 = verf.f32 %v1004_v52 }
 0x1c7   : > { %v4255_v34 = vpop.eup %4254  ;;  %v1254_v48 = vadd.f32 1.0, %v4253_v20  ;;  %1821 = vmatprep.mubr.bf16.mxu1 %v1486_v31 }
 0x1c8   : > { %v4257_v16 = vpop.eup %4256  ;;  %v1255_v56 = vadd.f32 1.0, %v4255_v34  ;;  %v5267_v35 = vpop.f32.mrb[52].mxu0  ;;  %1822 = vmatmul.mubr.bf16.gmra.mrb[32].mxu1 %v1485_v15  ;;  %v1381_v7 = vmul.f32 %v1253_v26, %v869_v42 }
 0x1c9   : > { %7926 = vst [vmem:[#allocation27_spill] sm:$0xff] %v5267_v35  ;;  %v1256_v58 = vadd.f32 1.0, %v4257_v16  ;;  %v1005_v29 = vmul.f32 0.70710677, %v5267_v35  ;;  %v5272_v44 = vpop.f32.mrb[53].mxu0  ;;  %v1382_v20 = vmul.f32 %v1254_v48, %v870_v63  ;;  %v873_v63 = vmul.f32 0.5, %v5251_v57 }
 0x1ca   : > { %7927 = vst [vmem:[#allocation28_spill] sm:$0xff] %v5272_v44  ;;  %v1383_v31 = vmul.f32 %v1255_v56, %v871_v14  ;;  %v1006_v0 = vmul.f32 0.70710677, %v5272_v44  ;;  %v5275_v52 = vpop.f32.mrb[54].mxu0 }
 0x1cb   : > { %7928 = vst [vmem:[#allocation29_spill] sm:$0xff] %v5275_v52  ;;  %v1384_v34 = vmul.f32 %v1256_v58, %v872_v32  ;;  %4266 = verf.f32 %v1005_v29  ;;  %v1007_v15 = vmul.f32 0.70710677, %v5275_v52  ;;  %v5278_v60 = vpop.f32.mrb[55].mxu0  ;;  %v875_v32 = vmul.f32 0.5, %v5259_v2 }
 0x1cc   : > { %7929 = vst [vmem:[#allocation30_spill] sm:$0xff] %v5278_v60  ;;  %4268 = verf.f32 %v1006_v0  ;;  %v1008_v16 = vmul.f32 0.70710677, %v5278_v60  ;;  %v1487_v45 = vpack.c.bf16 %v1383_v31, %v1381_v7  ;;  %v874_v7 = vmul.f32 0.5, %v5256_v1 }
 0x1cd   : > { %v4259_v40 = vpop.eup %4258  ;;  %4270 = verf.f32 %v1007_v15  ;;  %v1488_v23 = vpack.c.bf16 %v1384_v34, %v1382_v20  ;;  %v876_v31 = vmul.f32 0.5, %v5262_v39 }
 0x1ce   : > { %v4261_v26 = vpop.eup %4260  ;;  %v1257_v42 = vadd.f32 1.0, %v4259_v40  ;;  %4272 = verf.f32 %v1008_v16 }
 0x1cf   : > { %v4263_v14 = vpop.eup %4262  ;;  %v1258_v56 = vadd.f32 1.0, %v4261_v26  ;;  %1831 = vmatprep.mubr.bf16.mxu1 %v1488_v23 }
 0x1d0   : > { %v4265_v48 = vpop.eup %4264  ;;  %v1259_v58 = vadd.f32 1.0, %v4263_v14  ;;  %v5283_v29 = vpop.f32.mrb[56].mxu0  ;;  %1832 = vmatmul.mubr.bf16.gmra.mrb[36].mxu1 %v1487_v45  ;;  %v1385_v34 = vmul.f32 %v1257_v42, %v873_v63 }
 0x1d1   : > { %7930 = vst [vmem:[#allocation31_spill] sm:$0xff] %v5283_v29  ;;  %v1260_v0 = vadd.f32 1.0, %v4265_v48  ;;  %v1009_v40 = vmul.f32 0.70710677, %v5283_v29  ;;  %v5288_v20 = vpop.f32.mrb[57].mxu0  ;;  %v1386_v26 = vmul.f32 %v1258_v56, %v874_v7  ;;  %v877_v7 = vmul.f32 0.5, %v5267_v35 }
 0x1d2   : > { %7931 = vst [vmem:[#allocation32_spill] sm:$0xff] %v5288_v20  ;;  %v1387_v23 = vmul.f32 %v1259_v58, %v875_v32  ;;  %v1010_v15 = vmul.f32 0.70710677, %v5288_v20  ;;  %v5291_v16 = vpop.f32.mrb[58].mxu0 }
 0x1d3   : > { %7932 = vst [vmem:[#allocation33_spill] sm:$0xff] %v5291_v16  ;;  %v1388_v14 = vmul.f32 %v1260_v0, %v876_v31  ;;  %4274 = verf.f32 %v1009_v40  ;;  %v1011_v45 = vmul.f32 0.70710677, %v5291_v16  ;;  %v5294_v2 = vpop.f32.mrb[59].mxu0  ;;  %v879_v31 = vmul.f32 0.5, %v5275_v52 }
 0x1d4   : > { %7933 = vst [vmem:[#allocation34_spill] sm:$0xff] %v5294_v2  ;;  %4276 = verf.f32 %v1010_v15  ;;  %v1012_v48 = vmul.f32 0.70710677, %v5294_v2  ;;  %v1489_v39 = vpack.c.bf16 %v1387_v23, %v1385_v34  ;;  %v878_v34 = vmul.f32 0.5, %v5272_v44 }
 0x1d5   : > { %v4267_v1 = vpop.eup %4266  ;;  %4278 = verf.f32 %v1011_v45  ;;  %v1490_v57 = vpack.c.bf16 %v1388_v14, %v1386_v26  ;;  %v880_v23 = vmul.f32 0.5, %v5278_v60 }
 0x1d6   : > { %v4269_v42 = vpop.eup %4268  ;;  %v1261_v63 = vadd.f32 1.0, %v4267_v1  ;;  %4280 = verf.f32 %v1012_v48 }
 0x1d7   : > { %v4271_v32 = vpop.eup %4270  ;;  %v1262_v58 = vadd.f32 1.0, %v4269_v42  ;;  %1841 = vmatprep.mubr.bf16.mxu1 %v1490_v57 }
 0x1d8   : > { %v4273_v56 = vpop.eup %4272  ;;  %v1263_v0 = vadd.f32 1.0, %v4271_v32  ;;  %v5299_v40 = vpop.f32.mrb[60].mxu0  ;;  %1842 = vmatmul.mubr.bf16.gmra.mrb[40].mxu1 %v1489_v39  ;;  %v1389_v14 = vmul.f32 %v1261_v63, %v877_v7 }
 0x1d9   : > { %7934 = vst [vmem:[#allocation35_spill] sm:$0xff] %v5299_v40  ;;  %v1264_v15 = vadd.f32 1.0, %v4273_v56  ;;  %v1013_v1 = vmul.f32 0.70710677, %v5299_v40  ;;  %v5304_v26 = vpop.f32.mrb[61].mxu0  ;;  %v1390_v42 = vmul.f32 %v1262_v58, %v878_v34  ;;  %v881_v34 = vmul.f32 0.5, %v5283_v29 }
 0x1da   : > { %7935 = vst [vmem:[#allocation36_spill] sm:$0xff] %v5304_v26  ;;  %v1391_v57 = vmul.f32 %v1263_v0, %v879_v31  ;;  %v1014_v45 = vmul.f32 0.70710677, %v5304_v26  ;;  %v5307_v48 = vpop.f32.mrb[62].mxu0 }
 0x1db   : > { %7936 = vst [vmem:[#allocation37_spill] sm:$0xff] %v5307_v48  ;;  %v1392_v32 = vmul.f32 %v1264_v15, %v880_v23  ;;  %4282 = verf.f32 %v1013_v1  ;;  %v1015_v39 = vmul.f32 0.70710677, %v5307_v48  ;;  %v5310_v52 = vpop.f32.mrb[63].mxu0  ;;  %v883_v23 = vmul.f32 0.5, %v5291_v16 }
 0x1dc   : > { %7937 = vst [vmem:[#allocation38_spill] sm:$0xff] %v5310_v52  ;;  %4284 = verf.f32 %v1014_v45  ;;  %v1016_v56 = vmul.f32 0.70710677, %v5310_v52  ;;  %v1491_v60 = vpack.c.bf16 %v1391_v57, %v1389_v14  ;;  %v882_v14 = vmul.f32 0.5, %v5288_v20 }
 0x1dd   : > { %v4275_v44 = vpop.eup %4274  ;;  %4286 = verf.f32 %v1015_v39  ;;  %v1492_v35 = vpack.c.bf16 %v1392_v32, %v1390_v42  ;;  %v884_v57 = vmul.f32 0.5, %v5294_v2 }
 0x1de   : > { %v4277_v63 = vpop.eup %4276  ;;  %v1265_v7 = vadd.f32 1.0, %v4275_v44  ;;  %4288 = verf.f32 %v1016_v56 }
 0x1df   : > { %v4279_v31 = vpop.eup %4278  ;;  %v1266_v0 = vadd.f32 1.0, %v4277_v63  ;;  %1851 = vmatprep.mubr.bf16.mxu1 %v1492_v35 }
 0x1e0   : > { %v4281_v58 = vpop.eup %4280  ;;  %v1267_v15 = vadd.f32 1.0, %v4279_v31  ;;  %v5315_v1 = vpop.f32.mrb[64].mxu0  ;;  %1852 = vmatmul.mubr.bf16.gmra.mrb[44].mxu1 %v1491_v60  ;;  %v1393_v32 = vmul.f32 %v1265_v7, %v881_v34 }
 0x1e1   : > { %7938 = vst [vmem:[#allocation39_spill] sm:$0xff] %v5315_v1  ;;  %v1268_v45 = vadd.f32 1.0, %v4281_v58  ;;  %v1017_v44 = vmul.f32 0.70710677, %v5315_v1  ;;  %v5320_v42 = vpop.f32.mrb[65].mxu0  ;;  %v1394_v63 = vmul.f32 %v1266_v0, %v882_v14  ;;  %v885_v14 = vmul.f32 0.5, %v5299_v40 }
 0x1e2   : > { %7939 = vst [vmem:[#allocation40_spill] sm:$0xff] %v5320_v42  ;;  %v1395_v35 = vmul.f32 %v1267_v15, %v883_v23  ;;  %v1018_v39 = vmul.f32 0.70710677, %v5320_v42  ;;  %v5323_v56 = vpop.f32.mrb[66].mxu0 }
 0x1e3   : > { %7940 = vst [vmem:[#allocation41_spill] sm:$0xff] %v5323_v56  ;;  %v1396_v31 = vmul.f32 %v1268_v45, %v884_v57  ;;  %4290 = verf.f32 %v1017_v44  ;;  %v1019_v60 = vmul.f32 0.70710677, %v5323_v56  ;;  %v5326_v16 = vpop.f32.mrb[67].mxu0  ;;  %v887_v57 = vmul.f32 0.5, %v5307_v48 }
 0x1e4   : > { %7941 = vst [vmem:[#allocation42_spill] sm:$0xff] %v5326_v16  ;;  %4292 = verf.f32 %v1018_v39  ;;  %v1020_v58 = vmul.f32 0.70710677, %v5326_v16  ;;  %v1493_v2 = vpack.c.bf16 %v1395_v35, %v1393_v32  ;;  %v886_v32 = vmul.f32 0.5, %v5304_v26 }
 0x1e5   : > { %v4283_v20 = vpop.eup %4282  ;;  %4294 = verf.f32 %v1019_v60  ;;  %v1494_v29 = vpack.c.bf16 %v1396_v31, %v1394_v63  ;;  %v888_v35 = vmul.f32 0.5, %v5310_v52 }
 0x1e6   : > { %v4285_v7 = vpop.eup %4284  ;;  %v1269_v34 = vadd.f32 1.0, %v4283_v20  ;;  %4296 = verf.f32 %v1020_v58 }
 0x1e7   : > { %v4287_v23 = vpop.eup %4286  ;;  %v1270_v15 = vadd.f32 1.0, %v4285_v7  ;;  %1861 = vmatprep.mubr.bf16.mxu1 %v1494_v29 }
 0x1e8   : > { %v4289_v0 = vpop.eup %4288  ;;  %v1271_v45 = vadd.f32 1.0, %v4287_v23  ;;  %v5331_v44 = vpop.f32.mrb[68].mxu0  ;;  %1862 = vmatmul.mubr.bf16.gmra.mrb[48].mxu1 %v1493_v2  ;;  %v1397_v31 = vmul.f32 %v1269_v34, %v885_v14 }
 0x1e9   : > { %7942 = vst [vmem:[#allocation43_spill] sm:$0xff] %v5331_v44  ;;  %v1272_v39 = vadd.f32 1.0, %v4289_v0  ;;  %v1021_v20 = vmul.f32 0.70710677, %v5331_v44  ;;  %v5336_v63 = vpop.f32.mrb[69].mxu0  ;;  %v1398_v7 = vmul.f32 %v1270_v15, %v886_v32  ;;  %v889_v32 = vmul.f32 0.5, %v5315_v1 }
 0x1ea   : > { %7943 = vst [vmem:[#allocation44_spill] sm:$0xff] %v5336_v63  ;;  %v1399_v29 = vmul.f32 %v1271_v45, %v887_v57  ;;  %v1022_v60 = vmul.f32 0.70710677, %v5336_v63  ;;  %v5339_v58 = vpop.f32.mrb[70].mxu0 }
 0x1eb   : > { %7944 = vst [vmem:[#allocation45_spill] sm:$0xff] %v5339_v58  ;;  %v1400_v23 = vmul.f32 %v1272_v39, %v888_v35  ;;  %4298 = verf.f32 %v1021_v20  ;;  %v1023_v2 = vmul.f32 0.70710677, %v5339_v58  ;;  %v5342_v48 = vpop.f32.mrb[71].mxu0  ;;  %v891_v35 = vmul.f32 0.5, %v5323_v56 }
 0x1ec   : > { %7945 = vst [vmem:[#allocation46_spill] sm:$0xff] %v5342_v48  ;;  %4300 = verf.f32 %v1022_v60  ;;  %v1024_v0 = vmul.f32 0.70710677, %v5342_v48  ;;  %v1495_v52 = vpack.c.bf16 %v1399_v29, %v1397_v31  ;;  %v890_v31 = vmul.f32 0.5, %v5320_v42 }
 0x1ed   : > { %v4291_v26 = vpop.eup %4290  ;;  %4302 = verf.f32 %v1023_v2  ;;  %v1496_v40 = vpack.c.bf16 %v1400_v23, %v1398_v7  ;;  %v892_v29 = vmul.f32 0.5, %v5326_v16 }
 0x1ee   : > { %v4293_v34 = vpop.eup %4292  ;;  %v1273_v14 = vadd.f32 1.0, %v4291_v26  ;;  %4304 = verf.f32 %v1024_v0 }
 0x1ef   : > { %v4295_v57 = vpop.eup %4294  ;;  %v1274_v45 = vadd.f32 1.0, %v4293_v34  ;;  %1871 = vmatprep.mubr.bf16.mxu1 %v1496_v40 }
 0x1f0   : > { %v4297_v15 = vpop.eup %4296  ;;  %v1275_v39 = vadd.f32 1.0, %v4295_v57  ;;  %v5347_v20 = vpop.f32.mrb[72].mxu0  ;;  %1872 = vmatmul.mubr.bf16.gmra.mrb[52].mxu1 %v1495_v52  ;;  %v1401_v23 = vmul.f32 %v1273_v14, %v889_v32 }
 0x1f1   : > { %7946 = vst [vmem:[#allocation47_spill] sm:$0xff] %v5347_v20  ;;  %v1276_v60 = vadd.f32 1.0, %v4297_v15  ;;  %v1025_v26 = vmul.f32 0.70710677, %v5347_v20  ;;  %v5352_v7 = vpop.f32.mrb[73].mxu0  ;;  %v1402_v34 = vmul.f32 %v1274_v45, %v890_v31  ;;  %v893_v31 = vmul.f32 0.5, %v5331_v44 }
 0x1f2   : > { %7947 = vst [vmem:[#allocation48_spill] sm:$0xff] %v5352_v7  ;;  %v1403_v40 = vmul.f32 %v1275_v39, %v891_v35  ;;  %v1026_v2 = vmul.f32 0.70710677, %v5352_v7  ;;  %v5355_v0 = vpop.f32.mrb[74].mxu0 }
 0x1f3   : > { %7948 = vst [vmem:[#allocation49_spill] sm:$0xff] %v5355_v0  ;;  %v1404_v57 = vmul.f32 %v1276_v60, %v892_v29  ;;  %4306 = verf.f32 %v1025_v26  ;;  %v1027_v52 = vmul.f32 0.70710677, %v5355_v0  ;;  %v5358_v56 = vpop.f32.mrb[75].mxu0  ;;  %v895_v29 = vmul.f32 0.5, %v5339_v58 }
 0x1f4   : > { %7949 = vst [vmem:[#allocation50_spill] sm:$0xff] %v5358_v56  ;;  %4308 = verf.f32 %v1026_v2  ;;  %v1028_v15 = vmul.f32 0.70710677, %v5358_v56  ;;  %v1497_v16 = vpack.c.bf16 %v1403_v40, %v1401_v23  ;;  %v894_v23 = vmul.f32 0.5, %v5336_v63 }
 0x1f5   : > { %v4299_v42 = vpop.eup %4298  ;;  %4310 = verf.f32 %v1027_v52  ;;  %v1498_v1 = vpack.c.bf16 %v1404_v57, %v1402_v34  ;;  %v896_v40 = vmul.f32 0.5, %v5342_v48 }
 0x1f6   : > { %v4301_v14 = vpop.eup %4300  ;;  %v1277_v32 = vadd.f32 1.0, %v4299_v42  ;;  %4312 = verf.f32 %v1028_v15 }
 0x1f7   : > { %v4303_v35 = vpop.eup %4302  ;;  %v1278_v39 = vadd.f32 1.0, %v4301_v14  ;;  %1881 = vmatprep.mubr.bf16.mxu1 %v1498_v1 }
 0x1f8   : > { %v4305_v45 = vpop.eup %4304  ;;  %v1279_v60 = vadd.f32 1.0, %v4303_v35  ;;  %v5363_v26 = vpop.f32.mrb[76].mxu0  ;;  %1882 = vmatmul.mubr.bf16.gmra.mrb[56].mxu1 %v1497_v16  ;;  %v1405_v57 = vmul.f32 %v1277_v32, %v893_v31 }
 0x1f9   : > { %7950 = vst [vmem:[#allocation51_spill] sm:$0xff] %v5363_v26  ;;  %v1280_v2 = vadd.f32 1.0, %v4305_v45  ;;  %v1029_v42 = vmul.f32 0.70710677, %v5363_v26  ;;  %v5368_v34 = vpop.f32.mrb[77].mxu0  ;;  %v1406_v14 = vmul.f32 %v1278_v39, %v894_v23  ;;  %v897_v23 = vmul.f32 0.5, %v5347_v20 }
 0x1fa   : > { %7951 = vst [vmem:[#allocation52_spill] sm:$0xff] %v5368_v34  ;;  %v1407_v1 = vmul.f32 %v1279_v60, %v895_v29  ;;  %v1030_v52 = vmul.f32 0.70710677, %v5368_v34  ;;  %v5371_v15 = vpop.f32.mrb[78].mxu0 }
 0x1fb   : > { %7952 = vst [vmem:[#allocation53_spill] sm:$0xff] %v5371_v15  ;;  %v1408_v35 = vmul.f32 %v1280_v2, %v896_v40  ;;  %4314 = verf.f32 %v1029_v42  ;;  %v1031_v16 = vmul.f32 0.70710677, %v5371_v15  ;;  %v5374_v58 = vpop.f32.mrb[79].mxu0  ;;  %v899_v40 = vmul.f32 0.5, %v5355_v0 }
 0x1fc   : > { %7953 = vst [vmem:[#allocation54_spill] sm:$0xff] %v5374_v58  ;;  %4316 = verf.f32 %v1030_v52  ;;  %v1032_v45 = vmul.f32 0.70710677, %v5374_v58  ;;  %v1499_v48 = vpack.c.bf16 %v1407_v1, %v1405_v57  ;;  %v898_v57 = vmul.f32 0.5, %v5352_v7 }
 0x1fd   : > { %v4307_v63 = vpop.eup %4306  ;;  %4318 = verf.f32 %v1031_v16  ;;  %v1500_v44 = vpack.c.bf16 %v1408_v35, %v1406_v14  ;;  %v900_v1 = vmul.f32 0.5, %v5358_v56 }
 0x1fe   : > { %v4309_v32 = vpop.eup %4308  ;;  %v1281_v31 = vadd.f32 1.0, %v4307_v63  ;;  %4320 = verf.f32 %v1032_v45 }
 0x1ff   : > { %v4311_v29 = vpop.eup %4310  ;;  %v1282_v60 = vadd.f32 1.0, %v4309_v32  ;;  %1891 = vmatprep.mubr.bf16.mxu1 %v1500_v44 }
 0x200   : > { %v4313_v39 = vpop.eup %4312  ;;  %v1283_v2 = vadd.f32 1.0, %v4311_v29  ;;  %v5379_v42 = vpop.f32.mrb[80].mxu0  ;;  %1892 = vmatmul.mubr.bf16.gmra.mrb[60].mxu1 %v1499_v48  ;;  %v1409_v35 = vmul.f32 %v1281_v31, %v897_v23 }
 0x201   : > { %7954 = vst [vmem:[#allocation55_spill] sm:$0xff] %v5379_v42  ;;  %v1284_v52 = vadd.f32 1.0, %v4313_v39  ;;  %v1033_v63 = vmul.f32 0.70710677, %v5379_v42  ;;  %v5384_v14 = vpop.f32.mrb[81].mxu0  ;;  %v1410_v32 = vmul.f32 %v1282_v60, %v898_v57  ;;  %v901_v57 = vmul.f32 0.5, %v5363_v26 }
 0x202   : > { %7955 = vst [vmem:[#allocation56_spill] sm:$0xff] %v5384_v14  ;;  %v1411_v44 = vmul.f32 %v1283_v2, %v899_v40  ;;  %v1034_v16 = vmul.f32 0.70710677, %v5384_v14  ;;  %v5387_v45 = vpop.f32.mrb[82].mxu0 }
 0x203   : > { %7956 = vst [vmem:[#allocation57_spill] sm:$0xff] %v5387_v45  ;;  %v1412_v29 = vmul.f32 %v1284_v52, %v900_v1  ;;  %4322 = verf.f32 %v1033_v63  ;;  %v1035_v48 = vmul.f32 0.70710677, %v5387_v45  ;;  %v5390_v0 = vpop.f32.mrb[83].mxu0  ;;  %v903_v1 = vmul.f32 0.5, %v5371_v15 }
 0x204   : > { %7957 = vst [vmem:[#allocation58_spill] sm:$0xff] %v5390_v0  ;;  %4324 = verf.f32 %v1034_v16  ;;  %v1036_v39 = vmul.f32 0.70710677, %v5390_v0  ;;  %v1501_v56 = vpack.c.bf16 %v1411_v44, %v1409_v35  ;;  %v902_v35 = vmul.f32 0.5, %v5368_v34 }
 0x205   : > { %v4315_v7 = vpop.eup %4314  ;;  %4326 = verf.f32 %v1035_v48  ;;  %v1502_v20 = vpack.c.bf16 %v1412_v29, %v1410_v32  ;;  %v904_v44 = vmul.f32 0.5, %v5374_v58 }
 0x206   : > { %v4317_v31 = vpop.eup %4316  ;;  %v1285_v23 = vadd.f32 1.0, %v4315_v7  ;;  %4328 = verf.f32 %v1036_v39 }
 0x207   : > { %v4319_v40 = vpop.eup %4318  ;;  %v1286_v2 = vadd.f32 1.0, %v4317_v31  ;;  %1901 = vmatprep.mubr.bf16.mxu1 %v1502_v20 }
 0x208   : > { %v4321_v60 = vpop.eup %4320  ;;  %v1287_v52 = vadd.f32 1.0, %v4319_v40  ;;  %v5395_v63 = vpop.f32.mrb[84].mxu0  ;;  %1902 = vmatmul.mubr.bf16.gmra.mrb[64].mxu1 %v1501_v56  ;;  %v1413_v29 = vmul.f32 %v1285_v23, %v901_v57 }
 0x209   : > { %7958 = vst [vmem:[#allocation59_spill] sm:$0xff] %v5395_v63  ;;  %v1288_v16 = vadd.f32 1.0, %v4321_v60  ;;  %v1037_v7 = vmul.f32 0.70710677, %v5395_v63  ;;  %v5400_v32 = vpop.f32.mrb[85].mxu0  ;;  %v1414_v31 = vmul.f32 %v1286_v2, %v902_v35  ;;  %v905_v35 = vmul.f32 0.5, %v5379_v42 }
 0x20a   : > { %7959 = vst [vmem:[#allocation60_spill] sm:$0xff] %v5400_v32  ;;  %v1415_v20 = vmul.f32 %v1287_v52, %v903_v1  ;;  %v1038_v48 = vmul.f32 0.70710677, %v5400_v32  ;;  %v5403_v39 = vpop.f32.mrb[86].mxu0 }
 0x20b   : > { %7960 = vst [vmem:[#allocation61_spill] sm:$0xff] %v5403_v39  ;;  %v1416_v40 = vmul.f32 %v1288_v16, %v904_v44  ;;  %4330 = verf.f32 %v1037_v7  ;;  %v1039_v56 = vmul.f32 0.70710677, %v5403_v39  ;;  %v5406_v15 = vpop.f32.mrb[87].mxu0  ;;  %v907_v44 = vmul.f32 0.5, %v5387_v45 }
 0x20c   : > { %7961 = vst [vmem:[#allocation62_spill] sm:$0xff] %v5406_v15  ;;  %4332 = verf.f32 %v1038_v48  ;;  %v1040_v60 = vmul.f32 0.70710677, %v5406_v15  ;;  %v1503_v58 = vpack.c.bf16 %v1415_v20, %v1413_v29  ;;  %v906_v29 = vmul.f32 0.5, %v5384_v14 }
 0x20d   : > { %v4323_v34 = vpop.eup %4322  ;;  %4334 = verf.f32 %v1039_v56  ;;  %v1504_v26 = vpack.c.bf16 %v1416_v40, %v1414_v31  ;;  %v908_v20 = vmul.f32 0.5, %v5390_v0 }
 0x20e   : > { %v4325_v23 = vpop.eup %4324  ;;  %v1289_v57 = vadd.f32 1.0, %v4323_v34  ;;  %4336 = verf.f32 %v1040_v60 }
 0x20f   : > { %v4327_v1 = vpop.eup %4326  ;;  %v1290_v52 = vadd.f32 1.0, %v4325_v23  ;;  %1911 = vmatprep.mubr.bf16.mxu1 %v1504_v26 }
 0x210   : > { %v4329_v2 = vpop.eup %4328  ;;  %v1291_v16 = vadd.f32 1.0, %v4327_v1  ;;  %v5411_v7 = vpop.f32.mrb[88].mxu0  ;;  %1912 = vmatmul.mubr.bf16.gmra.mrb[68].mxu1 %v1503_v58  ;;  %v1417_v40 = vmul.f32 %v1289_v57, %v905_v35 }
 0x211   : > { %7962 = vst [vmem:[#allocation63_spill] sm:$0xff] %v5411_v7  ;;  %v1292_v48 = vadd.f32 1.0, %v4329_v2  ;;  %v1041_v34 = vmul.f32 0.70710677, %v5411_v7  ;;  %v5416_v31 = vpop.f32.mrb[89].mxu0  ;;  %v1418_v23 = vmul.f32 %v1290_v52, %v906_v29  ;;  %v909_v29 = vmul.f32 0.5, %v5395_v63 }
 0x212   : > { %7963 = vst [vmem:[#allocation64_spill] sm:$0xff] %v5416_v31  ;;  %v1419_v26 = vmul.f32 %v1291_v16, %v907_v44  ;;  %v1042_v56 = vmul.f32 0.70710677, %v5416_v31  ;;  %v5419_v60 = vpop.f32.mrb[90].mxu0 }
 0x213   : > { %7964 = vst [vmem:[#allocation65_spill] sm:$0xff] %v5419_v60  ;;  %v1420_v1 = vmul.f32 %v1292_v48, %v908_v20  ;;  %4338 = verf.f32 %v1041_v34  ;;  %v1043_v58 = vmul.f32 0.70710677, %v5419_v60  ;;  %v5422_v45 = vpop.f32.mrb[91].mxu0  ;;  %v911_v20 = vmul.f32 0.5, %v5403_v39 }
 0x214   : > { %7965 = vst [vmem:[#allocation66_spill] sm:$0xff] %v5422_v45  ;;  %4340 = verf.f32 %v1042_v56  ;;  %v1044_v2 = vmul.f32 0.70710677, %v5422_v45  ;;  %v1505_v0 = vpack.c.bf16 %v1419_v26, %v1417_v40  ;;  %v910_v40 = vmul.f32 0.5, %v5400_v32 }
 0x215   : > { %v4331_v14 = vpop.eup %4330  ;;  %4342 = verf.f32 %v1043_v58  ;;  %v1506_v42 = vpack.c.bf16 %v1420_v1, %v1418_v23  ;;  %v912_v26 = vmul.f32 0.5, %v5406_v15 }
 0x216   : > { %v4333_v57 = vpop.eup %4332  ;;  %v1293_v35 = vadd.f32 1.0, %v4331_v14  ;;  %4344 = verf.f32 %v1044_v2 }
 0x217   : > { %v4335_v44 = vpop.eup %4334  ;;  %v1294_v16 = vadd.f32 1.0, %v4333_v57  ;;  %1921 = vmatprep.mubr.bf16.mxu1 %v1506_v42 }
 0x218   : > { %v4337_v52 = vpop.eup %4336  ;;  %v1295_v48 = vadd.f32 1.0, %v4335_v44  ;;  %v5427_v34 = vpop.f32.mrb[92].mxu0  ;;  %1922 = vmatmul.mubr.bf16.gmra.mrb[72].mxu1 %v1505_v0  ;;  %v1421_v1 = vmul.f32 %v1293_v35, %v909_v29 }
 0x219   : > { %7966 = vst [vmem:[#allocation67_spill] sm:$0xff] %v5427_v34  ;;  %v1296_v56 = vadd.f32 1.0, %v4337_v52  ;;  %v1045_v14 = vmul.f32 0.70710677, %v5427_v34  ;;  %v5432_v23 = vpop.f32.mrb[93].mxu0  ;;  %v1422_v57 = vmul.f32 %v1294_v16, %v910_v40  ;;  %v913_v40 = vmul.f32 0.5, %v5411_v7 }
 0x21a   : > { %7967 = vst [vmem:[#allocation68_spill] sm:$0xff] %v5432_v23  ;;  %v1423_v42 = vmul.f32 %v1295_v48, %v911_v20  ;;  %v1046_v58 = vmul.f32 0.70710677, %v5432_v23  ;;  %v5435_v2 = vpop.f32.mrb[94].mxu0 }
 0x21b   : > { %7968 = vst [vmem:[#allocation69_spill] sm:$0xff] %v5435_v2  ;;  %v1424_v44 = vmul.f32 %v1296_v56, %v912_v26  ;;  %4346 = verf.f32 %v1045_v14  ;;  %v1047_v0 = vmul.f32 0.70710677, %v5435_v2  ;;  %v5438_v39 = vpop.f32.mrb[95].mxu0  ;;  %v915_v26 = vmul.f32 0.5, %v5419_v60 }
 0x21c   : > { %7969 = vst [vmem:[#allocation70_spill] sm:$0xff] %v5438_v39  ;;  %4348 = verf.f32 %v1046_v58  ;;  %v1048_v52 = vmul.f32 0.70710677, %v5438_v39  ;;  %v1507_v15 = vpack.c.bf16 %v1423_v42, %v1421_v1  ;;  %v914_v1 = vmul.f32 0.5, %v5416_v31 }
 0x21d   : > { %v4339_v32 = vpop.eup %4338  ;;  %4350 = verf.f32 %v1047_v0  ;;  %v1508_v63 = vpack.c.bf16 %v1424_v44, %v1422_v57  ;;  %v916_v42 = vmul.f32 0.5, %v5422_v45 }
 0x21e   : > { %v4341_v35 = vpop.eup %4340  ;;  %v1297_v29 = vadd.f32 1.0, %v4339_v32  ;;  %4352 = verf.f32 %v1048_v52 }
 0x21f   : > { %v4343_v20 = vpop.eup %4342  ;;  %v1298_v48 = vadd.f32 1.0, %v4341_v35  ;;  %1931 = vmatprep.mubr.bf16.mxu1 %v1508_v63 }
 0x220   : > { %v4345_v16 = vpop.eup %4344  ;;  %v1299_v56 = vadd.f32 1.0, %v4343_v20  ;;  %v5443_v14 = vpop.f32.mrb[96].mxu0  ;;  %1932 = vmatmul.mubr.bf16.gmra.mrb[76].mxu1 %v1507_v15  ;;  %v1425_v44 = vmul.f32 %v1297_v29, %v913_v40 }
 0x221   : > { %7970 = vst [vmem:[#allocation71_spill] sm:$0xff] %v5443_v14  ;;  %v1300_v58 = vadd.f32 1.0, %v4345_v16  ;;  %v1049_v32 = vmul.f32 0.70710677, %v5443_v14  ;;  %v5448_v57 = vpop.f32.mrb[97].mxu0  ;;  %v1426_v35 = vmul.f32 %v1298_v48, %v914_v1  ;;  %v917_v1 = vmul.f32 0.5, %v5427_v34 }
 0x222   : > { %7971 = vst [vmem:[#allocation72_spill] sm:$0xff] %v5448_v57  ;;  %v1427_v63 = vmul.f32 %v1299_v56, %v915_v26  ;;  %v1050_v0 = vmul.f32 0.70710677, %v5448_v57  ;;  %v5451_v52 = vpop.f32.mrb[98].mxu0 }
 0x223   : > { %7972 = vst [vmem:[#allocation73_spill] sm:$0xff] %v5451_v52  ;;  %v1428_v20 = vmul.f32 %v1300_v58, %v916_v42  ;;  %4354 = verf.f32 %v1049_v32  ;;  %v1051_v15 = vmul.f32 0.70710677, %v5451_v52  ;;  %v5454_v60 = vpop.f32.mrb[99].mxu0  ;;  %v919_v42 = vmul.f32 0.5, %v5435_v2 }
 0x224   : > { %7973 = vst [vmem:[#allocation74_spill] sm:$0xff] %v5454_v60  ;;  %4356 = verf.f32 %v1050_v0  ;;  %v1052_v16 = vmul.f32 0.70710677, %v5454_v60  ;;  %v1509_v45 = vpack.c.bf16 %v1427_v63, %v1425_v44  ;;  %v918_v44 = vmul.f32 0.5, %v5432_v23 }
 0x225   : > { %v4347_v31 = vpop.eup %4346  ;;  %4358 = verf.f32 %v1051_v15  ;;  %v1510_v7 = vpack.c.bf16 %v1428_v20, %v1426_v35  ;;  %v920_v63 = vmul.f32 0.5, %v5438_v39 }
 0x226   : > { %v4349_v29 = vpop.eup %4348  ;;  %v1301_v40 = vadd.f32 1.0, %v4347_v31  ;;  %4360 = verf.f32 %v1052_v16 }
 0x227   : > { %v4351_v26 = vpop.eup %4350  ;;  %v1302_v56 = vadd.f32 1.0, %v4349_v29  ;;  %1941 = vmatprep.mubr.bf16.mxu1 %v1510_v7 }
 0x228   : > { %v4353_v48 = vpop.eup %4352  ;;  %v1303_v58 = vadd.f32 1.0, %v4351_v26  ;;  %v5459_v32 = vpop.f32.mrb[100].mxu0  ;;  %1942 = vmatmul.mubr.bf16.gmra.mrb[80].mxu1 %v1509_v45  ;;  %v1429_v20 = vmul.f32 %v1301_v40, %v917_v1 }
 0x229   : > { %7974 = vst [vmem:[#allocation75_spill] sm:$0xff] %v5459_v32  ;;  %v1304_v0 = vadd.f32 1.0, %v4353_v48  ;;  %v1053_v31 = vmul.f32 0.70710677, %v5459_v32  ;;  %v5464_v35 = vpop.f32.mrb[101].mxu0  ;;  %v1430_v29 = vmul.f32 %v1302_v56, %v918_v44  ;;  %v921_v44 = vmul.f32 0.5, %v5443_v14 }
 0x22a   : > { %7975 = vst [vmem:[#allocation76_spill] sm:$0xff] %v5464_v35  ;;  %v1431_v7 = vmul.f32 %v1303_v58, %v919_v42  ;;  %v1054_v15 = vmul.f32 0.70710677, %v5464_v35  ;;  %v5467_v16 = vpop.f32.mrb[102].mxu0 }
 0x22b   : > { %7976 = vst [vmem:[#allocation77_spill] sm:$0xff] %v5467_v16  ;;  %v1432_v26 = vmul.f32 %v1304_v0, %v920_v63  ;;  %4362 = verf.f32 %v1053_v31  ;;  %v1055_v45 = vmul.f32 0.70710677, %v5467_v16  ;;  %v5470_v2 = vpop.f32.mrb[103].mxu0  ;;  %v923_v63 = vmul.f32 0.5, %v5451_v52 }
 0x22c   : > { %7977 = vst [vmem:[#allocation78_spill] sm:$0xff] %v5470_v2  ;;  %4364 = verf.f32 %v1054_v15  ;;  %v1056_v48 = vmul.f32 0.70710677, %v5470_v2  ;;  %v1511_v39 = vpack.c.bf16 %v1431_v7, %v1429_v20  ;;  %v922_v20 = vmul.f32 0.5, %v5448_v57 }
 0x22d   : > { %v4355_v23 = vpop.eup %4354  ;;  %4366 = verf.f32 %v1055_v45  ;;  %v1512_v34 = vpack.c.bf16 %v1432_v26, %v1430_v29  ;;  %v924_v7 = vmul.f32 0.5, %v5454_v60 }
 0x22e   : > { %v4357_v40 = vpop.eup %4356  ;;  %v1305_v1 = vadd.f32 1.0, %v4355_v23  ;;  %4368 = verf.f32 %v1056_v48 }
 0x22f   : > { %v4359_v42 = vpop.eup %4358  ;;  %v1306_v58 = vadd.f32 1.0, %v4357_v40  ;;  %1951 = vmatprep.mubr.bf16.mxu1 %v1512_v34 }
 0x230   : > { %v4361_v56 = vpop.eup %4360  ;;  %v1307_v0 = vadd.f32 1.0, %v4359_v42  ;;  %v5475_v31 = vpop.f32.mrb[104].mxu0  ;;  %1952 = vmatmul.mubr.bf16.gmra.mrb[84].mxu1 %v1511_v39  ;;  %v1433_v26 = vmul.f32 %v1305_v1, %v921_v44 }
 0x231   : > { %7978 = vst [vmem:[#allocation79_spill] sm:$0xff] %v5475_v31  ;;  %v1308_v15 = vadd.f32 1.0, %v4361_v56  ;;  %v1057_v23 = vmul.f32 0.70710677, %v5475_v31  ;;  %v5480_v29 = vpop.f32.mrb[105].mxu0  ;;  %v1434_v40 = vmul.f32 %v1306_v58, %v922_v20  ;;  %v925_v20 = vmul.f32 0.5, %v5459_v32 }
 0x232   : > { %7979 = vst [vmem:[#allocation80_spill] sm:$0xff] %v5480_v29  ;;  %v1435_v34 = vmul.f32 %v1307_v0, %v923_v63  ;;  %v1058_v45 = vmul.f32 0.70710677, %v5480_v29  ;;  %v5483_v48 = vpop.f32.mrb[106].mxu0 }
 0x233   : > { %7980 = vst [vmem:[#allocation81_spill] sm:$0xff] %v5483_v48  ;;  %v1436_v42 = vmul.f32 %v1308_v15, %v924_v7  ;;  %4370 = verf.f32 %v1057_v23  ;;  %v1059_v39 = vmul.f32 0.70710677, %v5483_v48  ;;  %v5486_v52 = vpop.f32.mrb[107].mxu0  ;;  %v927_v7 = vmul.f32 0.5, %v5467_v16 }
 0x234   : > { %7981 = vst [vmem:[#allocation82_spill] sm:$0xff] %v5486_v52  ;;  %4372 = verf.f32 %v1058_v45  ;;  %v1060_v56 = vmul.f32 0.70710677, %v5486_v52  ;;  %v1513_v60 = vpack.c.bf16 %v1435_v34, %v1433_v26  ;;  %v926_v26 = vmul.f32 0.5, %v5464_v35 }
 0x235   : > { %v4363_v57 = vpop.eup %4362  ;;  %4374 = verf.f32 %v1059_v39  ;;  %v1514_v14 = vpack.c.bf16 %v1436_v42, %v1434_v40  ;;  %v928_v34 = vmul.f32 0.5, %v5470_v2 }
 0x236   : > { %v4365_v1 = vpop.eup %4364  ;;  %v1309_v44 = vadd.f32 1.0, %v4363_v57  ;;  %4376 = verf.f32 %v1060_v56 }
 0x237   : > { %v4367_v63 = vpop.eup %4366  ;;  %v1310_v0 = vadd.f32 1.0, %v4365_v1  ;;  %1961 = vmatprep.mubr.bf16.mxu1 %v1514_v14 }
 0x238   : > { %v4369_v58 = vpop.eup %4368  ;;  %v1311_v15 = vadd.f32 1.0, %v4367_v63  ;;  %v5491_v23 = vpop.f32.mrb[108].mxu0  ;;  %1962 = vmatmul.mubr.bf16.gmra.mrb[88].mxu1 %v1513_v60  ;;  %v1437_v42 = vmul.f32 %v1309_v44, %v925_v20 }
 0x239   : > { %7982 = vst [vmem:[#allocation83_spill] sm:$0xff] %v5491_v23  ;;  %v1312_v45 = vadd.f32 1.0, %v4369_v58  ;;  %v1061_v57 = vmul.f32 0.70710677, %v5491_v23  ;;  %v5496_v40 = vpop.f32.mrb[109].mxu0  ;;  %v1438_v1 = vmul.f32 %v1310_v0, %v926_v26  ;;  %v929_v26 = vmul.f32 0.5, %v5475_v31 }
 0x23a   : > { %7983 = vst [vmem:[#allocation84_spill] sm:$0xff] %v5496_v40  ;;  %v1439_v14 = vmul.f32 %v1311_v15, %v927_v7  ;;  %v1062_v39 = vmul.f32 0.70710677, %v5496_v40  ;;  %v5499_v56 = vpop.f32.mrb[110].mxu0 }
 0x23b   : > { %7984 = vst [vmem:[#allocation85_spill] sm:$0xff] %v5499_v56  ;;  %v1440_v63 = vmul.f32 %v1312_v45, %v928_v34  ;;  %4378 = verf.f32 %v1061_v57  ;;  %v1063_v60 = vmul.f32 0.70710677, %v5499_v56  ;;  %v5502_v16 = vpop.f32.mrb[111].mxu0  ;;  %v931_v34 = vmul.f32 0.5, %v5483_v48 }
 0x23c   : > { %7985 = vst [vmem:[#allocation86_spill] sm:$0xff] %v5502_v16  ;;  %4380 = verf.f32 %v1062_v39  ;;  %v1064_v58 = vmul.f32 0.70710677, %v5502_v16  ;;  %v1515_v2 = vpack.c.bf16 %v1439_v14, %v1437_v42  ;;  %v930_v42 = vmul.f32 0.5, %v5480_v29 }
 0x23d   : > { %v4371_v35 = vpop.eup %4370  ;;  %4382 = verf.f32 %v1063_v60  ;;  %v1516_v32 = vpack.c.bf16 %v1440_v63, %v1438_v1  ;;  %v932_v14 = vmul.f32 0.5, %v5486_v52 }
 0x23e   : > { %v4373_v44 = vpop.eup %4372  ;;  %v1313_v20 = vadd.f32 1.0, %v4371_v35  ;;  %4384 = verf.f32 %v1064_v58 }
 0x23f   : > { %v4375_v7 = vpop.eup %4374  ;;  %v1314_v15 = vadd.f32 1.0, %v4373_v44  ;;  %1971 = vmatprep.mubr.bf16.mxu1 %v1516_v32 }
 0x240   : > { %v4377_v0 = vpop.eup %4376  ;;  %v1315_v45 = vadd.f32 1.0, %v4375_v7  ;;  %v5507_v57 = vpop.f32.mrb[112].mxu0  ;;  %1972 = vmatmul.mubr.bf16.gmra.mrb[92].mxu1 %v1515_v2  ;;  %v1441_v63 = vmul.f32 %v1313_v20, %v929_v26 }
 0x241   : > { %7986 = vst [vmem:[#allocation87_spill] sm:$0xff] %v5507_v57  ;;  %v1316_v39 = vadd.f32 1.0, %v4377_v0  ;;  %v1065_v35 = vmul.f32 0.70710677, %v5507_v57  ;;  %v5512_v1 = vpop.f32.mrb[113].mxu0  ;;  %v1442_v44 = vmul.f32 %v1314_v15, %v930_v42  ;;  %v933_v42 = vmul.f32 0.5, %v5491_v23 }
 0x242   : > { %7987 = vst [vmem:[#allocation88_spill] sm:$0xff] %v5512_v1  ;;  %v1443_v32 = vmul.f32 %v1315_v45, %v931_v34  ;;  %v1066_v60 = vmul.f32 0.70710677, %v5512_v1  ;;  %v5515_v58 = vpop.f32.mrb[114].mxu0 }
 0x243   : > { %7988 = vst [vmem:[#allocation89_spill] sm:$0xff] %v5515_v58  ;;  %v1444_v7 = vmul.f32 %v1316_v39, %v932_v14  ;;  %4386 = verf.f32 %v1065_v35  ;;  %v1067_v2 = vmul.f32 0.70710677, %v5515_v58  ;;  %v5518_v48 = vpop.f32.mrb[115].mxu0  ;;  %v935_v14 = vmul.f32 0.5, %v5499_v56 }
 0x244   : > { %7989 = vst [vmem:[#allocation90_spill] sm:$0xff] %v5518_v48  ;;  %4388 = verf.f32 %v1066_v60  ;;  %v1068_v0 = vmul.f32 0.70710677, %v5518_v48  ;;  %v1517_v52 = vpack.c.bf16 %v1443_v32, %v1441_v63  ;;  %v934_v63 = vmul.f32 0.5, %v5496_v40 }
 0x245   : > { %v4379_v29 = vpop.eup %4378  ;;  %4390 = verf.f32 %v1067_v2  ;;  %v1518_v31 = vpack.c.bf16 %v1444_v7, %v1442_v44  ;;  %v936_v32 = vmul.f32 0.5, %v5502_v16 }
 0x246   : > { %v4381_v20 = vpop.eup %4380  ;;  %v1317_v26 = vadd.f32 1.0, %v4379_v29  ;;  %4392 = verf.f32 %v1068_v0 }
 0x247   : > { %v4383_v34 = vpop.eup %4382  ;;  %v1318_v45 = vadd.f32 1.0, %v4381_v20  ;;  %1981 = vmatprep.mubr.bf16.mxu1 %v1518_v31 }
 0x248   : > { %v4385_v15 = vpop.eup %4384  ;;  %v1319_v39 = vadd.f32 1.0, %v4383_v34  ;;  %v5523_v35 = vpop.f32.mrb[116].mxu0  ;;  %1982 = vmatmul.mubr.bf16.gmra.mrb[96].mxu1 %v1517_v52  ;;  %v1445_v7 = vmul.f32 %v1317_v26, %v933_v42 }
 0x249   : > { %7990 = vst [vmem:[#allocation91_spill] sm:$0xff] %v5523_v35  ;;  %v1320_v60 = vadd.f32 1.0, %v4385_v15  ;;  %v1069_v29 = vmul.f32 0.70710677, %v5523_v35  ;;  %v5528_v44 = vpop.f32.mrb[117].mxu0  ;;  %v1446_v20 = vmul.f32 %v1318_v45, %v934_v63  ;;  %v937_v63 = vmul.f32 0.5, %v5507_v57 }
 0x24a   : > { %7991 = vst [vmem:[#allocation92_spill] sm:$0xff] %v5528_v44  ;;  %v1447_v31 = vmul.f32 %v1319_v39, %v935_v14  ;;  %v1070_v2 = vmul.f32 0.70710677, %v5528_v44  ;;  %v5531_v0 = vpop.f32.mrb[118].mxu0 }
 0x24b   : > { %7992 = vst [vmem:[#allocation93_spill] sm:$0xff] %v5531_v0  ;;  %v1448_v34 = vmul.f32 %v1320_v60, %v936_v32  ;;  %4394 = verf.f32 %v1069_v29  ;;  %v1071_v52 = vmul.f32 0.70710677, %v5531_v0  ;;  %v5534_v56 = vpop.f32.mrb[119].mxu0  ;;  %v939_v32 = vmul.f32 0.5, %v5515_v58 }
 0x24c   : > { %7993 = vst [vmem:[#allocation94_spill] sm:$0xff] %v5534_v56  ;;  %4396 = verf.f32 %v1070_v2  ;;  %v1072_v15 = vmul.f32 0.70710677, %v5534_v56  ;;  %v1519_v16 = vpack.c.bf16 %v1447_v31, %v1445_v7  ;;  %v938_v7 = vmul.f32 0.5, %v5512_v1 }
 0x24d   : > { %v4387_v40 = vpop.eup %4386  ;;  %4398 = verf.f32 %v1071_v52  ;;  %v1520_v23 = vpack.c.bf16 %v1448_v34, %v1446_v20  ;;  %v940_v31 = vmul.f32 0.5, %v5518_v48 }
 0x24e   : > { %v4389_v26 = vpop.eup %4388  ;;  %v1321_v42 = vadd.f32 1.0, %v4387_v40  ;;  %4400 = verf.f32 %v1072_v15 }
 0x24f   : > { %v4391_v14 = vpop.eup %4390  ;;  %v1322_v39 = vadd.f32 1.0, %v4389_v26  ;;  %1991 = vmatprep.mubr.bf16.mxu1 %v1520_v23 }
 0x250   : > { %v4393_v45 = vpop.eup %4392  ;;  %v1323_v60 = vadd.f32 1.0, %v4391_v14  ;;  %v5539_v29 = vpop.f32.mrb[120].mxu0  ;;  %1992 = vmatmul.mubr.bf16.gmra.mrb[100].mxu1 %v1519_v16  ;;  %v1449_v34 = vmul.f32 %v1321_v42, %v937_v63 }
 0x251   : > { %7994 = vst [vmem:[#allocation95_spill] sm:$0xff] %v5539_v29  ;;  %v1324_v2 = vadd.f32 1.0, %v4393_v45  ;;  %v1073_v40 = vmul.f32 0.70710677, %v5539_v29  ;;  %v5544_v20 = vpop.f32.mrb[121].mxu0  ;;  %v1450_v26 = vmul.f32 %v1322_v39, %v938_v7  ;;  %v941_v7 = vmul.f32 0.5, %v5523_v35 }
 0x252   : > { %7995 = vst [vmem:[#allocation96_spill] sm:$0xff] %v5544_v20  ;;  %v1451_v23 = vmul.f32 %v1323_v60, %v939_v32  ;;  %v1074_v52 = vmul.f32 0.70710677, %v5544_v20  ;;  %v5547_v15 = vpop.f32.mrb[122].mxu0 }
 0x253   : > { %7996 = vst [vmem:[#allocation97_spill] sm:$0xff] %v5547_v15  ;;  %v1452_v14 = vmul.f32 %v1324_v2, %v940_v31  ;;  %4402 = verf.f32 %v1073_v40  ;;  %v1075_v16 = vmul.f32 0.70710677, %v5547_v15  ;;  %v5550_v58 = vpop.f32.mrb[123].mxu0  ;;  %v943_v31 = vmul.f32 0.5, %v5531_v0 }
 0x254   : > { %7997 = vst [vmem:[#allocation98_spill] sm:$0xff] %v5550_v58  ;;  %4404 = verf.f32 %v1074_v52  ;;  %v1076_v45 = vmul.f32 0.70710677, %v5550_v58  ;;  %v1521_v48 = vpack.c.bf16 %v1451_v23, %v1449_v34  ;;  %v942_v34 = vmul.f32 0.5, %v5528_v44 }
 0x255   : > { %v4395_v1 = vpop.eup %4394  ;;  %4406 = verf.f32 %v1075_v16  ;;  %v1522_v57 = vpack.c.bf16 %v1452_v14, %v1450_v26  ;;  %v944_v23 = vmul.f32 0.5, %v5534_v56 }
 0x256   : > { %v4397_v42 = vpop.eup %4396  ;;  %v1325_v63 = vadd.f32 1.0, %v4395_v1  ;;  %4408 = verf.f32 %v1076_v45 }
 0x257   : > { %v4399_v32 = vpop.eup %4398  ;;  %v1326_v60 = vadd.f32 1.0, %v4397_v42  ;;  %2001 = vmatprep.mubr.bf16.mxu1 %v1522_v57 }
 0x258   : > { %v4401_v39 = vpop.eup %4400  ;;  %v1327_v2 = vadd.f32 1.0, %v4399_v32  ;;  %v5555_v40 = vpop.f32.mrb[124].mxu0  ;;  %2002 = vmatmul.mubr.bf16.gmra.mrb[104].mxu1 %v1521_v48  ;;  %v1453_v14 = vmul.f32 %v1325_v63, %v941_v7 }
 0x259   : > { %7998 = vst [vmem:[#allocation99_spill] sm:$0xff] %v5555_v40  ;;  %v1328_v52 = vadd.f32 1.0, %v4401_v39  ;;  %v1077_v1 = vmul.f32 0.70710677, %v5555_v40  ;;  %v5560_v26 = vpop.f32.mrb[125].mxu0  ;;  %v1454_v42 = vmul.f32 %v1326_v60, %v942_v34  ;;  %v945_v39 = vmul.f32 0.5, %v5539_v29 }
 0x25a   : > { %7999 = vst [vmem:[#allocation100_spill] sm:$0xff] %v5560_v26  ;;  %v1455_v57 = vmul.f32 %v1327_v2, %v943_v31  ;;  %v1078_v16 = vmul.f32 0.70710677, %v5560_v26  ;;  %v5563_v45 = vpop.f32.mrb[126].mxu0 }
 0x25b   : > { %8000 = vst [vmem:[#allocation101_spill] sm:$0xff] %v5563_v45  ;;  %v1456_v32 = vmul.f32 %v1328_v52, %v944_v23  ;;  %4410 = verf.f32 %v1077_v1  ;;  %v1079_v48 = vmul.f32 0.70710677, %v5563_v45  ;;  %v5566_v0 = vpop.f32.mrb[127].mxu0  ;;  %v1743_v44 = vpop.f32.mrb[0].mxu1 }
 0x25c   : > { %8001 = vst [vmem:[#allocation102_spill] sm:$0xff] %v5566_v0  ;;  %4412 = verf.f32 %v1078_v16  ;;  %v1080_v56 = vmul.f32 0.70710677, %v5566_v0  ;;  %v5571_v63 = vadd.f32 %v1743_v44, %v5049_v37  ;;  %v1745_v7 = vpop.f32.mrb[1].mxu1  ;;  %v1523_v23 = vpack.c.bf16 %v1455_v57, %v1453_v14 }
 0x25d   : > { %v4403_v31 = vpop.eup %4402  ;;  %4414 = verf.f32 %v1079_v48  ;;  %v5574_v60 = vadd.f32 %v1745_v7, %v5054_v43  ;;  %v1747_v2 = vpop.f32.mrb[2].mxu1  ;;  %v1524_v34 = vpack.c.bf16 %v1456_v32, %v1454_v42  ;;  %v947_v57 = vmul.f32 0.5, %v5547_v15 }
 0x25e   : > { %v4405_v52 = vpop.eup %4404  ;;  %v1329_v1 = vadd.f32 1.0, %v4403_v31  ;;  %4416 = verf.f32 %v1080_v56  ;;  %v5577_v29 = vadd.f32 %v1747_v2, %v5061_v47  ;;  %v1749_v16 = vpop.f32.mrb[3].mxu1  ;;  %v2435_v37 = vmul.f32 %v5571_v63, %v5571_v63 }
 0x25f   : > { %8002 = vst [vmem:[#allocation103_spill] sm:$0xff] %v5574_v60  ;;  %v4407_v44 = vpop.eup %4406  ;;  %v1330_v35 = vadd.f32 1.0, %v4405_v52  ;;  %v5582_v48 = vadd.f32 %v1749_v16, %v5068_v51  ;;  %2011 = vmatprep.mubr.bf16.mxu1 %v1524_v34  ;;  %v2182_v43 = vadd.f32 %v5574_v60, %v5571_v63  ;;  %v2436_v14 = vmul.f32 %v5574_v60, %v5574_v60 }
 0x260   : > { %8003 = vst [vmem:[#allocation104_spill] sm:$0xff] %v5577_v29  ;;  %v4409_v56 = vpop.eup %4408  ;;  %v946_v47 = vmul.f32 0.5, %v5544_v20  ;;  %v1331_v42 = vadd.f32 1.0, %v4407_v44  ;;  %v948_v32 = vmul.f32 0.5, %v5550_v58  ;;  %v1723_v7 = vpop.f32.mrb[128].mxu0  ;;  %2012 = vmatmul.mubr.bf16.gmra.mrb[108].mxu1 %v1523_v23  ;;  %v2437_v52 = vmul.f32 %v5577_v29, %v5577_v29 }
 0x261   : > { %v1332_v31 = vadd.f32 1.0, %v4409_v56  ;;  %v5592_v51 = vadd.f32 %v1723_v7, %v5017_v6  ;;  %2183 = vadd.xlane.f32.xlu0 %v2182_v43  ;;  %v1725_v2 = vpop.f32.mrb[129].mxu0  ;;  %v2185_v34 = vadd.f32 %v5582_v48, %v5577_v29  ;;  %v1457_v16 = vmul.f32 %v1329_v1, %v945_v39 }
 0x262   : > { %v1459_v20 = vmul.f32 %v1331_v42, %v947_v57  ;;  %v5599_v44 = vadd.f32 %v1725_v2, %v5020_v8  ;;  %v1727_v58 = vpop.f32.mrb[130].mxu0  ;;  %v2438_v23 = vmul.f32 %v5582_v48, %v5582_v48  ;;  %v1458_v56 = vmul.f32 %v1330_v35, %v946_v47 }
 0x263   : > { %v1460_v6 = vmul.f32 %v1332_v31, %v948_v32  ;;  %v5604_v43 = vadd.f32 %v1727_v58, %v5023_v11  ;;  %2186 = vadd.xlane.f32.xlu1 %v2185_v34  ;;  %v1729_v7 = vpop.f32.mrb[131].mxu0  ;;  %v1753_v15 = vpop.f32.mrb[4].mxu1  ;;  %v2567_v60 = vadd.f32 %v2436_v14, %v2435_v37  ;;  %v951_v34 = vmul.f32 0.5, %v5563_v45 }
 0x264   : > { %v5607_v29 = vadd.f32 %v1729_v7, %v5026_v13  ;;  %v5610_v39 = vadd.f32 %v1753_v15, %v5080_v3  ;;  %v1755_v8 = vpop.f32.mrb[5].mxu1  ;;  %v1525_v1 = vpack.c.bf16 %v1459_v20, %v1457_v16  ;;  %v2570_v11 = vadd.f32 %v2438_v23, %v2437_v52 }
 0x265   : > { %v4411_v57 = vpop.eup %4410  ;;  %v5613_v42 = vadd.f32 %v1755_v8, %v5085_v12  ;;  %2568 = vadd.xlane.f32.xlu0 %v2567_v60  ;;  %v1757_v35 = vpop.f32.mrb[6].mxu1  ;;  %v1526_v58 = vpack.c.bf16 %v1460_v6, %v1458_v56  ;;  %v2429_v47 = vmul.f32 %v5604_v43, %v5604_v43  ;;  %v949_v12 = vmul.f32 0.5, %v5555_v40 }
 0x266   : > { %v4413_v37 = vpop.eup %4412  ;;  %v1333_v14 = vadd.f32 1.0, %v4411_v57  ;;  %v5618_v13 = vadd.f32 %v1757_v35, %v5092_v18  ;;  %v1759_v3 = vpop.f32.mrb[7].mxu1  ;;  %v2430_v20 = vmul.f32 %v5607_v29, %v5607_v29  ;;  %v2170_v31 = vadd.f32 %v5599_v44, %v5592_v51 }
 0x267   : > { %v4415_v15 = vpop.eup %4414  ;;  %v1334_v32 = vadd.f32 1.0, %v4413_v37  ;;  %v5624_v60 = vadd.f32 %v1759_v3, %v5099_v25  ;;  %2571 = vadd.xlane.f32.xlu1 %v2570_v11  ;;  %2021 = vmatprep.mubr.bf16.mxu1 %v1526_v58  ;;  %v950_v18 = vmul.f32 0.5, %v5560_v26  ;;  %v952_v56 = vmul.f32 0.5, %v5566_v0 }
 0x268   : > { %v4417_v2 = vpop.eup %4416  ;;  %v1335_v52 = vadd.f32 1.0, %v4415_v15  ;;  %v1733_v16 = vpop.f32.mrb[132].mxu0  ;;  %2022 = vmatmul.mubr.bf16.gmra.mrb[112].mxu1 %v1525_v1  ;;  %v2558_v23 = vadd.f32 %v2430_v20, %v2429_v47  ;;  %v2427_v8 = vmul.f32 %v5592_v51, %v5592_v51  ;;  %v1461_v57 = vmul.f32 %v1333_v14, %v949_v12 }
 0x269   : > { %v1336_v6 = vadd.f32 1.0, %v4417_v2  ;;  %v5632_v25 = vadd.f32 %v1733_v16, %v5032_v17  ;;  %2171 = vadd.xlane.f32.xlu0 %v2170_v31  ;;  %v1735_v7 = vpop.f32.mrb[133].mxu0  ;;  %v2173_v1 = vadd.f32 %v5607_v29, %v5604_v43  ;;  %v1462_v47 = vmul.f32 %v1334_v32, %v950_v18 }
 0x26a   : > { %v1463_v35 = vmul.f32 %v1335_v52, %v951_v34  ;;  %v5637_v11 = vadd.f32 %v1735_v7, %v5035_v19  ;;  %v1737_v58 = vpop.f32.mrb[134].mxu0  ;;  %v2428_v15 = vmul.f32 %v5599_v44, %v5599_v44  ;;  %v2441_v32 = vmul.f32 %v5618_v13, %v5618_v13 }
 0x26b   : > { %v1464_v37 = vmul.f32 %v1336_v6, %v952_v56  ;;  %v5642_v3 = vadd.f32 %v1737_v58, %v5038_v22  ;;  %v1763_v17 = vpop.f32.mrb[8].mxu1  ;;  %2559 = vadd.xlane.f32.xlu1 %v2558_v23  ;;  %v1739_v20 = vpop.f32.mrb[135].mxu0  ;;  %v2191_v18 = vadd.f32 %v5624_v60, %v5618_v13  ;;  %v2188_v6 = vadd.f32 %v5613_v42, %v5610_v39 }
 0x26c   : > { %v5647_v14 = vadd.f32 %v1763_v17, %v5111_v41  ;;  %v5650_v19 = vadd.f32 %v1739_v20, %v5041_v24  ;;  %v1765_v12 = vpop.f32.mrb[9].mxu1  ;;  %v1527_v31 = vpack.c.bf16 %v1463_v35, %v1461_v57  ;;  %v2442_v41 = vmul.f32 %v5624_v60, %v5624_v60 }
 0x26d   : > { %v5655_v22 = vadd.f32 %v1765_v12, %v5116_v54  ;;  %v1767_v2 = vpop.f32.mrb[10].mxu1  ;;  %2174 = vadd.xlane.f32.xlu0 %v2173_v1  ;;  %v1528_v34 = vpack.c.bf16 %v1464_v37, %v1462_v47  ;;  %v2555_v54 = vadd.f32 %v2428_v15, %v2427_v8  ;;  %v2439_v7 = vmul.f32 %v5610_v39, %v5610_v39 }
 0x26e   : > { %v5662_v24 = vadd.f32 %v1767_v2, %v5119_v59  ;;  %v1769_v52 = vpop.f32.mrb[11].mxu1  ;;  %v2576_v23 = vadd.f32 %v2442_v41, %v2441_v32  ;;  %v2440_v59 = vmul.f32 %v5613_v42, %v5613_v42  ;;  %v2176_v58 = vadd.f32 %v5637_v11, %v5632_v25 }
 0x26f   : > { %v5665_v16 = vadd.f32 %v1769_v52, %v5122_v61  ;;  %2192 = vadd.xlane.f32.xlu1 %v2191_v18  ;;  %2031 = vmatprep.mubr.bf16.mxu1 %v1528_v34  ;;  %v2179_v20 = vadd.f32 %v5650_v19, %v5642_v3  ;;  %v2434_v15 = vmul.f32 %v5650_v19, %v5650_v19 }
 0x270   : > { %2032 = vmatmul.mubr.bf16.gmra.mrb[116].mxu1 %v1527_v31  ;;  %v2573_v17 = vadd.f32 %v2440_v59, %v2439_v7 }
 0x271   : > { %2556 = vadd.xlane.f32.xlu0 %v2555_v54 }
 0x273   : > { %v1773_v56 = vpop.f32.mrb[12].mxu1  ;;  %2577 = vadd.xlane.f32.xlu1 %v2576_v23  ;;  %v2194_v23 = vadd.f32 %v5655_v22, %v5647_v14 }
 0x274   : > { %v5674_v61 = vadd.f32 %v1773_v56, %v5130_v30  ;;  %v1775_v57 = vpop.f32.mrb[13].mxu1  ;;  %v2431_v30 = vmul.f32 %v5632_v25, %v5632_v25  ;;  %v2197_v56 = vadd.f32 %v5665_v16, %v5662_v24 }
 0x275   : > { %v5677_v8 = vadd.f32 %v1775_v57, %v5135_v49  ;;  %v1777_v35 = vpop.f32.mrb[14].mxu1  ;;  %2189 = vadd.xlane.f32.xlu0 %v2188_v6  ;;  %v2432_v49 = vmul.f32 %v5637_v11, %v5637_v11 }
 0x276   : > { %v5682_v1 = vadd.f32 %v1777_v35, %v5138_v38  ;;  %v1779_v47 = vpop.f32.mrb[15].mxu1  ;;  %v2433_v38 = vmul.f32 %v5642_v3, %v5642_v3 }
 0x277   : > { %v5685_v37 = vadd.f32 %v1779_v47, %v5141_v46  ;;  %2177 = vadd.xlane.f32.xlu1 %v2176_v58  ;;  %v2561_v12 = vadd.f32 %v2432_v49, %v2431_v30 }
 0x278   : > { %v2564_v34 = vadd.f32 %v2434_v15, %v2433_v38 }
 0x279   : > { %8004 = vst [vmem:[#allocation105_spill] sm:$0xff] %v5685_v37  ;;  %2574 = vadd.xlane.f32.xlu0 %v2573_v17  ;;  %v2203_v38 = vadd.f32 %v5685_v37, %v5682_v1 }
 0x27b   : > { %v1783_v46 = vpop.f32.mrb[16].mxu1  ;;  %2180 = vadd.xlane.f32.xlu1 %v2179_v20  ;;  %v2200_v20 = vadd.f32 %v5677_v8, %v5674_v61 }
 0x27c   : > { %v5698_v31 = vadd.f32 %v1783_v46, %v5152_v5  ;;  %v1785_v32 = vpop.f32.mrb[17].mxu1  ;;  %v2443_v5 = vmul.f32 %v5647_v14, %v5647_v14 }
 0x27d   : > { %v5701_v2 = vadd.f32 %v1785_v32, %v5157_v21  ;;  %v1787_v18 = vpop.f32.mrb[18].mxu1  ;;  %2562 = vadd.xlane.f32.xlu0 %v2561_v12  ;;  %v2444_v21 = vmul.f32 %v5655_v22, %v5655_v22 }
 0x27e   : > { %8005 = vst [vmem:[#allocation106_spill] sm:$0xff] %v5698_v31  ;;  %v5704_v41 = vadd.f32 %v1787_v18, %v5160_v10  ;;  %v1789_v52 = vpop.f32.mrb[19].mxu1  ;;  %v2445_v10 = vmul.f32 %v5662_v24, %v5662_v24 }
 0x27f   : > { %8006 = vst [vmem:[#allocation107_spill] sm:$0xff] %v5701_v2  ;;  %v5707_v54 = vadd.f32 %v1789_v52, %v5163_v28  ;;  %2565 = vadd.xlane.f32.xlu1 %v2564_v34  ;;  %v2446_v28 = vmul.f32 %v5665_v16, %v5665_v16  ;;  %v2579_v7 = vadd.f32 %v2444_v21, %v2443_v5 }
 0x280   : > { %8007 = vst [vmem:[#allocation108_spill] sm:$0xff] %v5704_v41 }
 0x281   : > { %8008 = vst [vmem:[#allocation109_spill] sm:$0xff] %v5707_v54  ;;  %2195 = vadd.xlane.f32.xlu0 %v2194_v23  ;;  %v2582_v47 = vadd.f32 %v2446_v28, %v2445_v10  ;;  %v2209_v10 = vadd.f32 %v5707_v54, %v5704_v41 }
 0x283   : > { %v1793_v6 = vpop.f32.mrb[20].mxu1  ;;  %2198 = vadd.xlane.f32.xlu1 %v2197_v56  ;;  %v2206_v56 = vadd.f32 %v5701_v2, %v5698_v31 }
 0x284   : > { %v5722_v59 = vadd.f32 %v1793_v6, %v5171_v53  ;;  %v1795_v57 = vpop.f32.mrb[21].mxu1  ;;  %v2447_v53 = vmul.f32 %v5674_v61, %v5674_v61 }
 0x285   : > { %v5725_v35 = vadd.f32 %v1795_v57, %v5176_v55  ;;  %v1797_v58 = vpop.f32.mrb[22].mxu1  ;;  %2580 = vadd.xlane.f32.xlu0 %v2579_v7  ;;  %v2448_v55 = vmul.f32 %v5677_v8, %v5677_v8 }
 0x286   : > { %8009 = vst [vmem:[#allocation110_spill] sm:$0xff] %v5722_v59  ;;  %v5728_v17 = vadd.f32 %v1797_v58, %v5179_v62  ;;  %v1799_v30 = vpop.f32.mrb[23].mxu1  ;;  %v2449_v62 = vmul.f32 %v5682_v1, %v5682_v1  ;;  %v8018_v58 = vld [vmem:[#allocation12_spill] sm:$0xff] }
 0x287   : > { %8010 = vst [vmem:[#allocation111_spill] sm:$0xff] %v5725_v35  ;;  %v5731_v49 = vadd.f32 %v1799_v30, %v5182_v4  ;;  %2583 = vadd.xlane.f32.xlu1 %v2582_v47  ;;  %v2450_v4 = vmul.f32 %v5685_v37, %v5685_v37  ;;  %v2585_v46 = vadd.f32 %v2448_v55, %v2447_v53  ;;  %v8020_v53 = vld [vmem:[#allocation13_spill] sm:$0xff] }
 0x288   : > { %8011 = vst [vmem:[#allocation112_spill] sm:$0xff] %v5728_v17 }
 0x289   : > { %8012 = vst [vmem:[#allocation113_spill] sm:$0xff] %v5731_v49  ;;  %2201 = vadd.xlane.f32.xlu0 %v2200_v20  ;;  %v2588_v52 = vadd.f32 %v2450_v4, %v2449_v62  ;;  %v8022_v62 = vld [vmem:[#allocation14_spill] sm:$0xff] }
 0x28b   : > { %v1803_v15 = vpop.f32.mrb[24].mxu1  ;;  %2204 = vadd.xlane.f32.xlu1 %v2203_v38 }
 0x28c   : > { %v5746_v12 = vadd.f32 %v1803_v15, %v5187_v33  ;;  %v1805_v32 = vpop.f32.mrb[25].mxu1  ;;  %v2451_v33 = vmul.f32 %v5698_v31, %v5698_v31  ;;  %v2212_v15 = vadd.f32 %v5725_v35, %v5722_v59 }
 0x28d   : > { %v5749_v18 = vadd.f32 %v1805_v32, %v5192_v36  ;;  %v1807_v34 = vpop.f32.mrb[26].mxu1  ;;  %2586 = vadd.xlane.f32.xlu0 %v2585_v46  ;;  %v2452_v36 = vmul.f32 %v5701_v2, %v5701_v2  ;;  %v2456_v46 = vmul.f32 %v5725_v35, %v5725_v35  ;;  %v2215_v32 = vadd.f32 %v5731_v49, %v5728_v17 }
 0x28e   : > { %8013 = vst [vmem:[#allocation114_spill] sm:$0xff] %v5746_v12  ;;  %v5752_v23 = vadd.f32 %v1807_v34, %v5195_v50  ;;  %v1809_v5 = vpop.f32.mrb[27].mxu1  ;;  %v2453_v50 = vmul.f32 %v5704_v41, %v5704_v41  ;;  %v2457_v34 = vmul.f32 %v5728_v17, %v5728_v17 }
 0x28f   : > { %8014 = vst [vmem:[#allocation115_spill] sm:$0xff] %v5749_v18  ;;  %v5755_v21 = vadd.f32 %v1809_v5, %v5198_v27  ;;  %2589 = vadd.xlane.f32.xlu1 %v2588_v52  ;;  %v2454_v27 = vmul.f32 %v5707_v54, %v5707_v54  ;;  %v2591_v6 = vadd.f32 %v2452_v36, %v2451_v33  ;;  %v8024_v33 = vld [vmem:[#allocation15_spill] sm:$0xff]  ;;  %v8118_v54 = vld [vmem:[#allocation62_spill] sm:$0xff] }
 0x290   : > { %8015 = vst [vmem:[#allocation116_spill] sm:$0xff] %v5752_v23  ;;  %v2458_v52 = vmul.f32 %v5731_v49, %v5731_v49  ;;  %v8112_v49 = vld [vmem:[#allocation59_spill] sm:$0xff] }
 0x291   : > { %8016 = vst [vmem:[#allocation117_spill] sm:$0xff] %v5755_v21  ;;  %2207 = vadd.xlane.f32.xlu0 %v2206_v56  ;;  %v2594_v20 = vadd.f32 %v2454_v27, %v2453_v50  ;;  %v8026_v50 = vld [vmem:[#allocation16_spill] sm:$0xff] }
 0x293   : > { %v1813_v28 = vpop.f32.mrb[28].mxu1  ;;  %2210 = vadd.xlane.f32.xlu1 %v2209_v10 }
 0x294   : > { %v5770_v7 = vadd.f32 %v1813_v28, %v5203_v9  ;;  %v1815_v57 = vpop.f32.mrb[29].mxu1  ;;  %v2455_v9 = vmul.f32 %v5722_v59, %v5722_v59 }
 0x295   : > { %v5773_v47 = vadd.f32 %v1815_v57, %v8018_v58  ;;  %v1817_v30 = vpop.f32.mrb[30].mxu1  ;;  %2592 = vadd.xlane.f32.xlu0 %v2591_v6  ;;  %v2600_v6 = vadd.f32 %v2458_v52, %v2457_v34  ;;  %v8028_v57 = vld [vmem:[#allocation17_spill] sm:$0xff] }
 0x296   : > { %8017 = vst [vmem:[#allocation118_spill] sm:$0xff] %v5770_v7  ;;  %v5776_v55 = vadd.f32 %v1817_v30, %v8020_v53  ;;  %v1819_v38 = vpop.f32.mrb[31].mxu1  ;;  %v2597_v56 = vadd.f32 %v2456_v46, %v2455_v9  ;;  %v2221_v9 = vadd.f32 %v5755_v21, %v5752_v23  ;;  %v2461_v46 = vmul.f32 %v5752_v23, %v5752_v23 }
 0x297   : > { %8019 = vst [vmem:[#allocation12_spill] sm:$0xff] %v5773_v47  ;;  %v5779_v4 = vadd.f32 %v1819_v38, %v8022_v62  ;;  %2595 = vadd.xlane.f32.xlu1 %v2594_v20  ;;  %v8030_v20 = vld [vmem:[#allocation18_spill] sm:$0xff]  ;;  %v2218_v38 = vadd.f32 %v5749_v18, %v5746_v12  ;;  %v2459_v62 = vmul.f32 %v5746_v12, %v5746_v12 }
 0x298   : > { %8021 = vst [vmem:[#allocation13_spill] sm:$0xff] %v5776_v55 }
 0x299   : > { %8023 = vst [vmem:[#allocation14_spill] sm:$0xff] %v5779_v4  ;;  %2213 = vadd.xlane.f32.xlu0 %v2212_v15  ;;  %v2460_v15 = vmul.f32 %v5749_v18, %v5749_v18 }
 0x29b   : > { %v1823_v5 = vpop.f32.mrb[32].mxu1  ;;  %2216 = vadd.xlane.f32.xlu1 %v2215_v32  ;;  %v2462_v32 = vmul.f32 %v5755_v21, %v5755_v21  ;;  %v2603_v52 = vadd.f32 %v2460_v15, %v2459_v62  ;;  %v2224_v62 = vadd.f32 %v5773_v47, %v5770_v7  ;;  %v2463_v15 = vmul.f32 %v5770_v7, %v5770_v7  ;;  %v8108_v21 = vld [vmem:[#allocation57_spill] sm:$0xff] }
 0x29c   : > { %v5794_v36 = vadd.f32 %v1823_v5, %v8024_v33  ;;  %v1825_v10 = vpop.f32.mrb[33].mxu1  ;;  %v8032_v5 = vld [vmem:[#allocation19_spill] sm:$0xff] }
 0x29d   : > { %v5797_v27 = vadd.f32 %v1825_v10, %v8026_v50  ;;  %v1827_v28 = vpop.f32.mrb[34].mxu1  ;;  %2598 = vadd.xlane.f32.xlu0 %v2597_v56  ;;  %v8034_v10 = vld [vmem:[#allocation20_spill] sm:$0xff] }
 0x29e   : > { %8025 = vst [vmem:[#allocation15_spill] sm:$0xff] %v5794_v36  ;;  %v5800_v58 = vadd.f32 %v1827_v28, %v8028_v57  ;;  %v1829_v30 = vpop.f32.mrb[35].mxu1  ;;  %v8036_v57 = vld [vmem:[#allocation21_spill] sm:$0xff] }
 0x29f   : > { %8027 = vst [vmem:[#allocation16_spill] sm:$0xff] %v5797_v27  ;;  %v5803_v53 = vadd.f32 %v1829_v30, %v8030_v20  ;;  %2601 = vadd.xlane.f32.xlu1 %v2600_v6  ;;  %v2606_v6 = vadd.f32 %v2462_v32, %v2461_v46  ;;  %v2227_v46 = vadd.f32 %v5779_v4, %v5776_v55 }
 0x2a0   : > { %8029 = vst [vmem:[#allocation17_spill] sm:$0xff] %v5800_v58  ;;  %v2465_v32 = vmul.f32 %v5776_v55, %v5776_v55  ;;  %v8046_v55 = vld [vmem:[#allocation26_spill] sm:$0xff] }
 0x2a1   : > { %8031 = vst [vmem:[#allocation18_spill] sm:$0xff] %v5803_v53  ;;  %2219 = vadd.xlane.f32.xlu0 %v2218_v38  ;;  %v8038_v38 = vld [vmem:[#allocation22_spill] sm:$0xff] }
 0x2a3   : > { %v1833_v34 = vpop.f32.mrb[36].mxu1  ;;  %2222 = vadd.xlane.f32.xlu1 %v2221_v9  ;;  %v2464_v9 = vmul.f32 %v5773_v47, %v5773_v47  ;;  %v8102_v47 = vld [vmem:[#allocation54_spill] sm:$0xff] }
 0x2a4   : > { %v5818_v56 = vadd.f32 %v1833_v34, %v8032_v5  ;;  %v1835_v33 = vpop.f32.mrb[37].mxu1  ;;  %v2466_v34 = vmul.f32 %v5779_v4, %v5779_v4 }
 0x2a5   : > { %v5821_v50 = vadd.f32 %v1835_v33, %v8034_v10  ;;  %v1837_v28 = vpop.f32.mrb[38].mxu1  ;;  %2604 = vadd.xlane.f32.xlu0 %v2603_v52  ;;  %v2609_v5 = vadd.f32 %v2464_v9, %v2463_v15  ;;  %v8040_v33 = vld [vmem:[#allocation23_spill] sm:$0xff]  ;;  %v2230_v15 = vadd.f32 %v5797_v27, %v5794_v36  ;;  %v2467_v9 = vmul.f32 %v5794_v36, %v5794_v36  ;;  %v8054_v36 = vld [vmem:[#allocation30_spill] sm:$0xff] }
 0x2a6   : > { %8033 = vst [vmem:[#allocation19_spill] sm:$0xff] %v5818_v56  ;;  %v5824_v30 = vadd.f32 %v1837_v28, %v8036_v57  ;;  %v1839_v20 = vpop.f32.mrb[39].mxu1 }
 0x2a7   : > { %8035 = vst [vmem:[#allocation20_spill] sm:$0xff] %v5821_v50  ;;  %v5827_v0 = vadd.f32 %v1839_v20, %v8038_v38  ;;  %2607 = vadd.xlane.f32.xlu1 %v2606_v6  ;;  %v8042_v6 = vld [vmem:[#allocation24_spill] sm:$0xff]  ;;  %v2612_v38 = vadd.f32 %v2466_v34, %v2465_v32  ;;  %v2233_v32 = vadd.f32 %v5803_v53, %v5800_v58 }
 0x2a8   : > { %8037 = vst [vmem:[#allocation21_spill] sm:$0xff] %v5824_v30  ;;  %v2469_v34 = vmul.f32 %v5800_v58, %v5800_v58 }
 0x2a9   : > { %8039 = vst [vmem:[#allocation22_spill] sm:$0xff] %v5827_v0  ;;  %2225 = vadd.xlane.f32.xlu0 %v2224_v62  ;;  %v8044_v62 = vld [vmem:[#allocation25_spill] sm:$0xff] }
 0x2ab   : > { %v1843_v52 = vpop.f32.mrb[40].mxu1  ;;  %2228 = vadd.xlane.f32.xlu1 %v2227_v46  ;;  %v2468_v46 = vmul.f32 %v5797_v27, %v5797_v27 }
 0x2ac   : > { %v5842_v10 = vadd.f32 %v1843_v52, %v8040_v33  ;;  %v1845_v28 = vpop.f32.mrb[41].mxu1 }
 0x2ad   : > { %v5845_v57 = vadd.f32 %v1845_v28, %v8042_v6  ;;  %v1847_v20 = vpop.f32.mrb[42].mxu1  ;;  %2610 = vadd.xlane.f32.xlu0 %v2609_v5  ;;  %v2615_v52 = vadd.f32 %v2468_v46, %v2467_v9  ;;  %v8048_v5 = vld [vmem:[#allocation27_spill] sm:$0xff]  ;;  %v8050_v6 = vld [vmem:[#allocation28_spill] sm:$0xff]  ;;  %v2236_v9 = vadd.f32 %v5821_v50, %v5818_v56  ;;  %v2471_v46 = vmul.f32 %v5818_v56, %v5818_v56  ;;  %v8062_v56 = vld [vmem:[#allocation34_spill] sm:$0xff] }
 0x2ae   : > { %8041 = vst [vmem:[#allocation23_spill] sm:$0xff] %v5842_v10  ;;  %v5848_v45 = vadd.f32 %v1847_v20, %v8044_v62  ;;  %v1849_v26 = vpop.f32.mrb[43].mxu1 }
 0x2af   : > { %8043 = vst [vmem:[#allocation24_spill] sm:$0xff] %v5845_v57  ;;  %v5851_v40 = vadd.f32 %v1849_v26, %v8046_v55  ;;  %2613 = vadd.xlane.f32.xlu1 %v2612_v38  ;;  %v2470_v26 = vmul.f32 %v5803_v53, %v5803_v53 }
 0x2b0   : > { %8045 = vst [vmem:[#allocation25_spill] sm:$0xff] %v5848_v45 }
 0x2b1   : > { %8047 = vst [vmem:[#allocation26_spill] sm:$0xff] %v5851_v40  ;;  %2231 = vadd.xlane.f32.xlu0 %v2230_v15  ;;  %v2618_v62 = vadd.f32 %v2470_v26, %v2469_v34  ;;  %v8052_v15 = vld [vmem:[#allocation29_spill] sm:$0xff]  ;;  %v2239_v34 = vadd.f32 %v5827_v0, %v5824_v30  ;;  %v2473_v26 = vmul.f32 %v5824_v30, %v5824_v30 }
 0x2b3   : > { %v1853_v55 = vpop.f32.mrb[44].mxu1  ;;  %2234 = vadd.xlane.f32.xlu1 %v2233_v32  ;;  %v2472_v32 = vmul.f32 %v5821_v50, %v5821_v50 }
 0x2b4   : > { %v5866_v33 = vadd.f32 %v1853_v55, %v8048_v5  ;;  %v1855_v28 = vpop.f32.mrb[45].mxu1 }
 0x2b5   : > { %v5869_v20 = vadd.f32 %v1855_v28, %v8050_v6  ;;  %v1857_v38 = vpop.f32.mrb[46].mxu1  ;;  %2616 = vadd.xlane.f32.xlu0 %v2615_v52  ;;  %v2621_v55 = vadd.f32 %v2472_v32, %v2471_v46  ;;  %v8056_v52 = vld [vmem:[#allocation31_spill] sm:$0xff]  ;;  %v8058_v6 = vld [vmem:[#allocation32_spill] sm:$0xff]  ;;  %v2242_v46 = vadd.f32 %v5845_v57, %v5842_v10  ;;  %v2475_v32 = vmul.f32 %v5842_v10, %v5842_v10  ;;  %v8070_v10 = vld [vmem:[#allocation38_spill] sm:$0xff] }
 0x2b6   : > { %8049 = vst [vmem:[#allocation27_spill] sm:$0xff] %v5866_v33  ;;  %v5872_v27 = vadd.f32 %v1857_v38, %v8052_v15  ;;  %v1859_v58 = vpop.f32.mrb[47].mxu1 }
 0x2b7   : > { %8051 = vst [vmem:[#allocation28_spill] sm:$0xff] %v5869_v20  ;;  %v5875_v4 = vadd.f32 %v1859_v58, %v8054_v36  ;;  %2619 = vadd.xlane.f32.xlu1 %v2618_v62  ;;  %v2474_v36 = vmul.f32 %v5827_v0, %v5827_v0 }
 0x2b8   : > { %8053 = vst [vmem:[#allocation29_spill] sm:$0xff] %v5872_v27 }
 0x2b9   : > { %8055 = vst [vmem:[#allocation30_spill] sm:$0xff] %v5875_v4  ;;  %2237 = vadd.xlane.f32.xlu0 %v2236_v9  ;;  %v2624_v15 = vadd.f32 %v2474_v36, %v2473_v26  ;;  %v8060_v9 = vld [vmem:[#allocation33_spill] sm:$0xff]  ;;  %v2245_v26 = vadd.f32 %v5851_v40, %v5848_v45  ;;  %v2477_v36 = vmul.f32 %v5848_v45, %v5848_v45 }
 0x2bb   : > { %v1863_v58 = vpop.f32.mrb[48].mxu1  ;;  %2240 = vadd.xlane.f32.xlu1 %v2239_v34  ;;  %v2476_v34 = vmul.f32 %v5845_v57, %v5845_v57 }
 0x2bc   : > { %v5890_v5 = vadd.f32 %v1863_v58, %v8056_v52  ;;  %v1865_v28 = vpop.f32.mrb[49].mxu1 }
 0x2bd   : > { %v5893_v38 = vadd.f32 %v1865_v28, %v8058_v6  ;;  %v1867_v62 = vpop.f32.mrb[50].mxu1  ;;  %2622 = vadd.xlane.f32.xlu0 %v2621_v55  ;;  %v2627_v58 = vadd.f32 %v2476_v34, %v2475_v32  ;;  %v8064_v55 = vld [vmem:[#allocation35_spill] sm:$0xff]  ;;  %v8066_v6 = vld [vmem:[#allocation36_spill] sm:$0xff]  ;;  %v2248_v32 = vadd.f32 %v5869_v20, %v5866_v33  ;;  %v2479_v34 = vmul.f32 %v5866_v33, %v5866_v33  ;;  %v8078_v33 = vld [vmem:[#allocation42_spill] sm:$0xff] }
 0x2be   : > { %8057 = vst [vmem:[#allocation31_spill] sm:$0xff] %v5890_v5  ;;  %v5896_v50 = vadd.f32 %v1867_v62, %v8060_v9  ;;  %v1869_v30 = vpop.f32.mrb[51].mxu1 }
 0x2bf   : > { %8059 = vst [vmem:[#allocation32_spill] sm:$0xff] %v5893_v38  ;;  %v5899_v53 = vadd.f32 %v1869_v30, %v8062_v56  ;;  %2625 = vadd.xlane.f32.xlu1 %v2624_v15  ;;  %v2478_v56 = vmul.f32 %v5851_v40, %v5851_v40 }
 0x2c0   : > { %8061 = vst [vmem:[#allocation33_spill] sm:$0xff] %v5896_v50 }
 0x2c1   : > { %8063 = vst [vmem:[#allocation34_spill] sm:$0xff] %v5899_v53  ;;  %2243 = vadd.xlane.f32.xlu0 %v2242_v46  ;;  %v2630_v9 = vadd.f32 %v2478_v56, %v2477_v36  ;;  %v8068_v46 = vld [vmem:[#allocation37_spill] sm:$0xff]  ;;  %v2251_v36 = vadd.f32 %v5875_v4, %v5872_v27  ;;  %v2481_v56 = vmul.f32 %v5872_v27, %v5872_v27 }
 0x2c3   : > { %v1873_v30 = vpop.f32.mrb[52].mxu1  ;;  %2246 = vadd.xlane.f32.xlu1 %v2245_v26  ;;  %v2480_v26 = vmul.f32 %v5869_v20, %v5869_v20 }
 0x2c4   : > { %v5914_v52 = vadd.f32 %v1873_v30, %v8064_v55  ;;  %v1875_v28 = vpop.f32.mrb[53].mxu1 }
 0x2c5   : > { %v5917_v62 = vadd.f32 %v1875_v28, %v8066_v6  ;;  %v1877_v15 = vpop.f32.mrb[54].mxu1  ;;  %2628 = vadd.xlane.f32.xlu0 %v2627_v58  ;;  %v2633_v30 = vadd.f32 %v2480_v26, %v2479_v34  ;;  %v8072_v58 = vld [vmem:[#allocation39_spill] sm:$0xff]  ;;  %v8074_v6 = vld [vmem:[#allocation40_spill] sm:$0xff]  ;;  %v2254_v34 = vadd.f32 %v5893_v38, %v5890_v5  ;;  %v2483_v26 = vmul.f32 %v5890_v5, %v5890_v5  ;;  %v8086_v5 = vld [vmem:[#allocation46_spill] sm:$0xff] }
 0x2c6   : > { %8065 = vst [vmem:[#allocation35_spill] sm:$0xff] %v5914_v52  ;;  %v5920_v57 = vadd.f32 %v1877_v15, %v8068_v46  ;;  %v1879_v45 = vpop.f32.mrb[55].mxu1 }
 0x2c7   : > { %8067 = vst [vmem:[#allocation36_spill] sm:$0xff] %v5917_v62  ;;  %v5923_v0 = vadd.f32 %v1879_v45, %v8070_v10  ;;  %2631 = vadd.xlane.f32.xlu1 %v2630_v9  ;;  %v2482_v45 = vmul.f32 %v5875_v4, %v5875_v4 }
 0x2c8   : > { %8069 = vst [vmem:[#allocation37_spill] sm:$0xff] %v5920_v57 }
 0x2c9   : > { %8071 = vst [vmem:[#allocation38_spill] sm:$0xff] %v5923_v0  ;;  %2249 = vadd.xlane.f32.xlu0 %v2248_v32  ;;  %v2636_v46 = vadd.f32 %v2482_v45, %v2481_v56  ;;  %v8076_v32 = vld [vmem:[#allocation41_spill] sm:$0xff]  ;;  %v2257_v56 = vadd.f32 %v5899_v53, %v5896_v50  ;;  %v2485_v45 = vmul.f32 %v5896_v50, %v5896_v50 }
 0x2cb   : > { %v1883_v10 = vpop.f32.mrb[56].mxu1  ;;  %2252 = vadd.xlane.f32.xlu1 %v2251_v36  ;;  %v2484_v36 = vmul.f32 %v5893_v38, %v5893_v38 }
 0x2cc   : > { %v5938_v55 = vadd.f32 %v1883_v10, %v8072_v58  ;;  %v1885_v28 = vpop.f32.mrb[57].mxu1 }
 0x2cd   : > { %v5941_v15 = vadd.f32 %v1885_v28, %v8074_v6  ;;  %v1887_v9 = vpop.f32.mrb[58].mxu1  ;;  %2634 = vadd.xlane.f32.xlu0 %v2633_v30  ;;  %v2639_v10 = vadd.f32 %v2484_v36, %v2483_v26  ;;  %v8080_v30 = vld [vmem:[#allocation43_spill] sm:$0xff]  ;;  %v8082_v6 = vld [vmem:[#allocation44_spill] sm:$0xff]  ;;  %v2260_v26 = vadd.f32 %v5917_v62, %v5914_v52  ;;  %v2487_v36 = vmul.f32 %v5914_v52, %v5914_v52  ;;  %v8094_v52 = vld [vmem:[#allocation50_spill] sm:$0xff] }
 0x2ce   : > { %8073 = vst [vmem:[#allocation39_spill] sm:$0xff] %v5938_v55  ;;  %v5944_v20 = vadd.f32 %v1887_v9, %v8076_v32  ;;  %v1889_v27 = vpop.f32.mrb[59].mxu1 }
 0x2cf   : > { %8075 = vst [vmem:[#allocation40_spill] sm:$0xff] %v5941_v15  ;;  %v5947_v40 = vadd.f32 %v1889_v27, %v8078_v33  ;;  %2637 = vadd.xlane.f32.xlu1 %v2636_v46  ;;  %v2486_v27 = vmul.f32 %v5899_v53, %v5899_v53 }
 0x2d0   : > { %8077 = vst [vmem:[#allocation41_spill] sm:$0xff] %v5944_v20 }
 0x2d1   : > { %8079 = vst [vmem:[#allocation42_spill] sm:$0xff] %v5947_v40  ;;  %2255 = vadd.xlane.f32.xlu0 %v2254_v34  ;;  %v2642_v32 = vadd.f32 %v2486_v27, %v2485_v45  ;;  %v8084_v34 = vld [vmem:[#allocation45_spill] sm:$0xff]  ;;  %v2263_v45 = vadd.f32 %v5923_v0, %v5920_v57  ;;  %v2489_v27 = vmul.f32 %v5920_v57, %v5920_v57 }
 0x2d3   : > { %v1893_v33 = vpop.f32.mrb[60].mxu1  ;;  %2258 = vadd.xlane.f32.xlu1 %v2257_v56  ;;  %v2488_v56 = vmul.f32 %v5917_v62, %v5917_v62 }
 0x2d4   : > { %v5962_v58 = vadd.f32 %v1893_v33, %v8080_v30  ;;  %v1895_v28 = vpop.f32.mrb[61].mxu1 }
 0x2d5   : > { %v5965_v9 = vadd.f32 %v1895_v28, %v8082_v6  ;;  %v1897_v46 = vpop.f32.mrb[62].mxu1  ;;  %2640 = vadd.xlane.f32.xlu0 %v2639_v10  ;;  %v2645_v33 = vadd.f32 %v2488_v56, %v2487_v36  ;;  %v8088_v10 = vld [vmem:[#allocation47_spill] sm:$0xff]  ;;  %v8090_v6 = vld [vmem:[#allocation48_spill] sm:$0xff]  ;;  %v2266_v36 = vadd.f32 %v5941_v15, %v5938_v55  ;;  %v2491_v56 = vmul.f32 %v5938_v55, %v5938_v55  ;;  %v8100_v55 = vld [vmem:[#allocation53_spill] sm:$0xff] }
 0x2d6   : > { %8081 = vst [vmem:[#allocation43_spill] sm:$0xff] %v5962_v58  ;;  %v5968_v38 = vadd.f32 %v1897_v46, %v8084_v34  ;;  %v1899_v50 = vpop.f32.mrb[63].mxu1 }
 0x2d7   : > { %8083 = vst [vmem:[#allocation44_spill] sm:$0xff] %v5965_v9  ;;  %v5971_v4 = vadd.f32 %v1899_v50, %v8086_v5  ;;  %2643 = vadd.xlane.f32.xlu1 %v2642_v32  ;;  %v2490_v50 = vmul.f32 %v5923_v0, %v5923_v0 }
 0x2d8   : > { %8085 = vst [vmem:[#allocation45_spill] sm:$0xff] %v5968_v38 }
 0x2d9   : > { %8087 = vst [vmem:[#allocation46_spill] sm:$0xff] %v5971_v4  ;;  %2261 = vadd.xlane.f32.xlu0 %v2260_v26  ;;  %v2648_v34 = vadd.f32 %v2490_v50, %v2489_v27  ;;  %v8092_v26 = vld [vmem:[#allocation49_spill] sm:$0xff]  ;;  %v2269_v27 = vadd.f32 %v5947_v40, %v5944_v20  ;;  %v2493_v50 = vmul.f32 %v5944_v20, %v5944_v20 }
 0x2db   : > { %v1903_v5 = vpop.f32.mrb[64].mxu1  ;;  %2264 = vadd.xlane.f32.xlu1 %v2263_v45  ;;  %v2492_v45 = vmul.f32 %v5941_v15, %v5941_v15 }
 0x2dc   : > { %v5986_v30 = vadd.f32 %v1903_v5, %v8088_v10  ;;  %v1905_v28 = vpop.f32.mrb[65].mxu1  ;;  %v3389_v5 = vlaneseq  ;;  %v8096_v10 = vld [vmem:[#allocation51_spill] sm:$0xff] }
 0x2dd   : > { %v5989_v46 = vadd.f32 %v1905_v28, %v8090_v6  ;;  %v1907_v32 = vpop.f32.mrb[66].mxu1  ;;  %2646 = vadd.xlane.f32.xlu0 %v2645_v33  ;;  %v2651_v33 = vadd.f32 %v2492_v45, %v2491_v56  ;;  %v2272_v56 = vadd.f32 %v5965_v9, %v5962_v58  ;;  %v2495_v45 = vmul.f32 %v5962_v58, %v5962_v58 }
 0x2de   : > { %8089 = vst [vmem:[#allocation47_spill] sm:$0xff] %v5986_v30  ;;  %v5992_v62 = vadd.f32 %v1907_v32, %v8092_v26  ;;  %v1909_v57 = vpop.f32.mrb[67].mxu1  ;;  %v3390_v32 = vshrl.u32 %v3389_v5, 7  ;;  %v2496_v5 = vmul.f32 %v5965_v9, %v5965_v9 }
 0x2df   : > { %8091 = vst [vmem:[#allocation48_spill] sm:$0xff] %v5989_v46  ;;  %v5995_v53 = vadd.f32 %v1909_v57, %v8094_v52  ;;  %2649 = vadd.xlane.f32.xlu1 %v2648_v34  ;;  %v2494_v57 = vmul.f32 %v5947_v40, %v5947_v40  ;;  %v8098_v34 = vld [vmem:[#allocation52_spill] sm:$0xff] }
 0x2e0   : > { %8093 = vst [vmem:[#allocation49_spill] sm:$0xff] %v5992_v62 }
 0x2e1   : > { %8095 = vst [vmem:[#allocation50_spill] sm:$0xff] %v5995_v53  ;;  %2267 = vadd.xlane.f32.xlu0 %v2266_v36  ;;  %v2654_v15 = vadd.f32 %v2494_v57, %v2493_v50  ;;  %v2497_v50 = vmul.f32 %v5968_v38, %v5968_v38 }
 0x2e3   : > { %v1913_v52 = vpop.f32.mrb[68].mxu1  ;;  %2270 = vadd.xlane.f32.xlu1 %v2269_v27  ;;  %v3391_v27 = vsub.s32 0, %v3390_v32 }
 0x2e4   : > { %v6010_v28 = vadd.f32 %v1913_v52, %v8096_v10  ;;  %v1915_v6 = vpop.f32.mrb[69].mxu1  ;;  %v2657_v52 = vadd.f32 %v2496_v5, %v2495_v45  ;;  %v2278_v45 = vadd.f32 %v5989_v46, %v5986_v30  ;;  %v2499_v5 = vmul.f32 %v5986_v30, %v5986_v30 }
 0x2e5   : > { %v6013_v26 = vadd.f32 %v1915_v6, %v8098_v34  ;;  %v1917_v36 = vpop.f32.mrb[70].mxu1  ;;  %2652 = vadd.xlane.f32.xlu0 %v2651_v33  ;;  %v8104_v33 = vld [vmem:[#allocation55_spill] sm:$0xff]  ;;  %v3537_v34 = vsub.s32 1, %v3390_v32 }
 0x2e6   : > { %8097 = vst [vmem:[#allocation51_spill] sm:$0xff] %v6010_v28  ;;  %v6016_v0 = vadd.f32 %v1917_v36, %v8100_v55  ;;  %v1919_v20 = vpop.f32.mrb[71].mxu1  ;;  %v2275_v55 = vadd.f32 %v5971_v4, %v5968_v38  ;;  %v3541_v36 = vsub.s32 3, %v3390_v32 }
 0x2e7   : > { %8099 = vst [vmem:[#allocation52_spill] sm:$0xff] %v6013_v26  ;;  %v6019_v40 = vadd.f32 %v1919_v20, %v8102_v47  ;;  %2655 = vadd.xlane.f32.xlu1 %v2654_v15  ;;  %v2498_v47 = vmul.f32 %v5971_v4, %v5971_v4  ;;  %v3395_v20 = vsub.s32 2, %v3390_v32  ;;  %v3131_v15 = vld [vmem:[%s7707_s3] sm:$0xf]  ;;  %v2500_v32 = vmul.f32 %v5989_v46, %v5989_v46 }
 0x2e8   : > { %8101 = vst [vmem:[#allocation53_spill] sm:$0xff] %v6016_v0  ;;  %v3392_v58 = vrot.slane %v3131_v15, %v3391_v27 }
 0x2e9   : > { %8103 = vst [vmem:[#allocation54_spill] sm:$0xff] %v6019_v40  ;;  %2273 = vadd.xlane.f32.xlu0 %v2272_v56  ;;  %v8106_v56 = vld [vmem:[#allocation56_spill] sm:$0xff]  ;;  %v2660_v4 = vadd.f32 %v2498_v47, %v2497_v50  ;;  %v3396_v7 = vrot.slane %v3131_v15, %v3395_v20 }
 0x2eb   : > { %v1923_v57 = vpop.f32.mrb[72].mxu1  ;;  %2276 = vadd.xlane.f32.xlu1 %v2275_v55 }
 0x2ec   : > { %v6037_v10 = vadd.f32 %v1923_v57, %v8104_v33  ;;  %v1925_v6 = vpop.f32.mrb[73].mxu1  ;;  %v3538_v33 = vrot.slane %v3131_v15, %v3537_v34 }
 0x2ed   : > { %v6040_v9 = vadd.f32 %v1925_v6, %v8106_v56  ;;  %v1927_v38 = vpop.f32.mrb[74].mxu1  ;;  %2658 = vadd.xlane.f32.xlu0 %v2657_v52  ;;  %v8110_v52 = vld [vmem:[#allocation58_spill] sm:$0xff]  ;;  %v2281_v6 = vadd.f32 %v5995_v53, %v5992_v62  ;;  %v6066_v56 = vrot.slane %v3396_v7, %v3391_v27  ;;  %v2504_v7 = vmul.f32 %v6013_v26, %v6013_v26 }
 0x2ee   : > { %8105 = vst [vmem:[#allocation55_spill] sm:$0xff] %v6037_v10  ;;  %v6043_v23 = vadd.f32 %v1927_v38, %v8108_v21  ;;  %v2184_v18 = vpop.xlane.xlu0 %2183  ;;  %v1929_v55 = vpop.f32.mrb[75].mxu1  ;;  %v2501_v21 = vmul.f32 %v5992_v62, %v5992_v62  ;;  %v2502_v38 = vmul.f32 %v5995_v53, %v5995_v53  ;;  %v2507_v59 = vmul.f32 %v6037_v10, %v6037_v10 }
 0x2ef   : > { %8107 = vst [vmem:[#allocation56_spill] sm:$0xff] %v6040_v9  ;;  %v6051_v57 = vmul.f32 0.00390625, %v2184_v18  ;;  %v6054_v50 = vadd.f32 %v1929_v55, %v8110_v52  ;;  %2661 = vadd.xlane.f32.xlu1 %v2660_v4  ;;  %v6064_v18 = vrot.slane %v3392_v58, %v3391_v27  ;;  %v3542_v55 = vrot.slane %v3131_v15, %v3541_v36 }
 0x2f0   : > { %8109 = vst [vmem:[#allocation57_spill] sm:$0xff] %v6043_v23  ;;  %v2187_v47 = vpop.xlane.xlu1 %2186  ;;  %v2663_v52 = vadd.f32 %v2500_v32, %v2499_v5  ;;  %v2505_v27 = vmul.f32 %v6016_v0, %v6016_v0  ;;  %v2506_v15 = vmul.f32 %v6019_v40, %v6019_v40 }
 0x2f1   : > { %8111 = vst [vmem:[#allocation58_spill] sm:$0xff] %v6054_v50  ;;  %v6060_v20 = vmul.f32 0.00390625, %v2187_v47  ;;  %2279 = vadd.xlane.f32.xlu0 %v2278_v45  ;;  %v2815_v46 = vmul.f32 %v6051_v57, %v6051_v57  ;;  %v2666_v47 = vadd.f32 %v2502_v38, %v2501_v21  ;;  %v2503_v45 = vmul.f32 %v6010_v28, %v6010_v28  ;;  %v8114_v21 = vld [vmem:[#allocation60_spill] sm:$0xff] }
 0x2f2   : > { %v2569_v4 = vpop.xlane.xlu0 %2568  ;;  %v2672_v41 = vadd.f32 %v2506_v15, %v2505_v27 }
 0x2f3   : > { %v2751_v30 = vmul.f32 0.00390625, %v2569_v4  ;;  %v1933_v12 = vpop.f32.mrb[76].mxu1  ;;  %2282 = vadd.xlane.f32.xlu1 %v2281_v6  ;;  %v2816_v5 = vmul.f32 %v6060_v20, %v6060_v20  ;;  %v8116_v6 = vld [vmem:[#allocation61_spill] sm:$0xff] }
 0x2f4   : > { %v6073_v17 = vadd.f32 %v1933_v12, %v8112_v49  ;;  %v2572_v58 = vpop.xlane.xlu1 %2571  ;;  %v1935_v53 = vpop.f32.mrb[77].mxu1  ;;  %v6086_v12 = vrot.slane %v3538_v33, %v3537_v34  ;;  %v2284_v33 = vadd.f32 %v6013_v26, %v6010_v28 }
 0x2f5   : > { %v2879_v36 = vsub.f32 %v2751_v30, %v2815_v46  ;;  %v2752_v32 = vmul.f32 0.00390625, %v2572_v58  ;;  %v6084_v38 = vadd.f32 %v1935_v53, %v8114_v21  ;;  %v1937_v49 = vpop.f32.mrb[78].mxu1  ;;  %2664 = vadd.xlane.f32.xlu0 %v2663_v52  ;;  %v2508_v30 = vmul.f32 %v6040_v9, %v6040_v9 }
 0x2f6   : > { %8113 = vst [vmem:[#allocation59_spill] sm:$0xff] %v6073_v17  ;;  %v6089_v4 = vadd.f32 %v1937_v49, %v8116_v6  ;;  %v1939_v62 = vpop.f32.mrb[79].mxu1  ;;  %v2172_v35 = vpop.xlane.xlu0 %2171  ;;  %v6100_v52 = vrot.slane %v3542_v55, %v3537_v34  ;;  %v2287_v49 = vadd.f32 %v6019_v40, %v6016_v0  ;;  %v2669_v6 = vadd.f32 %v2504_v7, %v2503_v45  ;;  %v8120_v34 = vld [vmem:[#allocation103_spill] sm:$0xff] }
 0x2f7   : > { %8115 = vst [vmem:[#allocation60_spill] sm:$0xff] %v6084_v38  ;;  %v2943_v46 = vmax.f32 %v2879_v36, 0.0  ;;  %v2880_v58 = vsub.f32 %v2752_v32, %v2816_v5  ;;  %v6096_v53 = vadd.f32 %v1939_v62, %v8118_v54  ;;  %2667 = vadd.xlane.f32.xlu1 %v2666_v47  ;;  %v2290_v36 = vadd.f32 %v6040_v9, %v6037_v10  ;;  %v8122_v55 = vld [vmem:[#allocation63_spill] sm:$0xff]  ;;  %v8128_v10 = vld [vmem:[#allocation66_spill] sm:$0xff] }
 0x2f8   : > { %8117 = vst [vmem:[#allocation61_spill] sm:$0xff] %v6089_v4  ;;  %v2560_v21 = vpop.xlane.xlu1 %2559  ;;  %v2509_v54 = vmul.f32 %v6043_v23, %v6043_v23  ;;  %v2293_v45 = vadd.f32 %v6054_v50, %v6043_v23  ;;  %v2675_v7 = vadd.f32 %v2508_v30, %v2507_v59  ;;  %v6114_v15 = vmul.f32 0.00390625, %v2172_v35 }
 0x2f9   : > { %8119 = vst [vmem:[#allocation62_spill] sm:$0xff] %v6096_v53  ;;  %v3007_v2 = vadd.f32 1e-05, %v2943_v46  ;;  %v2944_v31 = vmax.f32 %v2880_v58, 0.0  ;;  %2285 = vadd.xlane.f32.xlu0 %v2284_v33  ;;  %v8121_v46 = vld [vmem:[#allocation104_spill] sm:$0xff]  ;;  %v2511_v30 = vmul.f32 %v6073_v17, %v6073_v17 }
 0x2fa   : > { %v2175_v47 = vpop.xlane.xlu0 %2174 }
 0x2fb   : > { %4418 = vrsqrt.f32 %v3007_v2  ;;  %v3008_v27 = vadd.f32 1e-05, %v2944_v31  ;;  %v6116_v5 = vmul.f32 0.00390625, %v2175_v47  ;;  %v1943_v32 = vpop.f32.mrb[80].mxu1  ;;  %2288 = vadd.xlane.f32.xlu1 %v2287_v49  ;;  %v2510_v31 = vmul.f32 %v6054_v50, %v6054_v50  ;;  %v8124_v49 = vld [vmem:[#allocation64_spill] sm:$0xff] }
 0x2fc   : > { %v6123_v62 = vadd.f32 %v1943_v32, %v8122_v55  ;;  %v1945_v9 = vpop.f32.mrb[81].mxu1  ;;  %v2193_v23 = vpop.xlane.xlu1 %2192  ;;  %v2748_v2 = vmul.f32 0.00390625, %v2560_v21  ;;  %v8126_v32 = vld [vmem:[#allocation65_spill] sm:$0xff]  ;;  %v2512_v21 = vmul.f32 %v6084_v38, %v6084_v38 }
 0x2fd   : > { %4420 = vrsqrt.f32 %v3008_v27  ;;  %v2812_v59 = vmul.f32 %v6116_v5, %v6116_v5  ;;  %v1947_v35 = vpop.f32.mrb[82].mxu1  ;;  %2670 = vadd.xlane.f32.xlu0 %v2669_v6  ;;  %v6132_v47 = vadd.f32 %v1945_v9, %v8124_v49  ;;  %v6134_v55 = vmul.f32 0.00390625, %v2193_v23 }
 0x2fe   : > { %8123 = vst [vmem:[#allocation103_spill] sm:$0xff] %v6123_v62  ;;  %v6137_v33 = vadd.f32 %v1947_v35, %v8126_v32  ;;  %v1949_v58 = vpop.f32.mrb[83].mxu1  ;;  %v2557_v50 = vpop.xlane.xlu0 %2556  ;;  %v2811_v6 = vmul.f32 %v6114_v15, %v6114_v15  ;;  %v2678_v23 = vadd.f32 %v2510_v31, %v2509_v54  ;;  %v2296_v35 = vadd.f32 %v6084_v38, %v6073_v17 }
 0x2ff   : > { %8125 = vst [vmem:[#allocation104_spill] sm:$0xff] %v6132_v47  ;;  %v2876_v27 = vsub.f32 %v2748_v2, %v2812_v59  ;;  %v6142_v40 = vadd.f32 %v1949_v58, %v8128_v10  ;;  %v2747_v0 = vmul.f32 0.00390625, %v2557_v50  ;;  %2673 = vadd.xlane.f32.xlu1 %v2672_v41  ;;  %v2513_v49 = vmul.f32 %v6089_v4, %v6089_v4  ;;  %v8130_v41 = vld [vmem:[#allocation67_spill] sm:$0xff] }
 0x300   : > { %8127 = vst [vmem:[#allocation63_spill] sm:$0xff] %v6137_v33  ;;  %v2578_v9 = vpop.xlane.xlu1 %2577  ;;  %v2514_v32 = vmul.f32 %v6096_v53, %v6096_v53  ;;  %v2818_v10 = vmul.f32 %v6134_v55, %v6134_v55  ;;  %v2299_v31 = vadd.f32 %v6096_v53, %v6089_v4  ;;  %v6160_v38 = vadd.f32 %v2512_v21, %v2511_v30  ;;  %v8136_v4 = vld [vmem:[#allocation69_spill] sm:$0xff] }
 0x301   : > { %8129 = vst [vmem:[#allocation64_spill] sm:$0xff] %v6142_v40  ;;  %v2940_v2 = vmax.f32 %v2876_v27, 0.0  ;;  %v2875_v59 = vsub.f32 %v2747_v0, %v2811_v6  ;;  %v2754_v58 = vmul.f32 0.00390625, %v2578_v9  ;;  %2291 = vadd.xlane.f32.xlu0 %v2290_v36  ;;  %v6173_v30 = vmul.f32 %v6123_v62, %v6123_v62  ;;  %v8134_v9 = vld [vmem:[#allocation68_spill] sm:$0xff] }
 0x302   : > { %v2190_v54 = vpop.xlane.xlu0 %2189  ;;  %v6169_v53 = vadd.f32 %v2514_v32, %v2513_v49  ;;  %v8133_v49 = vsub.f32 %v8120_v34, %v6051_v57  ;;  %v8138_v34 = vsub.f32 %v8121_v46, %v6060_v20 }
 0x303   : > { %v3004_v17 = vadd.f32 1e-05, %v2940_v2  ;;  %v2939_v27 = vmax.f32 %v2875_v59, 0.0  ;;  %v2882_v6 = vsub.f32 %v2754_v58, %v2818_v10  ;;  %v1953_v36 = vpop.f32.mrb[84].mxu1  ;;  %2294 = vadd.xlane.f32.xlu1 %v2293_v45  ;;  %v8132_v58 = vsub.f32 %v5571_v63, %v6051_v57 }
 0x304   : > { %v6167_v50 = vadd.f32 %v1953_v36, %v8130_v41  ;;  %v1955_v26 = vpop.f32.mrb[85].mxu1  ;;  %v2178_v28 = vpop.xlane.xlu1 %2177  ;;  %v6184_v36 = vmul.f32 0.00390625, %v2190_v54  ;;  %v8139_v54 = vsub.f32 %v5582_v48, %v6060_v20 }
 0x305   : > { %v4419_v21 = vpop.eup %4418  ;;  %4422 = vrsqrt.f32 %v3004_v17  ;;  %v3003_v45 = vadd.f32 1e-05, %v2939_v27  ;;  %v2946_v59 = vmax.f32 %v2882_v6, 0.0  ;;  %v1957_v10 = vpop.f32.mrb[86].mxu1  ;;  %2676 = vadd.xlane.f32.xlu0 %v2675_v7  ;;  %v6187_v17 = vadd.f32 %v1955_v26, %v8134_v9 }
 0x306   : > { %8131 = vst [vmem:[#allocation65_spill] sm:$0xff] %v6167_v50  ;;  %v3268_v41 = vmul.f32 %v4419_v21, %v8132_v58  ;;  %v3269_v32 = vmul.f32 %v4419_v21, %v8133_v49  ;;  %v1959_v0 = vpop.f32.mrb[87].mxu1  ;;  %v2575_v2 = vpop.xlane.xlu0 %2574  ;;  %v6189_v7 = vmul.f32 0.00390625, %v2178_v28  ;;  %v6192_v37 = vadd.f32 %v1957_v10, %v8136_v4  ;;  %v8140_v4 = vld [vmem:[#allocation70_spill] sm:$0xff] }
 0x307   : > { %8135 = vst [vmem:[#allocation66_spill] sm:$0xff] %v6187_v17  ;;  %v4421_v27 = vpop.eup %4420  ;;  %4424 = vrsqrt.f32 %v3003_v45  ;;  %v3010_v6 = vadd.f32 1e-05, %v2946_v59  ;;  %2679 = vadd.xlane.f32.xlu1 %v2678_v23  ;;  %v6205_v23 = vadd.f32 %v1959_v0, %v8140_v4  ;;  %v2516_v45 = vmul.f32 %v6132_v47, %v6132_v47 }
 0x308   : > { %8137 = vst [vmem:[#allocation67_spill] sm:$0xff] %v6192_v37  ;;  %v3415_v63 = vmul.f32 %v6064_v18, %v3268_v41  ;;  %v3416_v57 = vmul.f32 %v6066_v56, %v3269_v32  ;;  %v3270_v26 = vmul.f32 %v4421_v27, %v8138_v34  ;;  %v3271_v9 = vmul.f32 %v4421_v27, %v8139_v54  ;;  %v2181_v21 = vpop.xlane.xlu1 %2180 }
 0x309   : > { %4426 = vrsqrt.f32 %v3010_v6  ;;  %8141 = vst [vmem:[#allocation68_spill] sm:$0xff] %v6205_v23  ;;  %2297 = vadd.xlane.f32.xlu0 %v2296_v35  ;;  %v2817_v58 = vmul.f32 %v6184_v36, %v6184_v36  ;;  %v2753_v41 = vmul.f32 0.00390625, %v2575_v2  ;;  %v6215_v49 = vmul.f32 0.00390625, %v2181_v21  ;;  %v8142_v6 = vld [vmem:[#allocation71_spill] sm:$0xff] }
 0x30a   : > { %v3561_v46 = vadd.f32 %v6086_v12, %v3415_v63  ;;  %v3562_v59 = vadd.f32 %v6100_v52, %v3416_v57  ;;  %v3417_v48 = vmul.f32 %v6064_v18, %v3270_v26  ;;  %v3418_v20 = vmul.f32 %v6066_v56, %v3271_v9  ;;  %v2563_v10 = vpop.xlane.xlu0 %2562  ;;  %v8144_v26 = vld [vmem:[#allocation72_spill] sm:$0xff] }
 0x30b   : > { %v2749_v0 = vmul.f32 0.00390625, %v2563_v10  ;;  %v1963_v35 = vpop.f32.mrb[88].mxu1  ;;  %2300 = vadd.xlane.f32.xlu1 %v2299_v31  ;;  %v2813_v2 = vmul.f32 %v6189_v7, %v6189_v7  ;;  %v2881_v34 = vsub.f32 %v2753_v41, %v2817_v58  ;;  %v2517_v21 = vmul.f32 %v6137_v33, %v6137_v33 }
 0x30c   : > { %3689 = vst [vmem:[%s6219_s12 + $0x40] sm:$0xff] %v3561_v46  ;;  %3690 = vst [vmem:[%s6219_s12 + $0x48] sm:$0xff] %v3562_v59  ;;  %v3563_v32 = vadd.f32 %v6086_v12, %v3417_v48  ;;  %v3564_v27 = vadd.f32 %v6100_v52, %v3418_v20  ;;  %v6228_v63 = vadd.f32 %v1963_v35, %v8142_v6  ;;  %v1965_v31 = vpop.f32.mrb[89].mxu1  ;;  %v2566_v57 = vpop.xlane.xlu1 %2565  ;;  %v8146_v35 = vld [vmem:[#allocation73_spill] sm:$0xff] }
 0x30d   : > { %v6231_v54 = vadd.f32 %v1965_v31, %v8144_v26  ;;  %v1967_v9 = vpop.f32.mrb[90].mxu1  ;;  %2682 = vadd.xlane.f32.xlu0 %v6160_v38  ;;  %v2518_v4 = vmul.f32 %v6142_v40, %v6142_v40  ;;  %v2877_v46 = vsub.f32 %v2749_v0, %v2813_v2  ;;  %v2814_v59 = vmul.f32 %v6215_v49, %v6215_v49  ;;  %v8148_v31 = vld [vmem:[#allocation74_spill] sm:$0xff] }
 0x30e   : > { %8143 = vst [vmem:[#allocation69_spill] sm:$0xff] %v6228_v63  ;;  %3691 = vst [vmem:[%s6219_s12 + $0x50] sm:$0xff] %v3563_v32  ;;  %v2750_v48 = vmul.f32 0.00390625, %v2566_v57  ;;  %v1969_v20 = vpop.f32.mrb[91].mxu1  ;;  %v2196_v10 = vpop.xlane.xlu0 %2195  ;;  %v2302_v58 = vadd.f32 %v6132_v47, %v6123_v62  ;;  %v2945_v38 = vmax.f32 %v2881_v34, 0.0  ;;  %v6245_v6 = vadd.f32 %v1967_v9, %v8146_v35  ;;  %v8196_v47 = vld [vmem:[#allocation111_spill] sm:$0xff] }
 0x30f   : > { %8145 = vst [vmem:[#allocation70_spill] sm:$0xff] %v6231_v54  ;;  %3692 = vst [vmem:[%s6219_s12 + $0x58] sm:$0xff] %v3564_v27  ;;  %v4423_v41 = vpop.eup %4422  ;;  %v6248_v26 = vadd.f32 %v1969_v20, %v8148_v31  ;;  %2685 = vadd.xlane.f32.xlu1 %v6169_v53  ;;  %v2305_v0 = vadd.f32 %v6142_v40, %v6137_v33  ;;  %v8150_v32 = vsub.f32 %v5604_v43, %v6116_v5 }
 0x310   : > { %8147 = vst [vmem:[#allocation71_spill] sm:$0xff] %v6245_v6  ;;  %v8151_v2 = vsub.f32 %v5607_v29, %v6116_v5  ;;  %v2941_v34 = vmax.f32 %v2877_v46, 0.0  ;;  %v2878_v28 = vsub.f32 %v2750_v48, %v2814_v59  ;;  %v2199_v9 = vpop.xlane.xlu1 %2198  ;;  %v3144_v20 = vsub.f32 %v5610_v39, %v6184_v36 }
 0x311   : > { %8149 = vst [vmem:[#allocation72_spill] sm:$0xff] %v6248_v26  ;;  %v3262_v27 = vmul.f32 %v4423_v41, %v8150_v32  ;;  %v4425_v35 = vpop.eup %4424  ;;  %v3009_v31 = vadd.f32 1e-05, %v2945_v38  ;;  %2303 = vadd.xlane.f32.xlu0 %v2302_v58  ;;  %v2687_v53 = vadd.f32 %v2516_v45, %v6173_v30  ;;  %v2690_v40 = vadd.f32 %v2518_v4, %v2517_v21 }
 0x312   : > { %v3263_v57 = vmul.f32 %v4423_v41, %v8151_v2  ;;  %v8152_v29 = vsub.f32 %v5592_v51, %v6114_v15  ;;  %v8153_v46 = vsub.f32 %v5599_v44, %v6114_v15  ;;  %v2581_v48 = vpop.xlane.xlu0 %2580  ;;  %v3005_v38 = vadd.f32 1e-05, %v2941_v34 }
 0x313   : > { %v3409_v33 = vmul.f32 %v6064_v18, %v3262_v27  ;;  %v4427_v41 = vpop.eup %4426  ;;  %4428 = vrsqrt.f32 %v3009_v31  ;;  %v2942_v58 = vmax.f32 %v2878_v28, 0.0  ;;  %v6270_v30 = vmul.f32 0.00390625, %v2196_v10  ;;  %v1973_v45 = vpop.f32.mrb[92].mxu1  ;;  %2306 = vadd.xlane.f32.xlu1 %v2305_v0 }
 0x314   : > { %v3410_v43 = vmul.f32 %v6066_v56, %v3263_v57  ;;  %v3260_v5 = vmul.f32 %v4425_v35, %v8152_v29  ;;  %v3261_v59 = vmul.f32 %v4425_v35, %v8153_v46  ;;  %v1975_v15 = vpop.f32.mrb[93].mxu1  ;;  %v2584_v32 = vpop.xlane.xlu1 %2583  ;;  %v8154_v27 = vsub.f32 %v5618_v13, %v6134_v55 }
 0x315   : > { %v3555_v21 = vadd.f32 %v6086_v12, %v3409_v33  ;;  %v8155_v10 = vsub.f32 %v5624_v60, %v6134_v55  ;;  %4430 = vrsqrt.f32 %v3005_v38  ;;  %v3006_v0 = vadd.f32 1e-05, %v2942_v58  ;;  %v1977_v33 = vpop.f32.mrb[94].mxu1  ;;  %2688 = vadd.xlane.f32.xlu0 %v2687_v53  ;;  %v8158_v38 = vld [vmem:[#allocation76_spill] sm:$0xff] }
 0x316   : > { %v3556_v51 = vadd.f32 %v6100_v52, %v3410_v43  ;;  %v3407_v4 = vmul.f32 %v6064_v18, %v3260_v5  ;;  %v3408_v44 = vmul.f32 %v6066_v56, %v3261_v59  ;;  %v3274_v28 = vmul.f32 %v4427_v41, %v8154_v27  ;;  %v1979_v31 = vpop.f32.mrb[95].mxu1  ;;  %v2202_v60 = vpop.xlane.xlu0 %2201  ;;  %v8156_v5 = vld [vmem:[#allocation75_spill] sm:$0xff] }
 0x317   : > { %v3275_v2 = vmul.f32 %v4427_v41, %v8155_v10  ;;  %3683 = vst [vmem:[%s6219_s12 + $0x10] sm:$0xff] %v3555_v21  ;;  %v3145_v13 = vsub.f32 %v5613_v42, %v6184_v36  ;;  %v6288_v35 = vmul.f32 0.00390625, %v2199_v9  ;;  %v3136_v53 = vsub.f32 %v5632_v25, %v6189_v7  ;;  %2691 = vadd.xlane.f32.xlu1 %v2690_v40 }
 0x318   : > { %3684 = vst [vmem:[%s6219_s12 + $0x18] sm:$0xff] %v3556_v51  ;;  %v3553_v57 = vadd.f32 %v6086_v12, %v3407_v4  ;;  %v3554_v34 = vadd.f32 %v6100_v52, %v3408_v44  ;;  %v3421_v55 = vmul.f32 %v6064_v18, %v3274_v28  ;;  %4432 = vrsqrt.f32 %v3006_v0  ;;  %v2205_v59 = vpop.xlane.xlu1 %2204  ;;  %v8162_v44 = vld [vmem:[#allocation78_spill] sm:$0xff] }
 0x319   : > { %v3422_v43 = vmul.f32 %v6066_v56, %v3275_v2  ;;  %v3137_v42 = vsub.f32 %v5637_v11, %v6189_v7  ;;  %v2819_v9 = vmul.f32 %v6270_v30, %v6270_v30  ;;  %v2755_v29 = vmul.f32 0.00390625, %v2581_v48  ;;  %v8160_v48 = vld [vmem:[#allocation77_spill] sm:$0xff] }
 0x31a   : > { %3681 = vst [vmem:[%s6219_s12] sm:$0xff] %v3553_v57  ;;  %3682 = vst [vmem:[%s6219_s12 + $0x8] sm:$0xff] %v3554_v34  ;;  %v6301_v46 = vadd.f32 %v1973_v45, %v8156_v5  ;;  %v3567_v41 = vadd.f32 %v6086_v12, %v3421_v55  ;;  %v3138_v40 = vsub.f32 %v5642_v3, %v6215_v49  ;;  %v2756_v7 = vmul.f32 0.00390625, %v2584_v32  ;;  %v2587_v45 = vpop.xlane.xlu0 %2586 }
 0x31b   : > { %v3568_v25 = vadd.f32 %v6100_v52, %v3422_v43  ;;  %v6308_v58 = vadd.f32 %v1975_v15, %v8158_v38  ;;  %v2883_v21 = vsub.f32 %v2755_v29, %v2819_v9  ;;  %v2820_v11 = vmul.f32 %v6288_v35, %v6288_v35  ;;  %v1983_v28 = vpop.f32.mrb[96].mxu1 }
 0x31c   : > { %8157 = vst [vmem:[#allocation73_spill] sm:$0xff] %v6301_v46  ;;  %v6313_v51 = vadd.f32 %v1977_v33, %v8160_v48  ;;  %3695 = vst [vmem:[%s6219_s12 + $0x70] sm:$0xff] %v3567_v41  ;;  %v3139_v4 = vsub.f32 %v5650_v19, %v6215_v49  ;;  %v6321_v3 = vmul.f32 %v6228_v63, %v6228_v63  ;;  %v6326_v27 = vmul.f32 0.00390625, %v2202_v60  ;;  %v1985_v19 = vpop.f32.mrb[97].mxu1  ;;  %v2590_v49 = vpop.xlane.xlu1 %2589  ;;  %v8164_v48 = vld [vmem:[#allocation79_spill] sm:$0xff] }
 0x31d   : > { %8159 = vst [vmem:[#allocation74_spill] sm:$0xff] %v6308_v58  ;;  %3696 = vst [vmem:[%s6219_s12 + $0x78] sm:$0xff] %v3568_v25  ;;  %v6324_v15 = vadd.f32 %v1979_v31, %v8162_v44  ;;  %v6330_v32 = vmul.f32 %v6231_v54, %v6231_v54  ;;  %v2947_v10 = vmax.f32 %v2883_v21, 0.0  ;;  %v2884_v2 = vsub.f32 %v2756_v7, %v2820_v11  ;;  %v4429_v33 = vpop.eup %4428  ;;  %v1987_v55 = vpop.f32.mrb[98].mxu1 }
 0x31e   : > { %8161 = vst [vmem:[#allocation75_spill] sm:$0xff] %v6313_v51  ;;  %v2308_v0 = vadd.f32 %v6187_v17, %v6167_v50  ;;  %v6336_v57 = vmul.f32 %v6245_v6, %v6245_v6  ;;  %v6340_v34 = vmul.f32 %v6248_v26, %v6248_v26  ;;  %v3272_v43 = vmul.f32 %v4429_v33, %v3144_v20  ;;  %v1989_v41 = vpop.f32.mrb[99].mxu1  ;;  %v2208_v25 = vpop.xlane.xlu0 %2207 }
 0x31f   : > { %8163 = vst [vmem:[#allocation76_spill] sm:$0xff] %v6324_v15  ;;  %v3273_v9 = vmul.f32 %v4429_v33, %v3145_v13  ;;  %v3011_v29 = vadd.f32 1e-05, %v2947_v10  ;;  %v2948_v5 = vmax.f32 %v2884_v2, 0.0  ;;  %v4431_v38 = vpop.eup %4430  ;;  %v2821_v11 = vmul.f32 %v6326_v27, %v6326_v27 }
 0x320   : > { %2309 = vadd.xlane.f32.xlu0 %v2308_v0  ;;  %v2757_v7 = vmul.f32 0.00390625, %v2587_v45  ;;  %v6354_v44 = vadd.f32 %v1983_v28, %v8164_v48  ;;  %v3419_v39 = vmul.f32 %v6064_v18, %v3272_v43  ;;  %v3264_v20 = vmul.f32 %v4431_v38, %v3136_v53  ;;  %v6358_v10 = vpop.xlane.xlu1 %2210 }
 0x321   : > { %v3420_v36 = vmul.f32 %v6066_v56, %v3273_v9  ;;  %v3265_v13 = vmul.f32 %v4431_v38, %v3137_v42  ;;  %4434 = vrsqrt.f32 %v3011_v29  ;;  %v3012_v0 = vadd.f32 1e-05, %v2948_v5 }
 0x322   : > { %8165 = vst [vmem:[#allocation77_spill] sm:$0xff] %v6354_v44  ;;  %v4433_v2 = vpop.eup %4432  ;;  %v6360_v33 = vmul.f32 0.00390625, %v2205_v59  ;;  %v2885_v21 = vsub.f32 %v2757_v7, %v2821_v11  ;;  %v3565_v45 = vadd.f32 %v6086_v12, %v3419_v39  ;;  %v3411_v43 = vmul.f32 %v6064_v18, %v3264_v20  ;;  %v6366_v53 = vpop.xlane.xlu0 %2592  ;;  %v8166_v7 = vld [vmem:[#allocation80_spill] sm:$0xff] }
 0x323   : > { %v3566_v28 = vadd.f32 %v6100_v52, %v3420_v36  ;;  %v3412_v9 = vmul.f32 %v6066_v56, %v3265_v13  ;;  %v3266_v42 = vmul.f32 %v4433_v2, %v3138_v40  ;;  %v3267_v38 = vmul.f32 %v4433_v2, %v3139_v4  ;;  %v1993_v29 = vpop.f32.mrb[100].mxu1 }
 0x324   : > { %4436 = vrsqrt.f32 %v3012_v0  ;;  %v2949_v48 = vmax.f32 %v2885_v21, 0.0  ;;  %3693 = vst [vmem:[%s6219_s12 + $0x60] sm:$0xff] %v3565_v45  ;;  %v3557_v59 = vadd.f32 %v6086_v12, %v3411_v43  ;;  %v2311_v11 = vadd.f32 %v6205_v23, %v6192_v37  ;;  %v1995_v36 = vpop.f32.mrb[101].mxu1  ;;  %v6377_v40 = vpop.xlane.xlu1 %2595  ;;  %v8168_v45 = vld [vmem:[#allocation81_spill] sm:$0xff] }
 0x325   : > { %3694 = vst [vmem:[%s6219_s12 + $0x68] sm:$0xff] %v3566_v28  ;;  %v3558_v5 = vadd.f32 %v6100_v52, %v3412_v9  ;;  %v6375_v39 = vadd.f32 %v1985_v19, %v8166_v7  ;;  %v3413_v4 = vmul.f32 %v6064_v18, %v3266_v42  ;;  %v3414_v21 = vmul.f32 %v6066_v56, %v3267_v38  ;;  %v6383_v2 = vpop.f32.mrb[102].mxu1 }
 0x326   : > { %v3151_v20 = vsub.f32 %v5665_v16, %v6288_v35  ;;  %v3013_v13 = vadd.f32 1e-05, %v2949_v48  ;;  %3685 = vst [vmem:[%s6219_s12 + $0x20] sm:$0xff] %v3557_v59  ;;  %2312 = vadd.xlane.f32.xlu1 %v2311_v11  ;;  %v2822_v19 = vmul.f32 %v6360_v33, %v6360_v33  ;;  %v2758_v0 = vmul.f32 0.00390625, %v2590_v49  ;;  %v6394_v9 = vpop.f32.mrb[103].mxu1  ;;  %v6396_v16 = vpop.xlane.xlu0 %2213 }
 0x327   : > { %8167 = vst [vmem:[#allocation78_spill] sm:$0xff] %v6375_v39  ;;  %3686 = vst [vmem:[%s6219_s12 + $0x28] sm:$0xff] %v3558_v5  ;;  %v6390_v28 = vadd.f32 %v1987_v55, %v8168_v45  ;;  %v2519_v43 = vmul.f32 %v6167_v50, %v6167_v50  ;;  %v3559_v42 = vadd.f32 %v6086_v12, %v3413_v4  ;;  %v8170_v5 = vld [vmem:[#allocation82_spill] sm:$0xff] }
 0x328   : > { %v3560_v38 = vadd.f32 %v6100_v52, %v3414_v21  ;;  %4438 = vrsqrt.f32 %v3013_v13  ;;  %v2520_v48 = vmul.f32 %v6187_v17, %v6187_v17  ;;  %v6404_v49 = vmul.f32 %v6301_v46, %v6301_v46  ;;  %v6413_v7 = vpop.xlane.xlu1 %2216 }
 0x329   : > { %8169 = vst [vmem:[#allocation79_spill] sm:$0xff] %v6390_v28  ;;  %v6408_v55 = vmul.f32 %v6308_v58, %v6308_v58  ;;  %v2886_v59 = vsub.f32 %v2758_v0, %v2822_v19  ;;  %v6411_v11 = vadd.f32 %v1989_v41, %v8170_v5  ;;  %3687 = vst [vmem:[%s6219_s12 + $0x30] sm:$0xff] %v3559_v42  ;;  %v6417_v21 = vmul.f32 0.00390625, %v2208_v25 }
 0x32a   : > { %3688 = vst [vmem:[%s6219_s12 + $0x38] sm:$0xff] %v3560_v38  ;;  %v2693_v4 = vadd.f32 %v2520_v48, %v2519_v43  ;;  %v2521_v13 = vmul.f32 %v6192_v37, %v6192_v37  ;;  %v2522_v45 = vmul.f32 %v6205_v23, %v6205_v23  ;;  %v6425_v60 = vmul.f32 %v6313_v51, %v6313_v51  ;;  %v6433_v25 = vpop.xlane.xlu0 %2598 }
 0x32b   : > { %8171 = vst [vmem:[#allocation80_spill] sm:$0xff] %v6411_v11  ;;  %v6429_v41 = vmul.f32 %v6324_v15, %v6324_v15  ;;  %v3152_v19 = vsub.f32 %v5674_v61, %v6326_v27  ;;  %v2950_v0 = vmax.f32 %v2886_v59, 0.0  ;;  %v4435_v43 = vpop.eup %4434  ;;  %v3153_v42 = vsub.f32 %v5677_v8, %v6326_v27  ;;  %v6442_v31 = vpop.f32.mrb[104].mxu1 }
 0x32c   : > { %2694 = vadd.xlane.f32.xlu0 %v2693_v4  ;;  %v2696_v48 = vadd.f32 %v2522_v45, %v2521_v13  ;;  %v6440_v5 = vmul.f32 0.00390625, %v6358_v10  ;;  %v8172_v61 = vsub.f32 %v5647_v14, %v6270_v30  ;;  %v8173_v23 = vsub.f32 %v5655_v22, %v6270_v30  ;;  %v6452_v27 = vpop.f32.mrb[105].mxu1  ;;  %v6454_v4 = vpop.xlane.xlu1 %2601  ;;  %v8174_v45 = vld [vmem:[#allocation83_spill] sm:$0xff]  ;;  %v8176_v22 = vld [vmem:[#allocation84_spill] sm:$0xff] }
 0x32d   : > { %v3014_v17 = vadd.f32 1e-05, %v2950_v0  ;;  %v2314_v8 = vadd.f32 %v6231_v54, %v6228_v63  ;;  %v2823_v13 = vmul.f32 %v6417_v21, %v6417_v21  ;;  %v2759_v14 = vmul.f32 0.00390625, %v6366_v53  ;;  %v6465_v30 = vpop.f32.mrb[106].mxu1 }
 0x32e   : > { %v3276_v59 = vmul.f32 %v4435_v43, %v8172_v61  ;;  %v3277_v37 = vmul.f32 %v4435_v43, %v8173_v23  ;;  %v4437_v10 = vpop.eup %4436  ;;  %2697 = vadd.xlane.f32.xlu1 %v2696_v48  ;;  %v6460_v61 = vadd.f32 %v1993_v29, %v8174_v45  ;;  %v6463_v23 = vadd.f32 %v1995_v36, %v8176_v22  ;;  %v6472_v63 = vpop.f32.mrb[107].mxu1  ;;  %v8179_v29 = vld [vmem:[#allocation105_spill] sm:$0xff] }
 0x32f   : > { %v8178_v48 = vsub.f32 %v5662_v24, %v6288_v35  ;;  %v3279_v54 = vmul.f32 %v4437_v10, %v3151_v20  ;;  %v6474_v53 = vpop.xlane.xlu0 %2219  ;;  %4440 = vrsqrt.f32 %v3014_v17  ;;  %v2887_v36 = vsub.f32 %v2759_v14, %v2823_v13  ;;  %v8180_v13 = vld [vmem:[#allocation85_spill] sm:$0xff] }
 0x330   : > { %8175 = vst [vmem:[#allocation81_spill] sm:$0xff] %v6460_v61  ;;  %8177 = vst [vmem:[#allocation82_spill] sm:$0xff] %v6463_v23  ;;  %v3423_v0 = vmul.f32 %v6064_v18, %v3276_v59  ;;  %v3424_v43 = vmul.f32 %v6066_v56, %v3277_v37  ;;  %2315 = vadd.xlane.f32.xlu0 %v2314_v8  ;;  %v2317_v37 = vadd.f32 %v6248_v26, %v6245_v6  ;;  %v8184_v26 = vld [vmem:[#allocation87_spill] sm:$0xff] }
 0x331   : > { %v3278_v38 = vmul.f32 %v4437_v10, %v8178_v48  ;;  %v3426_v20 = vmul.f32 %v6066_v56, %v3279_v54  ;;  %v6484_v10 = vpop.xlane.xlu1 %2222  ;;  %v2951_v48 = vmax.f32 %v2887_v36, 0.0  ;;  %v2824_v17 = vmul.f32 %v6440_v5, %v6440_v5 }
 0x332   : > { %v3569_v59 = vadd.f32 %v6086_v12, %v3423_v0  ;;  %v3570_v24 = vadd.f32 %v6100_v52, %v3424_v43  ;;  %v4439_v22 = vpop.eup %4438  ;;  %2318 = vadd.xlane.f32.xlu1 %v2317_v37  ;;  %v2760_v8 = vmul.f32 0.00390625, %v6377_v40  ;;  %v6491_v14 = vadd.f32 %v6383_v2, %v8180_v13 }
 0x333   : > { %v3425_v35 = vmul.f32 %v6064_v18, %v3278_v38  ;;  %v3572_v38 = vadd.f32 %v6100_v52, %v3426_v20  ;;  %v3280_v0 = vmul.f32 %v4439_v22, %v3152_v19  ;;  %v3281_v43 = vmul.f32 %v4439_v22, %v3153_v42  ;;  %v6497_v36 = vpop.xlane.xlu0 %2604  ;;  %v6505_v13 = vpop.f32.mrb[108].mxu1  ;;  %v8181_v42 = vld [vmem:[#allocation86_spill] sm:$0xff] }
 0x334   : > { %3697 = vst [vmem:[%s6219_s12 + $0x80] sm:$0xff] %v3569_v59  ;;  %3698 = vst [vmem:[%s6219_s12 + $0x88] sm:$0xff] %v3570_v24  ;;  %v6501_v37 = vmul.f32 %v6354_v44, %v6354_v44  ;;  %v3015_v45 = vadd.f32 1e-05, %v2951_v48  ;;  %v2888_v40 = vsub.f32 %v2760_v8, %v2824_v17  ;;  %v2699_v2 = vadd.f32 %v6330_v32, %v6321_v3  ;;  %v6518_v20 = vpop.f32.mrb[109].mxu1 }
 0x335   : > { %v3571_v54 = vadd.f32 %v6086_v12, %v3425_v35  ;;  %3700 = vst [vmem:[%s6219_s12 + $0x98] sm:$0xff] %v3572_v38  ;;  %v3427_v59 = vmul.f32 %v6064_v18, %v3280_v0  ;;  %v3428_v19 = vmul.f32 %v6066_v56, %v3281_v43  ;;  %v6513_v24 = vadd.f32 %v6394_v9, %v8181_v42  ;;  %v6520_v22 = vpop.xlane.xlu1 %2607  ;;  %v6528_v48 = vpop.f32.mrb[110].mxu1  ;;  %v8183_v0 = vld [vmem:[#allocation107_spill] sm:$0xff] }
 0x336   : > { %v6516_v35 = vmul.f32 0.00390625, %v6396_v16  ;;  %v6524_v3 = vmul.f32 %v6375_v39, %v6375_v39  ;;  %4442 = vrsqrt.f32 %v3015_v45  ;;  %v2952_v32 = vmax.f32 %v2888_v40, 0.0  ;;  %2700 = vadd.xlane.f32.xlu0 %v2699_v2 }
 0x337   : > { %3699 = vst [vmem:[%s6219_s12 + $0x90] sm:$0xff] %v3571_v54  ;;  %v2702_v9 = vadd.f32 %v6340_v34, %v6336_v57  ;;  %v3573_v16 = vadd.f32 %v6086_v12, %v3427_v59  ;;  %v3574_v17 = vadd.f32 %v6100_v52, %v3428_v19  ;;  %v6534_v8 = vmul.f32 %v6390_v28, %v6390_v28  ;;  %v6540_v54 = vpop.f32.mrb[111].mxu1  ;;  %v6542_v38 = vpop.xlane.xlu0 %2225  ;;  %v8182_v57 = vld [vmem:[#allocation106_spill] sm:$0xff] }
 0x338   : > { %v6538_v45 = vmul.f32 %v6411_v11, %v6411_v11  ;;  %v3156_v34 = vsub.f32 %v8182_v57, %v6417_v21  ;;  %v3157_v43 = vsub.f32 %v8183_v0, %v6417_v21  ;;  %v3016_v40 = vadd.f32 1e-05, %v2952_v32 }
 0x339   : > { %2703 = vadd.xlane.f32.xlu1 %v2702_v9  ;;  %v6549_v2 = vmul.f32 0.00390625, %v6413_v7  ;;  %3701 = vst [vmem:[%s6219_s12 + $0xa0] sm:$0xff] %v3573_v16  ;;  %3702 = vst [vmem:[%s6219_s12 + $0xa8] sm:$0xff] %v3574_v17  ;;  %v2320_v59 = vadd.f32 %v6308_v58, %v6301_v46  ;;  %v2825_v19 = vmul.f32 %v6516_v35, %v6516_v35  ;;  %v2761_v42 = vmul.f32 0.00390625, %v6433_v25  ;;  %v6562_v21 = vpop.xlane.xlu1 %2228  ;;  %v4441_v32 = vpop.eup %4440  ;;  %v8186_v7 = vld [vmem:[#allocation108_spill] sm:$0xff]  ;;  %v8191_v46 = vld [vmem:[#allocation109_spill] sm:$0xff] }
 0x33a   : > { %v6560_v57 = vadd.f32 %v6442_v31, %v8184_v26  ;;  %4444 = vrsqrt.f32 %v3016_v40  ;;  %v2323_v16 = vadd.f32 %v6324_v15, %v6313_v51  ;;  %v8187_v17 = vld [vmem:[#allocation88_spill] sm:$0xff]  ;;  %v8189_v25 = vsub.f32 %v5682_v1, %v6360_v33  ;;  %v8192_v15 = vld [vmem:[#allocation89_spill] sm:$0xff] }
 0x33b   : > { %v6570_v0 = vadd.f32 %v6452_v27, %v8187_v17  ;;  %v8190_v26 = vsub.f32 %v8179_v29, %v6360_v33  ;;  %v3159_v6 = vsub.f32 %v8191_v46, %v6440_v5  ;;  %2321 = vadd.xlane.f32.xlu0 %v2320_v59  ;;  %v2889_v40 = vsub.f32 %v2761_v42, %v2825_v19  ;;  %v6580_v9 = vpop.xlane.xlu0 %2610  ;;  %v6591_v29 = vpop.f32.mrb[112].mxu1  ;;  %v8193_v42 = vld [vmem:[#allocation90_spill] sm:$0xff] }
 0x33c   : > { %8185 = vst [vmem:[#allocation83_spill] sm:$0xff] %v6560_v57  ;;  %v3282_v58 = vmul.f32 %v4441_v32, %v8189_v25  ;;  %v2826_v27 = vmul.f32 %v6549_v2, %v6549_v2  ;;  %v2762_v17 = vmul.f32 0.00390625, %v6454_v4  ;;  %v6587_v1 = vadd.f32 %v6465_v30, %v8192_v15 }
 0x33d   : > { %8188 = vst [vmem:[#allocation84_spill] sm:$0xff] %v6570_v0  ;;  %v3283_v31 = vmul.f32 %v4441_v32, %v8190_v26  ;;  %2324 = vadd.xlane.f32.xlu1 %v2323_v16  ;;  %v2705_v33 = vadd.f32 %v6408_v55, %v6404_v49  ;;  %v2953_v19 = vmax.f32 %v2889_v40, 0.0  ;;  %v6597_v32 = vadd.f32 %v6472_v63, %v8193_v42  ;;  %v6599_v16 = vpop.f32.mrb[113].mxu1  ;;  %v6601_v4 = vpop.xlane.xlu1 %2613 }
 0x33e   : > { %v3429_v46 = vmul.f32 %v6064_v18, %v3282_v58  ;;  %v6605_v15 = vmul.f32 %v6460_v61, %v6460_v61  ;;  %v6609_v49 = vmul.f32 %v6463_v23, %v6463_v23  ;;  %v2890_v58 = vsub.f32 %v2762_v17, %v2826_v27  ;;  %v6613_v63 = vpop.f32.mrb[114].mxu1 }
 0x33f   : > { %v3430_v59 = vmul.f32 %v6066_v56, %v3283_v31  ;;  %v2708_v55 = vadd.f32 %v6429_v41, %v6425_v60  ;;  %v6619_v26 = vmul.f32 %v6491_v14, %v6491_v14  ;;  %v3017_v31 = vadd.f32 1e-05, %v2953_v19  ;;  %2706 = vadd.xlane.f32.xlu0 %v2705_v33  ;;  %v6621_v40 = vpop.f32.mrb[115].mxu1  ;;  %v6623_v27 = vpop.xlane.xlu0 %2231  ;;  %v8195_v41 = vld [vmem:[#allocation110_spill] sm:$0xff] }
 0x340   : > { %v3575_v30 = vadd.f32 %v6086_v12, %v3429_v46  ;;  %v4443_v17 = vpop.eup %4442  ;;  %v6627_v60 = vmul.f32 %v6513_v24, %v6513_v24  ;;  %v2954_v42 = vmax.f32 %v2890_v58, 0.0  ;;  %v2326_v51 = vadd.f32 %v6375_v39, %v6354_v44  ;;  %v8197_v46 = vld [vmem:[#allocation112_spill] sm:$0xff] }
 0x341   : > { %v3576_v25 = vadd.f32 %v6100_v52, %v3430_v59  ;;  %v6632_v59 = vmul.f32 0.00390625, %v6474_v53  ;;  %2709 = vadd.xlane.f32.xlu1 %v2708_v55  ;;  %v3284_v33 = vmul.f32 %v4443_v17, %v3156_v34  ;;  %v3285_v19 = vmul.f32 %v4443_v17, %v3157_v43  ;;  %v6638_v50 = vpop.xlane.xlu1 %2234 }
 0x342   : > { %8194 = vst [vmem:[#allocation105_spill] sm:$0xff] %v6627_v60  ;;  %3703 = vst [vmem:[%s6219_s12 + $0xb0] sm:$0xff] %v3575_v30  ;;  %4446 = vrsqrt.f32 %v3017_v31  ;;  %v3161_v62 = vsub.f32 %v8196_v47, %v6516_v35  ;;  %v3018_v60 = vadd.f32 1e-05, %v2954_v42  ;;  %v6645_v53 = vmul.f32 0.00390625, %v6484_v10  ;;  %v8198_v30 = vld [vmem:[#allocation91_spill] sm:$0xff] }
 0x343   : > { %3704 = vst [vmem:[%s6219_s12 + $0xb8] sm:$0xff] %v3576_v25  ;;  %v3431_v55 = vmul.f32 %v6064_v18, %v3284_v33  ;;  %v3432_v34 = vmul.f32 %v6066_v56, %v3285_v19  ;;  %2327 = vadd.xlane.f32.xlu0 %v2326_v51  ;;  %v2763_v43 = vmul.f32 0.00390625, %v6497_v36  ;;  %v6652_v25 = vadd.f32 %v6505_v13, %v8198_v30  ;;  %v6654_v31 = vpop.xlane.xlu0 %2616  ;;  %v8199_v42 = vld [vmem:[#allocation92_spill] sm:$0xff]  ;;  %v6664_v36 = vpop.f32.mrb[116].mxu1 }
 0x344   : > { %v4445_v47 = vpop.eup %4444  ;;  %4448 = vrsqrt.f32 %v3018_v60  ;;  %v2827_v17 = vmul.f32 %v6632_v59, %v6632_v59  ;;  %v2329_v10 = vadd.f32 %v6411_v11, %v6390_v28  ;;  %v6662_v51 = vadd.f32 %v6518_v20, %v8199_v42  ;;  %v6673_v39 = vpop.f32.mrb[117].mxu1  ;;  %v8201_v11 = vld [vmem:[#allocation113_spill] sm:$0xff] }
 0x345   : > { %v3577_v13 = vadd.f32 %v6086_v12, %v3431_v55  ;;  %v3578_v33 = vadd.f32 %v6100_v52, %v3432_v34  ;;  %v8200_v60 = vsub.f32 %v8186_v7, %v6440_v5  ;;  %v3287_v30 = vmul.f32 %v4445_v47, %v3159_v6  ;;  %v6671_v58 = vpop.xlane.xlu1 %2619  ;;  %v6680_v34 = vpop.f32.mrb[118].mxu1  ;;  %v8202_v7 = vld [vmem:[#allocation93_spill] sm:$0xff] }
 0x346   : > { %v3163_v28 = vsub.f32 %v8201_v11, %v6549_v2  ;;  %v2891_v20 = vsub.f32 %v2763_v43, %v2827_v17  ;;  %2330 = vadd.xlane.f32.xlu1 %v2329_v10  ;;  %v2828_v42 = vmul.f32 %v6645_v53, %v6645_v53  ;;  %v2764_v55 = vmul.f32 0.00390625, %v6520_v22  ;;  %v6694_v17 = vpop.f32.mrb[119].mxu1 }
 0x347   : > { %v3286_v19 = vmul.f32 %v4445_v47, %v8200_v60  ;;  %3705 = vst [vmem:[%s6219_s12 + $0xc0] sm:$0xff] %v3577_v13  ;;  %3706 = vst [vmem:[%s6219_s12 + $0xc8] sm:$0xff] %v3578_v33  ;;  %v3434_v5 = vmul.f32 %v6066_v56, %v3287_v30  ;;  %v6688_v47 = vadd.f32 %v6528_v48, %v8202_v7  ;;  %v6692_v43 = vpop.xlane.xlu0 %2237  ;;  %v8203_v33 = vld [vmem:[#allocation94_spill] sm:$0xff] }
 0x348   : > { %v2711_v11 = vadd.f32 %v6524_v3, %v6501_v37  ;;  %v6698_v22 = vmul.f32 %v6560_v57, %v6560_v57  ;;  %v2955_v10 = vmax.f32 %v2891_v20, 0.0  ;;  %v2892_v13 = vsub.f32 %v2764_v55, %v2828_v42 }
 0x349   : > { %v3433_v6 = vmul.f32 %v6064_v18, %v3286_v19  ;;  %v6702_v60 = vadd.f32 %v6540_v54, %v8203_v33  ;;  %v3580_v37 = vadd.f32 %v6100_v52, %v3434_v5  ;;  %v6707_v3 = vmul.f32 0.00390625, %v6542_v38  ;;  %v6711_v30 = vpop.xlane.xlu1 %2240 }
 0x34a   : > { %2712 = vadd.xlane.f32.xlu0 %v2711_v11  ;;  %v2714_v19 = vadd.f32 %v6538_v45, %v6534_v8  ;;  %v6715_v20 = vmul.f32 %v6570_v0, %v6570_v0  ;;  %v6719_v54 = vmul.f32 %v6587_v1, %v6587_v1  ;;  %v3019_v42 = vadd.f32 1e-05, %v2955_v10  ;;  %v8204_v8 = vld [vmem:[#allocation114_spill] sm:$0xff]  ;;  %v8207_v45 = vld [vmem:[#allocation95_spill] sm:$0xff] }
 0x34b   : > { %v3579_v48 = vadd.f32 %v6086_v12, %v3433_v6  ;;  %v2956_v55 = vmax.f32 %v2892_v13, 0.0  ;;  %3708 = vst [vmem:[%s6219_s12 + $0xd8] sm:$0xff] %v3580_v37  ;;  %v6725_v38 = vmul.f32 %v6597_v32, %v6597_v32  ;;  %v6730_v5 = vmul.f32 0.00390625, %v6562_v21  ;;  %v6734_v11 = vpop.xlane.xlu0 %2622  ;;  %v8206_v37 = vld [vmem:[#allocation115_spill] sm:$0xff] }
 0x34c   : > { %v4447_v6 = vpop.eup %4446  ;;  %2715 = vadd.xlane.f32.xlu1 %v2714_v19  ;;  %v2332_v7 = vadd.f32 %v6463_v23, %v6460_v61  ;;  %v8205_v10 = vsub.f32 %v8195_v41, %v6516_v35  ;;  %4450 = vrsqrt.f32 %v3019_v42  ;;  %v3165_v44 = vsub.f32 %v8206_v37, %v6632_v59 }
 0x34d   : > { %3707 = vst [vmem:[%s6219_s12 + $0xd0] sm:$0xff] %v3579_v48  ;;  %v3289_v33 = vmul.f32 %v4447_v6, %v3161_v62  ;;  %v3020_v48 = vadd.f32 1e-05, %v2956_v55  ;;  %v2829_v21 = vmul.f32 %v6707_v3, %v6707_v3  ;;  %v2765_v19 = vmul.f32 0.00390625, %v6580_v9  ;;  %v6748_v61 = vpop.xlane.xlu1 %2625 }
 0x34e   : > { %v3288_v13 = vmul.f32 %v4447_v6, %v8205_v10  ;;  %2333 = vadd.xlane.f32.xlu0 %v2332_v7  ;;  %v6746_v23 = vadd.f32 %v6591_v29, %v8207_v45  ;;  %v4449_v35 = vpop.eup %4448  ;;  %v2335_v42 = vadd.f32 %v6513_v24, %v6491_v14  ;;  %v8208_v55 = vsub.f32 %v8197_v46, %v6549_v2  ;;  %v8209_v29 = vld [vmem:[#allocation116_spill] sm:$0xff] }
 0x34f   : > { %v3436_v41 = vmul.f32 %v6066_v56, %v3289_v33  ;;  %4452 = vrsqrt.f32 %v3020_v48  ;;  %v3291_v6 = vmul.f32 %v4449_v35, %v3163_v28  ;;  %v3166_v45 = vsub.f32 %v8209_v29, %v6645_v53  ;;  %v6759_v10 = vpop.xlane.xlu0 %2243  ;;  %v8210_v48 = vld [vmem:[#allocation96_spill] sm:$0xff] }
 0x350   : > { %v3435_v62 = vmul.f32 %v6064_v18, %v3288_v13  ;;  %v3290_v9 = vmul.f32 %v4449_v35, %v8208_v55  ;;  %v2893_v7 = vsub.f32 %v2765_v19, %v2829_v21  ;;  %2336 = vadd.xlane.f32.xlu1 %v2335_v42  ;;  %v6765_v37 = vadd.f32 %v6599_v16, %v8210_v48 }
 0x351   : > { %v3582_v33 = vadd.f32 %v6100_v52, %v3436_v41  ;;  %v2830_v2 = vmul.f32 %v6730_v5, %v6730_v5  ;;  %v3438_v46 = vmul.f32 %v6066_v56, %v3291_v6  ;;  %v2766_v21 = vmul.f32 0.00390625, %v6601_v4  ;;  %v6772_v19 = vpop.xlane.xlu1 %2246  ;;  %v8212_v41 = vld [vmem:[#allocation97_spill] sm:$0xff] }
 0x352   : > { %v3581_v13 = vadd.f32 %v6086_v12, %v3435_v62  ;;  %v3437_v28 = vmul.f32 %v6064_v18, %v3290_v9  ;;  %v2957_v35 = vmax.f32 %v2893_v7, 0.0  ;;  %v8211_v62 = vld [vmem:[#allocation117_spill] sm:$0xff]  ;;  %v6780_v42 = vadd.f32 %v6613_v63, %v8212_v41  ;;  %v8213_v9 = vld [vmem:[#allocation98_spill] sm:$0xff] }
 0x353   : > { %3710 = vst [vmem:[%s6219_s12 + $0xe8] sm:$0xff] %v3582_v33  ;;  %v3167_v16 = vsub.f32 %v8211_v62, %v6645_v53  ;;  %v2717_v55 = vadd.f32 %v6609_v49, %v6605_v15  ;;  %v6786_v6 = vadd.f32 %v6621_v40, %v8213_v9  ;;  %v3584_v29 = vadd.f32 %v6100_v52, %v3438_v46  ;;  %v6790_v33 = vpop.xlane.xlu0 %2628  ;;  %v8214_v49 = vld [vmem:[#allocation105_spill] sm:$0xff] }
 0x354   : > { %3709 = vst [vmem:[%s6219_s12 + $0xe0] sm:$0xff] %v3581_v13  ;;  %v3583_v4 = vadd.f32 %v6086_v12, %v3437_v28  ;;  %v3021_v7 = vadd.f32 1e-05, %v2957_v35  ;;  %v2894_v13 = vsub.f32 %v2766_v21, %v2830_v2  ;;  %v6794_v53 = vmul.f32 %v6652_v25, %v6652_v25 }
 0x355   : > { %v6798_v63 = vmul.f32 %v6662_v51, %v6662_v51  ;;  %2718 = vadd.xlane.f32.xlu0 %v2717_v55  ;;  %v6801_v15 = vmul.f32 0.00390625, %v6623_v27  ;;  %v2720_v40 = vadd.f32 %v8214_v49, %v6619_v26  ;;  %3712 = vst [vmem:[%s6219_s12 + $0xf8] sm:$0xff] %v3584_v29  ;;  %v6809_v48 = vmul.f32 %v6688_v47, %v6688_v47  ;;  %v6815_v46 = vpop.xlane.xlu1 %2631  ;;  %v8217_v49 = vld [vmem:[#allocation12_spill] sm:$0xff] }
 0x356   : > { %3711 = vst [vmem:[%s6219_s12 + $0xf0] sm:$0xff] %v3583_v4  ;;  %v6813_v2 = vmul.f32 %v6702_v60, %v6702_v60  ;;  %4454 = vrsqrt.f32 %v3021_v7  ;;  %v2958_v28 = vmax.f32 %v2894_v13, 0.0  ;;  %v4451_v35 = vpop.eup %4450  ;;  %v6818_v27 = vmul.f32 0.00390625, %v6638_v50  ;;  %v8216_v4 = vld [vmem:[#allocation118_spill] sm:$0xff] }
 0x357   : > { %2721 = vadd.xlane.f32.xlu1 %v2720_v40  ;;  %v2338_v26 = vadd.f32 %v6570_v0, %v6560_v57  ;;  %v2831_v21 = vmul.f32 %v6801_v15, %v6801_v15  ;;  %v2767_v62 = vmul.f32 0.00390625, %v6654_v31  ;;  %v8215_v41 = vsub.f32 %v8204_v8, %v6632_v59  ;;  %v6830_v13 = vpop.xlane.xlu0 %2249  ;;  %v8218_v57 = vld [vmem:[#allocation99_spill] sm:$0xff] }
 0x358   : > { %v3293_v9 = vmul.f32 %v4451_v35, %v3165_v44  ;;  %v3168_v29 = vsub.f32 %v8216_v4, %v6707_v3  ;;  %v3022_v7 = vadd.f32 1e-05, %v2958_v28  ;;  %v3169_v40 = vsub.f32 %v8217_v49, %v6707_v3  ;;  %v8219_v3 = vld [vmem:[#allocation13_spill] sm:$0xff] }
 0x359   : > { %v3292_v55 = vmul.f32 %v4451_v35, %v8215_v41  ;;  %v4453_v50 = vpop.eup %4452  ;;  %2339 = vadd.xlane.f32.xlu0 %v2338_v26  ;;  %v2895_v0 = vsub.f32 %v2767_v62, %v2831_v21  ;;  %v2341_v31 = vadd.f32 %v6597_v32, %v6587_v1  ;;  %v6838_v59 = vadd.f32 %v6664_v36, %v8218_v57  ;;  %v6842_v41 = vpop.xlane.xlu1 %2252 }
 0x35a   : > { %v3440_v8 = vmul.f32 %v6066_v56, %v3293_v9  ;;  %v3294_v28 = vmul.f32 %v4453_v50, %v3166_v45  ;;  %v3295_v35 = vmul.f32 %v4453_v50, %v3167_v16  ;;  %v3170_v26 = vsub.f32 %v8219_v3, %v6730_v5  ;;  %v8220_v50 = vld [vmem:[#allocation100_spill] sm:$0xff] }
 0x35b   : > { %v3439_v44 = vmul.f32 %v6064_v18, %v3292_v55  ;;  %4456 = vrsqrt.f32 %v3022_v7  ;;  %v2959_v21 = vmax.f32 %v2895_v0, 0.0  ;;  %2342 = vadd.xlane.f32.xlu1 %v2341_v31  ;;  %v2832_v57 = vmul.f32 %v6818_v27, %v6818_v27  ;;  %v6852_v55 = vpop.xlane.xlu0 %2634 }
 0x35c   : > { %v3586_v62 = vadd.f32 %v6100_v52, %v3440_v8  ;;  %v3441_v45 = vmul.f32 %v6064_v18, %v3294_v28  ;;  %v3442_v16 = vmul.f32 %v6066_v56, %v3295_v35  ;;  %v2768_v4 = vmul.f32 0.00390625, %v6671_v58 }
 0x35d   : > { %v3585_v36 = vadd.f32 %v6086_v12, %v3439_v44  ;;  %v3023_v9 = vadd.f32 1e-05, %v2959_v21  ;;  %v6857_v0 = vadd.f32 %v6673_v39, %v8220_v50  ;;  %v2723_v7 = vadd.f32 %v6715_v20, %v6698_v22  ;;  %v8221_v44 = vld [vmem:[#allocation101_spill] sm:$0xff]  ;;  %v6872_v28 = vpop.xlane.xlu1 %2637  ;;  %v8222_v39 = vld [vmem:[#allocation14_spill] sm:$0xff] }
 0x35e   : > { %3714 = vst [vmem:[%s6219_s12 + $0x108] sm:$0xff] %v3586_v62  ;;  %v3587_v49 = vadd.f32 %v6086_v12, %v3441_v45  ;;  %v3588_v31 = vadd.f32 %v6100_v52, %v3442_v16  ;;  %v6867_v8 = vadd.f32 %v6680_v34, %v8221_v44  ;;  %v6870_v58 = vmul.f32 0.00390625, %v6692_v43  ;;  %v8223_v20 = vld [vmem:[#allocation102_spill] sm:$0xff] }
 0x35f   : > { %3713 = vst [vmem:[%s6219_s12 + $0x100] sm:$0xff] %v3585_v36  ;;  %v3171_v35 = vsub.f32 %v8222_v39, %v6730_v5  ;;  %4458 = vrsqrt.f32 %v3023_v9  ;;  %v2896_v22 = vsub.f32 %v2768_v4, %v2832_v57  ;;  %2724 = vadd.xlane.f32.xlu0 %v2723_v7  ;;  %v6878_v3 = vadd.f32 %v6694_v17, %v8223_v20  ;;  %v6896_v17 = vpop.xlane.xlu0 %2255  ;;  %v8224_v7 = vld [vmem:[#allocation15_spill] sm:$0xff] }
 0x360   : > { %v4455_v21 = vpop.eup %4454  ;;  %3715 = vst [vmem:[%s6219_s12 + $0x110] sm:$0xff] %v3587_v49  ;;  %3716 = vst [vmem:[%s6219_s12 + $0x118] sm:$0xff] %v3588_v31  ;;  %v6884_v34 = vmul.f32 %v6746_v23, %v6746_v23  ;;  %v6888_v43 = vmul.f32 %v6765_v37, %v6765_v37  ;;  %v6892_v5 = vmul.f32 %v6780_v42, %v6780_v42  ;;  %v6903_v9 = vmul.f32 0.00390625, %v6711_v30  ;;  %v8225_v30 = vld [vmem:[#allocation16_spill] sm:$0xff] }
 0x361   : > { %v2726_v57 = vadd.f32 %v6725_v38, %v6719_v54  ;;  %v3296_v36 = vmul.f32 %v4455_v21, %v3168_v29  ;;  %v3297_v62 = vmul.f32 %v4455_v21, %v3169_v40  ;;  %v6900_v45 = vmul.f32 %v6786_v6, %v6786_v6  ;;  %v6910_v38 = vpop.xlane.xlu1 %2258 }
 0x362   : > { %v2960_v16 = vmax.f32 %v2896_v22, 0.0  ;;  %v2344_v4 = vadd.f32 %v6662_v51, %v6652_v25  ;;  %v2833_v50 = vmul.f32 %v6870_v58, %v6870_v58  ;;  %v2769_v54 = vmul.f32 0.00390625, %v6734_v11 }
 0x363   : > { %2727 = vadd.xlane.f32.xlu1 %v2726_v57  ;;  %v3443_v29 = vmul.f32 %v6064_v18, %v3296_v36  ;;  %v3444_v40 = vmul.f32 %v6066_v56, %v3297_v62  ;;  %v3172_v49 = vsub.f32 %v8224_v7, %v6801_v15  ;;  %v3173_v44 = vsub.f32 %v8225_v30, %v6801_v15  ;;  %v6922_v20 = vpop.xlane.xlu0 %2640  ;;  %v8226_v7 = vld [vmem:[#allocation17_spill] sm:$0xff] }
 0x364   : > { %v3024_v31 = vadd.f32 1e-05, %v2960_v16  ;;  %2345 = vadd.xlane.f32.xlu0 %v2344_v4  ;;  %v2897_v39 = vsub.f32 %v2769_v54, %v2833_v50  ;;  %v2347_v11 = vadd.f32 %v6702_v60, %v6688_v47  ;;  %v2834_v22 = vmul.f32 %v6903_v9, %v6903_v9 }
 0x365   : > { %v4457_v21 = vpop.eup %4456  ;;  %v3589_v57 = vadd.f32 %v6086_v12, %v3443_v29  ;;  %v3590_v36 = vadd.f32 %v6100_v52, %v3444_v40  ;;  %v2770_v15 = vmul.f32 0.00390625, %v6748_v61  ;;  %v2729_v50 = vadd.f32 %v6798_v63, %v6794_v53  ;;  %v6929_v54 = vpop.xlane.xlu1 %2643  ;;  %v8227_v29 = vld [vmem:[#allocation18_spill] sm:$0xff] }
 0x366   : > { %4460 = vrsqrt.f32 %v3024_v31  ;;  %v3298_v62 = vmul.f32 %v4457_v21, %v3170_v26  ;;  %v3299_v16 = vmul.f32 %v4457_v21, %v3171_v35  ;;  %v2961_v4 = vmax.f32 %v2897_v39, 0.0 }
 0x367   : > { %2348 = vadd.xlane.f32.xlu1 %v2347_v11  ;;  %3717 = vst [vmem:[%s6219_s12 + $0x120] sm:$0xff] %v3589_v57  ;;  %3718 = vst [vmem:[%s6219_s12 + $0x128] sm:$0xff] %v3590_v36  ;;  %v3174_v30 = vsub.f32 %v8226_v7, %v6818_v27  ;;  %v3175_v40 = vsub.f32 %v8227_v29, %v6818_v27  ;;  %v2898_v31 = vsub.f32 %v2770_v15, %v2834_v22  ;;  %v6944_v63 = vpop.xlane.xlu0 %2261 }
 0x368   : > { %v6938_v61 = vmul.f32 0.00390625, %v6759_v10  ;;  %v3445_v26 = vmul.f32 %v6064_v18, %v3298_v62  ;;  %v3446_v35 = vmul.f32 %v6066_v56, %v3299_v16  ;;  %v3025_v39 = vadd.f32 1e-05, %v2961_v4  ;;  %2730 = vadd.xlane.f32.xlu0 %v2729_v50 }
 0x369   : > { %v2732_v53 = vadd.f32 %v6813_v2, %v6809_v48  ;;  %v4459_v11 = vpop.eup %4458  ;;  %v6948_v27 = vmul.f32 %v6838_v59, %v6838_v59  ;;  %v2962_v10 = vmax.f32 %v2898_v31, 0.0  ;;  %v6951_v22 = vmul.f32 0.00390625, %v6772_v19  ;;  %v6957_v15 = vpop.xlane.xlu1 %2264 }
 0x36a   : > { %v2350_v21 = vadd.f32 %v6765_v37, %v6746_v23  ;;  %v3591_v57 = vadd.f32 %v6086_v12, %v3445_v26  ;;  %v3592_v48 = vadd.f32 %v6100_v52, %v3446_v35  ;;  %v3300_v2 = vmul.f32 %v4459_v11, %v3172_v49 }
 0x36b   : > { %v3301_v36 = vmul.f32 %v4459_v11, %v3173_v44  ;;  %2733 = vadd.xlane.f32.xlu1 %v2732_v53  ;;  %v6961_v62 = vmul.f32 %v6857_v0, %v6857_v0  ;;  %4462 = vrsqrt.f32 %v3025_v39  ;;  %v3026_v16 = vadd.f32 1e-05, %v2962_v10  ;;  %v6972_v7 = vpop.xlane.xlu0 %2646 }
 0x36c   : > { %v2835_v19 = vmul.f32 %v6938_v61, %v6938_v61  ;;  %3719 = vst [vmem:[%s6219_s12 + $0x130] sm:$0xff] %v3591_v57  ;;  %3720 = vst [vmem:[%s6219_s12 + $0x138] sm:$0xff] %v3592_v48  ;;  %v3447_v4 = vmul.f32 %v6064_v18, %v3300_v2  ;;  %2351 = vadd.xlane.f32.xlu0 %v2350_v21  ;;  %v2771_v49 = vmul.f32 0.00390625, %v6790_v33  ;;  %v2772_v31 = vmul.f32 0.00390625, %v6815_v46  ;;  %v8228_v46 = vld [vmem:[#allocation19_spill] sm:$0xff] }
 0x36d   : > { %v3448_v50 = vmul.f32 %v6066_v56, %v3301_v36  ;;  %v2353_v44 = vadd.f32 %v6786_v6, %v6780_v42  ;;  %4464 = vrsqrt.f32 %v3026_v16  ;;  %v2836_v29 = vmul.f32 %v6951_v22, %v6951_v22  ;;  %v6984_v11 = vpop.xlane.xlu1 %2649 }
 0x36e   : > { %v2735_v26 = vadd.f32 %v6888_v43, %v6884_v34  ;;  %v3593_v35 = vadd.f32 %v6086_v12, %v3447_v4  ;;  %v2899_v39 = vsub.f32 %v2771_v49, %v2835_v19  ;;  %v6982_v53 = vmul.f32 0.00390625, %v6830_v13  ;;  %v8229_v19 = vld [vmem:[#allocation20_spill] sm:$0xff] }
 0x36f   : > { %v3594_v33 = vadd.f32 %v6100_v52, %v3448_v50  ;;  %2354 = vadd.xlane.f32.xlu1 %v2353_v44  ;;  %v2553_v21 = vmul.f32 %v6867_v8, %v6867_v8  ;;  %v3176_v57 = vsub.f32 %v8228_v46, %v6870_v58  ;;  %v2900_v48 = vsub.f32 %v2772_v31, %v2836_v29  ;;  %v6997_v16 = vpop.xlane.xlu0 %2267 }
 0x370   : > { %v4461_v10 = vpop.eup %4460  ;;  %v6991_v34 = vmul.f32 0.00390625, %v6842_v41  ;;  %3721 = vst [vmem:[%s6219_s12 + $0x140] sm:$0xff] %v3593_v35  ;;  %v2963_v36 = vmax.f32 %v2899_v39, 0.0  ;;  %2736 = vadd.xlane.f32.xlu0 %v2735_v26  ;;  %v2738_v13 = vadd.f32 %v6900_v45, %v6892_v5  ;;  %v3177_v4 = vsub.f32 %v8229_v19, %v6870_v58 }
 0x371   : > { %3722 = vst [vmem:[%s6219_s12 + $0x148] sm:$0xff] %v3594_v33  ;;  %v3302_v43 = vmul.f32 %v4461_v10, %v3174_v30  ;;  %v3303_v2 = vmul.f32 %v4461_v10, %v3175_v40  ;;  %v2554_v50 = vmul.f32 %v6878_v3, %v6878_v3  ;;  %v2964_v49 = vmax.f32 %v2900_v48, 0.0  ;;  %v7009_v45 = vpop.xlane.xlu1 %2270  ;;  %v8230_v48 = vld [vmem:[#allocation21_spill] sm:$0xff] }
 0x372   : > { %v2356_v41 = vadd.f32 %v6857_v0, %v6838_v59  ;;  %v3027_v44 = vadd.f32 1e-05, %v2963_v36  ;;  %v2837_v5 = vmul.f32 %v6982_v53, %v6982_v53  ;;  %v2773_v29 = vmul.f32 0.00390625, %v6852_v55 }
 0x373   : > { %v3449_v30 = vmul.f32 %v6064_v18, %v3302_v43  ;;  %v3450_v40 = vmul.f32 %v6066_v56, %v3303_v2  ;;  %2739 = vadd.xlane.f32.xlu1 %v2738_v13  ;;  %v3028_v58 = vadd.f32 1e-05, %v2964_v49  ;;  %v2359_v31 = vadd.f32 %v6878_v3, %v6867_v8  ;;  %v7019_v10 = vpop.xlane.xlu0 %2652  ;;  %v8231_v43 = vld [vmem:[#allocation22_spill] sm:$0xff] }
 0x374   : > { %v2838_v26 = vmul.f32 %v6991_v34, %v6991_v34  ;;  %4466 = vrsqrt.f32 %v3027_v44  ;;  %2357 = vadd.xlane.f32.xlu0 %v2356_v41  ;;  %v2774_v39 = vmul.f32 0.00390625, %v6872_v28  ;;  %v3178_v55 = vsub.f32 %v8230_v48, %v6903_v9 }
 0x375   : > { %v3595_v35 = vadd.f32 %v6086_v12, %v3449_v30  ;;  %v3596_v33 = vadd.f32 %v6100_v52, %v3450_v40  ;;  %v4463_v46 = vpop.eup %4462  ;;  %v3179_v2 = vsub.f32 %v8231_v43, %v6903_v9  ;;  %4468 = vrsqrt.f32 %v3028_v58  ;;  %v7029_v41 = vpop.xlane.xlu1 %2655 }
 0x376   : > { %v2901_v36 = vsub.f32 %v2773_v29, %v2837_v5  ;;  %v3304_v13 = vmul.f32 %v4463_v46, %v3176_v57  ;;  %v3305_v19 = vmul.f32 %v4463_v46, %v3177_v4  ;;  %v2902_v49 = vsub.f32 %v2774_v39, %v2838_v26 }
 0x377   : > { %3723 = vst [vmem:[%s6219_s12 + $0x150] sm:$0xff] %v3595_v35  ;;  %3724 = vst [vmem:[%s6219_s12 + $0x158] sm:$0xff] %v3596_v33  ;;  %2360 = vadd.xlane.f32.xlu1 %v2359_v31  ;;  %v2741_v28 = vadd.f32 %v6961_v62, %v6948_v27  ;;  %v4465_v30 = vpop.eup %4464  ;;  %v7032_v44 = vmul.f32 0.00390625, %v6896_v17  ;;  %v2744_v48 = vadd.f32 %v2554_v50, %v2553_v21  ;;  %v7035_v9 = vmul.f32 0.00390625, %v6910_v38  ;;  %v7039_v27 = vpop.xlane.xlu0 %2273  ;;  %v8232_v62 = vld [vmem:[#allocation23_spill] sm:$0xff]  ;;  %v8233_v17 = vld [vmem:[#allocation24_spill] sm:$0xff] }
 0x378   : > { %v2965_v40 = vmax.f32 %v2901_v36, 0.0  ;;  %v3451_v5 = vmul.f32 %v6064_v18, %v3304_v13  ;;  %v3452_v57 = vmul.f32 %v6066_v56, %v3305_v19  ;;  %v3306_v4 = vmul.f32 %v4465_v30, %v3178_v55 }
 0x379   : > { %v3307_v58 = vmul.f32 %v4465_v30, %v3179_v2  ;;  %2742 = vadd.xlane.f32.xlu0 %v2741_v28  ;;  %v3180_v29 = vsub.f32 %v8232_v62, %v6938_v61  ;;  %v3181_v21 = vsub.f32 %v8233_v17, %v6938_v61  ;;  %v2966_v38 = vmax.f32 %v2902_v49, 0.0  ;;  %v7049_v39 = vpop.xlane.xlu1 %2276  ;;  %v8234_v49 = vld [vmem:[#allocation25_spill] sm:$0xff]  ;;  %v8235_v30 = vld [vmem:[#allocation26_spill] sm:$0xff] }
 0x37a   : > { %v3029_v50 = vadd.f32 1e-05, %v2965_v40  ;;  %v3597_v31 = vadd.f32 %v6086_v12, %v3451_v5  ;;  %v3598_v26 = vadd.f32 %v6100_v52, %v3452_v57  ;;  %v3453_v35 = vmul.f32 %v6064_v18, %v3306_v4  ;;  %v8236_v5 = vld [vmem:[#allocation27_spill] sm:$0xff]  ;;  %v8237_v4 = vld [vmem:[#allocation28_spill] sm:$0xff] }
 0x37b   : > { %v3454_v33 = vmul.f32 %v6066_v56, %v3307_v58  ;;  %2745 = vadd.xlane.f32.xlu1 %v2744_v48  ;;  %v3030_v46 = vadd.f32 1e-05, %v2966_v38  ;;  %v2839_v61 = vmul.f32 %v7032_v44, %v7032_v44  ;;  %v2775_v55 = vmul.f32 0.00390625, %v6922_v20  ;;  %v7061_v19 = vpop.xlane.xlu0 %2658 }
 0x37c   : > { %4470 = vrsqrt.f32 %v3029_v50  ;;  %3725 = vst [vmem:[%s6219_s12 + $0x160] sm:$0xff] %v3597_v31  ;;  %3726 = vst [vmem:[%s6219_s12 + $0x168] sm:$0xff] %v3598_v26  ;;  %v3599_v43 = vadd.f32 %v6086_v12, %v3453_v35  ;;  %v2840_v36 = vmul.f32 %v7035_v9, %v7035_v9  ;;  %v2776_v13 = vmul.f32 0.00390625, %v6929_v54 }
 0x37d   : > { %v3600_v2 = vadd.f32 %v6100_v52, %v3454_v33  ;;  %v3182_v28 = vsub.f32 %v8234_v49, %v6951_v22  ;;  %v3183_v40 = vsub.f32 %v8235_v30, %v6951_v22  ;;  %4472 = vrsqrt.f32 %v3030_v46  ;;  %v7076_v17 = vpop.xlane.xlu1 %2661 }
 0x37e   : > { %v2903_v20 = vsub.f32 %v2775_v55, %v2839_v61  ;;  %v4467_v48 = vpop.eup %4466  ;;  %3727 = vst [vmem:[%s6219_s12 + $0x170] sm:$0xff] %v3599_v43  ;;  %v3184_v57 = vsub.f32 %v8236_v5, %v6982_v53  ;;  %v3185_v58 = vsub.f32 %v8237_v4, %v6982_v53  ;;  %v2904_v54 = vsub.f32 %v2776_v13, %v2840_v36  ;;  %v8239_v4 = vld [vmem:[#allocation30_spill] sm:$0xff] }
 0x37f   : > { %3728 = vst [vmem:[%s6219_s12 + $0x178] sm:$0xff] %v3600_v2  ;;  %v7074_v62 = vmul.f32 0.00390625, %v6944_v63  ;;  %v4469_v50 = vpop.eup %4468  ;;  %v3308_v38 = vmul.f32 %v4467_v48, %v3180_v29  ;;  %v3309_v22 = vmul.f32 %v4467_v48, %v3181_v21  ;;  %v7079_v26 = vmul.f32 0.00390625, %v6957_v15  ;;  %v7082_v55 = vpop.xlane.xlu0 %2279  ;;  %v8238_v48 = vld [vmem:[#allocation29_spill] sm:$0xff] }
 0x380   : > { %v2967_v31 = vmax.f32 %v2903_v20, 0.0  ;;  %v3310_v35 = vmul.f32 %v4469_v50, %v3182_v28  ;;  %v3311_v33 = vmul.f32 %v4469_v50, %v3183_v40  ;;  %v2968_v46 = vmax.f32 %v2904_v54, 0.0 }
 0x381   : > { %v2777_v61 = vmul.f32 0.00390625, %v6972_v7  ;;  %v3455_v53 = vmul.f32 %v6064_v18, %v3308_v38  ;;  %v3456_v63 = vmul.f32 %v6066_v56, %v3309_v22  ;;  %v2778_v2 = vmul.f32 0.00390625, %v6984_v11  ;;  %v7092_v7 = vpop.xlane.xlu1 %2282 }
 0x382   : > { %v3031_v43 = vadd.f32 1e-05, %v2967_v31  ;;  %v3457_v29 = vmul.f32 %v6064_v18, %v3310_v35  ;;  %v3458_v15 = vmul.f32 %v6066_v56, %v3311_v33  ;;  %v3032_v21 = vadd.f32 1e-05, %v2968_v46  ;;  %v8240_v35 = vld [vmem:[#allocation31_spill] sm:$0xff] }
 0x383   : > { %v7090_v36 = vmul.f32 0.00390625, %v6997_v16  ;;  %v3601_v13 = vadd.f32 %v6086_v12, %v3455_v53  ;;  %v3602_v49 = vadd.f32 %v6100_v52, %v3456_v63  ;;  %v2841_v11 = vmul.f32 %v7074_v62, %v7074_v62  ;;  %v7102_v40 = vpop.xlane.xlu0 %2664 }
 0x384   : > { %4474 = vrsqrt.f32 %v3031_v43  ;;  %v3603_v28 = vadd.f32 %v6086_v12, %v3457_v29  ;;  %v3604_v30 = vadd.f32 %v6100_v52, %v3458_v15  ;;  %v2842_v16 = vmul.f32 %v7079_v26, %v7079_v26  ;;  %v8241_v43 = vld [vmem:[#allocation32_spill] sm:$0xff] }
 0x385   : > { %4476 = vrsqrt.f32 %v3032_v21  ;;  %3729 = vst [vmem:[%s6219_s12 + $0x180] sm:$0xff] %v3601_v13  ;;  %3730 = vst [vmem:[%s6219_s12 + $0x188] sm:$0xff] %v3602_v49  ;;  %v3186_v5 = vsub.f32 %v8238_v48, %v6991_v34  ;;  %v3187_v54 = vsub.f32 %v8239_v4, %v6991_v34  ;;  %v2905_v50 = vsub.f32 %v2777_v61, %v2841_v11  ;;  %v7117_v53 = vpop.xlane.xlu1 %2667 }
 0x386   : > { %v4471_v20 = vpop.eup %4470  ;;  %v7111_v38 = vmul.f32 0.00390625, %v7009_v45  ;;  %3731 = vst [vmem:[%s6219_s12 + $0x190] sm:$0xff] %v3603_v28  ;;  %3732 = vst [vmem:[%s6219_s12 + $0x198] sm:$0xff] %v3604_v30  ;;  %v3188_v33 = vsub.f32 %v8240_v35, %v7032_v44  ;;  %v2906_v46 = vsub.f32 %v2778_v2, %v2842_v16  ;;  %v3189_v29 = vsub.f32 %v8241_v43, %v7032_v44  ;;  %v8243_v35 = vld [vmem:[#allocation34_spill] sm:$0xff] }
 0x387   : > { %v3312_v22 = vmul.f32 %v4471_v20, %v3184_v57  ;;  %v3313_v31 = vmul.f32 %v4471_v20, %v3185_v58  ;;  %v4473_v63 = vpop.eup %4472  ;;  %v2969_v15 = vmax.f32 %v2905_v50, 0.0  ;;  %v2843_v34 = vmul.f32 %v7090_v36, %v7090_v36  ;;  %v7126_v2 = vpop.xlane.xlu0 %2285 }
 0x388   : > { %v2779_v45 = vmul.f32 0.00390625, %v7019_v10  ;;  %v3314_v58 = vmul.f32 %v4473_v63, %v3186_v5  ;;  %v3315_v21 = vmul.f32 %v4473_v63, %v3187_v54  ;;  %v2970_v49 = vmax.f32 %v2906_v46, 0.0 }
 0x389   : > { %v3459_v61 = vmul.f32 %v6064_v18, %v3312_v22  ;;  %v3460_v57 = vmul.f32 %v6066_v56, %v3313_v31  ;;  %v3033_v13 = vadd.f32 1e-05, %v2969_v15  ;;  %v2844_v44 = vmul.f32 %v7111_v38, %v7111_v38  ;;  %v7134_v20 = vpop.xlane.xlu1 %2288  ;;  %v8242_v22 = vld [vmem:[#allocation33_spill] sm:$0xff] }
 0x38a   : > { %v2907_v11 = vsub.f32 %v2779_v45, %v2843_v34  ;;  %v3461_v30 = vmul.f32 %v6064_v18, %v3314_v58  ;;  %v3462_v16 = vmul.f32 %v6066_v56, %v3315_v21  ;;  %v3034_v48 = vadd.f32 1e-05, %v2970_v49 }
 0x38b   : > { %v3605_v28 = vadd.f32 %v6086_v12, %v3459_v61  ;;  %v3606_v10 = vadd.f32 %v6100_v52, %v3460_v57  ;;  %4478 = vrsqrt.f32 %v3033_v13  ;;  %v2780_v4 = vmul.f32 0.00390625, %v7029_v41  ;;  %v7145_v63 = vpop.xlane.xlu0 %2670 }
 0x38c   : > { %v2971_v5 = vmax.f32 %v2907_v11, 0.0  ;;  %v3607_v54 = vadd.f32 %v6086_v12, %v3461_v30  ;;  %v3608_v50 = vadd.f32 %v6100_v52, %v3462_v16  ;;  %v3190_v31 = vsub.f32 %v8242_v22, %v7035_v9 }
 0x38d   : > { %3733 = vst [vmem:[%s6219_s12 + $0x1a0] sm:$0xff] %v3605_v28  ;;  %3734 = vst [vmem:[%s6219_s12 + $0x1a8] sm:$0xff] %v3606_v10  ;;  %v3191_v46 = vsub.f32 %v8243_v35, %v7035_v9  ;;  %4480 = vrsqrt.f32 %v3034_v48  ;;  %v2908_v34 = vsub.f32 %v2780_v4, %v2844_v44  ;;  %v7148_v41 = vmul.f32 0.00390625, %v7039_v27  ;;  %v7156_v9 = vpop.xlane.xlu1 %2673  ;;  %v8244_v28 = vld [vmem:[#allocation35_spill] sm:$0xff] }
 0x38e   : > { %v4475_v43 = vpop.eup %4474  ;;  %v3035_v15 = vadd.f32 1e-05, %v2971_v5  ;;  %3735 = vst [vmem:[%s6219_s12 + $0x1b0] sm:$0xff] %v3607_v54  ;;  %3736 = vst [vmem:[%s6219_s12 + $0x1b8] sm:$0xff] %v3608_v50  ;;  %v7153_v58 = vmul.f32 0.00390625, %v7049_v39  ;;  %v2781_v21 = vmul.f32 0.00390625, %v7061_v19  ;;  %v3192_v10 = vsub.f32 %v8244_v28, %v7074_v62 }
 0x38f   : > { %v4477_v45 = vpop.eup %4476  ;;  %v3316_v61 = vmul.f32 %v4475_v43, %v3188_v33  ;;  %v3317_v57 = vmul.f32 %v4475_v43, %v3189_v29  ;;  %v2972_v11 = vmax.f32 %v2908_v34, 0.0  ;;  %v8245_v33 = vld [vmem:[#allocation36_spill] sm:$0xff]  ;;  %v7164_v29 = vpop.xlane.xlu0 %2291  ;;  %v2845_v48 = vmul.f32 %v7148_v41, %v7148_v41 }
 0x390   : > { %v3318_v13 = vmul.f32 %v4477_v45, %v3190_v31  ;;  %v3319_v49 = vmul.f32 %v4477_v45, %v3191_v46  ;;  %4482 = vrsqrt.f32 %v3035_v15  ;;  %v3193_v39 = vsub.f32 %v8245_v33, %v7074_v62  ;;  %v8246_v46 = vld [vmem:[#allocation37_spill] sm:$0xff]  ;;  %v8247_v15 = vld [vmem:[#allocation38_spill] sm:$0xff]  ;;  %v8248_v45 = vld [vmem:[#allocation39_spill] sm:$0xff] }
 0x391   : > { %v3463_v44 = vmul.f32 %v6064_v18, %v3316_v61  ;;  %v3464_v27 = vmul.f32 %v6066_v56, %v3317_v57  ;;  %v3036_v16 = vadd.f32 1e-05, %v2972_v11  ;;  %v2846_v62 = vmul.f32 %v7153_v58, %v7153_v58  ;;  %v7175_v50 = vpop.xlane.xlu1 %2294 }
 0x392   : > { %v3465_v19 = vmul.f32 %v6064_v18, %v3318_v13  ;;  %v3466_v30 = vmul.f32 %v6066_v56, %v3319_v49  ;;  %v2782_v54 = vmul.f32 0.00390625, %v7076_v17  ;;  %v2909_v35 = vsub.f32 %v2781_v21, %v2845_v48  ;;  %v8249_v13 = vld [vmem:[#allocation40_spill] sm:$0xff]  ;;  %v8251_v48 = vld [vmem:[#allocation42_spill] sm:$0xff] }
 0x393   : > { %v3609_v5 = vadd.f32 %v6086_v12, %v3463_v44  ;;  %v3610_v4 = vadd.f32 %v6100_v52, %v3464_v27  ;;  %4484 = vrsqrt.f32 %v3036_v16  ;;  %v3194_v43 = vsub.f32 %v8246_v46, %v7079_v26 }
 0x394   : > { %v3611_v22 = vadd.f32 %v6086_v12, %v3465_v19  ;;  %v3612_v31 = vadd.f32 %v6100_v52, %v3466_v30  ;;  %v3195_v34 = vsub.f32 %v8247_v15, %v7079_v26  ;;  %v3196_v61 = vsub.f32 %v8248_v45, %v7090_v36  ;;  %v8250_v26 = vld [vmem:[#allocation41_spill] sm:$0xff]  ;;  %v7199_v30 = vpop.xlane.xlu0 %2676 }
 0x395   : > { %3737 = vst [vmem:[%s6219_s12 + $0x1c0] sm:$0xff] %v3609_v5  ;;  %3738 = vst [vmem:[%s6219_s12 + $0x1c8] sm:$0xff] %v3610_v4  ;;  %v2910_v17 = vsub.f32 %v2782_v54, %v2846_v62  ;;  %v4479_v57 = vpop.eup %4478  ;;  %v3197_v49 = vsub.f32 %v8249_v13, %v7090_v36  ;;  %v2973_v11 = vmax.f32 %v2909_v35, 0.0  ;;  %v7192_v21 = vmul.f32 0.00390625, %v7082_v55  ;;  %v7207_v54 = vpop.xlane.xlu1 %2679 }
 0x396   : > { %3739 = vst [vmem:[%s6219_s12 + $0x1d0] sm:$0xff] %v3611_v22  ;;  %3740 = vst [vmem:[%s6219_s12 + $0x1d8] sm:$0xff] %v3612_v31  ;;  %v7195_v44 = vmul.f32 0.00390625, %v7092_v7  ;;  %v3320_v27 = vmul.f32 %v4479_v57, %v3192_v10  ;;  %v3321_v28 = vmul.f32 %v4479_v57, %v3193_v39  ;;  %v3198_v33 = vsub.f32 %v8250_v26, %v7111_v38 }
 0x397   : > { %v2974_v19 = vmax.f32 %v2910_v17, 0.0  ;;  %v4481_v16 = vpop.eup %4480  ;;  %v3199_v5 = vsub.f32 %v8251_v48, %v7111_v38  ;;  %v3037_v36 = vadd.f32 1e-05, %v2973_v11  ;;  %v2783_v4 = vmul.f32 0.00390625, %v7102_v40 }
 0x398   : > { %v2784_v55 = vmul.f32 0.00390625, %v7117_v53  ;;  %v3467_v7 = vmul.f32 %v6064_v18, %v3320_v27  ;;  %v3468_v10 = vmul.f32 %v6066_v56, %v3321_v28  ;;  %v3322_v39 = vmul.f32 %v4481_v16, %v3194_v43  ;;  %v7224_v27 = vpop.xlane.xlu0 %2297 }
 0x399   : > { %v3323_v62 = vmul.f32 %v4481_v16, %v3195_v34  ;;  %4486 = vrsqrt.f32 %v3037_v36  ;;  %v3038_v31 = vadd.f32 1e-05, %v2974_v19  ;;  %v2847_v38 = vmul.f32 %v7192_v21, %v7192_v21 }
 0x39a   : > { %v4483_v22 = vpop.eup %4482  ;;  %v2848_v40 = vmul.f32 %v7195_v44, %v7195_v44  ;;  %v3613_v53 = vadd.f32 %v6086_v12, %v3467_v7  ;;  %v3614_v35 = vadd.f32 %v6100_v52, %v3468_v10  ;;  %v3469_v46 = vmul.f32 %v6064_v18, %v3322_v39  ;;  %v8253_v39 = vld [vmem:[#allocation44_spill] sm:$0xff] }
 0x39b   : > { %v3470_v43 = vmul.f32 %v6066_v56, %v3323_v62  ;;  %v3324_v15 = vmul.f32 %v4483_v22, %v3196_v61  ;;  %v3325_v34 = vmul.f32 %v4483_v22, %v3197_v49  ;;  %4488 = vrsqrt.f32 %v3038_v31 }
 0x39c   : > { %v2911_v45 = vsub.f32 %v2783_v4, %v2847_v38  ;;  %3741 = vst [vmem:[%s6219_s12 + $0x1e0] sm:$0xff] %v3613_v53  ;;  %3742 = vst [vmem:[%s6219_s12 + $0x1e8] sm:$0xff] %v3614_v35  ;;  %v3615_v17 = vadd.f32 %v6086_v12, %v3469_v46  ;;  %v2912_v13 = vsub.f32 %v2784_v55, %v2848_v40  ;;  %v7222_v11 = vmul.f32 0.00390625, %v7126_v2  ;;  %v8252_v2 = vld [vmem:[#allocation43_spill] sm:$0xff]  ;;  %v7235_v55 = vpop.xlane.xlu1 %2300  ;;  %v8254_v46 = vld [vmem:[#allocation45_spill] sm:$0xff] }
 0x39d   : > { %v3616_v57 = vadd.f32 %v6100_v52, %v3470_v43  ;;  %v4485_v28 = vpop.eup %4484  ;;  %v3471_v61 = vmul.f32 %v6064_v18, %v3324_v15  ;;  %v3472_v49 = vmul.f32 %v6066_v56, %v3325_v34  ;;  %v7229_v19 = vmul.f32 0.00390625, %v7134_v20  ;;  %v2683_v15 = vpop.xlane.xlu0 %2682 }
 0x39e   : > { %v2975_v26 = vmax.f32 %v2911_v45, 0.0  ;;  %3743 = vst [vmem:[%s6219_s12 + $0x1f0] sm:$0xff] %v3615_v17  ;;  %v3326_v16 = vmul.f32 %v4485_v28, %v3198_v33  ;;  %v3327_v48 = vmul.f32 %v4485_v28, %v3199_v5  ;;  %v3200_v36 = vsub.f32 %v8252_v2, %v7148_v41  ;;  %v8255_v45 = vld [vmem:[#allocation46_spill] sm:$0xff] }
 0x39f   : > { %3744 = vst [vmem:[%s6219_s12 + $0x1f8] sm:$0xff] %v3616_v57  ;;  %v2976_v4 = vmax.f32 %v2912_v13, 0.0  ;;  %v3617_v7 = vadd.f32 %v6086_v12, %v3471_v61  ;;  %v3618_v10 = vadd.f32 %v6100_v52, %v3472_v49  ;;  %v3201_v20 = vsub.f32 %v8253_v39, %v7148_v41  ;;  %v8256_v61 = vld [vmem:[#allocation47_spill] sm:$0xff] }
 0x3a0   : > { %v3039_v62 = vadd.f32 1e-05, %v2975_v26  ;;  %v3473_v22 = vmul.f32 %v6064_v18, %v3326_v16  ;;  %v3474_v31 = vmul.f32 %v6066_v56, %v3327_v48  ;;  %v2849_v5 = vmul.f32 %v7222_v11, %v7222_v11  ;;  %v8257_v26 = vld [vmem:[#allocation48_spill] sm:$0xff]  ;;  %v2686_v48 = vpop.xlane.xlu1 %2685 }
 0x3a1   : > { %v3040_v33 = vadd.f32 1e-05, %v2976_v4  ;;  %3745 = vst [vmem:[%s6219_s12 + $0x200] sm:$0xff] %v3617_v7  ;;  %3746 = vst [vmem:[%s6219_s12 + $0x208] sm:$0xff] %v3618_v10  ;;  %v2785_v38 = vmul.f32 0.00390625, %v7145_v63  ;;  %v2850_v40 = vmul.f32 %v7229_v19, %v7229_v19  ;;  %v2786_v41 = vmul.f32 0.00390625, %v7156_v9 }
 0x3a2   : > { %4490 = vrsqrt.f32 %v3039_v62  ;;  %v3619_v53 = vadd.f32 %v6086_v12, %v3473_v22  ;;  %v3620_v35 = vadd.f32 %v6100_v52, %v3474_v31  ;;  %v3202_v43 = vsub.f32 %v8254_v46, %v7153_v58  ;;  %v8258_v62 = vld [vmem:[#allocation49_spill] sm:$0xff] }
 0x3a3   : > { %4492 = vrsqrt.f32 %v3040_v33  ;;  %v4487_v34 = vpop.eup %4486  ;;  %v3203_v17 = vsub.f32 %v8255_v45, %v7153_v58  ;;  %v2913_v57 = vsub.f32 %v2785_v38, %v2849_v5  ;;  %v2914_v63 = vsub.f32 %v2786_v41, %v2850_v40  ;;  %v2304_v40 = vpop.xlane.xlu0 %2303 }
 0x3a4   : > { %v7258_v13 = vmul.f32 0.00390625, %v7164_v29  ;;  %3747 = vst [vmem:[%s6219_s12 + $0x210] sm:$0xff] %v3619_v53  ;;  %3748 = vst [vmem:[%s6219_s12 + $0x218] sm:$0xff] %v3620_v35  ;;  %v3328_v9 = vmul.f32 %v4487_v34, %v3200_v36  ;;  %v3329_v28 = vmul.f32 %v4487_v34, %v3201_v20  ;;  %v3204_v49 = vsub.f32 %v8256_v61, %v7192_v21  ;;  %v2307_v45 = vpop.xlane.xlu1 %2306 }
 0x3a5   : > { %v3205_v16 = vsub.f32 %v8257_v26, %v7192_v21  ;;  %v4489_v2 = vpop.eup %4488  ;;  %v2977_v4 = vmax.f32 %v2913_v57, 0.0  ;;  %v2978_v7 = vmax.f32 %v2914_v63, 0.0  ;;  %v7267_v58 = vmul.f32 0.00390625, %v7175_v50  ;;  %v8259_v57 = vld [vmem:[#allocation50_spill] sm:$0xff] }
 0x3a6   : > { %v2787_v29 = vmul.f32 0.00390625, %v7199_v30  ;;  %v3475_v10 = vmul.f32 %v6064_v18, %v3328_v9  ;;  %v3476_v36 = vmul.f32 %v6066_v56, %v3329_v28  ;;  %v3330_v39 = vmul.f32 %v4489_v2, %v3202_v43  ;;  %v8260_v9 = vld [vmem:[#allocation51_spill] sm:$0xff] }
 0x3a7   : > { %v3331_v20 = vmul.f32 %v4489_v2, %v3203_v17  ;;  %v3206_v21 = vsub.f32 %v8258_v62, %v7195_v44  ;;  %v3041_v22 = vadd.f32 1e-05, %v2977_v4  ;;  %v3042_v31 = vadd.f32 1e-05, %v2978_v7  ;;  %v8261_v7 = vld [vmem:[#allocation52_spill] sm:$0xff] }
 0x3a8   : > { %v2851_v33 = vmul.f32 %v7258_v13, %v7258_v13  ;;  %v3621_v50 = vadd.f32 %v6086_v12, %v3475_v10  ;;  %v3622_v30 = vadd.f32 %v6100_v52, %v3476_v36  ;;  %v3477_v5 = vmul.f32 %v6064_v18, %v3330_v39 }
 0x3a9   : > { %v3478_v38 = vmul.f32 %v6066_v56, %v3331_v20  ;;  %4494 = vrsqrt.f32 %v3041_v22  ;;  %v2852_v53 = vmul.f32 %v7267_v58, %v7267_v58  ;;  %v2788_v35 = vmul.f32 0.00390625, %v7207_v54 }
 0x3aa   : > { %v2915_v41 = vsub.f32 %v2787_v29, %v2851_v33  ;;  %3749 = vst [vmem:[%s6219_s12 + $0x220] sm:$0xff] %v3621_v50  ;;  %3750 = vst [vmem:[%s6219_s12 + $0x228] sm:$0xff] %v3622_v30  ;;  %v3623_v46 = vadd.f32 %v6086_v12, %v3477_v5  ;;  %4496 = vrsqrt.f32 %v3042_v31  ;;  %v7288_v34 = vmul.f32 0.00390625, %v7224_v27  ;;  %v2692_v5 = vpop.xlane.xlu1 %2691 }
 0x3ab   : > { %v3624_v43 = vadd.f32 %v6100_v52, %v3478_v38  ;;  %v3207_v63 = vsub.f32 %v8259_v57, %v7195_v44  ;;  %v3208_v28 = vsub.f32 %v8260_v9, %v7222_v11  ;;  %v2916_v54 = vsub.f32 %v2788_v35, %v2852_v53  ;;  %v8262_v53 = vld [vmem:[#allocation53_spill] sm:$0xff] }
 0x3ac   : > { %v4491_v17 = vpop.eup %4490  ;;  %v2979_v61 = vmax.f32 %v2915_v41, 0.0  ;;  %3751 = vst [vmem:[%s6219_s12 + $0x230] sm:$0xff] %v3623_v46  ;;  %v3209_v29 = vsub.f32 %v8261_v7, %v7222_v11  ;;  %v7299_v27 = vmul.f32 0.00390625, %v7235_v55  ;;  %v2853_v22 = vmul.f32 %v7288_v34, %v7288_v34  ;;  %v8263_v46 = vld [vmem:[#allocation54_spill] sm:$0xff] }
 0x3ad   : > { %v4493_v26 = vpop.eup %4492  ;;  %3752 = vst [vmem:[%s6219_s12 + $0x238] sm:$0xff] %v3624_v43  ;;  %v3332_v2 = vmul.f32 %v4491_v17, %v3204_v49  ;;  %v3333_v4 = vmul.f32 %v4491_v17, %v3205_v16  ;;  %v2980_v44 = vmax.f32 %v2916_v54, 0.0  ;;  %v2789_v49 = vmul.f32 0.00390625, %v2683_v15  ;;  %v2689_v16 = vpop.xlane.xlu0 %2688  ;;  %v8264_v17 = vld [vmem:[#allocation55_spill] sm:$0xff] }
 0x3ae   : > { %v3334_v10 = vmul.f32 %v4493_v26, %v3206_v21  ;;  %v3335_v36 = vmul.f32 %v4493_v26, %v3207_v63  ;;  %v3043_v39 = vadd.f32 1e-05, %v2979_v61  ;;  %v2854_v30 = vmul.f32 %v7299_v27, %v7299_v27  ;;  %v8265_v61 = vld [vmem:[#allocation56_spill] sm:$0xff] }
 0x3af   : > { %v3479_v20 = vmul.f32 %v6064_v18, %v3332_v2  ;;  %v3480_v62 = vmul.f32 %v6066_v56, %v3333_v4  ;;  %v3044_v21 = vadd.f32 1e-05, %v2980_v44  ;;  %v2917_v50 = vsub.f32 %v2789_v49, %v2853_v22 }
 0x3b0   : > { %v3481_v11 = vmul.f32 %v6064_v18, %v3334_v10  ;;  %v3482_v55 = vmul.f32 %v6066_v56, %v3335_v36  ;;  %4498 = vrsqrt.f32 %v3043_v39  ;;  %v2790_v41 = vmul.f32 0.00390625, %v2686_v48  ;;  %v8266_v48 = vld [vmem:[#allocation57_spill] sm:$0xff] }
 0x3b1   : > { %v3625_v31 = vadd.f32 %v6086_v12, %v3479_v20  ;;  %v3626_v33 = vadd.f32 %v6100_v52, %v3480_v62  ;;  %4500 = vrsqrt.f32 %v3044_v21  ;;  %v3210_v35 = vsub.f32 %v8262_v53, %v7229_v19  ;;  %v2310_v44 = vpop.xlane.xlu0 %2309 }
 0x3b2   : > { %v3627_v15 = vadd.f32 %v6086_v12, %v3481_v11  ;;  %v3628_v38 = vadd.f32 %v6100_v52, %v3482_v55  ;;  %v3211_v43 = vsub.f32 %v8263_v46, %v7229_v19  ;;  %v3212_v57 = vsub.f32 %v8264_v17, %v7258_v13 }
 0x3b3   : > { %3753 = vst [vmem:[%s6219_s12 + $0x240] sm:$0xff] %v3625_v31  ;;  %3754 = vst [vmem:[%s6219_s12 + $0x248] sm:$0xff] %v3626_v33  ;;  %v2981_v63 = vmax.f32 %v2917_v50, 0.0  ;;  %v4495_v9 = vpop.eup %4494  ;;  %v3213_v54 = vsub.f32 %v8265_v61, %v7258_v13  ;;  %v3214_v26 = vsub.f32 %v8266_v48, %v7267_v58  ;;  %v2918_v2 = vsub.f32 %v2790_v41, %v2854_v30 }
 0x3b4   : > { %3755 = vst [vmem:[%s6219_s12 + $0x250] sm:$0xff] %v3627_v15  ;;  %3756 = vst [vmem:[%s6219_s12 + $0x258] sm:$0xff] %v3628_v38  ;;  %v7327_v4 = vmul.f32 0.00390625, %v2304_v40  ;;  %v4497_v7 = vpop.eup %4496  ;;  %v3336_v10 = vmul.f32 %v4495_v9, %v3208_v28  ;;  %v3337_v36 = vmul.f32 %v4495_v9, %v3209_v29  ;;  %v7329_v39 = vmul.f32 0.00390625, %v2307_v45  ;;  %v2313_v40 = vpop.xlane.xlu1 %2312  ;;  %v8267_v45 = vld [vmem:[#allocation58_spill] sm:$0xff] }
 0x3b5   : > { %v3045_v19 = vadd.f32 1e-05, %v2981_v63  ;;  %v3338_v20 = vmul.f32 %v4497_v7, %v3210_v35  ;;  %v3339_v62 = vmul.f32 %v4497_v7, %v3211_v43  ;;  %v2982_v22 = vmax.f32 %v2918_v2, 0.0  ;;  %v8268_v63 = vld [vmem:[#allocation59_spill] sm:$0xff] }
 0x3b6   : > { %v2791_v49 = vmul.f32 0.00390625, %v2689_v16  ;;  %v3483_v11 = vmul.f32 %v6064_v18, %v3336_v10  ;;  %v3484_v13 = vmul.f32 %v6066_v56, %v3337_v36  ;;  %v2792_v55 = vmul.f32 0.00390625, %v2692_v5 }
 0x3b7   : > { %4502 = vrsqrt.f32 %v3045_v19  ;;  %v3485_v28 = vmul.f32 %v6064_v18, %v3338_v20  ;;  %v3486_v29 = vmul.f32 %v6066_v56, %v3339_v62  ;;  %v3215_v21 = vsub.f32 %v8267_v45, %v7267_v58 }
 0x3b8   : > { %v3046_v31 = vadd.f32 1e-05, %v2982_v22  ;;  %v3629_v33 = vadd.f32 %v6086_v12, %v3483_v11  ;;  %v3630_v16 = vadd.f32 %v6100_v52, %v3484_v13  ;;  %v2855_v50 = vmul.f32 %v7327_v4, %v7327_v4 }
 0x3b9   : > { %v2856_v30 = vmul.f32 %v7329_v39, %v7329_v39  ;;  %v3631_v15 = vadd.f32 %v6086_v12, %v3485_v28  ;;  %v3632_v38 = vadd.f32 %v6100_v52, %v3486_v29  ;;  %v7345_v58 = vmul.f32 0.00390625, %v2310_v44  ;;  %v2695_v43 = vpop.xlane.xlu0 %2694 }
 0x3ba   : > { %v4499_v5 = vpop.eup %4498  ;;  %4504 = vrsqrt.f32 %v3046_v31  ;;  %3757 = vst [vmem:[%s6219_s12 + $0x260] sm:$0xff] %v3629_v33  ;;  %3758 = vst [vmem:[%s6219_s12 + $0x268] sm:$0xff] %v3630_v16  ;;  %v2919_v35 = vsub.f32 %v2791_v49, %v2855_v50  ;;  %v3216_v9 = vsub.f32 %v8268_v63, %v7288_v34  ;;  %v7353_v61 = vmul.f32 0.00390625, %v2313_v40 }
 0x3bb   : > { %v3340_v41 = vmul.f32 %v4499_v5, %v3212_v57  ;;  %v3341_v53 = vmul.f32 %v4499_v5, %v3213_v54  ;;  %v2920_v46 = vsub.f32 %v2792_v55, %v2856_v30  ;;  %v4501_v17 = vpop.eup %4500  ;;  %3759 = vst [vmem:[%s6219_s12 + $0x270] sm:$0xff] %v3631_v15  ;;  %3760 = vst [vmem:[%s6219_s12 + $0x278] sm:$0xff] %v3632_v38  ;;  %v2793_v48 = vmul.f32 0.00390625, %v2695_v43  ;;  %v2698_v57 = vpop.xlane.xlu1 %2697  ;;  %v8269_v54 = vld [vmem:[#allocation60_spill] sm:$0xff]  ;;  %v8270_v55 = vld [vmem:[#allocation61_spill] sm:$0xff] }
 0x3bc   : > { %v3342_v10 = vmul.f32 %v4501_v17, %v3214_v26  ;;  %v3343_v36 = vmul.f32 %v4501_v17, %v3215_v21  ;;  %v3217_v19 = vsub.f32 %v8269_v54, %v7288_v34  ;;  %v2983_v44 = vmax.f32 %v2919_v35, 0.0  ;;  %v8271_v38 = vld [vmem:[#allocation62_spill] sm:$0xff] }
 0x3bd   : > { %v3487_v2 = vmul.f32 %v6064_v18, %v3340_v41  ;;  %v3488_v7 = vmul.f32 %v6066_v56, %v3341_v53  ;;  %v2984_v20 = vmax.f32 %v2920_v46, 0.0  ;;  %v2857_v62 = vmul.f32 %v7345_v58, %v7345_v58  ;;  %v2316_v13 = vpop.xlane.xlu0 %2315 }
 0x3be   : > { %v3489_v11 = vmul.f32 %v6064_v18, %v3342_v10  ;;  %v3490_v26 = vmul.f32 %v6066_v56, %v3343_v36  ;;  %v3218_v40 = vsub.f32 %v8270_v55, %v7299_v27  ;;  %v3047_v28 = vadd.f32 1e-05, %v2983_v44 }
 0x3bf   : > { %v3633_v22 = vadd.f32 %v6086_v12, %v3487_v2  ;;  %v3634_v49 = vadd.f32 %v6100_v52, %v3488_v7  ;;  %v3048_v34 = vadd.f32 1e-05, %v2984_v20  ;;  %v2921_v29 = vsub.f32 %v2793_v48, %v2857_v62  ;;  %v2319_v50 = vpop.xlane.xlu1 %2318 }
 0x3c0   : > { %v3635_v21 = vadd.f32 %v6086_v12, %v3489_v11  ;;  %v3636_v31 = vadd.f32 %v6100_v52, %v3490_v26  ;;  %v2858_v33 = vmul.f32 %v7353_v61, %v7353_v61  ;;  %v2794_v16 = vmul.f32 0.00390625, %v2698_v57 }
 0x3c1   : > { %v4503_v45 = vpop.eup %4502  ;;  %3761 = vst [vmem:[%s6219_s12 + $0x280] sm:$0xff] %v3633_v22  ;;  %3762 = vst [vmem:[%s6219_s12 + $0x288] sm:$0xff] %v3634_v49  ;;  %4506 = vrsqrt.f32 %v3047_v28  ;;  %v2985_v15 = vmax.f32 %v2921_v29, 0.0  ;;  %v3219_v41 = vsub.f32 %v8271_v38, %v7299_v27  ;;  %v7377_v35 = vmul.f32 0.00390625, %v2316_v13  ;;  %v8272_v28 = vld [vmem:[#allocation103_spill] sm:$0xff]  ;;  %v8273_v29 = vld [vmem:[#allocation104_spill] sm:$0xff] }
 0x3c2   : > { %v3344_v30 = vmul.f32 %v4503_v45, %v3216_v9  ;;  %v3345_v5 = vmul.f32 %v4503_v45, %v3217_v19  ;;  %3763 = vst [vmem:[%s6219_s12 + $0x290] sm:$0xff] %v3635_v21  ;;  %3764 = vst [vmem:[%s6219_s12 + $0x298] sm:$0xff] %v3636_v31  ;;  %4508 = vrsqrt.f32 %v3048_v34  ;;  %v2922_v53 = vsub.f32 %v2794_v16, %v2858_v33  ;;  %v8274_v21 = vld [vmem:[#allocation63_spill] sm:$0xff]  ;;  %v8275_v33 = vld [vmem:[#allocation64_spill] sm:$0xff] }
 0x3c3   : > { %v3049_v63 = vadd.f32 1e-05, %v2985_v15  ;;  %v7381_v9 = vmul.f32 0.00390625, %v2319_v50  ;;  %v2701_v10 = vpop.xlane.xlu0 %2700  ;;  %v2859_v20 = vmul.f32 %v7377_v35, %v7377_v35  ;;  %v3220_v34 = vsub.f32 %v8272_v28, %v7327_v4 }
 0x3c4   : > { %v4505_v46 = vpop.eup %4504  ;;  %v3491_v43 = vmul.f32 %v6064_v18, %v3344_v30  ;;  %v3492_v17 = vmul.f32 %v6066_v56, %v3345_v5  ;;  %v2986_v7 = vmax.f32 %v2922_v53, 0.0  ;;  %v2795_v62 = vmul.f32 0.00390625, %v2701_v10  ;;  %v8276_v5 = vld [vmem:[#allocation65_spill] sm:$0xff] }
 0x3c5   : > { %v3346_v48 = vmul.f32 %v4505_v46, %v3218_v40  ;;  %v3347_v2 = vmul.f32 %v4505_v46, %v3219_v41  ;;  %4510 = vrsqrt.f32 %v3049_v63  ;;  %v2860_v22 = vmul.f32 %v7381_v9, %v7381_v9 }
 0x3c6   : > { %v3637_v27 = vadd.f32 %v6086_v12, %v3491_v43  ;;  %v3638_v36 = vadd.f32 %v6100_v52, %v3492_v17  ;;  %v3050_v19 = vadd.f32 1e-05, %v2986_v7  ;;  %v2704_v44 = vpop.xlane.xlu1 %2703  ;;  %v2923_v13 = vsub.f32 %v2795_v62, %v2859_v20 }
 0x3c7   : > { %v3493_v57 = vmul.f32 %v6064_v18, %v3346_v48  ;;  %v3494_v54 = vmul.f32 %v6066_v56, %v3347_v2  ;;  %v2796_v49 = vmul.f32 0.00390625, %v2704_v44  ;;  %v3221_v45 = vsub.f32 %v8273_v29, %v7327_v4  ;;  %v8277_v4 = vld [vmem:[#allocation66_spill] sm:$0xff]  ;;  %v8278_v48 = vld [vmem:[#allocation67_spill] sm:$0xff] }
 0x3c8   : > { %3765 = vst [vmem:[%s6219_s12 + $0x2a0] sm:$0xff] %v3637_v27  ;;  %3766 = vst [vmem:[%s6219_s12 + $0x2a8] sm:$0xff] %v3638_v36  ;;  %4512 = vrsqrt.f32 %v3050_v19  ;;  %v2322_v40 = vpop.xlane.xlu0 %2321  ;;  %v3222_v31 = vsub.f32 %v8274_v21, %v7329_v39  ;;  %v3223_v16 = vsub.f32 %v8275_v33, %v7329_v39  ;;  %v3224_v15 = vsub.f32 %v8276_v5, %v7345_v58  ;;  %v8279_v19 = vld [vmem:[#allocation68_spill] sm:$0xff] }
 0x3c9   : > { %v3639_v11 = vadd.f32 %v6086_v12, %v3493_v57  ;;  %v3640_v26 = vadd.f32 %v6100_v52, %v3494_v54  ;;  %v2924_v55 = vsub.f32 %v2796_v49, %v2860_v22  ;;  %v2987_v38 = vmax.f32 %v2923_v13, 0.0 }
 0x3ca   : > { %v2325_v50 = vpop.xlane.xlu1 %2324  ;;  %v7407_v53 = vmul.f32 0.00390625, %v2322_v40  ;;  %v3225_v63 = vsub.f32 %v8277_v4, %v7345_v58  ;;  %v3226_v2 = vsub.f32 %v8278_v48, %v7353_v61  ;;  %v3227_v44 = vsub.f32 %v8279_v19, %v7353_v61  ;;  %v8280_v48 = vld [vmem:[#allocation69_spill] sm:$0xff] }
 0x3cb   : > { %3767 = vst [vmem:[%s6219_s12 + $0x2b0] sm:$0xff] %v3639_v11  ;;  %3768 = vst [vmem:[%s6219_s12 + $0x2b8] sm:$0xff] %v3640_v26  ;;  %v4507_v30 = vpop.eup %4506  ;;  %v2988_v41 = vmax.f32 %v2924_v55, 0.0  ;;  %v3051_v10 = vadd.f32 1e-05, %v2987_v38  ;;  %v7417_v20 = vmul.f32 0.00390625, %v2325_v50 }
 0x3cc   : > { %v4509_v46 = vpop.eup %4508  ;;  %v3348_v43 = vmul.f32 %v4507_v30, %v3220_v34  ;;  %v3349_v17 = vmul.f32 %v4507_v30, %v3221_v45  ;;  %v2707_v36 = vpop.xlane.xlu0 %2706  ;;  %v2861_v11 = vmul.f32 %v7407_v53, %v7407_v53 }
 0x3cd   : > { %v3350_v7 = vmul.f32 %v4509_v46, %v3222_v31  ;;  %v3351_v39 = vmul.f32 %v4509_v46, %v3223_v16  ;;  %v3052_v27 = vadd.f32 1e-05, %v2988_v41  ;;  %4514 = vrsqrt.f32 %v3051_v10 }
 0x3ce   : > { %v3495_v57 = vmul.f32 %v6064_v18, %v3348_v43  ;;  %v3496_v54 = vmul.f32 %v6066_v56, %v3349_v17  ;;  %v2710_v62 = vpop.xlane.xlu1 %2709  ;;  %v2797_v34 = vmul.f32 0.00390625, %v2707_v36  ;;  %v2862_v33 = vmul.f32 %v7417_v20, %v7417_v20 }
 0x3cf   : > { %v4511_v58 = vpop.eup %4510  ;;  %v3497_v22 = vmul.f32 %v6064_v18, %v3350_v7  ;;  %v3498_v49 = vmul.f32 %v6066_v56, %v3351_v39  ;;  %4516 = vrsqrt.f32 %v3052_v27  ;;  %v2798_v16 = vmul.f32 0.00390625, %v2710_v62 }
 0x3d0   : > { %v3641_v26 = vadd.f32 %v6086_v12, %v3495_v57  ;;  %v3642_v13 = vadd.f32 %v6100_v52, %v3496_v54  ;;  %v3352_v61 = vmul.f32 %v4511_v58, %v3224_v15  ;;  %v3353_v55 = vmul.f32 %v4511_v58, %v3225_v63  ;;  %v2328_v29 = vpop.xlane.xlu0 %2327  ;;  %v8281_v54 = vld [vmem:[#allocation70_spill] sm:$0xff] }
 0x3d1   : > { %v3643_v40 = vadd.f32 %v6086_v12, %v3497_v22  ;;  %v3644_v28 = vadd.f32 %v6100_v52, %v3498_v49  ;;  %v2925_v5 = vsub.f32 %v2797_v34, %v2861_v11  ;;  %v2926_v41 = vsub.f32 %v2798_v16, %v2862_v33  ;;  %v8282_v49 = vld [vmem:[#allocation71_spill] sm:$0xff] }
 0x3d2   : > { %v4513_v45 = vpop.eup %4512  ;;  %3769 = vst [vmem:[%s6219_s12 + $0x2c0] sm:$0xff] %v3641_v26  ;;  %3770 = vst [vmem:[%s6219_s12 + $0x2c8] sm:$0xff] %v3642_v13  ;;  %v3499_v21 = vmul.f32 %v6064_v18, %v3352_v61  ;;  %v3500_v31 = vmul.f32 %v6066_v56, %v3353_v55  ;;  %v7437_v46 = vmul.f32 0.00390625, %v2328_v29  ;;  %v3229_v19 = vsub.f32 %v8281_v54, %v7377_v35  ;;  %v8283_v26 = vld [vmem:[#allocation72_spill] sm:$0xff]  ;;  %v8286_v54 = vld [vmem:[#allocation75_spill] sm:$0xff] }
 0x3d3   : > { %3771 = vst [vmem:[%s6219_s12 + $0x2d0] sm:$0xff] %v3643_v40  ;;  %3772 = vst [vmem:[%s6219_s12 + $0x2d8] sm:$0xff] %v3644_v28  ;;  %v3354_v50 = vmul.f32 %v4513_v45, %v3226_v2  ;;  %v3355_v30 = vmul.f32 %v4513_v45, %v3227_v44  ;;  %v2331_v43 = vpop.xlane.xlu1 %2330  ;;  %v2989_v63 = vmax.f32 %v2925_v5, 0.0  ;;  %v3228_v2 = vsub.f32 %v8280_v48, %v7377_v35 }
 0x3d4   : > { %v3645_v15 = vadd.f32 %v6086_v12, %v3499_v21  ;;  %v3646_v38 = vadd.f32 %v6100_v52, %v3500_v31  ;;  %v2990_v7 = vmax.f32 %v2926_v41, 0.0  ;;  %v7447_v36 = vmul.f32 0.00390625, %v2331_v43 }
 0x3d5   : > { %v3501_v17 = vmul.f32 %v6064_v18, %v3354_v50  ;;  %v3502_v4 = vmul.f32 %v6066_v56, %v3355_v30  ;;  %v3053_v27 = vadd.f32 1e-05, %v2989_v63  ;;  %v2863_v62 = vmul.f32 %v7437_v46, %v7437_v46 }
 0x3d6   : > { %3773 = vst [vmem:[%s6219_s12 + $0x2e0] sm:$0xff] %v3645_v15  ;;  %3774 = vst [vmem:[%s6219_s12 + $0x2e8] sm:$0xff] %v3646_v38  ;;  %v3054_v44 = vadd.f32 1e-05, %v2990_v7  ;;  %v3230_v11 = vsub.f32 %v8282_v49, %v7381_v9  ;;  %v3231_v13 = vsub.f32 %v8283_v26, %v7381_v9  ;;  %v2864_v34 = vmul.f32 %v7447_v36, %v7447_v36 }
 0x3d7   : > { %v3647_v39 = vadd.f32 %v6086_v12, %v3501_v17  ;;  %v3648_v10 = vadd.f32 %v6100_v52, %v3502_v4  ;;  %v2713_v57 = vpop.xlane.xlu0 %2712  ;;  %v4515_v22 = vpop.eup %4514  ;;  %4518 = vrsqrt.f32 %v3053_v27  ;;  %v8285_v27 = vld [vmem:[#allocation74_spill] sm:$0xff] }
 0x3d8   : > { %v2799_v58 = vmul.f32 0.00390625, %v2713_v57  ;;  %v3356_v55 = vmul.f32 %v4515_v22, %v3228_v2  ;;  %v3357_v40 = vmul.f32 %v4515_v22, %v3229_v19  ;;  %4520 = vrsqrt.f32 %v3054_v44 }
 0x3d9   : > { %3775 = vst [vmem:[%s6219_s12 + $0x2f0] sm:$0xff] %v3647_v39  ;;  %3776 = vst [vmem:[%s6219_s12 + $0x2f8] sm:$0xff] %v3648_v10  ;;  %v2716_v61 = vpop.xlane.xlu1 %2715  ;;  %v4517_v28 = vpop.eup %4516  ;;  %v8284_v39 = vld [vmem:[#allocation73_spill] sm:$0xff]  ;;  %v3233_v57 = vsub.f32 %v8285_v27, %v7407_v53  ;;  %v3234_v19 = vsub.f32 %v8286_v54, %v7417_v20  ;;  %v8290_v27 = vld [vmem:[#allocation79_spill] sm:$0xff] }
 0x3da   : > { %v2927_v35 = vsub.f32 %v2799_v58, %v2863_v62  ;;  %v2800_v29 = vmul.f32 0.00390625, %v2716_v61  ;;  %v3503_v45 = vmul.f32 %v6064_v18, %v3356_v55  ;;  %v3504_v21 = vmul.f32 %v6066_v56, %v3357_v40  ;;  %v8287_v58 = vld [vmem:[#allocation76_spill] sm:$0xff] }
 0x3db   : > { %v3358_v31 = vmul.f32 %v4517_v28, %v3230_v11  ;;  %v3359_v33 = vmul.f32 %v4517_v28, %v3231_v13  ;;  %v2334_v9 = vpop.xlane.xlu0 %2333  ;;  %v3232_v10 = vsub.f32 %v8284_v39, %v7407_v53  ;;  %v3235_v22 = vsub.f32 %v8287_v58, %v7417_v20  ;;  %v8291_v54 = vld [vmem:[#allocation80_spill] sm:$0xff] }
 0x3dc   : > { %v2991_v16 = vmax.f32 %v2927_v35, 0.0  ;;  %v2928_v50 = vsub.f32 %v2800_v29, %v2864_v34  ;;  %v3649_v30 = vadd.f32 %v6086_v12, %v3503_v45  ;;  %v3650_v5 = vadd.f32 %v6100_v52, %v3504_v21 }
 0x3dd   : > { %v3505_v15 = vmul.f32 %v6064_v18, %v3358_v31  ;;  %v3506_v38 = vmul.f32 %v6066_v56, %v3359_v33  ;;  %v2337_v41 = vpop.xlane.xlu1 %2336  ;;  %v7467_v4 = vmul.f32 0.00390625, %v2334_v9 }
 0x3de   : > { %v3055_v43 = vadd.f32 1e-05, %v2991_v16  ;;  %v2992_v17 = vmax.f32 %v2928_v50, 0.0  ;;  %3777 = vst [vmem:[%s6219_s12 + $0x300] sm:$0xff] %v3649_v30  ;;  %3778 = vst [vmem:[%s6219_s12 + $0x308] sm:$0xff] %v3650_v5  ;;  %v7473_v2 = vmul.f32 0.00390625, %v2337_v41 }
 0x3df   : > { %v3651_v63 = vadd.f32 %v6086_v12, %v3505_v15  ;;  %v3652_v48 = vadd.f32 %v6100_v52, %v3506_v38  ;;  %v2865_v49 = vmul.f32 %v7467_v4, %v7467_v4 }
 0x3e0   : > { %4522 = vrsqrt.f32 %v3055_v43  ;;  %v3056_v7 = vadd.f32 1e-05, %v2992_v17  ;;  %v2866_v55 = vmul.f32 %v7473_v2, %v7473_v2  ;;  %v8288_v17 = vld [vmem:[#allocation77_spill] sm:$0xff] }
 0x3e1   : > { %3779 = vst [vmem:[%s6219_s12 + $0x310] sm:$0xff] %v3651_v63  ;;  %3780 = vst [vmem:[%s6219_s12 + $0x318] sm:$0xff] %v3652_v48  ;;  %v4519_v62 = vpop.eup %4518  ;;  %v3236_v63 = vsub.f32 %v8288_v17, %v7437_v46  ;;  %v8289_v48 = vld [vmem:[#allocation78_spill] sm:$0xff] }
 0x3e2   : > { %v2719_v44 = vpop.xlane.xlu0 %2718  ;;  %4524 = vrsqrt.f32 %v3056_v7  ;;  %v4521_v26 = vpop.eup %4520  ;;  %v3360_v13 = vmul.f32 %v4519_v62, %v3232_v10  ;;  %v3361_v61 = vmul.f32 %v4519_v62, %v3233_v57  ;;  %v3237_v7 = vsub.f32 %v8289_v48, %v7437_v46 }
 0x3e3   : > { %v2801_v11 = vmul.f32 0.00390625, %v2719_v44  ;;  %v3362_v40 = vmul.f32 %v4521_v26, %v3234_v19  ;;  %v3363_v35 = vmul.f32 %v4521_v26, %v3235_v22  ;;  %v3238_v57 = vsub.f32 %v8290_v27, %v7447_v36 }
 0x3e4   : > { %v2722_v53 = vpop.xlane.xlu1 %2721  ;;  %v3507_v29 = vmul.f32 %v6064_v18, %v3360_v13  ;;  %v3508_v20 = vmul.f32 %v6066_v56, %v3361_v61  ;;  %v3239_v19 = vsub.f32 %v8291_v54, %v7447_v36 }
 0x3e5   : > { %v2929_v28 = vsub.f32 %v2801_v11, %v2865_v49  ;;  %v2802_v34 = vmul.f32 0.00390625, %v2722_v53  ;;  %v3509_v21 = vmul.f32 %v6064_v18, %v3362_v40  ;;  %v3510_v31 = vmul.f32 %v6066_v56, %v3363_v35 }
 0x3e6   : > { %v2340_v45 = vpop.xlane.xlu0 %2339  ;;  %v3653_v16 = vadd.f32 %v6086_v12, %v3507_v29  ;;  %v3654_v50 = vadd.f32 %v6100_v52, %v3508_v20 }
 0x3e7   : > { %v2993_v33 = vmax.f32 %v2929_v28, 0.0  ;;  %v2930_v9 = vsub.f32 %v2802_v34, %v2866_v55  ;;  %v7495_v30 = vmul.f32 0.00390625, %v2340_v45  ;;  %v3655_v5 = vadd.f32 %v6086_v12, %v3509_v21 }
 0x3e8   : > { %v3656_v15 = vadd.f32 %v6100_v52, %v3510_v31  ;;  %v2343_v43 = vpop.xlane.xlu1 %2342  ;;  %3781 = vst [vmem:[%s6219_s12 + $0x320] sm:$0xff] %v3653_v16  ;;  %3782 = vst [vmem:[%s6219_s12 + $0x328] sm:$0xff] %v3654_v50 }
 0x3e9   : > { %v3057_v38 = vadd.f32 1e-05, %v2993_v33  ;;  %v2994_v41 = vmax.f32 %v2930_v9, 0.0  ;;  %3783 = vst [vmem:[%s6219_s12 + $0x330] sm:$0xff] %v3655_v5  ;;  %v7511_v49 = vmul.f32 0.00390625, %v2343_v43  ;;  %v2867_v46 = vmul.f32 %v7495_v30, %v7495_v30 }
 0x3ea   : > { %v4523_v39 = vpop.eup %4522  ;;  %3784 = vst [vmem:[%s6219_s12 + $0x338] sm:$0xff] %v3656_v15  ;;  %v8292_v15 = vld [vmem:[#allocation81_spill] sm:$0xff] }
 0x3eb   : > { %4526 = vrsqrt.f32 %v3057_v38  ;;  %v3058_v10 = vadd.f32 1e-05, %v2994_v41  ;;  %v3364_v44 = vmul.f32 %v4523_v39, %v3236_v63  ;;  %v3365_v62 = vmul.f32 %v4523_v39, %v3237_v7  ;;  %v8293_v41 = vld [vmem:[#allocation82_spill] sm:$0xff] }
 0x3ec   : > { %v2725_v58 = vpop.xlane.xlu0 %2724  ;;  %v4525_v22 = vpop.eup %4524  ;;  %v2868_v20 = vmul.f32 %v7511_v49, %v7511_v49  ;;  %v3240_v38 = vsub.f32 %v8292_v15, %v7467_v4  ;;  %v3241_v43 = vsub.f32 %v8293_v41, %v7467_v4  ;;  %v3242_v39 = vsub.f32 %v6491_v14, %v7473_v2 }
 0x3ed   : > { %4528 = vrsqrt.f32 %v3058_v10  ;;  %v2803_v11 = vmul.f32 0.00390625, %v2725_v58  ;;  %v3511_v26 = vmul.f32 %v6064_v18, %v3364_v44  ;;  %v3512_v13 = vmul.f32 %v6066_v56, %v3365_v62 }
 0x3ee   : > { %v3366_v61 = vmul.f32 %v4525_v22, %v3238_v57  ;;  %v3367_v55 = vmul.f32 %v4525_v22, %v3239_v19  ;;  %v3243_v10 = vsub.f32 %v6513_v24, %v7473_v2 }
 0x3ef   : > { %v2931_v36 = vsub.f32 %v2803_v11, %v2867_v46  ;;  %v3657_v40 = vadd.f32 %v6086_v12, %v3511_v26  ;;  %v3658_v35 = vadd.f32 %v6100_v52, %v3512_v13 }
 0x3f0   : > { %v2728_v53 = vpop.xlane.xlu1 %2727  ;;  %v3513_v28 = vmul.f32 %v6064_v18, %v3366_v61  ;;  %v3514_v34 = vmul.f32 %v6066_v56, %v3367_v55 }
 0x3f1   : > { %v2995_v29 = vmax.f32 %v2931_v36, 0.0  ;;  %v2804_v45 = vmul.f32 0.00390625, %v2728_v53  ;;  %v2346_v21 = vpop.xlane.xlu0 %2345  ;;  %3785 = vst [vmem:[%s6219_s12 + $0x340] sm:$0xff] %v3657_v40  ;;  %3786 = vst [vmem:[%s6219_s12 + $0x348] sm:$0xff] %v3658_v35 }
 0x3f2   : > { %v3659_v31 = vadd.f32 %v6086_v12, %v3513_v28  ;;  %v3660_v33 = vadd.f32 %v6100_v52, %v3514_v34  ;;  %v7527_v50 = vmul.f32 0.00390625, %v2346_v21 }
 0x3f3   : > { %v3059_v9 = vadd.f32 1e-05, %v2995_v29  ;;  %v2932_v16 = vsub.f32 %v2804_v45, %v2868_v20 }
 0x3f4   : > { %v2349_v5 = vpop.xlane.xlu1 %2348  ;;  %3787 = vst [vmem:[%s6219_s12 + $0x350] sm:$0xff] %v3659_v31  ;;  %3788 = vst [vmem:[%s6219_s12 + $0x358] sm:$0xff] %v3660_v33  ;;  %v2869_v44 = vmul.f32 %v7527_v50, %v7527_v50  ;;  %v8294_v33 = vld [vmem:[#allocation83_spill] sm:$0xff] }
 0x3f5   : > { %v4527_v17 = vpop.eup %4526  ;;  %4530 = vrsqrt.f32 %v3059_v9  ;;  %v2996_v63 = vmax.f32 %v2932_v16, 0.0  ;;  %v7535_v48 = vmul.f32 0.00390625, %v2349_v5  ;;  %v2731_v7 = vpop.xlane.xlu0 %2730  ;;  %v3244_v9 = vsub.f32 %v8294_v33, %v7495_v30  ;;  %v8295_v16 = vld [vmem:[#allocation84_spill] sm:$0xff] }
 0x3f6   : > { %v3368_v27 = vmul.f32 %v4527_v17, %v3240_v38  ;;  %v3369_v57 = vmul.f32 %v4527_v17, %v3241_v43  ;;  %v2805_v4 = vmul.f32 0.00390625, %v2731_v7  ;;  %v3245_v5 = vsub.f32 %v8295_v16, %v7495_v30 }
 0x3f7   : > { %v4529_v54 = vpop.eup %4528  ;;  %v3060_v19 = vadd.f32 1e-05, %v2996_v63  ;;  %v2870_v24 = vmul.f32 %v7535_v48, %v7535_v48  ;;  %v3247_v30 = vsub.f32 %v6597_v32, %v7511_v49  ;;  %v3250_v16 = vsub.f32 %v6688_v47, %v7535_v48 }
 0x3f8   : > { %v2734_v62 = vpop.xlane.xlu1 %2733  ;;  %v3515_v58 = vmul.f32 %v6064_v18, %v3368_v27  ;;  %v3516_v22 = vmul.f32 %v6066_v56, %v3369_v57  ;;  %v3370_v46 = vmul.f32 %v4529_v54, %v3242_v39  ;;  %v3371_v14 = vmul.f32 %v4529_v54, %v3243_v10 }
 0x3f9   : > { %4532 = vrsqrt.f32 %v3060_v19  ;;  %v2933_v11 = vsub.f32 %v2805_v4, %v2869_v44  ;;  %v2806_v2 = vmul.f32 0.00390625, %v2734_v62  ;;  %v2352_v26 = vpop.xlane.xlu0 %2351  ;;  %v3246_v57 = vsub.f32 %v6587_v1, %v7511_v49 }
 0x3fa   : > { %v3661_v13 = vadd.f32 %v6086_v12, %v3515_v58  ;;  %v3662_v61 = vadd.f32 %v6100_v52, %v3516_v22  ;;  %v3517_v55 = vmul.f32 %v6064_v18, %v3370_v46  ;;  %v3518_v36 = vmul.f32 %v6066_v56, %v3371_v14 }
 0x3fb   : > { %v2997_v53 = vmax.f32 %v2933_v11, 0.0  ;;  %v2934_v40 = vsub.f32 %v2806_v2, %v2870_v24  ;;  %v7551_v35 = vmul.f32 0.00390625, %v2352_v26 }
 0x3fc   : > { %v2355_v28 = vpop.xlane.xlu1 %2354  ;;  %3789 = vst [vmem:[%s6219_s12 + $0x360] sm:$0xff] %v3661_v13  ;;  %3790 = vst [vmem:[%s6219_s12 + $0x368] sm:$0xff] %v3662_v61  ;;  %v3663_v34 = vadd.f32 %v6086_v12, %v3517_v55  ;;  %v3664_v29 = vadd.f32 %v6100_v52, %v3518_v36 }
 0x3fd   : > { %v7557_v20 = vmul.f32 0.00390625, %v2355_v28  ;;  %v3061_v45 = vadd.f32 1e-05, %v2997_v53  ;;  %v2998_v21 = vmax.f32 %v2934_v40, 0.0  ;;  %v2737_v31 = vpop.xlane.xlu0 %2736  ;;  %v2871_v15 = vmul.f32 %v7551_v35, %v7551_v35 }
 0x3fe   : > { %3791 = vst [vmem:[%s6219_s12 + $0x370] sm:$0xff] %v3663_v34  ;;  %3792 = vst [vmem:[%s6219_s12 + $0x378] sm:$0xff] %v3664_v29  ;;  %v2807_v38 = vmul.f32 0.00390625, %v2737_v31  ;;  %v3248_v29 = vsub.f32 %v6652_v25, %v7527_v50 }
 0x3ff   : > { %v4531_v41 = vpop.eup %4530  ;;  %4534 = vrsqrt.f32 %v3061_v45  ;;  %v3062_v43 = vadd.f32 1e-05, %v2998_v21  ;;  %v2872_v17 = vmul.f32 %v7557_v20, %v7557_v20  ;;  %v3249_v45 = vsub.f32 %v6662_v51, %v7527_v50 }
 0x400   : > { %v2740_v63 = vpop.xlane.xlu1 %2739  ;;  %v3372_v7 = vmul.f32 %v4531_v41, %v3244_v9  ;;  %v3373_v39 = vmul.f32 %v4531_v41, %v3245_v5  ;;  %v2935_v10 = vsub.f32 %v2807_v38, %v2871_v15  ;;  %v3251_v5 = vsub.f32 %v6702_v60, %v7535_v48 }
 0x401   : > { %v2808_v27 = vmul.f32 0.00390625, %v2740_v63  ;;  %4536 = vrsqrt.f32 %v3062_v43  ;;  %v2358_v54 = vpop.xlane.xlu0 %2357 }
 0x402   : > { %v3519_v19 = vmul.f32 %v6064_v18, %v3372_v7  ;;  %v3520_v44 = vmul.f32 %v6066_v56, %v3373_v39  ;;  %v2999_v4 = vmax.f32 %v2935_v10, 0.0  ;;  %v7575_v22 = vmul.f32 0.00390625, %v2358_v54 }
 0x403   : > { %v2936_v62 = vsub.f32 %v2808_v27, %v2872_v17  ;;  %v4533_v58 = vpop.eup %4532  ;;  %v3252_v54 = vsub.f32 %v6746_v23, %v7551_v35 }
 0x404   : > { %v2361_v46 = vpop.xlane.xlu1 %2360  ;;  %v3665_v14 = vadd.f32 %v6086_v12, %v3519_v19  ;;  %v3666_v1 = vadd.f32 %v6100_v52, %v3520_v44  ;;  %v3374_v11 = vmul.f32 %v4533_v58, %v3246_v57  ;;  %v3375_v32 = vmul.f32 %v4533_v58, %v3247_v30 }
 0x405   : > { %v3063_v49 = vadd.f32 1e-05, %v2999_v4  ;;  %v3000_v24 = vmax.f32 %v2936_v62, 0.0  ;;  %v7583_v61 = vmul.f32 0.00390625, %v2361_v46  ;;  %v2873_v36 = vmul.f32 %v7575_v22, %v7575_v22 }
 0x406   : > { %v2743_v2 = vpop.xlane.xlu0 %2742  ;;  %3793 = vst [vmem:[%s6219_s12 + $0x380] sm:$0xff] %v3665_v14  ;;  %3794 = vst [vmem:[%s6219_s12 + $0x388] sm:$0xff] %v3666_v1  ;;  %v3521_v26 = vmul.f32 %v6064_v18, %v3374_v11  ;;  %v3522_v13 = vmul.f32 %v6066_v56, %v3375_v32  ;;  %v3253_v19 = vsub.f32 %v6765_v37, %v7551_v35 }
 0x407   : > { %4538 = vrsqrt.f32 %v3063_v49  ;;  %v3064_v55 = vadd.f32 1e-05, %v3000_v24  ;;  %v2809_v53 = vmul.f32 0.00390625, %v2743_v2  ;;  %v2874_v33 = vmul.f32 %v7583_v61, %v7583_v61 }
 0x408   : > { %v2746_v40 = vpop.xlane.xlu1 %2745  ;;  %v3667_v28 = vadd.f32 %v6086_v12, %v3521_v26  ;;  %v3668_v34 = vadd.f32 %v6100_v52, %v3522_v13  ;;  %v3254_v4 = vsub.f32 %v6780_v42, %v7557_v20  ;;  %v3255_v62 = vsub.f32 %v6786_v6, %v7557_v20 }
 0x409   : > { %v4535_v21 = vpop.eup %4534  ;;  %4540 = vrsqrt.f32 %v3064_v55  ;;  %v2937_v31 = vsub.f32 %v2809_v53, %v2873_v36  ;;  %v2810_v9 = vmul.f32 0.00390625, %v2746_v40  ;;  %v3256_v24 = vsub.f32 %v6838_v59, %v7575_v22 }
 0x40a   : > { %3795 = vst [vmem:[%s6219_s12 + $0x390] sm:$0xff] %v3667_v28  ;;  %3796 = vst [vmem:[%s6219_s12 + $0x398] sm:$0xff] %v3668_v34  ;;  %v3376_v15 = vmul.f32 %v4535_v21, %v3248_v29  ;;  %v3377_v25 = vmul.f32 %v4535_v21, %v3249_v45  ;;  %v3257_v2 = vsub.f32 %v6857_v0, %v7575_v22 }
 0x40b   : > { %v4537_v38 = vpop.eup %4536  ;;  %v3001_v51 = vmax.f32 %v2937_v31, 0.0  ;;  %v2938_v50 = vsub.f32 %v2810_v9, %v2874_v33  ;;  %v3258_v13 = vsub.f32 %v6867_v8, %v7583_v61  ;;  %v3259_v55 = vsub.f32 %v6878_v3, %v7583_v61 }
 0x40c   : > { %v3523_v41 = vmul.f32 %v6064_v18, %v3376_v15  ;;  %v3524_v43 = vmul.f32 %v6066_v56, %v3377_v25  ;;  %v3378_v17 = vmul.f32 %v4537_v38, %v3250_v16  ;;  %v3379_v63 = vmul.f32 %v4537_v38, %v3251_v5 }
 0x40d   : > { %v3065_v7 = vadd.f32 1e-05, %v3001_v51  ;;  %v3002_v39 = vmax.f32 %v2938_v50, 0.0 }
 0x40e   : > { %v3669_v47 = vadd.f32 %v6086_v12, %v3523_v41  ;;  %v3670_v60 = vadd.f32 %v6100_v52, %v3524_v43  ;;  %v3525_v48 = vmul.f32 %v6064_v18, %v3378_v17  ;;  %v3526_v10 = vmul.f32 %v6066_v56, %v3379_v63 }
 0x40f   : > { %4542 = vrsqrt.f32 %v3065_v7  ;;  %v3066_v27 = vadd.f32 1e-05, %v3002_v39 }
 0x410   : > { %3797 = vst [vmem:[%s6219_s12 + $0x3a0] sm:$0xff] %v3669_v47  ;;  %3798 = vst [vmem:[%s6219_s12 + $0x3a8] sm:$0xff] %v3670_v60  ;;  %v3671_v57 = vadd.f32 %v6086_v12, %v3525_v48  ;;  %v3672_v30 = vadd.f32 %v6100_v52, %v3526_v10 }
 0x411   : > { %v4539_v44 = vpop.eup %4538  ;;  %4544 = vrsqrt.f32 %v3066_v27 }
 0x412   : > { %3799 = vst [vmem:[%s6219_s12 + $0x3b0] sm:$0xff] %v3671_v57  ;;  %3800 = vst [vmem:[%s6219_s12 + $0x3b8] sm:$0xff] %v3672_v30  ;;  %v3380_v58 = vmul.f32 %v4539_v44, %v3252_v54  ;;  %v3381_v46 = vmul.f32 %v4539_v44, %v3253_v19 }
 0x413   : > { %v4541_v14 = vpop.eup %4540 }
 0x414   : > { %v3527_v23 = vmul.f32 %v6064_v18, %v3380_v58  ;;  %v3528_v37 = vmul.f32 %v6066_v56, %v3381_v46  ;;  %v3382_v35 = vmul.f32 %v4541_v14, %v3254_v4  ;;  %v3383_v1 = vmul.f32 %v4541_v14, %v3255_v62 }
 0x416   : > { %v3673_v11 = vadd.f32 %v6086_v12, %v3527_v23  ;;  %v3674_v32 = vadd.f32 %v6100_v52, %v3528_v37  ;;  %v3529_v42 = vmul.f32 %v6064_v18, %v3382_v35  ;;  %v3530_v49 = vmul.f32 %v6066_v56, %v3383_v1 }
 0x418   : > { %3801 = vst [vmem:[%s6219_s12 + $0x3c0] sm:$0xff] %v3673_v11  ;;  %3802 = vst [vmem:[%s6219_s12 + $0x3c8] sm:$0xff] %v3674_v32  ;;  %v3675_v6 = vadd.f32 %v6086_v12, %v3529_v42  ;;  %v3676_v20 = vadd.f32 %v6100_v52, %v3530_v49 }
 0x419   : > { %v4543_v26 = vpop.eup %4542 }
 0x41a   : > { %3803 = vst [vmem:[%s6219_s12 + $0x3d0] sm:$0xff] %v3675_v6  ;;  %3804 = vst [vmem:[%s6219_s12 + $0x3d8] sm:$0xff] %v3676_v20  ;;  %v3384_v36 = vmul.f32 %v4543_v26, %v3256_v24  ;;  %v3385_v53 = vmul.f32 %v4543_v26, %v3257_v2 }
 0x41b   : > { %v4545_v40 = vpop.eup %4544 }
 0x41c   : > { %v3531_v28 = vmul.f32 %v6064_v18, %v3384_v36  ;;  %v3532_v59 = vmul.f32 %v6066_v56, %v3385_v53  ;;  %v3386_v0 = vmul.f32 %v4545_v40, %v3258_v13  ;;  %v3387_v22 = vmul.f32 %v4545_v40, %v3259_v55 }
 0x41e   : > { %v3677_v8 = vadd.f32 %v6086_v12, %v3531_v28  ;;  %v3678_v3 = vadd.f32 %v6100_v52, %v3532_v59  ;;  %v3533_v61 = vmul.f32 %v6064_v18, %v3386_v0  ;;  %v3534_v34 = vmul.f32 %v6066_v56, %v3387_v22 }
 0x420   : > { %3805 = vst [vmem:[%s6219_s12 + $0x3e0] sm:$0xff] %v3677_v8  ;;  %3806 = vst [vmem:[%s6219_s12 + $0x3e8] sm:$0xff] %v3678_v3  ;;  %v3679_v29 = vadd.f32 %v6086_v12, %v3533_v61  ;;  %v3680_v45 = vadd.f32 %v6100_v52, %v3534_v34 }
 0x422   : > { %3807 = vst [vmem:[%s6219_s12 + $0x3f0] sm:$0xff] %v3679_v29  ;;  %3808 = vst [vmem:[%s6219_s12 + $0x3f8] sm:$0xff] %v3680_v45 }
 0x423   : > { %4645 = shalt.err (!%p4642_p1)
}
 0x424   : > { %s4646_s10 = scalar_lea.hbm %s7652_s27, 16384  ;;  %s4650_s21 = scalar_lea.hbm %s7708_s4, 32768 }
 0x425   : > { %p4647_p13 = scmp.ne.s32.totalorder %s7652_s27, %s4646_s10  ;;  %p4651_p4 = scmp.lt.u32.totalorder %s7652_s27, %s7708_s4 }
 0x426   : > { %p4652_p5 = scmp.lt.u32.totalorder %s4650_s21, %s4646_s10  ;;  %p4654_p11 = scmp.lt.u32.totalorder %s4646_s10, %s7652_s27 }
 0x427   : > { %p4648_p6 = pnand %p4647_p13, %p8296_p0 }
 0x428   : > { %p4653_p8 = por %p4652_p5, %p4651_p4 }
 0x429   : > { %p4649_p10 = pneg %p4648_p6 }
 0x42a   : > { %p4655_p2 = por %p4654_p11, %p4653_p8 }
 0x42c   : > { %p4656_p3 = pnand %p4655_p2, %p4649_p10 }
 0x42e   : > { %4659 = shalt.err (!%p4656_p3)
}
 0x42f   : > { %s4711_s12 = smov 256   ;;  %s4712_s30 = smov 16  }
 0x430   : > { %4028 = dma.vmem_to_hbm [thread:$0]  (%p8296_p0), %s7654_s6, 16384, %s7652_s27, %s3810_s19, %s4711_s12, %s4711_s12, %s4712_s30  }
 0x431 PF: > { %s3839_s25 = sand.u32 1, %s4690_s15   ;;  %p8297_p7 = scmp.ne.s32.totalorder %s7902_s22, 0 }
 0x432   : > { %p8298_p9 = scmp.ge.s32.totalorder %s4702_s18, 2  ;;  %s3840_s7 = scalar_lea.sflag [#allocation4], %s3839_s25 }
 0x434   : > { %p4042_p12 = pnand %p8298_p9, %p8297_p7 }
 0x436   : > { %4685 = dma.done.wait (!%p4042_p12), %s3840_s7, 16384  }
 0x437   : > { %4687 = vsyncadd (!%p4042_p12), %s3840_s7, 4294950912  ;;  %p18_p1 = scmp.ge.s32.totalorder %s4854_s26, 4   ;;  %s8299_s15 = smov %s4694_s16 }
 0x438   : > { %s8300_s16 = smov %s4698_s17  ;;  %s8301_s17 = smov %s4870_s14 }
 0x439   : > { %s8302_s18 = smov %s4854_s26  ;;  %20 = sbr.rel (!%p18_p1) target bundleno = 6 (0x6), region = 89 }
 0x440   :  { %3845 = vsyncpa [#allocation3], 1 }
 0x441   :  { %3847 = vsyncpa [#allocation3 + $0x1], 1 }
 0x442   :  { %3848 = vsyncpa [#allocation6], 1 }
 0x443   :  { %3849 = vsyncpa [#allocation4], 1 }
 0x444   :  { %3851 = vsyncpa [#allocation4 + $0x1], 1 }

// kernel: tpu_custom_call.1
= control target key start
LH: loop header
LB: loop body
LE: loop exit
PB: predicated region body
PF: predicated region fallthrough
CT: control target
= control target key end

     0   :  { %9 = vsyncpa [#allocation3], 0  ;;  %s7704_s0 = inlined_call_operand.hbm [shape: f32[1024,128], index: 0, kind: input, shape index: {}]   ;;  %s7705_s1 = inlined_call_operand.hbm [shape: bf16[128,256], index: 1, kind: input, shape index: {}]   ;;  %s7706_s2 = inlined_call_operand.hbm [shape: bf16[256,256], index: 2, kind: input, shape index: {}]   ;;  %s7707_s3 = inlined_call_operand.vmem [shape: f32[2,256], index: 3, kind: input, shape index: {}]   ;;  %s7708_s4 = inlined_call_operand.hbm [shape: f32[1024,256], index: 4, kind: output, shape index: {}]  }
   0x1   :  { %11 = vsyncpa [#allocation3 + $0x1], 0 }
   0x2   :  { %12 = vsyncpa [#allocation6], 0 }
   0x3   :  { %13 = vsyncpa [#allocation4], 0 }
   0x4   :  { %15 = vsyncpa [#allocation4 + $0x1], 0  ;;  %s4738_s15 = smov 0   ;;  %s4740_s16 = smov 0  }
   0x5   :  { %s4742_s17 = smov 0   ;;  %s4744_s18 = smov 0  }
   0x6 LB: > { %s4759_s19 = sadd.s32 4294967295, %s4702_s18   ;;  %s3916_s20 = sadd.s32 4294967294, %s4702_s18   ;;  %s4702_s18 = sphi %s4744_s18, %s8302_s18   ;;  %s4698_s17 = sphi %s4742_s17, %s8301_s17   ;;  %s4694_s16 = sphi %s4740_s16, %s8300_s16   ;;  %s4690_s15 = sphi %s4738_s15, %s8299_s15  }
   0x7   : > { %p41_p0 = scmp.ne.s32.totalorder %s4694_s16, %s4690_s15  ;;  %p7709_p1 = scmp.eq.s32.totalorder %s4759_s19, 0 }
   0x8   : > { %p134_p3 = scmp.eq.s32.totalorder %s3916_s20, 1  ;;  %p3917_p5 = scmp.ge.s32.totalorder %s4702_s18, 1 }
   0x9   : > { %p4768_p4 = por %p7709_p1, %p41_p0  ;;  %p141_p7 = scmp.lt.s32.totalorder %s4702_s18, 3 }
   0xa   : > { %p4773_p6 = por %p134_p3, %p41_p0  ;;  %s4704_s24 = smov [#allocation5]  }
   0xb   : > { %s7901_s21 = scalar_select %p4768_p4, 1, 0 }
   0xc   : > { %s7902_s22 = scalar_select %p4773_p6, 1, 0 }
   0xd   : > { %p4778_p8 = pnand %p3917_p5, %p141_p7  ;;  %s153_s25 = sshll.u32 %s4704_s24, 4  ;;  %s4782_s25 = int_to_ptr.vmem [resolvable:$true] %s153_s25 }
   0xe   : > { %s4705_s27 = smov [#allocation7]   ;;  %s4546_s5 = scalar_lea.hbm %s7705_s1, 2048 }
   0xf   : > { %p4030_p9 = pneg %p4778_p8  ;;  %s166_s28 = sshll.u32 %s4705_s27, 4  ;;  %s4793_s28 = int_to_ptr.vmem [resolvable:$true] %s166_s28 }
  0x10   : > { %p4547_p12 = scmp.ne.s32.totalorder %s7705_s1, %s4546_s5  ;;  %p4553_p5 = scmp.lt.u32.totalorder %s4546_s5, %s7705_s1 }
  0x11   : > { %p4789_p11 = pnand %p4030_p9, %p7709_p1 }
  0x13   : > { %p4548_p13 = pneg %p4789_p11 }
  0x15   : > { %p4549_p0 = pnand %p4548_p13, %p4547_p12 }
  0x17   : > { %p4550_p3 = pneg %p4549_p0 }
  0x19   : > { %p4555_p7 = pnand %p4553_p5, %p4550_p3 }
  0x1b   : > { %4558 = shalt.err (!%p4555_p7)
}
  0x1c   : > { %s4559_s10 = scalar_lea.vmem %s4782_s25, 2048  ;;  %p4567_p2 = scmp.lt.s32.totalorder %s4782_s25, %s4782_s25 }
  0x1d   : > { %p4560_p9 = scmp.ne.s32.totalorder %s4782_s25, %s4559_s10  ;;  %p4568_p12 = scmp.lt.s32.totalorder %s4559_s10, %s4559_s10 }
  0x1f   : > { %p4562_p10 = pnand %p4560_p9, %p4548_p13  ;;  %p4569_p0 = por %p4568_p12, %p4567_p2 }
  0x21   : > { %p4563_p1 = pneg %p4562_p10 }
  0x23   : > { %p4570_p6 = pnand %p4569_p0, %p4563_p1 }
  0x25   : > { %4573 = shalt.err (!%p4570_p6)
}
  0x26   : > { %s4706_s11 = smov 128   ;;  %s4707_s12 = smov 8  }
  0x27   : > { %4033 = dma.hbm_to_vmem [thread:$0]  (!%p4789_p11), %s7705_s1, 2048, %s4782_s25, [#allocation6], %s4706_s11, %s4706_s11, %s4707_s12  }
  0x28   : > { %s4574_s27 = scalar_lea.hbm %s7706_s2, 4096 }
  0x29   : > { %p4575_p1 = scmp.ne.s32.totalorder %s7706_s2, %s4574_s27  ;;  %p4581_p10 = scmp.lt.u32.totalorder %s4574_s27, %s7706_s2 }
  0x2b   : > { %p4577_p2 = pnand %p4575_p1, %p4548_p13 }
  0x2d   : > { %p4578_p6 = pneg %p4577_p2 }
  0x2f   : > { %p4583_p3 = pnand %p4581_p10, %p4578_p6 }
  0x31   : > { %4586 = shalt.err (!%p4583_p3)
}
  0x32   : > { %s4587_s25 = scalar_lea.vmem %s4793_s28, 4096  ;;  %p4595_p12 = scmp.lt.s32.totalorder %s4793_s28, %s4793_s28 }
  0x33   : > { %p4588_p5 = scmp.ne.s32.totalorder %s4793_s28, %s4587_s25  ;;  %p4596_p0 = scmp.lt.s32.totalorder %s4587_s25, %s4587_s25 }
  0x35   : > { %p4590_p7 = pnand %p4588_p5, %p4548_p13  ;;  %p4597_p1 = por %p4596_p0, %p4595_p12 }
  0x37   : > { %p4591_p9 = pneg %p4590_p7 }
  0x39   : > { %p4598_p2 = pnand %p4597_p1, %p4591_p9 }
  0x3b   : > { %4601 = shalt.err (!%p4598_p2)
}
  0x3c   : > { %4036 = dma.hbm_to_vmem [thread:$0]  (!%p4789_p11), %s7706_s2, 4096, %s4793_s28, [#allocation6], %s4706_s11, %s4706_s11, %s4707_s12  }
  0x3d   : > { %s4854_s26 = sadd.s32 1, %s4702_s18   ;;  %s28_s9 = sadd.s32 1, %s4698_s17 }
  0x3e   : > { %s25_s10 = ssub.s32 %s4702_s18, %s4854_s26  ;;  %p35_p13 = scmp.ne.s32.totalorder %s4698_s17, %s4694_s16 }
  0x3f   : > { %p26_p6 = scmp.eq.s32.totalorder %s25_s10, 0  ;;  %p36_p10 = scmp.eq.s32.totalorder %s4702_s18, 0 }
  0x40   : > { %p7905_p3 = scmp.eq.s32.totalorder %s4759_s19, 1  ;;  %p4047_p7 = scmp.lt.s32.totalorder %s4702_s18, 2 }
  0x41   : > { %s4870_s14 = scalar_select %p26_p6, %s4698_s17, %s28_s9  }
  0x42   : > { %p4864_p5 = por %p7905_p3, %p35_p13  ;;  %p37_p9 = por %p36_p10, %p35_p13 }
  0x43   : > { %s183_s20 = sand.u32 1, %s4698_s17   ;;  %s3983_s28 = sshll.u32 %s4702_s18, 13 }
  0x44   : > { %s7906_s13 = scalar_select %p4864_p5, 1, 0 }
  0x45   : > { %s3921_s24 = sshll.u32 %s183_s20, 9  ;;  %s4877_s30 = scalar_lea.hbm %s7704_s0, %s3983_s28 }
  0x46   : > { %s187_s5 = scalar_lea.vmem [#allocation2], %s3921_s24  ;;  %p4881_p11 = pnand %p4047_p7, %p37_p9 }
  0x47   : > { %s194_s6 = sshll.u32 %s187_s5, 4  ;;  %s4885_s7 = scalar_lea.sflag [#allocation3], %s183_s20  ;;  %s4879_s6 = int_to_ptr.vmem [resolvable:$true] %s194_s6 }
  0x48   : > { %s4602_s8 = scalar_lea.hbm %s4877_s30, 8192  ;;  %p4604_p0 = pneg %p4881_p11 }
  0x49   : > { %p4603_p12 = scmp.ne.s32.totalorder %s4877_s30, %s4602_s8  ;;  %s4607_s24 = scalar_lea.hbm %s7704_s0, 16384 }
  0x4a   : > { %p4608_p13 = scmp.lt.u32.totalorder %s4877_s30, %s7704_s0  ;;  %p4609_p6 = scmp.lt.u32.totalorder %s4607_s24, %s4602_s8 }
  0x4b   : > { %p4605_p1 = pnand %p4604_p0, %p4603_p12  ;;  %p4611_p3 = scmp.lt.u32.totalorder %s4602_s8, %s4877_s30 }
  0x4c   : > { %p4610_p10 = por %p4609_p6, %p4608_p13 }
  0x4d   : > { %p4606_p2 = pneg %p4605_p1 }
  0x4e   : > { %p4612_p7 = por %p4611_p3, %p4610_p10 }
  0x50   : > { %p4613_p9 = pnand %p4612_p7, %p4606_p2 }
  0x52   : > { %4616 = shalt.err (!%p4613_p9)
}
  0x53   : > { %s4617_s20 = scalar_lea.vmem %s4879_s6, 8192  ;;  %s4708_s29 = smov [#allocation2]  }
  0x54   : > { %p4618_p12 = scmp.ne.s32.totalorder %s4879_s6, %s4617_s20  ;;  %s4622_s5 = sshll.u32 %s4708_s29, 4  ;;  %s4623_s5 = int_to_ptr.vmem [resolvable:$false] %s4622_s5 }
  0x55   : > { %s4624_s9 = scalar_lea.vmem %s4623_s5, 16384  ;;  %p4625_p4 = scmp.lt.s32.totalorder %s4879_s6, %s4623_s5 }
  0x56   : > { %p4620_p1 = pnand %p4618_p12, %p4604_p0  ;;  %p4626_p13 = scmp.lt.s32.totalorder %s4624_s9, %s4617_s20 }
  0x58   : > { %p4621_p5 = pneg %p4620_p1  ;;  %p4627_p6 = por %p4626_p13, %p4625_p4 }
  0x5a   : > { %p4628_p10 = pnand %p4627_p6, %p4621_p5 }
  0x5c   : > { %4631 = shalt.err (!%p4628_p10)
}
  0x5d   : > { %4040 = dma.hbm_to_vmem [thread:$0]  (!%p4881_p11), %s4877_s30, 8192, %s4879_s6, %s4885_s7, %s4706_s11, %s4706_s11, %s4707_s12  }
  0x5e   : > { %206 = sbr.rel (%p4778_p8) target bundleno = 1073 (0x431), region = 36 }
  0x65   : > { %s4919_s8 = sand.u32 1, %s4694_s16   ;;  %p7908_p4 = scmp.ne.s32.totalorder %s7901_s21, 0 }
  0x66   : > { %s3925_s10 = sshll.u32 %s4919_s8, 9  ;;  %s209_s24 = scalar_lea.sflag [#allocation3], %s4919_s8 }
  0x67   : > { %s4923_s28 = scalar_lea.vmem [#allocation2], %s3925_s10 }
  0x68   : > { %4677 = dma.done.wait (%p7908_p4), %s209_s24, 8192  }
  0x69   : > { %4679 = vsyncadd (%p7908_p4), %s209_s24, 4294959104  ;;  %p7909_p5 = scmp.eq.s32.totalorder %s4759_s19, 0 }
  0x6b   : > { %4681 = dma.done.wait (%p7909_p5), [#allocation6], 6144   ;;  %p7910_p8 = pmov %p7909_p5 }
  0x6c   : > { %v4709_v0 = vmov 0   ;;  %v4090_v1 = vld [vmem:[#allocation5 + $0x4] ss:$8 sps:$4 sm:$0xff]   ;;  %v4092_v2 = vld [vmem:[#allocation5] ss:$8 sps:$4 sm:$0xff]   ;;  %v250_v33 = vld [vmem:[%s4923_s28 + $0x10] sm:$0xff] }
  0x6d   : > { %4683 = vsyncadd (%p7910_p8), [#allocation6], 4294961152  ;;  %504 = vmatprep.mubr.bf16.mxu0 %v4709_v0  ;;  %472 = vmatprep.subr.bf16.mxu0 %v4090_v1  ;;  %v4093_v3 = vld [vmem:[#allocation5 + $0x14] ss:$8 sps:$4 sm:$0xff]   ;;  %v4095_v4 = vld [vmem:[#allocation5 + $0x10] ss:$8 sps:$4 sm:$0xff]  }
  0x6e   : > { %473 = vmatpush1.bf16.msra.mxu0 %v4092_v2  ;;  %v4096_v5 = vld [vmem:[#allocation5 + $0x24] ss:$8 sps:$4 sm:$0xff]   ;;  %v4098_v6 = vld [vmem:[#allocation5 + $0x20] ss:$8 sps:$4 sm:$0xff]   ;;  %v4099_v7 = vld [vmem:[#allocation5 + $0x34] ss:$8 sps:$4 sm:$0xff]  }
  0x6f   : > { %474 = vmatprep.subr.bf16.mxu0 %v4093_v3  ;;  %v4101_v8 = vld [vmem:[#allocation5 + $0x30] ss:$8 sps:$4 sm:$0xff]   ;;  %v4102_v9 = vld [vmem:[#allocation5 + $0x44] ss:$8 sps:$4 sm:$0xff]   ;;  %v4114_v10 = vld [vmem:[#allocation7] ss:$8 sps:$4 sm:$0xff]  }
  0x70   : > { %v4116_v11 = vld [vmem:[#allocation7 + $0x4] ss:$8 sps:$4 sm:$0xff]   ;;  %v4104_v12 = vld [vmem:[#allocation5 + $0x40] ss:$8 sps:$4 sm:$0xff]   ;;  %v4117_v13 = vld [vmem:[#allocation7 + $0x10] ss:$8 sps:$4 sm:$0xff]  }
  0x71   : > { %3986 = vmatprep.subr.bf16.mxu1 %v4116_v11  ;;  %v4119_v14 = vld [vmem:[#allocation7 + $0x14] ss:$8 sps:$4 sm:$0xff]   ;;  %v4122_v16 = vld [vmem:[#allocation7 + $0x24] ss:$8 sps:$4 sm:$0xff]   ;;  %v4107_v17 = vld [vmem:[#allocation5 + $0x50] ss:$8 sps:$4 sm:$0xff]  }
  0x72   : > { %475 = vmatpush1.bf16.msra.mxu0 %v4095_v4  ;;  %4002 = vmatpush1.bf16.msra.mxu1 %v4114_v10  ;;  %v4105_v15 = vld [vmem:[#allocation5 + $0x54] ss:$8 sps:$4 sm:$0xff]   ;;  %v4120_v18 = vld [vmem:[#allocation7 + $0x20] ss:$8 sps:$4 sm:$0xff]   ;;  %v4108_v19 = vld [vmem:[#allocation5 + $0x64] ss:$8 sps:$4 sm:$0xff]  }
  0x73   : > { %476 = vmatprep.subr.bf16.mxu0 %v4096_v5  ;;  %3987 = vmatprep.subr.bf16.mxu1 %v4119_v14  ;;  %v4125_v20 = vld [vmem:[#allocation7 + $0x34] ss:$8 sps:$4 sm:$0xff]   ;;  %v4110_v21 = vld [vmem:[#allocation5 + $0x60] ss:$8 sps:$4 sm:$0xff]   ;;  %v4123_v22 = vld [vmem:[#allocation7 + $0x30] ss:$8 sps:$4 sm:$0xff]  }
  0x74   : > { %v4111_v23 = vld [vmem:[#allocation5 + $0x74] ss:$8 sps:$4 sm:$0xff]   ;;  %v4128_v24 = vld [vmem:[#allocation7 + $0x44] ss:$8 sps:$4 sm:$0xff]   ;;  %v4113_v25 = vld [vmem:[#allocation5 + $0x70] ss:$8 sps:$4 sm:$0xff]  }
  0x75   : > { %v248_v26 = vld [vmem:[%s4923_s28] sm:$0xff]  ;;  %v249_v27 = vld [vmem:[%s4923_s28 + $0x8] sm:$0xff]  ;;  %v4131_v29 = vld [vmem:[#allocation7 + $0x54] ss:$8 sps:$4 sm:$0xff]   ;;  %s3928_s11 = sshll.u32 %s4919_s8, 10  ;;  %s3985_s30 = sshll.u32 %s4759_s19, 14 }
  0x76   : > { %477 = vmatpush1.bf16.msra.mxu0 %v4098_v6  ;;  %4003 = vmatpush1.bf16.msra.mxu1 %v4117_v13  ;;  %v4126_v28 = vld [vmem:[#allocation7 + $0x40] ss:$8 sps:$4 sm:$0xff]   ;;  %v312_v30 = vpack.c.bf16 %v249_v27, %v248_v26  ;;  %v4129_v31 = vld [vmem:[#allocation7 + $0x50] ss:$8 sps:$4 sm:$0xff]   ;;  %v4134_v32 = vld [vmem:[#allocation7 + $0x64] ss:$8 sps:$4 sm:$0xff]   ;;  %s7652_s27 = scalar_lea.hbm %s7708_s4, %s3985_s30 }
  0x77   : > { %478 = vmatprep.subr.bf16.mxu0 %v4099_v7  ;;  %3988 = vmatprep.subr.bf16.mxu1 %v4122_v16  ;;  %v251_v34 = vld [vmem:[%s4923_s28 + $0x18] sm:$0xff]  ;;  %v4132_v35 = vld [vmem:[#allocation7 + $0x60] ss:$8 sps:$4 sm:$0xff]   ;;  %v4140_v39 = vld [vmem:[#allocation7 + $0x84] ss:$8 sps:$4 sm:$0xff]   ;;  %s6219_s12 = scalar_lea.vmem [#allocation8], %s3928_s11 }
  0x78   : > { %v4137_v36 = vld [vmem:[#allocation7 + $0x74] ss:$8 sps:$4 sm:$0xff]   ;;  %v313_v37 = vpack.c.bf16 %v251_v34, %v250_v33  ;;  %v4135_v38 = vld [vmem:[#allocation7 + $0x70] ss:$8 sps:$4 sm:$0xff]   ;;  %v252_v40 = vld [vmem:[%s4923_s28 + $0x20] sm:$0xff]  ;;  %s3824_s6 = sshll.u32 %s6219_s12, 4  ;;  %s7654_s6 = int_to_ptr.vmem [resolvable:$true] %s3824_s6 }
  0x79   : > { %v253_v41 = vld [vmem:[%s4923_s28 + $0x28] sm:$0xff]  ;;  %v4141_v44 = vld [vmem:[#allocation7 + $0x90] ss:$8 sps:$4 sm:$0xff]   ;;  %v4143_v45 = vld [vmem:[#allocation7 + $0x94] ss:$8 sps:$4 sm:$0xff]   ;;  %s3810_s19 = scalar_lea.sflag [#allocation4], %s4919_s8 }
  0x7a   : > { %479 = vmatpush1.bf16.msra.mxu0 %v4101_v8  ;;  %4004 = vmatpush1.bf16.msra.mxu1 %v4120_v18  ;;  %v4138_v42 = vld [vmem:[#allocation7 + $0x80] ss:$8 sps:$4 sm:$0xff]   ;;  %v314_v43 = vpack.c.bf16 %v253_v41, %v252_v40  ;;  %v254_v46 = vld [vmem:[%s4923_s28 + $0x30] sm:$0xff]  ;;  %v255_v47 = vld [vmem:[%s4923_s28 + $0x38] sm:$0xff]  ;;  %s4632_s20 = scalar_lea.vmem %s7654_s6, 16384  ;;  %p8296_p0 = scmp.ne.s32.totalorder %s7906_s13, 0 }
  0x7b   : > { %480 = vmatprep.subr.bf16.mxu0 %v4102_v9  ;;  %3989 = vmatprep.subr.bf16.mxu1 %v4125_v20  ;;  %v315_v48 = vpack.c.bf16 %v255_v47, %v254_v46  ;;  %v256_v49 = vld [vmem:[%s4923_s28 + $0x40] sm:$0xff]  ;;  %v257_v50 = vld [vmem:[%s4923_s28 + $0x48] sm:$0xff]  ;;  %v258_v54 = vld [vmem:[%s4923_s28 + $0x50] sm:$0xff]  ;;  %p4633_p11 = scmp.ne.s32.totalorder %s7654_s6, %s4632_s20  ;;  %s4710_s29 = smov [#allocation8]  }
  0x7c   : > { %v316_v51 = vpack.c.bf16 %v257_v50, %v256_v49  ;;  %v4144_v52 = vld [vmem:[#allocation7 + $0xa0] ss:$8 sps:$4 sm:$0xff]   ;;  %v4146_v53 = vld [vmem:[#allocation7 + $0xa4] ss:$8 sps:$4 sm:$0xff]   ;;  %v259_v55 = vld [vmem:[%s4923_s28 + $0x58] sm:$0xff]  ;;  %s4636_s5 = sshll.u32 %s4710_s29, 4  ;;  %s4637_s5 = int_to_ptr.vmem [resolvable:$false] %s4636_s5 }
  0x7d   : > { %v317_v56 = vpack.c.bf16 %v259_v55, %v258_v54  ;;  %v260_v57 = vld [vmem:[%s4923_s28 + $0x60] sm:$0xff]  ;;  %v261_v58 = vld [vmem:[%s4923_s28 + $0x68] sm:$0xff]  ;;  %v4147_v60 = vld [vmem:[#allocation7 + $0xb0] ss:$8 sps:$4 sm:$0xff]   ;;  %p4634_p2 = pnand %p4633_p11, %p8296_p0  ;;  %s4638_s9 = scalar_lea.vmem %s4637_s5, 32768 }
  0x7e   : > { %481 = vmatpush1.bf16.msra.mxu0 %v4104_v12  ;;  %4005 = vmatpush1.bf16.msra.mxu1 %v4123_v22  ;;  %v318_v59 = vpack.c.bf16 %v261_v58, %v260_v57  ;;  %v4149_v61 = vld [vmem:[#allocation7 + $0xb4] ss:$8 sps:$4 sm:$0xff]   ;;  %v264_v2 = vld [vmem:[%s4923_s28 + $0x80] sm:$0xff]  ;;  %v265_v3 = vld [vmem:[%s4923_s28 + $0x88] sm:$0xff]  ;;  %p4639_p7 = scmp.lt.s32.totalorder %s7654_s6, %s4637_s5  ;;  %p4640_p9 = scmp.lt.s32.totalorder %s4638_s9, %s4632_s20 }
  0x7f   : > { %482 = vmatprep.subr.bf16.mxu0 %v4105_v15  ;;  %3990 = vmatprep.subr.bf16.mxu1 %v4128_v24  ;;  %v262_v62 = vld [vmem:[%s4923_s28 + $0x70] sm:$0xff]  ;;  %v263_v63 = vld [vmem:[%s4923_s28 + $0x78] sm:$0xff]  ;;  %v320_v4 = vpack.c.bf16 %v265_v3, %v264_v2  ;;  %v4150_v5 = vld [vmem:[#allocation7 + $0xc0] ss:$8 sps:$4 sm:$0xff]   ;;  %p4635_p3 = pneg %p4634_p2 }
  0x80   : > { %v319_v1 = vpack.c.bf16 %v263_v63, %v262_v62  ;;  %v4152_v6 = vld [vmem:[#allocation7 + $0xc4] ss:$8 sps:$4 sm:$0xff]   ;;  %v266_v7 = vld [vmem:[%s4923_s28 + $0x90] sm:$0xff]  ;;  %v267_v8 = vld [vmem:[%s4923_s28 + $0x98] sm:$0xff]  ;;  %p4641_p12 = por %p4640_p9, %p4639_p7 }
  0x81   : > { %v321_v9 = vpack.c.bf16 %v267_v8, %v266_v7  ;;  %v270_v15 = vld [vmem:[%s4923_s28 + $0xb0] sm:$0xff]  ;;  %v4158_v27 = vld [vmem:[#allocation7 + $0xe4] ss:$8 sps:$4 sm:$0xff]   ;;  %v291_v50 = vld [vmem:[%s4923_s28 + $0x158] sm:$0xff] }
  0x82   : > { %483 = vmatpush1.bf16.msra.mxu0 %v4107_v17  ;;  %4006 = vmatpush1.bf16.msra.mxu1 %v4126_v28  ;;  %v4159_v33 = vld [vmem:[#allocation7 + $0xf0] ss:$8 sps:$4 sm:$0xff]   ;;  %v280_v34 = vld [vmem:[%s4923_s28 + $0x100] sm:$0xff]  ;;  %v285_v41 = vld [vmem:[%s4923_s28 + $0x128] sm:$0xff]  ;;  %p4642_p1 = pnand %p4641_p12, %p4635_p3 }
  0x83   : > { %484 = vmatprep.subr.bf16.mxu0 %v4108_v19  ;;  %3991 = vmatprep.subr.bf16.mxu1 %v4131_v29  ;;  %v273_v19 = vld [vmem:[%s4923_s28 + $0xc8] sm:$0xff]  ;;  %v284_v40 = vld [vmem:[%s4923_s28 + $0x120] sm:$0xff]  ;;  %v290_v49 = vld [vmem:[%s4923_s28 + $0x150] sm:$0xff] }
  0x84   : > { %v288_v46 = vld [vmem:[%s4923_s28 + $0x140] sm:$0xff]  ;;  %v289_v47 = vld [vmem:[%s4923_s28 + $0x148] sm:$0xff]  ;;  %v294_v55 = vld [vmem:[%s4923_s28 + $0x170] sm:$0xff] }
  0x85   : > { %v296_v58 = vld [vmem:[%s4923_s28 + $0x180] sm:$0xff]  ;;  %v299_v62 = vld [vmem:[%s4923_s28 + $0x198] sm:$0xff]  ;;  %v301_v2 = vld [vmem:[%s4923_s28 + $0x1a8] sm:$0xff] }
  0x86   : > { %485 = vmatpush1.bf16.msra.mxu0 %v4110_v21  ;;  %4007 = vmatpush1.bf16.msra.mxu1 %v4129_v31  ;;  %v274_v21 = vld [vmem:[%s4923_s28 + $0xd0] sm:$0xff] }
  0x87   : > { %486 = vmatprep.subr.bf16.mxu0 %v4111_v23  ;;  %3992 = vmatprep.subr.bf16.mxu1 %v4134_v32 }
  0x8a   : > { %487 = vmatpush1.bf16.msra.mxu0 %v4113_v25  ;;  %4008 = vmatpush1.bf16.msra.mxu1 %v4132_v35  ;;  %v277_v25 = vld [vmem:[%s4923_s28 + $0xe8] sm:$0xff] }
  0x8b   : > { %1689 = vmatprep.subr.bf16.mxu0 %v4116_v11  ;;  %3993 = vmatprep.subr.bf16.mxu1 %v4137_v36  ;;  %v269_v11 = vld [vmem:[%s4923_s28 + $0xa8] sm:$0xff] }
  0x8d   : > { %505 = vmatmul.mubr.bf16.vlgmr.msra.gmra.mrb[0].mxu0 %v312_v30  ;;  %v279_v30 = vld [vmem:[%s4923_s28 + $0xf8] sm:$0xff] }
  0x8e   : > { %1690 = vmatpush1.bf16.msra.mxu0 %v4114_v10  ;;  %514 = vmatprep.mubr.bf16.mxu0 %v4709_v0  ;;  %v268_v10 = vld [vmem:[%s4923_s28 + $0xa0] sm:$0xff] }
  0x8f   : > { %1691 = vmatprep.subr.bf16.mxu0 %v4119_v14  ;;  %4009 = vmatpush1.bf16.msra.mxu1 %v4135_v38  ;;  %v322_v12 = vpack.c.bf16 %v269_v11, %v268_v10  ;;  %v4155_v14 = vld [vmem:[#allocation7 + $0xd4] ss:$8 sps:$4 sm:$0xff]  }
  0x90   : > { %3994 = vmatprep.subr.bf16.mxu1 %v4140_v39 }
  0x92   : > { %1692 = vmatpush1.bf16.msra.mxu0 %v4117_v13  ;;  %v4153_v13 = vld [vmem:[#allocation7 + $0xd0] ss:$8 sps:$4 sm:$0xff]  }
  0x93   : > { %1693 = vmatprep.subr.bf16.mxu0 %v4122_v16  ;;  %4010 = vmatpush1.bf16.msra.mxu1 %v4138_v42  ;;  %v271_v16 = vld [vmem:[%s4923_s28 + $0xb8] sm:$0xff] }
  0x94   : > { %3995 = vmatprep.subr.bf16.mxu1 %v4143_v45  ;;  %v323_v17 = vpack.c.bf16 %v271_v16, %v270_v15  ;;  %v304_v15 = vld [vmem:[%s4923_s28 + $0x1c0] sm:$0xff]  ;;  %v305_v16 = vld [vmem:[%s4923_s28 + $0x1c8] sm:$0xff] }
  0x95   : > { %515 = vmatmul.mubr.bf16.gmra.mrb[4].mxu0 %v313_v37  ;;  %v282_v37 = vld [vmem:[%s4923_s28 + $0x110] sm:$0xff] }
  0x96   : > { %524 = vmatprep.mubr.bf16.mxu0 %v4709_v0  ;;  %1694 = vmatpush1.bf16.msra.mxu0 %v4120_v18  ;;  %v272_v18 = vld [vmem:[%s4923_s28 + $0xc0] sm:$0xff] }
  0x97   : > { %1695 = vmatprep.subr.bf16.mxu0 %v4125_v20  ;;  %4011 = vmatpush1.bf16.msra.mxu1 %v4141_v44  ;;  %v324_v20 = vpack.c.bf16 %v273_v19, %v272_v18 }
  0x98   : > { %3996 = vmatprep.subr.bf16.mxu1 %v4146_v53 }
  0x9a   : > { %1696 = vmatpush1.bf16.msra.mxu0 %v4123_v22  ;;  %v275_v22 = vld [vmem:[%s4923_s28 + $0xd8] sm:$0xff] }
  0x9b   : > { %1697 = vmatprep.subr.bf16.mxu0 %v4128_v24  ;;  %4012 = vmatpush1.bf16.msra.mxu1 %v4144_v52  ;;  %v325_v23 = vpack.c.bf16 %v275_v22, %v274_v21  ;;  %v276_v24 = vld [vmem:[%s4923_s28 + $0xe0] sm:$0xff] }
  0x9c   : > { %3997 = vmatprep.subr.bf16.mxu1 %v4149_v61  ;;  %v326_v26 = vpack.c.bf16 %v277_v25, %v276_v24 }
  0x9d   : > { %525 = vmatmul.mubr.bf16.gmra.mrb[8].mxu0 %v314_v43  ;;  %v286_v43 = vld [vmem:[%s4923_s28 + $0x130] sm:$0xff] }
  0x9e   : > { %534 = vmatprep.mubr.bf16.mxu0 %v4709_v0  ;;  %1698 = vmatpush1.bf16.msra.mxu0 %v4126_v28  ;;  %v4156_v28 = vld [vmem:[#allocation7 + $0xe0] ss:$8 sps:$4 sm:$0xff]  }
  0x9f   : > { %1699 = vmatprep.subr.bf16.mxu0 %v4131_v29  ;;  %4013 = vmatpush1.bf16.msra.mxu1 %v4147_v60  ;;  %v278_v29 = vld [vmem:[%s4923_s28 + $0xf0] sm:$0xff] }
  0xa0   : > { %3998 = vmatprep.subr.bf16.mxu1 %v4152_v6 }
  0xa2   : > { %1700 = vmatpush1.bf16.msra.mxu0 %v4129_v31  ;;  %v327_v31 = vpack.c.bf16 %v279_v30, %v278_v29 }
  0xa3   : > { %1701 = vmatprep.subr.bf16.mxu0 %v4134_v32  ;;  %4014 = vmatpush1.bf16.msra.mxu1 %v4150_v5  ;;  %v4161_v32 = vld [vmem:[#allocation7 + $0xf4] ss:$8 sps:$4 sm:$0xff]  }
  0xa4   : > { %3999 = vmatprep.subr.bf16.mxu1 %v4155_v14 }
  0xa5   : > { %535 = vmatmul.mubr.bf16.gmra.mrb[12].mxu0 %v315_v48  ;;  %v332_v48 = vpack.c.bf16 %v289_v47, %v288_v46 }
  0xa6   : > { %544 = vmatprep.mubr.bf16.mxu0 %v4709_v0  ;;  %1702 = vmatpush1.bf16.msra.mxu0 %v4132_v35  ;;  %v281_v35 = vld [vmem:[%s4923_s28 + $0x108] sm:$0xff] }
  0xa7   : > { %1703 = vmatprep.subr.bf16.mxu0 %v4137_v36  ;;  %4015 = vmatpush1.bf16.msra.mxu1 %v4153_v13  ;;  %v328_v36 = vpack.c.bf16 %v281_v35, %v280_v34 }
  0xa8   : > { %4000 = vmatprep.subr.bf16.mxu1 %v4158_v27 }
  0xaa   : > { %1704 = vmatpush1.bf16.msra.mxu0 %v4135_v38  ;;  %v283_v38 = vld [vmem:[%s4923_s28 + $0x118] sm:$0xff] }
  0xab   : > { %1705 = vmatprep.subr.bf16.mxu0 %v4140_v39  ;;  %4016 = vmatpush1.bf16.msra.mxu1 %v4156_v28  ;;  %v329_v39 = vpack.c.bf16 %v283_v38, %v282_v37 }
  0xac   : > { %4001 = vmatprep.subr.bf16.mxu1 %v4161_v32 }
  0xad   : > { %545 = vmatmul.mubr.bf16.gmra.mrb[16].mxu0 %v316_v51  ;;  %v333_v51 = vpack.c.bf16 %v291_v50, %v290_v49 }
  0xae   : > { %554 = vmatprep.mubr.bf16.mxu0 %v4709_v0  ;;  %1706 = vmatpush1.bf16.msra.mxu0 %v4138_v42  ;;  %v330_v42 = vpack.c.bf16 %v285_v41, %v284_v40 }
  0xaf   : > { %1707 = vmatprep.subr.bf16.mxu0 %v4143_v45  ;;  %4017 = vmatpush1.bf16.msra.mxu1 %v4159_v33 }
  0xb2   : > { %1708 = vmatpush1.bf16.msra.mxu0 %v4141_v44  ;;  %v287_v44 = vld [vmem:[%s4923_s28 + $0x138] sm:$0xff] }
  0xb3   : > { %1709 = vmatprep.subr.bf16.mxu0 %v4146_v53  ;;  %v331_v45 = vpack.c.bf16 %v287_v44, %v286_v43  ;;  %v293_v53 = vld [vmem:[%s4923_s28 + $0x168] sm:$0xff] }
  0xb5   : > { %555 = vmatmul.mubr.bf16.gmra.mrb[20].mxu0 %v317_v56  ;;  %v295_v56 = vld [vmem:[%s4923_s28 + $0x178] sm:$0xff] }
  0xb6   : > { %564 = vmatprep.mubr.bf16.mxu0 %v4709_v0  ;;  %1710 = vmatpush1.bf16.msra.mxu0 %v4144_v52  ;;  %v292_v52 = vld [vmem:[%s4923_s28 + $0x160] sm:$0xff]  ;;  %v335_v57 = vpack.c.bf16 %v295_v56, %v294_v55  ;;  %v309_v56 = vld [vmem:[%s4923_s28 + $0x1e8] sm:$0xff] }
  0xb7   : > { %1711 = vmatprep.subr.bf16.mxu0 %v4149_v61  ;;  %v334_v54 = vpack.c.bf16 %v293_v53, %v292_v52  ;;  %v298_v61 = vld [vmem:[%s4923_s28 + $0x190] sm:$0xff]  ;;  %v308_v55 = vld [vmem:[%s4923_s28 + $0x1e0] sm:$0xff] }
  0xb8   : > { %v337_v63 = vpack.c.bf16 %v299_v62, %v298_v61 }
  0xba   : > { %1712 = vmatpush1.bf16.msra.mxu0 %v4147_v60 }
  0xbb   : > { %1713 = vmatprep.subr.bf16.mxu0 %v4152_v6 }
  0xbd   : > { %565 = vmatmul.mubr.bf16.gmra.mrb[24].mxu0 %v318_v59  ;;  %v297_v59 = vld [vmem:[%s4923_s28 + $0x188] sm:$0xff] }
  0xbe   : > { %574 = vmatprep.mubr.bf16.mxu0 %v4709_v0  ;;  %1714 = vmatpush1.bf16.msra.mxu0 %v4150_v5  ;;  %v336_v60 = vpack.c.bf16 %v297_v59, %v296_v58  ;;  %v303_v5 = vld [vmem:[%s4923_s28 + $0x1b8] sm:$0xff] }
  0xbf   : > { %1715 = vmatprep.subr.bf16.mxu0 %v4155_v14 }
  0xc2   : > { %1716 = vmatpush1.bf16.msra.mxu0 %v4153_v13 }
  0xc3   : > { %1717 = vmatprep.subr.bf16.mxu0 %v4158_v27  ;;  %v306_v27 = vld [vmem:[%s4923_s28 + $0x1d0] sm:$0xff] }
  0xc5   : > { %575 = vmatmul.mubr.bf16.gmra.mrb[28].mxu0 %v319_v1  ;;  %v300_v1 = vld [vmem:[%s4923_s28 + $0x1a0] sm:$0xff] }
  0xc6   : > { %584 = vmatprep.mubr.bf16.mxu0 %v4709_v0  ;;  %1718 = vmatpush1.bf16.msra.mxu0 %v4156_v28  ;;  %v338_v3 = vpack.c.bf16 %v301_v2, %v300_v1  ;;  %v307_v28 = vld [vmem:[%s4923_s28 + $0x1d8] sm:$0xff] }
  0xc7   : > { %1719 = vmatprep.subr.bf16.mxu0 %v4161_v32  ;;  %v341_v38 = vpack.c.bf16 %v307_v28, %v306_v27 }
  0xca   : > { %1720 = vmatpush1.bf16.msra.mxu0 %v4159_v33 }
  0xcd   : > { %585 = vmatmul.mubr.bf16.gmra.mrb[32].mxu0 %v320_v4  ;;  %v302_v4 = vld [vmem:[%s4923_s28 + $0x1b0] sm:$0xff] }
  0xce   : > { %594 = vmatprep.mubr.bf16.mxu0 %v4709_v0 }
  0xd5   : > { %595 = vmatmul.mubr.bf16.gmra.mrb[36].mxu0 %v321_v9  ;;  %v339_v9 = vpack.c.bf16 %v303_v5, %v302_v4  ;;  %v342_v4 = vpack.c.bf16 %v309_v56, %v308_v55 }
  0xd6   : > { %604 = vmatprep.mubr.bf16.mxu0 %v4709_v0 }
  0xdd   : > { %605 = vmatmul.mubr.bf16.gmra.mrb[40].mxu0 %v322_v12 }
  0xde   : > { %614 = vmatprep.mubr.bf16.mxu0 %v4709_v0 }
  0xe5   : > { %615 = vmatmul.mubr.bf16.gmra.mrb[44].mxu0 %v323_v17 }
  0xe6   : > { %624 = vmatprep.mubr.bf16.mxu0 %v4709_v0 }
  0xed   : > { %625 = vmatmul.mubr.bf16.gmra.mrb[48].mxu0 %v324_v20  ;;  %v340_v20 = vpack.c.bf16 %v305_v16, %v304_v15 }
  0xee   : > { %634 = vmatprep.mubr.bf16.mxu0 %v4709_v0 }
  0xf5   : > { %635 = vmatmul.mubr.bf16.gmra.mrb[52].mxu0 %v325_v23 }
  0xf6   : > { %644 = vmatprep.mubr.bf16.mxu0 %v4709_v0 }
  0xfd   : > { %645 = vmatmul.mubr.bf16.gmra.mrb[56].mxu0 %v326_v26 }
  0xfe   : > { %654 = vmatprep.mubr.bf16.mxu0 %v4709_v0 }
 0x105   : > { %655 = vmatmul.mubr.bf16.gmra.mrb[60].mxu0 %v327_v31 }
 0x106   : > { %664 = vmatprep.mubr.bf16.mxu0 %v4709_v0 }
 0x10d   : > { %665 = vmatmul.mubr.bf16.gmra.mrb[64].mxu0 %v328_v36 }
 0x10e   : > { %674 = vmatprep.mubr.bf16.mxu0 %v4709_v0 }
 0x115   : > { %675 = vmatmul.mubr.bf16.gmra.mrb[68].mxu0 %v329_v39 }
 0x116   : > { %684 = vmatprep.mubr.bf16.mxu0 %v4709_v0 }
 0x11d   : > { %685 = vmatmul.mubr.bf16.gmra.mrb[72].mxu0 %v330_v42 }
 0x11e   : > { %694 = vmatprep.mubr.bf16.mxu0 %v4709_v0 }
 0x125   : > { %695 = vmatmul.mubr.bf16.gmra.mrb[76].mxu0 %v331_v45 }
 0x126   : > { %704 = vmatprep.mubr.bf16.mxu0 %v4709_v0 }
 0x12d   : > { %705 = vmatmul.mubr.bf16.gmra.mrb[80].mxu0 %v332_v48 }
 0x12e   : > { %714 = vmatprep.mubr.bf16.mxu0 %v4709_v0 }
 0x135   : > { %715 = vmatmul.mubr.bf16.gmra.mrb[84].mxu0 %v333_v51 }
 0x136   : > { %724 = vmatprep.mubr.bf16.mxu0 %v4709_v0 }
 0x13d   : > { %725 = vmatmul.mubr.bf16.gmra.mrb[88].mxu0 %v334_v54 }
 0x13e   : > { %734 = vmatprep.mubr.bf16.mxu0 %v4709_v0 }
 0x145   : > { %735 = vmatmul.mubr.bf16.gmra.mrb[92].mxu0 %v335_v57 }
 0x146   : > { %744 = vmatprep.mubr.bf16.mxu0 %v4709_v0 }
 0x14d   : > { %745 = vmatmul.mubr.bf16.gmra.mrb[96].mxu0 %v336_v60 }
 0x14e   : > { %754 = vmatprep.mubr.bf16.mxu0 %v4709_v0 }
 0x155   : > { %755 = vmatmul.mubr.bf16.gmra.mrb[100].mxu0 %v337_v63 }
 0x156   : > { %764 = vmatprep.mubr.bf16.mxu0 %v4709_v0 }
 0x15d   : > { %765 = vmatmul.mubr.bf16.gmra.mrb[104].mxu0 %v338_v3 }
 0x15e   : > { %774 = vmatprep.mubr.bf16.mxu0 %v4709_v0 }
 0x160   : > { %v5017_v6 = vpop.f32.mrb[0].mxu0 }
 0x161   : > { %v953_v7 = vmul.f32 0.70710677, %v5017_v6  ;;  %v5020_v8 = vpop.f32.mrb[1].mxu0  ;;  %v825_v34 = vmul.f32 0.5, %v5017_v6 }
 0x162   : > { %v954_v10 = vmul.f32 0.70710677, %v5020_v8  ;;  %v5023_v11 = vpop.f32.mrb[2].mxu0  ;;  %v826_v39 = vmul.f32 0.5, %v5020_v8 }
 0x163   : > { %4162 = verf.f32 %v953_v7  ;;  %v955_v12 = vmul.f32 0.70710677, %v5023_v11  ;;  %v5026_v13 = vpop.f32.mrb[3].mxu0  ;;  %v827_v35 = vmul.f32 0.5, %v5023_v11 }
 0x164   : > { %4164 = verf.f32 %v954_v10  ;;  %v956_v14 = vmul.f32 0.70710677, %v5026_v13  ;;  %v828_v40 = vmul.f32 0.5, %v5026_v13 }
 0x165   : > { %4166 = verf.f32 %v955_v12  ;;  %775 = vmatmul.mubr.bf16.gmra.mrb[108].mxu0 %v339_v9 }
 0x166   : > { %4168 = verf.f32 %v956_v14  ;;  %784 = vmatprep.mubr.bf16.mxu0 %v4709_v0 }
 0x168   : > { %v5032_v17 = vpop.f32.mrb[4].mxu0 }
 0x169   : > { %v957_v18 = vmul.f32 0.70710677, %v5032_v17  ;;  %v5035_v19 = vpop.f32.mrb[5].mxu0  ;;  %v829_v63 = vmul.f32 0.5, %v5032_v17 }
 0x16a   : > { %v958_v21 = vmul.f32 0.70710677, %v5035_v19  ;;  %v5038_v22 = vpop.f32.mrb[6].mxu0  ;;  %v830_v5 = vmul.f32 0.5, %v5035_v19 }
 0x16b   : > { %4170 = verf.f32 %v957_v18  ;;  %v959_v23 = vmul.f32 0.70710677, %v5038_v22  ;;  %v5041_v24 = vpop.f32.mrb[7].mxu0  ;;  %v831_v1 = vmul.f32 0.5, %v5038_v22 }
 0x16c   : > { %4172 = verf.f32 %v958_v21  ;;  %v960_v25 = vmul.f32 0.70710677, %v5041_v24  ;;  %v832_v7 = vmul.f32 0.5, %v5041_v24 }
 0x16d   : > { %v4163_v26 = vpop.eup %4162  ;;  %4174 = verf.f32 %v959_v23  ;;  %785 = vmatmul.mubr.bf16.gmra.mrb[112].mxu0 %v340_v20 }
 0x16e   : > { %v4165_v29 = vpop.eup %4164  ;;  %v1209_v30 = vadd.f32 1.0, %v4163_v26  ;;  %4176 = verf.f32 %v960_v25  ;;  %794 = vmatprep.mubr.bf16.mxu0 %v4709_v0 }
 0x16f   : > { %v4167_v31 = vpop.eup %4166  ;;  %v1210_v32 = vadd.f32 1.0, %v4165_v29  ;;  %v310_v29 = vld [vmem:[%s4923_s28 + $0x1f0] sm:$0xff] }
 0x170   : > { %v4169_v33 = vpop.eup %4168  ;;  %v1211_v36 = vadd.f32 1.0, %v4167_v31  ;;  %v5049_v37 = vpop.f32.mrb[8].mxu0  ;;  %v5056_v44 = vmul.f32 %v1209_v30, %v825_v34  ;;  %v311_v30 = vld [vmem:[%s4923_s28 + $0x1f8] sm:$0xff] }
 0x171   : > { %v1212_v41 = vadd.f32 1.0, %v4169_v33  ;;  %v961_v42 = vmul.f32 0.70710677, %v5049_v37  ;;  %v5054_v43 = vpop.f32.mrb[9].mxu0  ;;  %v5063_v48 = vmul.f32 %v1210_v32, %v826_v39 }
 0x172   : > { %v5058_v45 = vmul.f32 %v1211_v36, %v827_v35  ;;  %v962_v46 = vmul.f32 0.70710677, %v5054_v43  ;;  %v5061_v47 = vpop.f32.mrb[10].mxu0 }
 0x173   : > { %v5065_v49 = vmul.f32 %v1212_v41, %v828_v40  ;;  %4178 = verf.f32 %v961_v42  ;;  %v963_v50 = vmul.f32 0.70710677, %v5061_v47  ;;  %v5068_v51 = vpop.f32.mrb[11].mxu0  ;;  %v835_v39 = vmul.f32 0.5, %v5061_v47 }
 0x174   : > { %v1465_v52 = vpack.c.bf16 %v5058_v45, %v5056_v44  ;;  %4180 = verf.f32 %v962_v46  ;;  %v964_v53 = vmul.f32 0.70710677, %v5068_v51  ;;  %v343_v42 = vpack.c.bf16 %v311_v30, %v310_v29 }
 0x175   : > { %v4171_v54 = vpop.eup %4170  ;;  %4182 = verf.f32 %v963_v50  ;;  %795 = vmatmul.mubr.bf16.gmra.mrb[116].mxu0 %v341_v38  ;;  %v1466_v57 = vpack.c.bf16 %v5065_v49, %v5063_v48  ;;  %v833_v38 = vmul.f32 0.5, %v5049_v37  ;;  %v834_v46 = vmul.f32 0.5, %v5054_v43 }
 0x176   : > { %v4173_v58 = vpop.eup %4172  ;;  %v1213_v59 = vadd.f32 1.0, %v4171_v54  ;;  %4184 = verf.f32 %v964_v53  ;;  %804 = vmatprep.mubr.bf16.mxu0 %v4709_v0  ;;  %v836_v50 = vmul.f32 0.5, %v5068_v51 }
 0x177   : > { %v4175_v60 = vpop.eup %4174  ;;  %v1214_v61 = vadd.f32 1.0, %v4173_v58 }
 0x178   : > { %v4177_v62 = vpop.eup %4176  ;;  %v1215_v2 = vadd.f32 1.0, %v4175_v60  ;;  %v5080_v3 = vpop.f32.mrb[12].mxu0  ;;  %v5087_v14 = vmul.f32 %v1213_v59, %v829_v63 }
 0x179   : > { %v1216_v9 = vadd.f32 1.0, %v4177_v62  ;;  %v965_v10 = vmul.f32 0.70710677, %v5080_v3  ;;  %v5085_v12 = vpop.f32.mrb[13].mxu0  ;;  %v5094_v20 = vmul.f32 %v1214_v61, %v830_v5 }
 0x17a   : > { %v5089_v15 = vmul.f32 %v1215_v2, %v831_v1  ;;  %v966_v16 = vmul.f32 0.70710677, %v5085_v12  ;;  %v5092_v18 = vpop.f32.mrb[14].mxu0 }
 0x17b   : > { %v5096_v21 = vmul.f32 %v1216_v9, %v832_v7  ;;  %4186 = verf.f32 %v965_v10  ;;  %v967_v23 = vmul.f32 0.70710677, %v5092_v18  ;;  %v5099_v25 = vpop.f32.mrb[15].mxu0 }
 0x17c   : > { %4188 = verf.f32 %v966_v16  ;;  %v968_v26 = vmul.f32 0.70710677, %v5099_v25  ;;  %v1467_v27 = vpack.c.bf16 %v5089_v15, %v5087_v14 }
 0x17d   : > { %v4179_v28 = vpop.eup %4178  ;;  %4190 = verf.f32 %v967_v23  ;;  %805 = vmatmul.mubr.bf16.gmra.mrb[120].mxu0 %v342_v4  ;;  %v1468_v31 = vpack.c.bf16 %v5096_v21, %v5094_v20 }
 0x17e   : > { %v4181_v32 = vpop.eup %4180  ;;  %v1217_v33 = vadd.f32 1.0, %v4179_v28  ;;  %4192 = verf.f32 %v968_v26  ;;  %814 = vmatprep.mubr.bf16.mxu0 %v4709_v0  ;;  %v837_v26 = vmul.f32 0.5, %v5080_v3  ;;  %v839_v28 = vmul.f32 0.5, %v5092_v18 }
 0x17f   : > { %v4183_v34 = vpop.eup %4182  ;;  %v1218_v35 = vadd.f32 1.0, %v4181_v32  ;;  %v838_v32 = vmul.f32 0.5, %v5085_v12 }
 0x180   : > { %v4185_v36 = vpop.eup %4184  ;;  %v1219_v40 = vadd.f32 1.0, %v4183_v34  ;;  %v5111_v41 = vpop.f32.mrb[16].mxu0  ;;  %v1345_v55 = vmul.f32 %v1217_v33, %v833_v38  ;;  %v840_v33 = vmul.f32 0.5, %v5099_v25 }
 0x181   : > { %v969_v53 = vmul.f32 0.70710677, %v5111_v41  ;;  %v5116_v54 = vpop.f32.mrb[17].mxu0  ;;  %v1220_v0 = vadd.f32 1.0, %v4185_v36  ;;  %v1346_v62 = vmul.f32 %v1218_v35, %v834_v46 }
 0x182   : > { %v1347_v56 = vmul.f32 %v1219_v40, %v835_v39  ;;  %v970_v58 = vmul.f32 0.70710677, %v5116_v54  ;;  %v5119_v59 = vpop.f32.mrb[18].mxu0  ;;  %v842_v44 = vmul.f32 0.5, %v5116_v54 }
 0x183   : > { %4194 = verf.f32 %v969_v53  ;;  %v971_v60 = vmul.f32 0.70710677, %v5119_v59  ;;  %v5122_v61 = vpop.f32.mrb[19].mxu0  ;;  %v1348_v63 = vmul.f32 %v1220_v0, %v836_v50 }
 0x184   : > { %4196 = verf.f32 %v970_v58  ;;  %v972_v1 = vmul.f32 0.70710677, %v5122_v61  ;;  %v1469_v2 = vpack.c.bf16 %v1347_v56, %v1345_v55  ;;  %v844_v45 = vmul.f32 0.5, %v5122_v61 }
 0x185   : > { %v4187_v4 = vpop.eup %4186  ;;  %4198 = verf.f32 %v971_v60  ;;  %815 = vmatmul.mubr.bf16.gmra.mrb[124].mxu0 %v343_v42  ;;  %v1470_v5 = vpack.c.bf16 %v1348_v63, %v1346_v62 }
 0x186   : > { %v4189_v7 = vpop.eup %4188  ;;  %v1221_v9 = vadd.f32 1.0, %v4187_v4  ;;  %4200 = verf.f32 %v972_v1  ;;  %1721 = vmatprep.mubr.bf16.mxu0 %v1466_v57  ;;  %v841_v1 = vmul.f32 0.5, %v5111_v41 }
 0x187   : > { %v4191_v10 = vpop.eup %4190  ;;  %v1222_v16 = vadd.f32 1.0, %v4189_v7  ;;  %1741 = vmatprep.mubr.bf16.mxu1 %v1470_v5 }
 0x188   : > { %v4193_v23 = vpop.eup %4192  ;;  %v1223_v29 = vadd.f32 1.0, %v4191_v10  ;;  %v5130_v30 = vpop.f32.mrb[20].mxu0  ;;  %1742 = vmatmul.mubr.bf16.vlgmr.msra.gmra.mrb[0].mxu1 %v1469_v2  ;;  %v1349_v57 = vmul.f32 %v1221_v9, %v837_v26  ;;  %v843_v2 = vmul.f32 0.5, %v5119_v59 }
 0x189   : > { %v1224_v34 = vadd.f32 1.0, %v4193_v23  ;;  %v973_v48 = vmul.f32 0.70710677, %v5130_v30  ;;  %v5135_v49 = vpop.f32.mrb[21].mxu0  ;;  %v1350_v39 = vmul.f32 %v1222_v16, %v838_v32 }
 0x18a   : > { %v1351_v35 = vmul.f32 %v1223_v29, %v839_v28  ;;  %v974_v36 = vmul.f32 0.70710677, %v5135_v49  ;;  %v5138_v38 = vpop.f32.mrb[22].mxu0 }
 0x18b   : > { %v1352_v40 = vmul.f32 %v1224_v34, %v840_v33  ;;  %4202 = verf.f32 %v973_v48  ;;  %v975_v42 = vmul.f32 0.70710677, %v5138_v38  ;;  %v5141_v46 = vpop.f32.mrb[23].mxu0 }
 0x18c   : > { %4204 = verf.f32 %v974_v36  ;;  %v976_v50 = vmul.f32 0.70710677, %v5141_v46  ;;  %v1471_v53 = vpack.c.bf16 %v1351_v35, %v1349_v57  ;;  %v848_v14 = vmul.f32 0.5, %v5141_v46 }
 0x18d   : > { %v4195_v0 = vpop.eup %4194  ;;  %4206 = verf.f32 %v975_v42  ;;  %1722 = vmatmul.mubr.bf16.vlgmr.msra.gmra.mrb[128].mxu0 %v1465_v52  ;;  %v1472_v55 = vpack.c.bf16 %v1352_v40, %v1350_v39  ;;  %v845_v40 = vmul.f32 0.5, %v5130_v30  ;;  %v847_v42 = vmul.f32 0.5, %v5138_v38 }
 0x18e   : > { %v4197_v56 = vpop.eup %4196  ;;  %v1225_v58 = vadd.f32 1.0, %v4195_v0  ;;  %4208 = verf.f32 %v976_v50  ;;  %1731 = vmatprep.mubr.bf16.mxu0 %v1468_v31  ;;  %v846_v0 = vmul.f32 0.5, %v5135_v49 }
 0x18f   : > { %v4199_v60 = vpop.eup %4198  ;;  %v1226_v62 = vadd.f32 1.0, %v4197_v56  ;;  %1751 = vmatprep.mubr.bf16.mxu1 %v1472_v55 }
 0x190   : > { %v4201_v63 = vpop.eup %4200  ;;  %v1227_v4 = vadd.f32 1.0, %v4199_v60  ;;  %v5152_v5 = vpop.f32.mrb[24].mxu0  ;;  %1752 = vmatmul.mubr.bf16.gmra.mrb[4].mxu1 %v1471_v53  ;;  %v1353_v31 = vmul.f32 %v1225_v58, %v841_v1 }
 0x191   : > { %v1228_v52 = vadd.f32 1.0, %v4201_v63  ;;  %v977_v20 = vmul.f32 0.70710677, %v5152_v5  ;;  %v5157_v21 = vpop.f32.mrb[25].mxu0  ;;  %v1354_v16 = vmul.f32 %v1226_v62, %v842_v44 }
 0x192   : > { %v1355_v7 = vmul.f32 %v1227_v4, %v843_v2  ;;  %v978_v9 = vmul.f32 0.70710677, %v5157_v21  ;;  %v5160_v10 = vpop.f32.mrb[26].mxu0 }
 0x193   : > { %v1356_v23 = vmul.f32 %v1228_v52, %v844_v45  ;;  %4210 = verf.f32 %v977_v20  ;;  %v979_v26 = vmul.f32 0.70710677, %v5160_v10  ;;  %v5163_v28 = vpop.f32.mrb[27].mxu0 }
 0x194   : > { %4212 = verf.f32 %v978_v9  ;;  %v980_v29 = vmul.f32 0.70710677, %v5163_v28  ;;  %v1473_v32 = vpack.c.bf16 %v1355_v7, %v1353_v31 }
 0x195   : > { %v4203_v33 = vpop.eup %4202  ;;  %4214 = verf.f32 %v979_v26  ;;  %1732 = vmatmul.mubr.bf16.gmra.mrb[132].mxu0 %v1467_v27  ;;  %v1474_v34 = vpack.c.bf16 %v1356_v23, %v1354_v16  ;;  %v849_v26 = vmul.f32 0.5, %v5152_v5 }
 0x196   : > { %v4205_v48 = vpop.eup %4204  ;;  %v1229_v57 = vadd.f32 1.0, %v4203_v33  ;;  %4216 = verf.f32 %v980_v29  ;;  %v851_v29 = vmul.f32 0.5, %v5160_v10 }
 0x197   : > { %v4207_v35 = vpop.eup %4206  ;;  %v1230_v36 = vadd.f32 1.0, %v4205_v48  ;;  %1761 = vmatprep.mubr.bf16.mxu1 %v1474_v34  ;;  %v850_v34 = vmul.f32 0.5, %v5157_v21  ;;  %v852_v48 = vmul.f32 0.5, %v5163_v28 }
 0x198   : > { %v4209_v39 = vpop.eup %4208  ;;  %v1231_v50 = vadd.f32 1.0, %v4207_v35  ;;  %v5171_v53 = vpop.f32.mrb[28].mxu0  ;;  %1762 = vmatmul.mubr.bf16.gmra.mrb[8].mxu1 %v1473_v32  ;;  %v1357_v56 = vmul.f32 %v1229_v57, %v845_v40 }
 0x199   : > { %v1232_v15 = vadd.f32 1.0, %v4209_v39  ;;  %v981_v27 = vmul.f32 0.70710677, %v5171_v53  ;;  %v5176_v55 = vpop.f32.mrb[29].mxu0  ;;  %v1358_v63 = vmul.f32 %v1230_v36, %v846_v0 }
 0x19a   : > { %v1359_v58 = vmul.f32 %v1231_v50, %v847_v42  ;;  %v982_v60 = vmul.f32 0.70710677, %v5176_v55  ;;  %v5179_v62 = vpop.f32.mrb[30].mxu0 }
 0x19b   : > { %v1360_v1 = vmul.f32 %v1232_v15, %v848_v14  ;;  %4218 = verf.f32 %v981_v27  ;;  %v983_v2 = vmul.f32 0.70710677, %v5179_v62  ;;  %v5182_v4 = vpop.f32.mrb[31].mxu0 }
 0x19c   : > { %4220 = verf.f32 %v982_v60  ;;  %v984_v44 = vmul.f32 0.70710677, %v5182_v4  ;;  %v1475_v45 = vpack.c.bf16 %v1359_v58, %v1357_v56 }
 0x19d   : > { %v4211_v52 = vpop.eup %4210  ;;  %4222 = verf.f32 %v983_v2  ;;  %v1476_v20 = vpack.c.bf16 %v1360_v1, %v1358_v63 }
 0x19e   : > { %v4213_v31 = vpop.eup %4212  ;;  %v1233_v7 = vadd.f32 1.0, %v4211_v52  ;;  %4224 = verf.f32 %v984_v44 }
 0x19f   : > { %v4215_v9 = vpop.eup %4214  ;;  %v1234_v16 = vadd.f32 1.0, %v4213_v31  ;;  %1771 = vmatprep.mubr.bf16.mxu1 %v1476_v20  ;;  %v853_v20 = vmul.f32 0.5, %v5171_v53  ;;  %v855_v31 = vmul.f32 0.5, %v5179_v62 }
 0x1a0   : > { %v4217_v23 = vpop.eup %4216  ;;  %v1235_v32 = vadd.f32 1.0, %v4215_v9  ;;  %v5187_v33 = vpop.f32.mrb[32].mxu0  ;;  %1772 = vmatmul.mubr.bf16.gmra.mrb[12].mxu1 %v1475_v45  ;;  %v1361_v39 = vmul.f32 %v1233_v7, %v849_v26 }
 0x1a1   : > { %v1236_v57 = vadd.f32 1.0, %v4217_v23  ;;  %v985_v35 = vmul.f32 0.70710677, %v5187_v33  ;;  %v5192_v36 = vpop.f32.mrb[33].mxu0  ;;  %v1362_v0 = vmul.f32 %v1234_v16, %v850_v34  ;;  %v854_v16 = vmul.f32 0.5, %v5176_v55 }
 0x1a2   : > { %v1363_v40 = vmul.f32 %v1235_v32, %v851_v29  ;;  %v986_v42 = vmul.f32 0.70710677, %v5192_v36  ;;  %v5195_v50 = vpop.f32.mrb[34].mxu0  ;;  %v856_v23 = vmul.f32 0.5, %v5182_v4 }
 0x1a3   : > { %v1364_v14 = vmul.f32 %v1236_v57, %v852_v48  ;;  %4226 = verf.f32 %v985_v35  ;;  %v987_v15 = vmul.f32 0.70710677, %v5195_v50  ;;  %v5198_v27 = vpop.f32.mrb[35].mxu0 }
 0x1a4   : > { %4228 = verf.f32 %v986_v42  ;;  %v988_v56 = vmul.f32 0.70710677, %v5198_v27  ;;  %v1477_v58 = vpack.c.bf16 %v1363_v40, %v1361_v39 }
 0x1a5   : > { %v4219_v60 = vpop.eup %4218  ;;  %4230 = verf.f32 %v987_v15  ;;  %v1478_v63 = vpack.c.bf16 %v1364_v14, %v1362_v0 }
 0x1a6   : > { %v4221_v1 = vpop.eup %4220  ;;  %v1237_v2 = vadd.f32 1.0, %v4219_v60  ;;  %4232 = verf.f32 %v988_v56 }
 0x1a7   : > { %v4223_v44 = vpop.eup %4222  ;;  %v1238_v45 = vadd.f32 1.0, %v4221_v1  ;;  %1781 = vmatprep.mubr.bf16.mxu1 %v1478_v63 }
 0x1a8   : > { %v4225_v52 = vpop.eup %4224  ;;  %v1239_v7 = vadd.f32 1.0, %v4223_v44  ;;  %v5203_v9 = vpop.f32.mrb[36].mxu0  ;;  %1782 = vmatmul.mubr.bf16.gmra.mrb[16].mxu1 %v1477_v58  ;;  %v1365_v34 = vmul.f32 %v1237_v2, %v853_v20 }
 0x1a9   : > { %v1240_v26 = vadd.f32 1.0, %v4225_v52  ;;  %v989_v29 = vmul.f32 0.70710677, %v5203_v9  ;;  %v5208_v32 = vpop.f32.mrb[37].mxu0  ;;  %v1366_v39 = vmul.f32 %v1238_v45, %v854_v16  ;;  %v857_v45 = vmul.f32 0.5, %v5187_v33 }
 0x1aa   : > { %7911 = vst [vmem:[#allocation12_spill] sm:$0xff] %v5208_v32  ;;  %v1367_v48 = vmul.f32 %v1239_v7, %v855_v31  ;;  %v990_v57 = vmul.f32 0.70710677, %v5208_v32  ;;  %v5211_v35 = vpop.f32.mrb[38].mxu0  ;;  %v859_v52 = vmul.f32 0.5, %v5195_v50  ;;  %v858_v7 = vmul.f32 0.5, %v5192_v36 }
 0x1ab   : > { %7912 = vst [vmem:[#allocation13_spill] sm:$0xff] %v5211_v35  ;;  %v1368_v40 = vmul.f32 %v1240_v26, %v856_v23  ;;  %4234 = verf.f32 %v989_v29  ;;  %v991_v42 = vmul.f32 0.70710677, %v5211_v35  ;;  %v5214_v0 = vpop.f32.mrb[39].mxu0  ;;  %v860_v16 = vmul.f32 0.5, %v5198_v27 }
 0x1ac   : > { %7913 = vst [vmem:[#allocation14_spill] sm:$0xff] %v5214_v0  ;;  %4236 = verf.f32 %v990_v57  ;;  %v992_v14 = vmul.f32 0.70710677, %v5214_v0  ;;  %v1479_v15 = vpack.c.bf16 %v1367_v48, %v1365_v34 }
 0x1ad   : > { %v4227_v56 = vpop.eup %4226  ;;  %4238 = verf.f32 %v991_v42  ;;  %v1480_v58 = vpack.c.bf16 %v1368_v40, %v1366_v39 }
 0x1ae   : > { %v4229_v60 = vpop.eup %4228  ;;  %v1241_v63 = vadd.f32 1.0, %v4227_v56  ;;  %4240 = verf.f32 %v992_v14 }
 0x1af   : > { %v4231_v1 = vpop.eup %4230  ;;  %v1242_v2 = vadd.f32 1.0, %v4229_v60  ;;  %1791 = vmatprep.mubr.bf16.mxu1 %v1480_v58 }
 0x1b0   : > { %v4233_v44 = vpop.eup %4232  ;;  %v1243_v20 = vadd.f32 1.0, %v4231_v1  ;;  %v5219_v31 = vpop.f32.mrb[40].mxu0  ;;  %1792 = vmatmul.mubr.bf16.gmra.mrb[20].mxu1 %v1479_v15  ;;  %v1369_v34 = vmul.f32 %v1241_v63, %v857_v45 }
 0x1b1   : > { %7914 = vst [vmem:[#allocation15_spill] sm:$0xff] %v5219_v31  ;;  %v1244_v23 = vadd.f32 1.0, %v4233_v44  ;;  %v993_v26 = vmul.f32 0.70710677, %v5219_v31  ;;  %v5224_v29 = vpop.f32.mrb[41].mxu0  ;;  %v1370_v40 = vmul.f32 %v1242_v2, %v858_v7  ;;  %v863_v7 = vmul.f32 0.5, %v5211_v35 }
 0x1b2   : > { %7915 = vst [vmem:[#allocation16_spill] sm:$0xff] %v5224_v29  ;;  %v1371_v48 = vmul.f32 %v1243_v20, %v859_v52  ;;  %v994_v57 = vmul.f32 0.70710677, %v5224_v29  ;;  %v5227_v39 = vpop.f32.mrb[42].mxu0  ;;  %v861_v20 = vmul.f32 0.5, %v5203_v9 }
 0x1b3   : > { %7916 = vst [vmem:[#allocation17_spill] sm:$0xff] %v5227_v39  ;;  %v1372_v42 = vmul.f32 %v1244_v23, %v860_v16  ;;  %4242 = verf.f32 %v993_v26  ;;  %v995_v14 = vmul.f32 0.70710677, %v5227_v39  ;;  %v5230_v15 = vpop.f32.mrb[43].mxu0  ;;  %v862_v26 = vmul.f32 0.5, %v5208_v32 }
 0x1b4   : > { %7917 = vst [vmem:[#allocation18_spill] sm:$0xff] %v5230_v15  ;;  %4244 = verf.f32 %v994_v57  ;;  %v996_v56 = vmul.f32 0.70710677, %v5230_v15  ;;  %v1481_v58 = vpack.c.bf16 %v1371_v48, %v1369_v34  ;;  %v864_v34 = vmul.f32 0.5, %v5214_v0 }
 0x1b5   : > { %v4235_v60 = vpop.eup %4234  ;;  %4246 = verf.f32 %v995_v14  ;;  %v1482_v1 = vpack.c.bf16 %v1372_v42, %v1370_v40 }
 0x1b6   : > { %v4237_v63 = vpop.eup %4236  ;;  %v1245_v44 = vadd.f32 1.0, %v4235_v60  ;;  %4248 = verf.f32 %v996_v56 }
 0x1b7   : > { %v4239_v45 = vpop.eup %4238  ;;  %v1246_v52 = vadd.f32 1.0, %v4237_v63  ;;  %1801 = vmatprep.mubr.bf16.mxu1 %v1482_v1 }
 0x1b8   : > { %v4241_v2 = vpop.eup %4240  ;;  %v1247_v16 = vadd.f32 1.0, %v4239_v45  ;;  %v5235_v23 = vpop.f32.mrb[44].mxu0  ;;  %1802 = vmatmul.mubr.bf16.gmra.mrb[24].mxu1 %v1481_v58  ;;  %v1373_v42 = vmul.f32 %v1245_v44, %v861_v20 }
 0x1b9   : > { %7918 = vst [vmem:[#allocation19_spill] sm:$0xff] %v5235_v23  ;;  %v1248_v48 = vadd.f32 1.0, %v4241_v2  ;;  %v997_v57 = vmul.f32 0.70710677, %v5235_v23  ;;  %v5240_v40 = vpop.f32.mrb[45].mxu0  ;;  %v1374_v1 = vmul.f32 %v1246_v52, %v862_v26  ;;  %v865_v26 = vmul.f32 0.5, %v5219_v31 }
 0x1ba   : > { %7919 = vst [vmem:[#allocation20_spill] sm:$0xff] %v5240_v40  ;;  %v1375_v14 = vmul.f32 %v1247_v16, %v863_v7  ;;  %v998_v56 = vmul.f32 0.70710677, %v5240_v40  ;;  %v5243_v60 = vpop.f32.mrb[46].mxu0 }
 0x1bb   : > { %7920 = vst [vmem:[#allocation21_spill] sm:$0xff] %v5243_v60  ;;  %v1376_v63 = vmul.f32 %v1248_v48, %v864_v34  ;;  %4250 = verf.f32 %v997_v57  ;;  %v999_v58 = vmul.f32 0.70710677, %v5243_v60  ;;  %v5246_v45 = vpop.f32.mrb[47].mxu0  ;;  %v867_v34 = vmul.f32 0.5, %v5227_v39 }
 0x1bc   : > { %7921 = vst [vmem:[#allocation22_spill] sm:$0xff] %v5246_v45  ;;  %4252 = verf.f32 %v998_v56  ;;  %v1000_v2 = vmul.f32 0.70710677, %v5246_v45  ;;  %v1483_v0 = vpack.c.bf16 %v1375_v14, %v1373_v42  ;;  %v866_v42 = vmul.f32 0.5, %v5224_v29 }
 0x1bd   : > { %v4243_v35 = vpop.eup %4242  ;;  %4254 = verf.f32 %v999_v58  ;;  %v1484_v32 = vpack.c.bf16 %v1376_v63, %v1374_v1  ;;  %v868_v14 = vmul.f32 0.5, %v5230_v15 }
 0x1be   : > { %v4245_v44 = vpop.eup %4244  ;;  %v1249_v20 = vadd.f32 1.0, %v4243_v35  ;;  %4256 = verf.f32 %v1000_v2 }
 0x1bf   : > { %v4247_v7 = vpop.eup %4246  ;;  %v1250_v16 = vadd.f32 1.0, %v4245_v44  ;;  %1811 = vmatprep.mubr.bf16.mxu1 %v1484_v32 }
 0x1c0   : > { %v4249_v52 = vpop.eup %4248  ;;  %v1251_v48 = vadd.f32 1.0, %v4247_v7  ;;  %v5251_v57 = vpop.f32.mrb[48].mxu0  ;;  %1812 = vmatmul.mubr.bf16.gmra.mrb[28].mxu1 %v1483_v0  ;;  %v1377_v63 = vmul.f32 %v1249_v20, %v865_v26 }
 0x1c1   : > { %7922 = vst [vmem:[#allocation23_spill] sm:$0xff] %v5251_v57  ;;  %v1252_v56 = vadd.f32 1.0, %v4249_v52  ;;  %v1001_v35 = vmul.f32 0.70710677, %v5251_v57  ;;  %v5256_v1 = vpop.f32.mrb[49].mxu0  ;;  %v1378_v44 = vmul.f32 %v1250_v16, %v866_v42  ;;  %v869_v42 = vmul.f32 0.5, %v5235_v23 }
 0x1c2   : > { %7923 = vst [vmem:[#allocation24_spill] sm:$0xff] %v5256_v1  ;;  %v1379_v32 = vmul.f32 %v1251_v48, %v867_v34  ;;  %v1002_v58 = vmul.f32 0.70710677, %v5256_v1  ;;  %v5259_v2 = vpop.f32.mrb[50].mxu0 }
 0x1c3   : > { %7924 = vst [vmem:[#allocation25_spill] sm:$0xff] %v5259_v2  ;;  %v1380_v7 = vmul.f32 %v1252_v56, %v868_v14  ;;  %4258 = verf.f32 %v1001_v35  ;;  %v1003_v0 = vmul.f32 0.70710677, %v5259_v2  ;;  %v5262_v39 = vpop.f32.mrb[51].mxu0  ;;  %v871_v14 = vmul.f32 0.5, %v5243_v60 }
 0x1c4   : > { %7925 = vst [vmem:[#allocation26_spill] sm:$0xff] %v5262_v39  ;;  %4260 = verf.f32 %v1002_v58  ;;  %v1004_v52 = vmul.f32 0.70710677, %v5262_v39  ;;  %v1485_v15 = vpack.c.bf16 %v1379_v32, %v1377_v63  ;;  %v870_v63 = vmul.f32 0.5, %v5240_v40 }
 0x1c5   : > { %v4251_v29 = vpop.eup %4250  ;;  %4262 = verf.f32 %v1003_v0  ;;  %v1486_v31 = vpack.c.bf16 %v1380_v7, %v1378_v44  ;;  %v872_v32 = vmul.f32 0.5, %v5246_v45 }
 0x1c6   : > { %v4253_v20 = vpop.eup %4252  ;;  %v1253_v26 = vadd.f32 1.0, %v4251_v29  ;;  %4264 = verf.f32 %v1004_v52 }
 0x1c7   : > { %v4255_v34 = vpop.eup %4254  ;;  %v1254_v48 = vadd.f32 1.0, %v4253_v20  ;;  %1821 = vmatprep.mubr.bf16.mxu1 %v1486_v31 }
 0x1c8   : > { %v4257_v16 = vpop.eup %4256  ;;  %v1255_v56 = vadd.f32 1.0, %v4255_v34  ;;  %v5267_v35 = vpop.f32.mrb[52].mxu0  ;;  %1822 = vmatmul.mubr.bf16.gmra.mrb[32].mxu1 %v1485_v15  ;;  %v1381_v7 = vmul.f32 %v1253_v26, %v869_v42 }
 0x1c9   : > { %7926 = vst [vmem:[#allocation27_spill] sm:$0xff] %v5267_v35  ;;  %v1256_v58 = vadd.f32 1.0, %v4257_v16  ;;  %v1005_v29 = vmul.f32 0.70710677, %v5267_v35  ;;  %v5272_v44 = vpop.f32.mrb[53].mxu0  ;;  %v1382_v20 = vmul.f32 %v1254_v48, %v870_v63  ;;  %v873_v63 = vmul.f32 0.5, %v5251_v57 }
 0x1ca   : > { %7927 = vst [vmem:[#allocation28_spill] sm:$0xff] %v5272_v44  ;;  %v1383_v31 = vmul.f32 %v1255_v56, %v871_v14  ;;  %v1006_v0 = vmul.f32 0.70710677, %v5272_v44  ;;  %v5275_v52 = vpop.f32.mrb[54].mxu0 }
 0x1cb   : > { %7928 = vst [vmem:[#allocation29_spill] sm:$0xff] %v5275_v52  ;;  %v1384_v34 = vmul.f32 %v1256_v58, %v872_v32  ;;  %4266 = verf.f32 %v1005_v29  ;;  %v1007_v15 = vmul.f32 0.70710677, %v5275_v52  ;;  %v5278_v60 = vpop.f32.mrb[55].mxu0  ;;  %v875_v32 = vmul.f32 0.5, %v5259_v2 }
 0x1cc   : > { %7929 = vst [vmem:[#allocation30_spill] sm:$0xff] %v5278_v60  ;;  %4268 = verf.f32 %v1006_v0  ;;  %v1008_v16 = vmul.f32 0.70710677, %v5278_v60  ;;  %v1487_v45 = vpack.c.bf16 %v1383_v31, %v1381_v7  ;;  %v874_v7 = vmul.f32 0.5, %v5256_v1 }
 0x1cd   : > { %v4259_v40 = vpop.eup %4258  ;;  %4270 = verf.f32 %v1007_v15  ;;  %v1488_v23 = vpack.c.bf16 %v1384_v34, %v1382_v20  ;;  %v876_v31 = vmul.f32 0.5, %v5262_v39 }
 0x1ce   : > { %v4261_v26 = vpop.eup %4260  ;;  %v1257_v42 = vadd.f32 1.0, %v4259_v40  ;;  %4272 = verf.f32 %v1008_v16 }
 0x1cf   : > { %v4263_v14 = vpop.eup %4262  ;;  %v1258_v56 = vadd.f32 1.0, %v4261_v26  ;;  %1831 = vmatprep.mubr.bf16.mxu1 %v1488_v23 }
 0x1d0   : > { %v4265_v48 = vpop.eup %4264  ;;  %v1259_v58 = vadd.f32 1.0, %v4263_v14  ;;  %v5283_v29 = vpop.f32.mrb[56].mxu0  ;;  %1832 = vmatmul.mubr.bf16.gmra.mrb[36].mxu1 %v1487_v45  ;;  %v1385_v34 = vmul.f32 %v1257_v42, %v873_v63 }
 0x1d1   : > { %7930 = vst [vmem:[#allocation31_spill] sm:$0xff] %v5283_v29  ;;  %v1260_v0 = vadd.f32 1.0, %v4265_v48  ;;  %v1009_v40 = vmul.f32 0.70710677, %v5283_v29  ;;  %v5288_v20 = vpop.f32.mrb[57].mxu0  ;;  %v1386_v26 = vmul.f32 %v1258_v56, %v874_v7  ;;  %v877_v7 = vmul.f32 0.5, %v5267_v35 }
 0x1d2   : > { %7931 = vst [vmem:[#allocation32_spill] sm:$0xff] %v5288_v20  ;;  %v1387_v23 = vmul.f32 %v1259_v58, %v875_v32  ;;  %v1010_v15 = vmul.f32 0.70710677, %v5288_v20  ;;  %v5291_v16 = vpop.f32.mrb[58].mxu0 }
 0x1d3   : > { %7932 = vst [vmem:[#allocation33_spill] sm:$0xff] %v5291_v16  ;;  %v1388_v14 = vmul.f32 %v1260_v0, %v876_v31  ;;  %4274 = verf.f32 %v1009_v40  ;;  %v1011_v45 = vmul.f32 0.70710677, %v5291_v16  ;;  %v5294_v2 = vpop.f32.mrb[59].mxu0  ;;  %v879_v31 = vmul.f32 0.5, %v5275_v52 }
 0x1d4   : > { %7933 = vst [vmem:[#allocation34_spill] sm:$0xff] %v5294_v2  ;;  %4276 = verf.f32 %v1010_v15  ;;  %v1012_v48 = vmul.f32 0.70710677, %v5294_v2  ;;  %v1489_v39 = vpack.c.bf16 %v1387_v23, %v1385_v34  ;;  %v878_v34 = vmul.f32 0.5, %v5272_v44 }
 0x1d5   : > { %v4267_v1 = vpop.eup %4266  ;;  %4278 = verf.f32 %v1011_v45  ;;  %v1490_v57 = vpack.c.bf16 %v1388_v14, %v1386_v26  ;;  %v880_v23 = vmul.f32 0.5, %v5278_v60 }
 0x1d6   : > { %v4269_v42 = vpop.eup %4268  ;;  %v1261_v63 = vadd.f32 1.0, %v4267_v1  ;;  %4280 = verf.f32 %v1012_v48 }
 0x1d7   : > { %v4271_v32 = vpop.eup %4270  ;;  %v1262_v58 = vadd.f32 1.0, %v4269_v42  ;;  %1841 = vmatprep.mubr.bf16.mxu1 %v1490_v57 }
 0x1d8   : > { %v4273_v56 = vpop.eup %4272  ;;  %v1263_v0 = vadd.f32 1.0, %v4271_v32  ;;  %v5299_v40 = vpop.f32.mrb[60].mxu0  ;;  %1842 = vmatmul.mubr.bf16.gmra.mrb[40].mxu1 %v1489_v39  ;;  %v1389_v14 = vmul.f32 %v1261_v63, %v877_v7 }
 0x1d9   : > { %7934 = vst [vmem:[#allocation35_spill] sm:$0xff] %v5299_v40  ;;  %v1264_v15 = vadd.f32 1.0, %v4273_v56  ;;  %v1013_v1 = vmul.f32 0.70710677, %v5299_v40  ;;  %v5304_v26 = vpop.f32.mrb[61].mxu0  ;;  %v1390_v42 = vmul.f32 %v1262_v58, %v878_v34  ;;  %v881_v34 = vmul.f32 0.5, %v5283_v29 }
 0x1da   : > { %7935 = vst [vmem:[#allocation36_spill] sm:$0xff] %v5304_v26  ;;  %v1391_v57 = vmul.f32 %v1263_v0, %v879_v31  ;;  %v1014_v45 = vmul.f32 0.70710677, %v5304_v26  ;;  %v5307_v48 = vpop.f32.mrb[62].mxu0 }
 0x1db   : > { %7936 = vst [vmem:[#allocation37_spill] sm:$0xff] %v5307_v48  ;;  %v1392_v32 = vmul.f32 %v1264_v15, %v880_v23  ;;  %4282 = verf.f32 %v1013_v1  ;;  %v1015_v39 = vmul.f32 0.70710677, %v5307_v48  ;;  %v5310_v52 = vpop.f32.mrb[63].mxu0  ;;  %v883_v23 = vmul.f32 0.5, %v5291_v16 }
 0x1dc   : > { %7937 = vst [vmem:[#allocation38_spill] sm:$0xff] %v5310_v52  ;;  %4284 = verf.f32 %v1014_v45  ;;  %v1016_v56 = vmul.f32 0.70710677, %v5310_v52  ;;  %v1491_v60 = vpack.c.bf16 %v1391_v57, %v1389_v14  ;;  %v882_v14 = vmul.f32 0.5, %v5288_v20 }
 0x1dd   : > { %v4275_v44 = vpop.eup %4274  ;;  %4286 = verf.f32 %v1015_v39  ;;  %v1492_v35 = vpack.c.bf16 %v1392_v32, %v1390_v42  ;;  %v884_v57 = vmul.f32 0.5, %v5294_v2 }
 0x1de   : > { %v4277_v63 = vpop.eup %4276  ;;  %v1265_v7 = vadd.f32 1.0, %v4275_v44  ;;  %4288 = verf.f32 %v1016_v56 }
 0x1df   : > { %v4279_v31 = vpop.eup %4278  ;;  %v1266_v0 = vadd.f32 1.0, %v4277_v63  ;;  %1851 = vmatprep.mubr.bf16.mxu1 %v1492_v35 }
 0x1e0   : > { %v4281_v58 = vpop.eup %4280  ;;  %v1267_v15 = vadd.f32 1.0, %v4279_v31  ;;  %v5315_v1 = vpop.f32.mrb[64].mxu0  ;;  %1852 = vmatmul.mubr.bf16.gmra.mrb[44].mxu1 %v1491_v60  ;;  %v1393_v32 = vmul.f32 %v1265_v7, %v881_v34 }
 0x1e1   : > { %7938 = vst [vmem:[#allocation39_spill] sm:$0xff] %v5315_v1  ;;  %v1268_v45 = vadd.f32 1.0, %v4281_v58  ;;  %v1017_v44 = vmul.f32 0.70710677, %v5315_v1  ;;  %v5320_v42 = vpop.f32.mrb[65].mxu0  ;;  %v1394_v63 = vmul.f32 %v1266_v0, %v882_v14  ;;  %v885_v14 = vmul.f32 0.5, %v5299_v40 }
 0x1e2   : > { %7939 = vst [vmem:[#allocation40_spill] sm:$0xff] %v5320_v42  ;;  %v1395_v35 = vmul.f32 %v1267_v15, %v883_v23  ;;  %v1018_v39 = vmul.f32 0.70710677, %v5320_v42  ;;  %v5323_v56 = vpop.f32.mrb[66].mxu0 }
 0x1e3   : > { %7940 = vst [vmem:[#allocation41_spill] sm:$0xff] %v5323_v56  ;;  %v1396_v31 = vmul.f32 %v1268_v45, %v884_v57  ;;  %4290 = verf.f32 %v1017_v44  ;;  %v1019_v60 = vmul.f32 0.70710677, %v5323_v56  ;;  %v5326_v16 = vpop.f32.mrb[67].mxu0  ;;  %v887_v57 = vmul.f32 0.5, %v5307_v48 }
 0x1e4   : > { %7941 = vst [vmem:[#allocation42_spill] sm:$0xff] %v5326_v16  ;;  %4292 = verf.f32 %v1018_v39  ;;  %v1020_v58 = vmul.f32 0.70710677, %v5326_v16  ;;  %v1493_v2 = vpack.c.bf16 %v1395_v35, %v1393_v32  ;;  %v886_v32 = vmul.f32 0.5, %v5304_v26 }
 0x1e5   : > { %v4283_v20 = vpop.eup %4282  ;;  %4294 = verf.f32 %v1019_v60  ;;  %v1494_v29 = vpack.c.bf16 %v1396_v31, %v1394_v63  ;;  %v888_v35 = vmul.f32 0.5, %v5310_v52 }
 0x1e6   : > { %v4285_v7 = vpop.eup %4284  ;;  %v1269_v34 = vadd.f32 1.0, %v4283_v20  ;;  %4296 = verf.f32 %v1020_v58 }
 0x1e7   : > { %v4287_v23 = vpop.eup %4286  ;;  %v1270_v15 = vadd.f32 1.0, %v4285_v7  ;;  %1861 = vmatprep.mubr.bf16.mxu1 %v1494_v29 }
 0x1e8   : > { %v4289_v0 = vpop.eup %4288  ;;  %v1271_v45 = vadd.f32 1.0, %v4287_v23  ;;  %v5331_v44 = vpop.f32.mrb[68].mxu0  ;;  %1862 = vmatmul.mubr.bf16.gmra.mrb[48].mxu1 %v1493_v2  ;;  %v1397_v31 = vmul.f32 %v1269_v34, %v885_v14 }
 0x1e9   : > { %7942 = vst [vmem:[#allocation43_spill] sm:$0xff] %v5331_v44  ;;  %v1272_v39 = vadd.f32 1.0, %v4289_v0  ;;  %v1021_v20 = vmul.f32 0.70710677, %v5331_v44  ;;  %v5336_v63 = vpop.f32.mrb[69].mxu0  ;;  %v1398_v7 = vmul.f32 %v1270_v15, %v886_v32  ;;  %v889_v32 = vmul.f32 0.5, %v5315_v1 }
 0x1ea   : > { %7943 = vst [vmem:[#allocation44_spill] sm:$0xff] %v5336_v63  ;;  %v1399_v29 = vmul.f32 %v1271_v45, %v887_v57  ;;  %v1022_v60 = vmul.f32 0.70710677, %v5336_v63  ;;  %v5339_v58 = vpop.f32.mrb[70].mxu0 }
 0x1eb   : > { %7944 = vst [vmem:[#allocation45_spill] sm:$0xff] %v5339_v58  ;;  %v1400_v23 = vmul.f32 %v1272_v39, %v888_v35  ;;  %4298 = verf.f32 %v1021_v20  ;;  %v1023_v2 = vmul.f32 0.70710677, %v5339_v58  ;;  %v5342_v48 = vpop.f32.mrb[71].mxu0  ;;  %v891_v35 = vmul.f32 0.5, %v5323_v56 }
 0x1ec   : > { %7945 = vst [vmem:[#allocation46_spill] sm:$0xff] %v5342_v48  ;;  %4300 = verf.f32 %v1022_v60  ;;  %v1024_v0 = vmul.f32 0.70710677, %v5342_v48  ;;  %v1495_v52 = vpack.c.bf16 %v1399_v29, %v1397_v31  ;;  %v890_v31 = vmul.f32 0.5, %v5320_v42 }
 0x1ed   : > { %v4291_v26 = vpop.eup %4290  ;;  %4302 = verf.f32 %v1023_v2  ;;  %v1496_v40 = vpack.c.bf16 %v1400_v23, %v1398_v7  ;;  %v892_v29 = vmul.f32 0.5, %v5326_v16 }
 0x1ee   : > { %v4293_v34 = vpop.eup %4292  ;;  %v1273_v14 = vadd.f32 1.0, %v4291_v26  ;;  %4304 = verf.f32 %v1024_v0 }
 0x1ef   : > { %v4295_v57 = vpop.eup %4294  ;;  %v1274_v45 = vadd.f32 1.0, %v4293_v34  ;;  %1871 = vmatprep.mubr.bf16.mxu1 %v1496_v40 }
 0x1f0   : > { %v4297_v15 = vpop.eup %4296  ;;  %v1275_v39 = vadd.f32 1.0, %v4295_v57  ;;  %v5347_v20 = vpop.f32.mrb[72].mxu0  ;;  %1872 = vmatmul.mubr.bf16.gmra.mrb[52].mxu1 %v1495_v52  ;;  %v1401_v23 = vmul.f32 %v1273_v14, %v889_v32 }
 0x1f1   : > { %7946 = vst [vmem:[#allocation47_spill] sm:$0xff] %v5347_v20  ;;  %v1276_v60 = vadd.f32 1.0, %v4297_v15  ;;  %v1025_v26 = vmul.f32 0.70710677, %v5347_v20  ;;  %v5352_v7 = vpop.f32.mrb[73].mxu0  ;;  %v1402_v34 = vmul.f32 %v1274_v45, %v890_v31  ;;  %v893_v31 = vmul.f32 0.5, %v5331_v44 }
 0x1f2   : > { %7947 = vst [vmem:[#allocation48_spill] sm:$0xff] %v5352_v7  ;;  %v1403_v40 = vmul.f32 %v1275_v39, %v891_v35  ;;  %v1026_v2 = vmul.f32 0.70710677, %v5352_v7  ;;  %v5355_v0 = vpop.f32.mrb[74].mxu0 }
 0x1f3   : > { %7948 = vst [vmem:[#allocation49_spill] sm:$0xff] %v5355_v0  ;;  %v1404_v57 = vmul.f32 %v1276_v60, %v892_v29  ;;  %4306 = verf.f32 %v1025_v26  ;;  %v1027_v52 = vmul.f32 0.70710677, %v5355_v0  ;;  %v5358_v56 = vpop.f32.mrb[75].mxu0  ;;  %v895_v29 = vmul.f32 0.5, %v5339_v58 }
 0x1f4   : > { %7949 = vst [vmem:[#allocation50_spill] sm:$0xff] %v5358_v56  ;;  %4308 = verf.f32 %v1026_v2  ;;  %v1028_v15 = vmul.f32 0.70710677, %v5358_v56  ;;  %v1497_v16 = vpack.c.bf16 %v1403_v40, %v1401_v23  ;;  %v894_v23 = vmul.f32 0.5, %v5336_v63 }
 0x1f5   : > { %v4299_v42 = vpop.eup %4298  ;;  %4310 = verf.f32 %v1027_v52  ;;  %v1498_v1 = vpack.c.bf16 %v1404_v57, %v1402_v34  ;;  %v896_v40 = vmul.f32 0.5, %v5342_v48 }
 0x1f6   : > { %v4301_v14 = vpop.eup %4300  ;;  %v1277_v32 = vadd.f32 1.0, %v4299_v42  ;;  %4312 = verf.f32 %v1028_v15 }
 0x1f7   : > { %v4303_v35 = vpop.eup %4302  ;;  %v1278_v39 = vadd.f32 1.0, %v4301_v14  ;;  %1881 = vmatprep.mubr.bf16.mxu1 %v1498_v1 }
 0x1f8   : > { %v4305_v45 = vpop.eup %4304  ;;  %v1279_v60 = vadd.f32 1.0, %v4303_v35  ;;  %v5363_v26 = vpop.f32.mrb[76].mxu0  ;;  %1882 = vmatmul.mubr.bf16.gmra.mrb[56].mxu1 %v1497_v16  ;;  %v1405_v57 = vmul.f32 %v1277_v32, %v893_v31 }
 0x1f9   : > { %7950 = vst [vmem:[#allocation51_spill] sm:$0xff] %v5363_v26  ;;  %v1280_v2 = vadd.f32 1.0, %v4305_v45  ;;  %v1029_v42 = vmul.f32 0.70710677, %v5363_v26  ;;  %v5368_v34 = vpop.f32.mrb[77].mxu0  ;;  %v1406_v14 = vmul.f32 %v1278_v39, %v894_v23  ;;  %v897_v23 = vmul.f32 0.5, %v5347_v20 }
 0x1fa   : > { %7951 = vst [vmem:[#allocation52_spill] sm:$0xff] %v5368_v34  ;;  %v1407_v1 = vmul.f32 %v1279_v60, %v895_v29  ;;  %v1030_v52 = vmul.f32 0.70710677, %v5368_v34  ;;  %v5371_v15 = vpop.f32.mrb[78].mxu0 }
 0x1fb   : > { %7952 = vst [vmem:[#allocation53_spill] sm:$0xff] %v5371_v15  ;;  %v1408_v35 = vmul.f32 %v1280_v2, %v896_v40  ;;  %4314 = verf.f32 %v1029_v42  ;;  %v1031_v16 = vmul.f32 0.70710677, %v5371_v15  ;;  %v5374_v58 = vpop.f32.mrb[79].mxu0  ;;  %v899_v40 = vmul.f32 0.5, %v5355_v0 }
 0x1fc   : > { %7953 = vst [vmem:[#allocation54_spill] sm:$0xff] %v5374_v58  ;;  %4316 = verf.f32 %v1030_v52  ;;  %v1032_v45 = vmul.f32 0.70710677, %v5374_v58  ;;  %v1499_v48 = vpack.c.bf16 %v1407_v1, %v1405_v57  ;;  %v898_v57 = vmul.f32 0.5, %v5352_v7 }
 0x1fd   : > { %v4307_v63 = vpop.eup %4306  ;;  %4318 = verf.f32 %v1031_v16  ;;  %v1500_v44 = vpack.c.bf16 %v1408_v35, %v1406_v14  ;;  %v900_v1 = vmul.f32 0.5, %v5358_v56 }
 0x1fe   : > { %v4309_v32 = vpop.eup %4308  ;;  %v1281_v31 = vadd.f32 1.0, %v4307_v63  ;;  %4320 = verf.f32 %v1032_v45 }
 0x1ff   : > { %v4311_v29 = vpop.eup %4310  ;;  %v1282_v60 = vadd.f32 1.0, %v4309_v32  ;;  %1891 = vmatprep.mubr.bf16.mxu1 %v1500_v44 }
 0x200   : > { %v4313_v39 = vpop.eup %4312  ;;  %v1283_v2 = vadd.f32 1.0, %v4311_v29  ;;  %v5379_v42 = vpop.f32.mrb[80].mxu0  ;;  %1892 = vmatmul.mubr.bf16.gmra.mrb[60].mxu1 %v1499_v48  ;;  %v1409_v35 = vmul.f32 %v1281_v31, %v897_v23 }
 0x201   : > { %7954 = vst [vmem:[#allocation55_spill] sm:$0xff] %v5379_v42  ;;  %v1284_v52 = vadd.f32 1.0, %v4313_v39  ;;  %v1033_v63 = vmul.f32 0.70710677, %v5379_v42  ;;  %v5384_v14 = vpop.f32.mrb[81].mxu0  ;;  %v1410_v32 = vmul.f32 %v1282_v60, %v898_v57  ;;  %v901_v57 = vmul.f32 0.5, %v5363_v26 }
 0x202   : > { %7955 = vst [vmem:[#allocation56_spill] sm:$0xff] %v5384_v14  ;;  %v1411_v44 = vmul.f32 %v1283_v2, %v899_v40  ;;  %v1034_v16 = vmul.f32 0.70710677, %v5384_v14  ;;  %v5387_v45 = vpop.f32.mrb[82].mxu0 }
 0x203   : > { %7956 = vst [vmem:[#allocation57_spill] sm:$0xff] %v5387_v45  ;;  %v1412_v29 = vmul.f32 %v1284_v52, %v900_v1  ;;  %4322 = verf.f32 %v1033_v63  ;;  %v1035_v48 = vmul.f32 0.70710677, %v5387_v45  ;;  %v5390_v0 = vpop.f32.mrb[83].mxu0  ;;  %v903_v1 = vmul.f32 0.5, %v5371_v15 }
 0x204   : > { %7957 = vst [vmem:[#allocation58_spill] sm:$0xff] %v5390_v0  ;;  %4324 = verf.f32 %v1034_v16  ;;  %v1036_v39 = vmul.f32 0.70710677, %v5390_v0  ;;  %v1501_v56 = vpack.c.bf16 %v1411_v44, %v1409_v35  ;;  %v902_v35 = vmul.f32 0.5, %v5368_v34 }
 0x205   : > { %v4315_v7 = vpop.eup %4314  ;;  %4326 = verf.f32 %v1035_v48  ;;  %v1502_v20 = vpack.c.bf16 %v1412_v29, %v1410_v32  ;;  %v904_v44 = vmul.f32 0.5, %v5374_v58 }
 0x206   : > { %v4317_v31 = vpop.eup %4316  ;;  %v1285_v23 = vadd.f32 1.0, %v4315_v7  ;;  %4328 = verf.f32 %v1036_v39 }
 0x207   : > { %v4319_v40 = vpop.eup %4318  ;;  %v1286_v2 = vadd.f32 1.0, %v4317_v31  ;;  %1901 = vmatprep.mubr.bf16.mxu1 %v1502_v20 }
 0x208   : > { %v4321_v60 = vpop.eup %4320  ;;  %v1287_v52 = vadd.f32 1.0, %v4319_v40  ;;  %v5395_v63 = vpop.f32.mrb[84].mxu0  ;;  %1902 = vmatmul.mubr.bf16.gmra.mrb[64].mxu1 %v1501_v56  ;;  %v1413_v29 = vmul.f32 %v1285_v23, %v901_v57 }
 0x209   : > { %7958 = vst [vmem:[#allocation59_spill] sm:$0xff] %v5395_v63  ;;  %v1288_v16 = vadd.f32 1.0, %v4321_v60  ;;  %v1037_v7 = vmul.f32 0.70710677, %v5395_v63  ;;  %v5400_v32 = vpop.f32.mrb[85].mxu0  ;;  %v1414_v31 = vmul.f32 %v1286_v2, %v902_v35  ;;  %v905_v35 = vmul.f32 0.5, %v5379_v42 }
 0x20a   : > { %7959 = vst [vmem:[#allocation60_spill] sm:$0xff] %v5400_v32  ;;  %v1415_v20 = vmul.f32 %v1287_v52, %v903_v1  ;;  %v1038_v48 = vmul.f32 0.70710677, %v5400_v32  ;;  %v5403_v39 = vpop.f32.mrb[86].mxu0 }
 0x20b   : > { %7960 = vst [vmem:[#allocation61_spill] sm:$0xff] %v5403_v39  ;;  %v1416_v40 = vmul.f32 %v1288_v16, %v904_v44  ;;  %4330 = verf.f32 %v1037_v7  ;;  %v1039_v56 = vmul.f32 0.70710677, %v5403_v39  ;;  %v5406_v15 = vpop.f32.mrb[87].mxu0  ;;  %v907_v44 = vmul.f32 0.5, %v5387_v45 }
 0x20c   : > { %7961 = vst [vmem:[#allocation62_spill] sm:$0xff] %v5406_v15  ;;  %4332 = verf.f32 %v1038_v48  ;;  %v1040_v60 = vmul.f32 0.70710677, %v5406_v15  ;;  %v1503_v58 = vpack.c.bf16 %v1415_v20, %v1413_v29  ;;  %v906_v29 = vmul.f32 0.5, %v5384_v14 }
 0x20d   : > { %v4323_v34 = vpop.eup %4322  ;;  %4334 = verf.f32 %v1039_v56  ;;  %v1504_v26 = vpack.c.bf16 %v1416_v40, %v1414_v31  ;;  %v908_v20 = vmul.f32 0.5, %v5390_v0 }
 0x20e   : > { %v4325_v23 = vpop.eup %4324  ;;  %v1289_v57 = vadd.f32 1.0, %v4323_v34  ;;  %4336 = verf.f32 %v1040_v60 }
 0x20f   : > { %v4327_v1 = vpop.eup %4326  ;;  %v1290_v52 = vadd.f32 1.0, %v4325_v23  ;;  %1911 = vmatprep.mubr.bf16.mxu1 %v1504_v26 }
 0x210   : > { %v4329_v2 = vpop.eup %4328  ;;  %v1291_v16 = vadd.f32 1.0, %v4327_v1  ;;  %v5411_v7 = vpop.f32.mrb[88].mxu0  ;;  %1912 = vmatmul.mubr.bf16.gmra.mrb[68].mxu1 %v1503_v58  ;;  %v1417_v40 = vmul.f32 %v1289_v57, %v905_v35 }
 0x211   : > { %7962 = vst [vmem:[#allocation63_spill] sm:$0xff] %v5411_v7  ;;  %v1292_v48 = vadd.f32 1.0, %v4329_v2  ;;  %v1041_v34 = vmul.f32 0.70710677, %v5411_v7  ;;  %v5416_v31 = vpop.f32.mrb[89].mxu0  ;;  %v1418_v23 = vmul.f32 %v1290_v52, %v906_v29  ;;  %v909_v29 = vmul.f32 0.5, %v5395_v63 }
 0x212   : > { %7963 = vst [vmem:[#allocation64_spill] sm:$0xff] %v5416_v31  ;;  %v1419_v26 = vmul.f32 %v1291_v16, %v907_v44  ;;  %v1042_v56 = vmul.f32 0.70710677, %v5416_v31  ;;  %v5419_v60 = vpop.f32.mrb[90].mxu0 }
 0x213   : > { %7964 = vst [vmem:[#allocation65_spill] sm:$0xff] %v5419_v60  ;;  %v1420_v1 = vmul.f32 %v1292_v48, %v908_v20  ;;  %4338 = verf.f32 %v1041_v34  ;;  %v1043_v58 = vmul.f32 0.70710677, %v5419_v60  ;;  %v5422_v45 = vpop.f32.mrb[91].mxu0  ;;  %v911_v20 = vmul.f32 0.5, %v5403_v39 }
 0x214   : > { %7965 = vst [vmem:[#allocation66_spill] sm:$0xff] %v5422_v45  ;;  %4340 = verf.f32 %v1042_v56  ;;  %v1044_v2 = vmul.f32 0.70710677, %v5422_v45  ;;  %v1505_v0 = vpack.c.bf16 %v1419_v26, %v1417_v40  ;;  %v910_v40 = vmul.f32 0.5, %v5400_v32 }
 0x215   : > { %v4331_v14 = vpop.eup %4330  ;;  %4342 = verf.f32 %v1043_v58  ;;  %v1506_v42 = vpack.c.bf16 %v1420_v1, %v1418_v23  ;;  %v912_v26 = vmul.f32 0.5, %v5406_v15 }
 0x216   : > { %v4333_v57 = vpop.eup %4332  ;;  %v1293_v35 = vadd.f32 1.0, %v4331_v14  ;;  %4344 = verf.f32 %v1044_v2 }
 0x217   : > { %v4335_v44 = vpop.eup %4334  ;;  %v1294_v16 = vadd.f32 1.0, %v4333_v57  ;;  %1921 = vmatprep.mubr.bf16.mxu1 %v1506_v42 }
 0x218   : > { %v4337_v52 = vpop.eup %4336  ;;  %v1295_v48 = vadd.f32 1.0, %v4335_v44  ;;  %v5427_v34 = vpop.f32.mrb[92].mxu0  ;;  %1922 = vmatmul.mubr.bf16.gmra.mrb[72].mxu1 %v1505_v0  ;;  %v1421_v1 = vmul.f32 %v1293_v35, %v909_v29 }
 0x219   : > { %7966 = vst [vmem:[#allocation67_spill] sm:$0xff] %v5427_v34  ;;  %v1296_v56 = vadd.f32 1.0, %v4337_v52  ;;  %v1045_v14 = vmul.f32 0.70710677, %v5427_v34  ;;  %v5432_v23 = vpop.f32.mrb[93].mxu0  ;;  %v1422_v57 = vmul.f32 %v1294_v16, %v910_v40  ;;  %v913_v40 = vmul.f32 0.5, %v5411_v7 }
 0x21a   : > { %7967 = vst [vmem:[#allocation68_spill] sm:$0xff] %v5432_v23  ;;  %v1423_v42 = vmul.f32 %v1295_v48, %v911_v20  ;;  %v1046_v58 = vmul.f32 0.70710677, %v5432_v23  ;;  %v5435_v2 = vpop.f32.mrb[94].mxu0 }
 0x21b   : > { %7968 = vst [vmem:[#allocation69_spill] sm:$0xff] %v5435_v2  ;;  %v1424_v44 = vmul.f32 %v1296_v56, %v912_v26  ;;  %4346 = verf.f32 %v1045_v14  ;;  %v1047_v0 = vmul.f32 0.70710677, %v5435_v2  ;;  %v5438_v39 = vpop.f32.mrb[95].mxu0  ;;  %v915_v26 = vmul.f32 0.5, %v5419_v60 }
 0x21c   : > { %7969 = vst [vmem:[#allocation70_spill] sm:$0xff] %v5438_v39  ;;  %4348 = verf.f32 %v1046_v58  ;;  %v1048_v52 = vmul.f32 0.70710677, %v5438_v39  ;;  %v1507_v15 = vpack.c.bf16 %v1423_v42, %v1421_v1  ;;  %v914_v1 = vmul.f32 0.5, %v5416_v31 }
 0x21d   : > { %v4339_v32 = vpop.eup %4338  ;;  %4350 = verf.f32 %v1047_v0  ;;  %v1508_v63 = vpack.c.bf16 %v1424_v44, %v1422_v57  ;;  %v916_v42 = vmul.f32 0.5, %v5422_v45 }
 0x21e   : > { %v4341_v35 = vpop.eup %4340  ;;  %v1297_v29 = vadd.f32 1.0, %v4339_v32  ;;  %4352 = verf.f32 %v1048_v52 }
 0x21f   : > { %v4343_v20 = vpop.eup %4342  ;;  %v1298_v48 = vadd.f32 1.0, %v4341_v35  ;;  %1931 = vmatprep.mubr.bf16.mxu1 %v1508_v63 }
 0x220   : > { %v4345_v16 = vpop.eup %4344  ;;  %v1299_v56 = vadd.f32 1.0, %v4343_v20  ;;  %v5443_v14 = vpop.f32.mrb[96].mxu0  ;;  %1932 = vmatmul.mubr.bf16.gmra.mrb[76].mxu1 %v1507_v15  ;;  %v1425_v44 = vmul.f32 %v1297_v29, %v913_v40 }
 0x221   : > { %7970 = vst [vmem:[#allocation71_spill] sm:$0xff] %v5443_v14  ;;  %v1300_v58 = vadd.f32 1.0, %v4345_v16  ;;  %v1049_v32 = vmul.f32 0.70710677, %v5443_v14  ;;  %v5448_v57 = vpop.f32.mrb[97].mxu0  ;;  %v1426_v35 = vmul.f32 %v1298_v48, %v914_v1  ;;  %v917_v1 = vmul.f32 0.5, %v5427_v34 }
 0x222   : > { %7971 = vst [vmem:[#allocation72_spill] sm:$0xff] %v5448_v57  ;;  %v1427_v63 = vmul.f32 %v1299_v56, %v915_v26  ;;  %v1050_v0 = vmul.f32 0.70710677, %v5448_v57  ;;  %v5451_v52 = vpop.f32.mrb[98].mxu0 }
 0x223   : > { %7972 = vst [vmem:[#allocation73_spill] sm:$0xff] %v5451_v52  ;;  %v1428_v20 = vmul.f32 %v1300_v58, %v916_v42  ;;  %4354 = verf.f32 %v1049_v32  ;;  %v1051_v15 = vmul.f32 0.70710677, %v5451_v52  ;;  %v5454_v60 = vpop.f32.mrb[99].mxu0  ;;  %v919_v42 = vmul.f32 0.5, %v5435_v2 }
 0x224   : > { %7973 = vst [vmem:[#allocation74_spill] sm:$0xff] %v5454_v60  ;;  %4356 = verf.f32 %v1050_v0  ;;  %v1052_v16 = vmul.f32 0.70710677, %v5454_v60  ;;  %v1509_v45 = vpack.c.bf16 %v1427_v63, %v1425_v44  ;;  %v918_v44 = vmul.f32 0.5, %v5432_v23 }
 0x225   : > { %v4347_v31 = vpop.eup %4346  ;;  %4358 = verf.f32 %v1051_v15  ;;  %v1510_v7 = vpack.c.bf16 %v1428_v20, %v1426_v35  ;;  %v920_v63 = vmul.f32 0.5, %v5438_v39 }
 0x226   : > { %v4349_v29 = vpop.eup %4348  ;;  %v1301_v40 = vadd.f32 1.0, %v4347_v31  ;;  %4360 = verf.f32 %v1052_v16 }
 0x227   : > { %v4351_v26 = vpop.eup %4350  ;;  %v1302_v56 = vadd.f32 1.0, %v4349_v29  ;;  %1941 = vmatprep.mubr.bf16.mxu1 %v1510_v7 }
 0x228   : > { %v4353_v48 = vpop.eup %4352  ;;  %v1303_v58 = vadd.f32 1.0, %v4351_v26  ;;  %v5459_v32 = vpop.f32.mrb[100].mxu0  ;;  %1942 = vmatmul.mubr.bf16.gmra.mrb[80].mxu1 %v1509_v45  ;;  %v1429_v20 = vmul.f32 %v1301_v40, %v917_v1 }
 0x229   : > { %7974 = vst [vmem:[#allocation75_spill] sm:$0xff] %v5459_v32  ;;  %v1304_v0 = vadd.f32 1.0, %v4353_v48  ;;  %v1053_v31 = vmul.f32 0.70710677, %v5459_v32  ;;  %v5464_v35 = vpop.f32.mrb[101].mxu0  ;;  %v1430_v29 = vmul.f32 %v1302_v56, %v918_v44  ;;  %v921_v44 = vmul.f32 0.5, %v5443_v14 }
 0x22a   : > { %7975 = vst [vmem:[#allocation76_spill] sm:$0xff] %v5464_v35  ;;  %v1431_v7 = vmul.f32 %v1303_v58, %v919_v42  ;;  %v1054_v15 = vmul.f32 0.70710677, %v5464_v35  ;;  %v5467_v16 = vpop.f32.mrb[102].mxu0 }
 0x22b   : > { %7976 = vst [vmem:[#allocation77_spill] sm:$0xff] %v5467_v16  ;;  %v1432_v26 = vmul.f32 %v1304_v0, %v920_v63  ;;  %4362 = verf.f32 %v1053_v31  ;;  %v1055_v45 = vmul.f32 0.70710677, %v5467_v16  ;;  %v5470_v2 = vpop.f32.mrb[103].mxu0  ;;  %v923_v63 = vmul.f32 0.5, %v5451_v52 }
 0x22c   : > { %7977 = vst [vmem:[#allocation78_spill] sm:$0xff] %v5470_v2  ;;  %4364 = verf.f32 %v1054_v15  ;;  %v1056_v48 = vmul.f32 0.70710677, %v5470_v2  ;;  %v1511_v39 = vpack.c.bf16 %v1431_v7, %v1429_v20  ;;  %v922_v20 = vmul.f32 0.5, %v5448_v57 }
 0x22d   : > { %v4355_v23 = vpop.eup %4354  ;;  %4366 = verf.f32 %v1055_v45  ;;  %v1512_v34 = vpack.c.bf16 %v1432_v26, %v1430_v29  ;;  %v924_v7 = vmul.f32 0.5, %v5454_v60 }
 0x22e   : > { %v4357_v40 = vpop.eup %4356  ;;  %v1305_v1 = vadd.f32 1.0, %v4355_v23  ;;  %4368 = verf.f32 %v1056_v48 }
 0x22f   : > { %v4359_v42 = vpop.eup %4358  ;;  %v1306_v58 = vadd.f32 1.0, %v4357_v40  ;;  %1951 = vmatprep.mubr.bf16.mxu1 %v1512_v34 }
 0x230   : > { %v4361_v56 = vpop.eup %4360  ;;  %v1307_v0 = vadd.f32 1.0, %v4359_v42  ;;  %v5475_v31 = vpop.f32.mrb[104].mxu0  ;;  %1952 = vmatmul.mubr.bf16.gmra.mrb[84].mxu1 %v1511_v39  ;;  %v1433_v26 = vmul.f32 %v1305_v1, %v921_v44 }
 0x231   : > { %7978 = vst [vmem:[#allocation79_spill] sm:$0xff] %v5475_v31  ;;  %v1308_v15 = vadd.f32 1.0, %v4361_v56  ;;  %v1057_v23 = vmul.f32 0.70710677, %v5475_v31  ;;  %v5480_v29 = vpop.f32.mrb[105].mxu0  ;;  %v1434_v40 = vmul.f32 %v1306_v58, %v922_v20  ;;  %v925_v20 = vmul.f32 0.5, %v5459_v32 }
 0x232   : > { %7979 = vst [vmem:[#allocation80_spill] sm:$0xff] %v5480_v29  ;;  %v1435_v34 = vmul.f32 %v1307_v0, %v923_v63  ;;  %v1058_v45 = vmul.f32 0.70710677, %v5480_v29  ;;  %v5483_v48 = vpop.f32.mrb[106].mxu0 }
 0x233   : > { %7980 = vst [vmem:[#allocation81_spill] sm:$0xff] %v5483_v48  ;;  %v1436_v42 = vmul.f32 %v1308_v15, %v924_v7  ;;  %4370 = verf.f32 %v1057_v23  ;;  %v1059_v39 = vmul.f32 0.70710677, %v5483_v48  ;;  %v5486_v52 = vpop.f32.mrb[107].mxu0  ;;  %v927_v7 = vmul.f32 0.5, %v5467_v16 }
 0x234   : > { %7981 = vst [vmem:[#allocation82_spill] sm:$0xff] %v5486_v52  ;;  %4372 = verf.f32 %v1058_v45  ;;  %v1060_v56 = vmul.f32 0.70710677, %v5486_v52  ;;  %v1513_v60 = vpack.c.bf16 %v1435_v34, %v1433_v26  ;;  %v926_v26 = vmul.f32 0.5, %v5464_v35 }
 0x235   : > { %v4363_v57 = vpop.eup %4362  ;;  %4374 = verf.f32 %v1059_v39  ;;  %v1514_v14 = vpack.c.bf16 %v1436_v42, %v1434_v40  ;;  %v928_v34 = vmul.f32 0.5, %v5470_v2 }
 0x236   : > { %v4365_v1 = vpop.eup %4364  ;;  %v1309_v44 = vadd.f32 1.0, %v4363_v57  ;;  %4376 = verf.f32 %v1060_v56 }
 0x237   : > { %v4367_v63 = vpop.eup %4366  ;;  %v1310_v0 = vadd.f32 1.0, %v4365_v1  ;;  %1961 = vmatprep.mubr.bf16.mxu1 %v1514_v14 }
 0x238   : > { %v4369_v58 = vpop.eup %4368  ;;  %v1311_v15 = vadd.f32 1.0, %v4367_v63  ;;  %v5491_v23 = vpop.f32.mrb[108].mxu0  ;;  %1962 = vmatmul.mubr.bf16.gmra.mrb[88].mxu1 %v1513_v60  ;;  %v1437_v42 = vmul.f32 %v1309_v44, %v925_v20 }
 0x239   : > { %7982 = vst [vmem:[#allocation83_spill] sm:$0xff] %v5491_v23  ;;  %v1312_v45 = vadd.f32 1.0, %v4369_v58  ;;  %v1061_v57 = vmul.f32 0.70710677, %v5491_v23  ;;  %v5496_v40 = vpop.f32.mrb[109].mxu0  ;;  %v1438_v1 = vmul.f32 %v1310_v0, %v926_v26  ;;  %v929_v26 = vmul.f32 0.5, %v5475_v31 }
 0x23a   : > { %7983 = vst [vmem:[#allocation84_spill] sm:$0xff] %v5496_v40  ;;  %v1439_v14 = vmul.f32 %v1311_v15, %v927_v7  ;;  %v1062_v39 = vmul.f32 0.70710677, %v5496_v40  ;;  %v5499_v56 = vpop.f32.mrb[110].mxu0 }
 0x23b   : > { %7984 = vst [vmem:[#allocation85_spill] sm:$0xff] %v5499_v56  ;;  %v1440_v63 = vmul.f32 %v1312_v45, %v928_v34  ;;  %4378 = verf.f32 %v1061_v57  ;;  %v1063_v60 = vmul.f32 0.70710677, %v5499_v56  ;;  %v5502_v16 = vpop.f32.mrb[111].mxu0  ;;  %v931_v34 = vmul.f32 0.5, %v5483_v48 }
 0x23c   : > { %7985 = vst [vmem:[#allocation86_spill] sm:$0xff] %v5502_v16  ;;  %4380 = verf.f32 %v1062_v39  ;;  %v1064_v58 = vmul.f32 0.70710677, %v5502_v16  ;;  %v1515_v2 = vpack.c.bf16 %v1439_v14, %v1437_v42  ;;  %v930_v42 = vmul.f32 0.5, %v5480_v29 }
 0x23d   : > { %v4371_v35 = vpop.eup %4370  ;;  %4382 = verf.f32 %v1063_v60  ;;  %v1516_v32 = vpack.c.bf16 %v1440_v63, %v1438_v1  ;;  %v932_v14 = vmul.f32 0.5, %v5486_v52 }
 0x23e   : > { %v4373_v44 = vpop.eup %4372  ;;  %v1313_v20 = vadd.f32 1.0, %v4371_v35  ;;  %4384 = verf.f32 %v1064_v58 }
 0x23f   : > { %v4375_v7 = vpop.eup %4374  ;;  %v1314_v15 = vadd.f32 1.0, %v4373_v44  ;;  %1971 = vmatprep.mubr.bf16.mxu1 %v1516_v32 }
 0x240   : > { %v4377_v0 = vpop.eup %4376  ;;  %v1315_v45 = vadd.f32 1.0, %v4375_v7  ;;  %v5507_v57 = vpop.f32.mrb[112].mxu0  ;;  %1972 = vmatmul.mubr.bf16.gmra.mrb[92].mxu1 %v1515_v2  ;;  %v1441_v63 = vmul.f32 %v1313_v20, %v929_v26 }
 0x241   : > { %7986 = vst [vmem:[#allocation87_spill] sm:$0xff] %v5507_v57  ;;  %v1316_v39 = vadd.f32 1.0, %v4377_v0  ;;  %v1065_v35 = vmul.f32 0.70710677, %v5507_v57  ;;  %v5512_v1 = vpop.f32.mrb[113].mxu0  ;;  %v1442_v44 = vmul.f32 %v1314_v15, %v930_v42  ;;  %v933_v42 = vmul.f32 0.5, %v5491_v23 }
 0x242   : > { %7987 = vst [vmem:[#allocation88_spill] sm:$0xff] %v5512_v1  ;;  %v1443_v32 = vmul.f32 %v1315_v45, %v931_v34  ;;  %v1066_v60 = vmul.f32 0.70710677, %v5512_v1  ;;  %v5515_v58 = vpop.f32.mrb[114].mxu0 }
 0x243   : > { %7988 = vst [vmem:[#allocation89_spill] sm:$0xff] %v5515_v58  ;;  %v1444_v7 = vmul.f32 %v1316_v39, %v932_v14  ;;  %4386 = verf.f32 %v1065_v35  ;;  %v1067_v2 = vmul.f32 0.70710677, %v5515_v58  ;;  %v5518_v48 = vpop.f32.mrb[115].mxu0  ;;  %v935_v14 = vmul.f32 0.5, %v5499_v56 }
 0x244   : > { %7989 = vst [vmem:[#allocation90_spill] sm:$0xff] %v5518_v48  ;;  %4388 = verf.f32 %v1066_v60  ;;  %v1068_v0 = vmul.f32 0.70710677, %v5518_v48  ;;  %v1517_v52 = vpack.c.bf16 %v1443_v32, %v1441_v63  ;;  %v934_v63 = vmul.f32 0.5, %v5496_v40 }
 0x245   : > { %v4379_v29 = vpop.eup %4378  ;;  %4390 = verf.f32 %v1067_v2  ;;  %v1518_v31 = vpack.c.bf16 %v1444_v7, %v1442_v44  ;;  %v936_v32 = vmul.f32 0.5, %v5502_v16 }
 0x246   : > { %v4381_v20 = vpop.eup %4380  ;;  %v1317_v26 = vadd.f32 1.0, %v4379_v29  ;;  %4392 = verf.f32 %v1068_v0 }
 0x247   : > { %v4383_v34 = vpop.eup %4382  ;;  %v1318_v45 = vadd.f32 1.0, %v4381_v20  ;;  %1981 = vmatprep.mubr.bf16.mxu1 %v1518_v31 }
 0x248   : > { %v4385_v15 = vpop.eup %4384  ;;  %v1319_v39 = vadd.f32 1.0, %v4383_v34  ;;  %v5523_v35 = vpop.f32.mrb[116].mxu0  ;;  %1982 = vmatmul.mubr.bf16.gmra.mrb[96].mxu1 %v1517_v52  ;;  %v1445_v7 = vmul.f32 %v1317_v26, %v933_v42 }
 0x249   : > { %7990 = vst [vmem:[#allocation91_spill] sm:$0xff] %v5523_v35  ;;  %v1320_v60 = vadd.f32 1.0, %v4385_v15  ;;  %v1069_v29 = vmul.f32 0.70710677, %v5523_v35  ;;  %v5528_v44 = vpop.f32.mrb[117].mxu0  ;;  %v1446_v20 = vmul.f32 %v1318_v45, %v934_v63  ;;  %v937_v63 = vmul.f32 0.5, %v5507_v57 }
 0x24a   : > { %7991 = vst [vmem:[#allocation92_spill] sm:$0xff] %v5528_v44  ;;  %v1447_v31 = vmul.f32 %v1319_v39, %v935_v14  ;;  %v1070_v2 = vmul.f32 0.70710677, %v5528_v44  ;;  %v5531_v0 = vpop.f32.mrb[118].mxu0 }
 0x24b   : > { %7992 = vst [vmem:[#allocation93_spill] sm:$0xff] %v5531_v0  ;;  %v1448_v34 = vmul.f32 %v1320_v60, %v936_v32  ;;  %4394 = verf.f32 %v1069_v29  ;;  %v1071_v52 = vmul.f32 0.70710677, %v5531_v0  ;;  %v5534_v56 = vpop.f32.mrb[119].mxu0  ;;  %v939_v32 = vmul.f32 0.5, %v5515_v58 }
 0x24c   : > { %7993 = vst [vmem:[#allocation94_spill] sm:$0xff] %v5534_v56  ;;  %4396 = verf.f32 %v1070_v2  ;;  %v1072_v15 = vmul.f32 0.70710677, %v5534_v56  ;;  %v1519_v16 = vpack.c.bf16 %v1447_v31, %v1445_v7  ;;  %v938_v7 = vmul.f32 0.5, %v5512_v1 }
 0x24d   : > { %v4387_v40 = vpop.eup %4386  ;;  %4398 = verf.f32 %v1071_v52  ;;  %v1520_v23 = vpack.c.bf16 %v1448_v34, %v1446_v20  ;;  %v940_v31 = vmul.f32 0.5, %v5518_v48 }
 0x24e   : > { %v4389_v26 = vpop.eup %4388  ;;  %v1321_v42 = vadd.f32 1.0, %v4387_v40  ;;  %4400 = verf.f32 %v1072_v15 }
 0x24f   : > { %v4391_v14 = vpop.eup %4390  ;;  %v1322_v39 = vadd.f32 1.0, %v4389_v26  ;;  %1991 = vmatprep.mubr.bf16.mxu1 %v1520_v23 }
 0x250   : > { %v4393_v45 = vpop.eup %4392  ;;  %v1323_v60 = vadd.f32 1.0, %v4391_v14  ;;  %v5539_v29 = vpop.f32.mrb[120].mxu0  ;;  %1992 = vmatmul.mubr.bf16.gmra.mrb[100].mxu1 %v1519_v16  ;;  %v1449_v34 = vmul.f32 %v1321_v42, %v937_v63 }
 0x251   : > { %7994 = vst [vmem:[#allocation95_spill] sm:$0xff] %v5539_v29  ;;  %v1324_v2 = vadd.f32 1.0, %v4393_v45  ;;  %v1073_v40 = vmul.f32 0.70710677, %v5539_v29  ;;  %v5544_v20 = vpop.f32.mrb[121].mxu0  ;;  %v1450_v26 = vmul.f32 %v1322_v39, %v938_v7  ;;  %v941_v7 = vmul.f32 0.5, %v5523_v35 }
 0x252   : > { %7995 = vst [vmem:[#allocation96_spill] sm:$0xff] %v5544_v20  ;;  %v1451_v23 = vmul.f32 %v1323_v60, %v939_v32  ;;  %v1074_v52 = vmul.f32 0.70710677, %v5544_v20  ;;  %v5547_v15 = vpop.f32.mrb[122].mxu0 }
 0x253   : > { %7996 = vst [vmem:[#allocation97_spill] sm:$0xff] %v5547_v15  ;;  %v1452_v14 = vmul.f32 %v1324_v2, %v940_v31  ;;  %4402 = verf.f32 %v1073_v40  ;;  %v1075_v16 = vmul.f32 0.70710677, %v5547_v15  ;;  %v5550_v58 = vpop.f32.mrb[123].mxu0  ;;  %v943_v31 = vmul.f32 0.5, %v5531_v0 }
 0x254   : > { %7997 = vst [vmem:[#allocation98_spill] sm:$0xff] %v5550_v58  ;;  %4404 = verf.f32 %v1074_v52  ;;  %v1076_v45 = vmul.f32 0.70710677, %v5550_v58  ;;  %v1521_v48 = vpack.c.bf16 %v1451_v23, %v1449_v34  ;;  %v942_v34 = vmul.f32 0.5, %v5528_v44 }
 0x255   : > { %v4395_v1 = vpop.eup %4394  ;;  %4406 = verf.f32 %v1075_v16  ;;  %v1522_v57 = vpack.c.bf16 %v1452_v14, %v1450_v26  ;;  %v944_v23 = vmul.f32 0.5, %v5534_v56 }
 0x256   : > { %v4397_v42 = vpop.eup %4396  ;;  %v1325_v63 = vadd.f32 1.0, %v4395_v1  ;;  %4408 = verf.f32 %v1076_v45 }
 0x257   : > { %v4399_v32 = vpop.eup %4398  ;;  %v1326_v60 = vadd.f32 1.0, %v4397_v42  ;;  %2001 = vmatprep.mubr.bf16.mxu1 %v1522_v57 }
 0x258   : > { %v4401_v39 = vpop.eup %4400  ;;  %v1327_v2 = vadd.f32 1.0, %v4399_v32  ;;  %v5555_v40 = vpop.f32.mrb[124].mxu0  ;;  %2002 = vmatmul.mubr.bf16.gmra.mrb[104].mxu1 %v1521_v48  ;;  %v1453_v14 = vmul.f32 %v1325_v63, %v941_v7 }
 0x259   : > { %7998 = vst [vmem:[#allocation99_spill] sm:$0xff] %v5555_v40  ;;  %v1328_v52 = vadd.f32 1.0, %v4401_v39  ;;  %v1077_v1 = vmul.f32 0.70710677, %v5555_v40  ;;  %v5560_v26 = vpop.f32.mrb[125].mxu0  ;;  %v1454_v42 = vmul.f32 %v1326_v60, %v942_v34  ;;  %v945_v39 = vmul.f32 0.5, %v5539_v29 }
 0x25a   : > { %7999 = vst [vmem:[#allocation100_spill] sm:$0xff] %v5560_v26  ;;  %v1455_v57 = vmul.f32 %v1327_v2, %v943_v31  ;;  %v1078_v16 = vmul.f32 0.70710677, %v5560_v26  ;;  %v5563_v45 = vpop.f32.mrb[126].mxu0 }
 0x25b   : > { %8000 = vst [vmem:[#allocation101_spill] sm:$0xff] %v5563_v45  ;;  %v1456_v32 = vmul.f32 %v1328_v52, %v944_v23  ;;  %4410 = verf.f32 %v1077_v1  ;;  %v1079_v48 = vmul.f32 0.70710677, %v5563_v45  ;;  %v5566_v0 = vpop.f32.mrb[127].mxu0  ;;  %v1743_v44 = vpop.f32.mrb[0].mxu1 }
 0x25c   : > { %8001 = vst [vmem:[#allocation102_spill] sm:$0xff] %v5566_v0  ;;  %4412 = verf.f32 %v1078_v16  ;;  %v1080_v56 = vmul.f32 0.70710677, %v5566_v0  ;;  %v5571_v63 = vadd.f32 %v1743_v44, %v5049_v37  ;;  %v1745_v7 = vpop.f32.mrb[1].mxu1  ;;  %v1523_v23 = vpack.c.bf16 %v1455_v57, %v1453_v14 }
 0x25d   : > { %v4403_v31 = vpop.eup %4402  ;;  %4414 = verf.f32 %v1079_v48  ;;  %v5574_v60 = vadd.f32 %v1745_v7, %v5054_v43  ;;  %v1747_v2 = vpop.f32.mrb[2].mxu1  ;;  %v1524_v34 = vpack.c.bf16 %v1456_v32, %v1454_v42  ;;  %v947_v57 = vmul.f32 0.5, %v5547_v15 }
 0x25e   : > { %v4405_v52 = vpop.eup %4404  ;;  %v1329_v1 = vadd.f32 1.0, %v4403_v31  ;;  %4416 = verf.f32 %v1080_v56  ;;  %v5577_v29 = vadd.f32 %v1747_v2, %v5061_v47  ;;  %v1749_v16 = vpop.f32.mrb[3].mxu1  ;;  %v2435_v37 = vmul.f32 %v5571_v63, %v5571_v63 }
 0x25f   : > { %8002 = vst [vmem:[#allocation103_spill] sm:$0xff] %v5574_v60  ;;  %v4407_v44 = vpop.eup %4406  ;;  %v1330_v35 = vadd.f32 1.0, %v4405_v52  ;;  %v5582_v48 = vadd.f32 %v1749_v16, %v5068_v51  ;;  %2011 = vmatprep.mubr.bf16.mxu1 %v1524_v34  ;;  %v2182_v43 = vadd.f32 %v5574_v60, %v5571_v63  ;;  %v2436_v14 = vmul.f32 %v5574_v60, %v5574_v60 }
 0x260   : > { %8003 = vst [vmem:[#allocation104_spill] sm:$0xff] %v5577_v29  ;;  %v4409_v56 = vpop.eup %4408  ;;  %v946_v47 = vmul.f32 0.5, %v5544_v20  ;;  %v1331_v42 = vadd.f32 1.0, %v4407_v44  ;;  %v948_v32 = vmul.f32 0.5, %v5550_v58  ;;  %v1723_v7 = vpop.f32.mrb[128].mxu0  ;;  %2012 = vmatmul.mubr.bf16.gmra.mrb[108].mxu1 %v1523_v23  ;;  %v2437_v52 = vmul.f32 %v5577_v29, %v5577_v29 }
 0x261   : > { %v1332_v31 = vadd.f32 1.0, %v4409_v56  ;;  %v5592_v51 = vadd.f32 %v1723_v7, %v5017_v6  ;;  %2183 = vadd.xlane.f32.xlu0 %v2182_v43  ;;  %v1725_v2 = vpop.f32.mrb[129].mxu0  ;;  %v2185_v34 = vadd.f32 %v5582_v48, %v5577_v29  ;;  %v1457_v16 = vmul.f32 %v1329_v1, %v945_v39 }
 0x262   : > { %v1459_v20 = vmul.f32 %v1331_v42, %v947_v57  ;;  %v5599_v44 = vadd.f32 %v1725_v2, %v5020_v8  ;;  %v1727_v58 = vpop.f32.mrb[130].mxu0  ;;  %v2438_v23 = vmul.f32 %v5582_v48, %v5582_v48  ;;  %v1458_v56 = vmul.f32 %v1330_v35, %v946_v47 }
 0x263   : > { %v1460_v6 = vmul.f32 %v1332_v31, %v948_v32  ;;  %v5604_v43 = vadd.f32 %v1727_v58, %v5023_v11  ;;  %2186 = vadd.xlane.f32.xlu1 %v2185_v34  ;;  %v1729_v7 = vpop.f32.mrb[131].mxu0  ;;  %v1753_v15 = vpop.f32.mrb[4].mxu1  ;;  %v2567_v60 = vadd.f32 %v2436_v14, %v2435_v37  ;;  %v951_v34 = vmul.f32 0.5, %v5563_v45 }
 0x264   : > { %v5607_v29 = vadd.f32 %v1729_v7, %v5026_v13  ;;  %v5610_v39 = vadd.f32 %v1753_v15, %v5080_v3  ;;  %v1755_v8 = vpop.f32.mrb[5].mxu1  ;;  %v1525_v1 = vpack.c.bf16 %v1459_v20, %v1457_v16  ;;  %v2570_v11 = vadd.f32 %v2438_v23, %v2437_v52 }
 0x265   : > { %v4411_v57 = vpop.eup %4410  ;;  %v5613_v42 = vadd.f32 %v1755_v8, %v5085_v12  ;;  %2568 = vadd.xlane.f32.xlu0 %v2567_v60  ;;  %v1757_v35 = vpop.f32.mrb[6].mxu1  ;;  %v1526_v58 = vpack.c.bf16 %v1460_v6, %v1458_v56  ;;  %v2429_v47 = vmul.f32 %v5604_v43, %v5604_v43  ;;  %v949_v12 = vmul.f32 0.5, %v5555_v40 }
 0x266   : > { %v4413_v37 = vpop.eup %4412  ;;  %v1333_v14 = vadd.f32 1.0, %v4411_v57  ;;  %v5618_v13 = vadd.f32 %v1757_v35, %v5092_v18  ;;  %v1759_v3 = vpop.f32.mrb[7].mxu1  ;;  %v2430_v20 = vmul.f32 %v5607_v29, %v5607_v29  ;;  %v2170_v31 = vadd.f32 %v5599_v44, %v5592_v51 }
 0x267   : > { %v4415_v15 = vpop.eup %4414  ;;  %v1334_v32 = vadd.f32 1.0, %v4413_v37  ;;  %v5624_v60 = vadd.f32 %v1759_v3, %v5099_v25  ;;  %2571 = vadd.xlane.f32.xlu1 %v2570_v11  ;;  %2021 = vmatprep.mubr.bf16.mxu1 %v1526_v58  ;;  %v950_v18 = vmul.f32 0.5, %v5560_v26  ;;  %v952_v56 = vmul.f32 0.5, %v5566_v0 }
 0x268   : > { %v4417_v2 = vpop.eup %4416  ;;  %v1335_v52 = vadd.f32 1.0, %v4415_v15  ;;  %v1733_v16 = vpop.f32.mrb[132].mxu0  ;;  %2022 = vmatmul.mubr.bf16.gmra.mrb[112].mxu1 %v1525_v1  ;;  %v2558_v23 = vadd.f32 %v2430_v20, %v2429_v47  ;;  %v2427_v8 = vmul.f32 %v5592_v51, %v5592_v51  ;;  %v1461_v57 = vmul.f32 %v1333_v14, %v949_v12 }
 0x269   : > { %v1336_v6 = vadd.f32 1.0, %v4417_v2  ;;  %v5632_v25 = vadd.f32 %v1733_v16, %v5032_v17  ;;  %2171 = vadd.xlane.f32.xlu0 %v2170_v31  ;;  %v1735_v7 = vpop.f32.mrb[133].mxu0  ;;  %v2173_v1 = vadd.f32 %v5607_v29, %v5604_v43  ;;  %v1462_v47 = vmul.f32 %v1334_v32, %v950_v18 }
 0x26a   : > { %v1463_v35 = vmul.f32 %v1335_v52, %v951_v34  ;;  %v5637_v11 = vadd.f32 %v1735_v7, %v5035_v19  ;;  %v1737_v58 = vpop.f32.mrb[134].mxu0  ;;  %v2428_v15 = vmul.f32 %v5599_v44, %v5599_v44  ;;  %v2441_v32 = vmul.f32 %v5618_v13, %v5618_v13 }
 0x26b   : > { %v1464_v37 = vmul.f32 %v1336_v6, %v952_v56  ;;  %v5642_v3 = vadd.f32 %v1737_v58, %v5038_v22  ;;  %v1763_v17 = vpop.f32.mrb[8].mxu1  ;;  %2559 = vadd.xlane.f32.xlu1 %v2558_v23  ;;  %v1739_v20 = vpop.f32.mrb[135].mxu0  ;;  %v2191_v18 = vadd.f32 %v5624_v60, %v5618_v13  ;;  %v2188_v6 = vadd.f32 %v5613_v42, %v5610_v39 }
 0x26c   : > { %v5647_v14 = vadd.f32 %v1763_v17, %v5111_v41  ;;  %v5650_v19 = vadd.f32 %v1739_v20, %v5041_v24  ;;  %v1765_v12 = vpop.f32.mrb[9].mxu1  ;;  %v1527_v31 = vpack.c.bf16 %v1463_v35, %v1461_v57  ;;  %v2442_v41 = vmul.f32 %v5624_v60, %v5624_v60 }
 0x26d   : > { %v5655_v22 = vadd.f32 %v1765_v12, %v5116_v54  ;;  %v1767_v2 = vpop.f32.mrb[10].mxu1  ;;  %2174 = vadd.xlane.f32.xlu0 %v2173_v1  ;;  %v1528_v34 = vpack.c.bf16 %v1464_v37, %v1462_v47  ;;  %v2555_v54 = vadd.f32 %v2428_v15, %v2427_v8  ;;  %v2439_v7 = vmul.f32 %v5610_v39, %v5610_v39 }
 0x26e   : > { %v5662_v24 = vadd.f32 %v1767_v2, %v5119_v59  ;;  %v1769_v52 = vpop.f32.mrb[11].mxu1  ;;  %v2576_v23 = vadd.f32 %v2442_v41, %v2441_v32  ;;  %v2440_v59 = vmul.f32 %v5613_v42, %v5613_v42  ;;  %v2176_v58 = vadd.f32 %v5637_v11, %v5632_v25 }
 0x26f   : > { %v5665_v16 = vadd.f32 %v1769_v52, %v5122_v61  ;;  %2192 = vadd.xlane.f32.xlu1 %v2191_v18  ;;  %2031 = vmatprep.mubr.bf16.mxu1 %v1528_v34  ;;  %v2179_v20 = vadd.f32 %v5650_v19, %v5642_v3  ;;  %v2434_v15 = vmul.f32 %v5650_v19, %v5650_v19 }
 0x270   : > { %2032 = vmatmul.mubr.bf16.gmra.mrb[116].mxu1 %v1527_v31  ;;  %v2573_v17 = vadd.f32 %v2440_v59, %v2439_v7 }
 0x271   : > { %2556 = vadd.xlane.f32.xlu0 %v2555_v54 }
 0x273   : > { %v1773_v56 = vpop.f32.mrb[12].mxu1  ;;  %2577 = vadd.xlane.f32.xlu1 %v2576_v23  ;;  %v2194_v23 = vadd.f32 %v5655_v22, %v5647_v14 }
 0x274   : > { %v5674_v61 = vadd.f32 %v1773_v56, %v5130_v30  ;;  %v1775_v57 = vpop.f32.mrb[13].mxu1  ;;  %v2431_v30 = vmul.f32 %v5632_v25, %v5632_v25  ;;  %v2197_v56 = vadd.f32 %v5665_v16, %v5662_v24 }
 0x275   : > { %v5677_v8 = vadd.f32 %v1775_v57, %v5135_v49  ;;  %v1777_v35 = vpop.f32.mrb[14].mxu1  ;;  %2189 = vadd.xlane.f32.xlu0 %v2188_v6  ;;  %v2432_v49 = vmul.f32 %v5637_v11, %v5637_v11 }
 0x276   : > { %v5682_v1 = vadd.f32 %v1777_v35, %v5138_v38  ;;  %v1779_v47 = vpop.f32.mrb[15].mxu1  ;;  %v2433_v38 = vmul.f32 %v5642_v3, %v5642_v3 }
 0x277   : > { %v5685_v37 = vadd.f32 %v1779_v47, %v5141_v46  ;;  %2177 = vadd.xlane.f32.xlu1 %v2176_v58  ;;  %v2561_v12 = vadd.f32 %v2432_v49, %v2431_v30 }
 0x278   : > { %v2564_v34 = vadd.f32 %v2434_v15, %v2433_v38 }
 0x279   : > { %8004 = vst [vmem:[#allocation105_spill] sm:$0xff] %v5685_v37  ;;  %2574 = vadd.xlane.f32.xlu0 %v2573_v17  ;;  %v2203_v38 = vadd.f32 %v5685_v37, %v5682_v1 }
 0x27b   : > { %v1783_v46 = vpop.f32.mrb[16].mxu1  ;;  %2180 = vadd.xlane.f32.xlu1 %v2179_v20  ;;  %v2200_v20 = vadd.f32 %v5677_v8, %v5674_v61 }
 0x27c   : > { %v5698_v31 = vadd.f32 %v1783_v46, %v5152_v5  ;;  %v1785_v32 = vpop.f32.mrb[17].mxu1  ;;  %v2443_v5 = vmul.f32 %v5647_v14, %v5647_v14 }
 0x27d   : > { %v5701_v2 = vadd.f32 %v1785_v32, %v5157_v21  ;;  %v1787_v18 = vpop.f32.mrb[18].mxu1  ;;  %2562 = vadd.xlane.f32.xlu0 %v2561_v12  ;;  %v2444_v21 = vmul.f32 %v5655_v22, %v5655_v22 }
 0x27e   : > { %8005 = vst [vmem:[#allocation106_spill] sm:$0xff] %v5698_v31  ;;  %v5704_v41 = vadd.f32 %v1787_v18, %v5160_v10  ;;  %v1789_v52 = vpop.f32.mrb[19].mxu1  ;;  %v2445_v10 = vmul.f32 %v5662_v24, %v5662_v24 }
 0x27f   : > { %8006 = vst [vmem:[#allocation107_spill] sm:$0xff] %v5701_v2  ;;  %v5707_v54 = vadd.f32 %v1789_v52, %v5163_v28  ;;  %2565 = vadd.xlane.f32.xlu1 %v2564_v34  ;;  %v2446_v28 = vmul.f32 %v5665_v16, %v5665_v16  ;;  %v2579_v7 = vadd.f32 %v2444_v21, %v2443_v5 }
 0x280   : > { %8007 = vst [vmem:[#allocation108_spill] sm:$0xff] %v5704_v41 }
 0x281   : > { %8008 = vst [vmem:[#allocation109_spill] sm:$0xff] %v5707_v54  ;;  %2195 = vadd.xlane.f32.xlu0 %v2194_v23  ;;  %v2582_v47 = vadd.f32 %v2446_v28, %v2445_v10  ;;  %v2209_v10 = vadd.f32 %v5707_v54, %v5704_v41 }
 0x283   : > { %v1793_v6 = vpop.f32.mrb[20].mxu1  ;;  %2198 = vadd.xlane.f32.xlu1 %v2197_v56  ;;  %v2206_v56 = vadd.f32 %v5701_v2, %v5698_v31 }
 0x284   : > { %v5722_v59 = vadd.f32 %v1793_v6, %v5171_v53  ;;  %v1795_v57 = vpop.f32.mrb[21].mxu1  ;;  %v2447_v53 = vmul.f32 %v5674_v61, %v5674_v61 }
 0x285   : > { %v5725_v35 = vadd.f32 %v1795_v57, %v5176_v55  ;;  %v1797_v58 = vpop.f32.mrb[22].mxu1  ;;  %2580 = vadd.xlane.f32.xlu0 %v2579_v7  ;;  %v2448_v55 = vmul.f32 %v5677_v8, %v5677_v8 }
 0x286   : > { %8009 = vst [vmem:[#allocation110_spill] sm:$0xff] %v5722_v59  ;;  %v5728_v17 = vadd.f32 %v1797_v58, %v5179_v62  ;;  %v1799_v30 = vpop.f32.mrb[23].mxu1  ;;  %v2449_v62 = vmul.f32 %v5682_v1, %v5682_v1  ;;  %v8018_v58 = vld [vmem:[#allocation12_spill] sm:$0xff] }
 0x287   : > { %8010 = vst [vmem:[#allocation111_spill] sm:$0xff] %v5725_v35  ;;  %v5731_v49 = vadd.f32 %v1799_v30, %v5182_v4  ;;  %2583 = vadd.xlane.f32.xlu1 %v2582_v47  ;;  %v2450_v4 = vmul.f32 %v5685_v37, %v5685_v37  ;;  %v2585_v46 = vadd.f32 %v2448_v55, %v2447_v53  ;;  %v8020_v53 = vld [vmem:[#allocation13_spill] sm:$0xff] }
 0x288   : > { %8011 = vst [vmem:[#allocation112_spill] sm:$0xff] %v5728_v17 }
 0x289   : > { %8012 = vst [vmem:[#allocation113_spill] sm:$0xff] %v5731_v49  ;;  %2201 = vadd.xlane.f32.xlu0 %v2200_v20  ;;  %v2588_v52 = vadd.f32 %v2450_v4, %v2449_v62  ;;  %v8022_v62 = vld [vmem:[#allocation14_spill] sm:$0xff] }
 0x28b   : > { %v1803_v15 = vpop.f32.mrb[24].mxu1  ;;  %2204 = vadd.xlane.f32.xlu1 %v2203_v38 }
 0x28c   : > { %v5746_v12 = vadd.f32 %v1803_v15, %v5187_v33  ;;  %v1805_v32 = vpop.f32.mrb[25].mxu1  ;;  %v2451_v33 = vmul.f32 %v5698_v31, %v5698_v31  ;;  %v2212_v15 = vadd.f32 %v5725_v35, %v5722_v59 }
 0x28d   : > { %v5749_v18 = vadd.f32 %v1805_v32, %v5192_v36  ;;  %v1807_v34 = vpop.f32.mrb[26].mxu1  ;;  %2586 = vadd.xlane.f32.xlu0 %v2585_v46  ;;  %v2452_v36 = vmul.f32 %v5701_v2, %v5701_v2  ;;  %v2456_v46 = vmul.f32 %v5725_v35, %v5725_v35  ;;  %v2215_v32 = vadd.f32 %v5731_v49, %v5728_v17 }
 0x28e   : > { %8013 = vst [vmem:[#allocation114_spill] sm:$0xff] %v5746_v12  ;;  %v5752_v23 = vadd.f32 %v1807_v34, %v5195_v50  ;;  %v1809_v5 = vpop.f32.mrb[27].mxu1  ;;  %v2453_v50 = vmul.f32 %v5704_v41, %v5704_v41  ;;  %v2457_v34 = vmul.f32 %v5728_v17, %v5728_v17 }
 0x28f   : > { %8014 = vst [vmem:[#allocation115_spill] sm:$0xff] %v5749_v18  ;;  %v5755_v21 = vadd.f32 %v1809_v5, %v5198_v27  ;;  %2589 = vadd.xlane.f32.xlu1 %v2588_v52  ;;  %v2454_v27 = vmul.f32 %v5707_v54, %v5707_v54  ;;  %v2591_v6 = vadd.f32 %v2452_v36, %v2451_v33  ;;  %v8024_v33 = vld [vmem:[#allocation15_spill] sm:$0xff]  ;;  %v8118_v54 = vld [vmem:[#allocation62_spill] sm:$0xff] }
 0x290   : > { %8015 = vst [vmem:[#allocation116_spill] sm:$0xff] %v5752_v23  ;;  %v2458_v52 = vmul.f32 %v5731_v49, %v5731_v49  ;;  %v8112_v49 = vld [vmem:[#allocation59_spill] sm:$0xff] }
 0x291   : > { %8016 = vst [vmem:[#allocation117_spill] sm:$0xff] %v5755_v21  ;;  %2207 = vadd.xlane.f32.xlu0 %v2206_v56  ;;  %v2594_v20 = vadd.f32 %v2454_v27, %v2453_v50  ;;  %v8026_v50 = vld [vmem:[#allocation16_spill] sm:$0xff] }
 0x293   : > { %v1813_v28 = vpop.f32.mrb[28].mxu1  ;;  %2210 = vadd.xlane.f32.xlu1 %v2209_v10 }
 0x294   : > { %v5770_v7 = vadd.f32 %v1813_v28, %v5203_v9  ;;  %v1815_v57 = vpop.f32.mrb[29].mxu1  ;;  %v2455_v9 = vmul.f32 %v5722_v59, %v5722_v59 }
 0x295   : > { %v5773_v47 = vadd.f32 %v1815_v57, %v8018_v58  ;;  %v1817_v30 = vpop.f32.mrb[30].mxu1  ;;  %2592 = vadd.xlane.f32.xlu0 %v2591_v6  ;;  %v2600_v6 = vadd.f32 %v2458_v52, %v2457_v34  ;;  %v8028_v57 = vld [vmem:[#allocation17_spill] sm:$0xff] }
 0x296   : > { %8017 = vst [vmem:[#allocation118_spill] sm:$0xff] %v5770_v7  ;;  %v5776_v55 = vadd.f32 %v1817_v30, %v8020_v53  ;;  %v1819_v38 = vpop.f32.mrb[31].mxu1  ;;  %v2597_v56 = vadd.f32 %v2456_v46, %v2455_v9  ;;  %v2221_v9 = vadd.f32 %v5755_v21, %v5752_v23  ;;  %v2461_v46 = vmul.f32 %v5752_v23, %v5752_v23 }
 0x297   : > { %8019 = vst [vmem:[#allocation12_spill] sm:$0xff] %v5773_v47  ;;  %v5779_v4 = vadd.f32 %v1819_v38, %v8022_v62  ;;  %2595 = vadd.xlane.f32.xlu1 %v2594_v20  ;;  %v8030_v20 = vld [vmem:[#allocation18_spill] sm:$0xff]  ;;  %v2218_v38 = vadd.f32 %v5749_v18, %v5746_v12  ;;  %v2459_v62 = vmul.f32 %v5746_v12, %v5746_v12 }
 0x298   : > { %8021 = vst [vmem:[#allocation13_spill] sm:$0xff] %v5776_v55 }
 0x299   : > { %8023 = vst [vmem:[#allocation14_spill] sm:$0xff] %v5779_v4  ;;  %2213 = vadd.xlane.f32.xlu0 %v2212_v15  ;;  %v2460_v15 = vmul.f32 %v5749_v18, %v5749_v18 }
 0x29b   : > { %v1823_v5 = vpop.f32.mrb[32].mxu1  ;;  %2216 = vadd.xlane.f32.xlu1 %v2215_v32  ;;  %v2462_v32 = vmul.f32 %v5755_v21, %v5755_v21  ;;  %v2603_v52 = vadd.f32 %v2460_v15, %v2459_v62  ;;  %v2224_v62 = vadd.f32 %v5773_v47, %v5770_v7  ;;  %v2463_v15 = vmul.f32 %v5770_v7, %v5770_v7  ;;  %v8108_v21 = vld [vmem:[#allocation57_spill] sm:$0xff] }
 0x29c   : > { %v5794_v36 = vadd.f32 %v1823_v5, %v8024_v33  ;;  %v1825_v10 = vpop.f32.mrb[33].mxu1  ;;  %v8032_v5 = vld [vmem:[#allocation19_spill] sm:$0xff] }
 0x29d   : > { %v5797_v27 = vadd.f32 %v1825_v10, %v8026_v50  ;;  %v1827_v28 = vpop.f32.mrb[34].mxu1  ;;  %2598 = vadd.xlane.f32.xlu0 %v2597_v56  ;;  %v8034_v10 = vld [vmem:[#allocation20_spill] sm:$0xff] }
 0x29e   : > { %8025 = vst [vmem:[#allocation15_spill] sm:$0xff] %v5794_v36  ;;  %v5800_v58 = vadd.f32 %v1827_v28, %v8028_v57  ;;  %v1829_v30 = vpop.f32.mrb[35].mxu1  ;;  %v8036_v57 = vld [vmem:[#allocation21_spill] sm:$0xff] }
 0x29f   : > { %8027 = vst [vmem:[#allocation16_spill] sm:$0xff] %v5797_v27  ;;  %v5803_v53 = vadd.f32 %v1829_v30, %v8030_v20  ;;  %2601 = vadd.xlane.f32.xlu1 %v2600_v6  ;;  %v2606_v6 = vadd.f32 %v2462_v32, %v2461_v46  ;;  %v2227_v46 = vadd.f32 %v5779_v4, %v5776_v55 }
 0x2a0   : > { %8029 = vst [vmem:[#allocation17_spill] sm:$0xff] %v5800_v58  ;;  %v2465_v32 = vmul.f32 %v5776_v55, %v5776_v55  ;;  %v8046_v55 = vld [vmem:[#allocation26_spill] sm:$0xff] }
 0x2a1   : > { %8031 = vst [vmem:[#allocation18_spill] sm:$0xff] %v5803_v53  ;;  %2219 = vadd.xlane.f32.xlu0 %v2218_v38  ;;  %v8038_v38 = vld [vmem:[#allocation22_spill] sm:$0xff] }
 0x2a3   : > { %v1833_v34 = vpop.f32.mrb[36].mxu1  ;;  %2222 = vadd.xlane.f32.xlu1 %v2221_v9  ;;  %v2464_v9 = vmul.f32 %v5773_v47, %v5773_v47  ;;  %v8102_v47 = vld [vmem:[#allocation54_spill] sm:$0xff] }
 0x2a4   : > { %v5818_v56 = vadd.f32 %v1833_v34, %v8032_v5  ;;  %v1835_v33 = vpop.f32.mrb[37].mxu1  ;;  %v2466_v34 = vmul.f32 %v5779_v4, %v5779_v4 }
 0x2a5   : > { %v5821_v50 = vadd.f32 %v1835_v33, %v8034_v10  ;;  %v1837_v28 = vpop.f32.mrb[38].mxu1  ;;  %2604 = vadd.xlane.f32.xlu0 %v2603_v52  ;;  %v2609_v5 = vadd.f32 %v2464_v9, %v2463_v15  ;;  %v8040_v33 = vld [vmem:[#allocation23_spill] sm:$0xff]  ;;  %v2230_v15 = vadd.f32 %v5797_v27, %v5794_v36  ;;  %v2467_v9 = vmul.f32 %v5794_v36, %v5794_v36  ;;  %v8054_v36 = vld [vmem:[#allocation30_spill] sm:$0xff] }
 0x2a6   : > { %8033 = vst [vmem:[#allocation19_spill] sm:$0xff] %v5818_v56  ;;  %v5824_v30 = vadd.f32 %v1837_v28, %v8036_v57  ;;  %v1839_v20 = vpop.f32.mrb[39].mxu1 }
 0x2a7   : > { %8035 = vst [vmem:[#allocation20_spill] sm:$0xff] %v5821_v50  ;;  %v5827_v0 = vadd.f32 %v1839_v20, %v8038_v38  ;;  %2607 = vadd.xlane.f32.xlu1 %v2606_v6  ;;  %v8042_v6 = vld [vmem:[#allocation24_spill] sm:$0xff]  ;;  %v2612_v38 = vadd.f32 %v2466_v34, %v2465_v32  ;;  %v2233_v32 = vadd.f32 %v5803_v53, %v5800_v58 }
 0x2a8   : > { %8037 = vst [vmem:[#allocation21_spill] sm:$0xff] %v5824_v30  ;;  %v2469_v34 = vmul.f32 %v5800_v58, %v5800_v58 }
 0x2a9   : > { %8039 = vst [vmem:[#allocation22_spill] sm:$0xff] %v5827_v0  ;;  %2225 = vadd.xlane.f32.xlu0 %v2224_v62  ;;  %v8044_v62 = vld [vmem:[#allocation25_spill] sm:$0xff] }
 0x2ab   : > { %v1843_v52 = vpop.f32.mrb[40].mxu1  ;;  %2228 = vadd.xlane.f32.xlu1 %v2227_v46  ;;  %v2468_v46 = vmul.f32 %v5797_v27, %v5797_v27 }
 0x2ac   : > { %v5842_v10 = vadd.f32 %v1843_v52, %v8040_v33  ;;  %v1845_v28 = vpop.f32.mrb[41].mxu1 }
 0x2ad   : > { %v5845_v57 = vadd.f32 %v1845_v28, %v8042_v6  ;;  %v1847_v20 = vpop.f32.mrb[42].mxu1  ;;  %2610 = vadd.xlane.f32.xlu0 %v2609_v5  ;;  %v2615_v52 = vadd.f32 %v2468_v46, %v2467_v9  ;;  %v8048_v5 = vld [vmem:[#allocation27_spill] sm:$0xff]  ;;  %v8050_v6 = vld [vmem:[#allocation28_spill] sm:$0xff]  ;;  %v2236_v9 = vadd.f32 %v5821_v50, %v5818_v56  ;;  %v2471_v46 = vmul.f32 %v5818_v56, %v5818_v56  ;;  %v8062_v56 = vld [vmem:[#allocation34_spill] sm:$0xff] }
 0x2ae   : > { %8041 = vst [vmem:[#allocation23_spill] sm:$0xff] %v5842_v10  ;;  %v5848_v45 = vadd.f32 %v1847_v20, %v8044_v62  ;;  %v1849_v26 = vpop.f32.mrb[43].mxu1 }
 0x2af   : > { %8043 = vst [vmem:[#allocation24_spill] sm:$0xff] %v5845_v57  ;;  %v5851_v40 = vadd.f32 %v1849_v26, %v8046_v55  ;;  %2613 = vadd.xlane.f32.xlu1 %v2612_v38  ;;  %v2470_v26 = vmul.f32 %v5803_v53, %v5803_v53 }
 0x2b0   : > { %8045 = vst [vmem:[#allocation25_spill] sm:$0xff] %v5848_v45 }
 0x2b1   : > { %8047 = vst [vmem:[#allocation26_spill] sm:$0xff] %v5851_v40  ;;  %2231 = vadd.xlane.f32.xlu0 %v2230_v15  ;;  %v2618_v62 = vadd.f32 %v2470_v26, %v2469_v34  ;;  %v8052_v15 = vld [vmem:[#allocation29_spill] sm:$0xff]  ;;  %v2239_v34 = vadd.f32 %v5827_v0, %v5824_v30  ;;  %v2473_v26 = vmul.f32 %v5824_v30, %v5824_v30 }
 0x2b3   : > { %v1853_v55 = vpop.f32.mrb[44].mxu1  ;;  %2234 = vadd.xlane.f32.xlu1 %v2233_v32  ;;  %v2472_v32 = vmul.f32 %v5821_v50, %v5821_v50 }
 0x2b4   : > { %v5866_v33 = vadd.f32 %v1853_v55, %v8048_v5  ;;  %v1855_v28 = vpop.f32.mrb[45].mxu1 }
 0x2b5   : > { %v5869_v20 = vadd.f32 %v1855_v28, %v8050_v6  ;;  %v1857_v38 = vpop.f32.mrb[46].mxu1  ;;  %2616 = vadd.xlane.f32.xlu0 %v2615_v52  ;;  %v2621_v55 = vadd.f32 %v2472_v32, %v2471_v46  ;;  %v8056_v52 = vld [vmem:[#allocation31_spill] sm:$0xff]  ;;  %v8058_v6 = vld [vmem:[#allocation32_spill] sm:$0xff]  ;;  %v2242_v46 = vadd.f32 %v5845_v57, %v5842_v10  ;;  %v2475_v32 = vmul.f32 %v5842_v10, %v5842_v10  ;;  %v8070_v10 = vld [vmem:[#allocation38_spill] sm:$0xff] }
 0x2b6   : > { %8049 = vst [vmem:[#allocation27_spill] sm:$0xff] %v5866_v33  ;;  %v5872_v27 = vadd.f32 %v1857_v38, %v8052_v15  ;;  %v1859_v58 = vpop.f32.mrb[47].mxu1 }
 0x2b7   : > { %8051 = vst [vmem:[#allocation28_spill] sm:$0xff] %v5869_v20  ;;  %v5875_v4 = vadd.f32 %v1859_v58, %v8054_v36  ;;  %2619 = vadd.xlane.f32.xlu1 %v2618_v62  ;;  %v2474_v36 = vmul.f32 %v5827_v0, %v5827_v0 }
 0x2b8   : > { %8053 = vst [vmem:[#allocation29_spill] sm:$0xff] %v5872_v27 }
 0x2b9   : > { %8055 = vst [vmem:[#allocation30_spill] sm:$0xff] %v5875_v4  ;;  %2237 = vadd.xlane.f32.xlu0 %v2236_v9  ;;  %v2624_v15 = vadd.f32 %v2474_v36, %v2473_v26  ;;  %v8060_v9 = vld [vmem:[#allocation33_spill] sm:$0xff]  ;;  %v2245_v26 = vadd.f32 %v5851_v40, %v5848_v45  ;;  %v2477_v36 = vmul.f32 %v5848_v45, %v5848_v45 }
 0x2bb   : > { %v1863_v58 = vpop.f32.mrb[48].mxu1  ;;  %2240 = vadd.xlane.f32.xlu1 %v2239_v34  ;;  %v2476_v34 = vmul.f32 %v5845_v57, %v5845_v57 }
 0x2bc   : > { %v5890_v5 = vadd.f32 %v1863_v58, %v8056_v52  ;;  %v1865_v28 = vpop.f32.mrb[49].mxu1 }
 0x2bd   : > { %v5893_v38 = vadd.f32 %v1865_v28, %v8058_v6  ;;  %v1867_v62 = vpop.f32.mrb[50].mxu1  ;;  %2622 = vadd.xlane.f32.xlu0 %v2621_v55  ;;  %v2627_v58 = vadd.f32 %v2476_v34, %v2475_v32  ;;  %v8064_v55 = vld [vmem:[#allocation35_spill] sm:$0xff]  ;;  %v8066_v6 = vld [vmem:[#allocation36_spill] sm:$0xff]  ;;  %v2248_v32 = vadd.f32 %v5869_v20, %v5866_v33  ;;  %v2479_v34 = vmul.f32 %v5866_v33, %v5866_v33  ;;  %v8078_v33 = vld [vmem:[#allocation42_spill] sm:$0xff] }
 0x2be   : > { %8057 = vst [vmem:[#allocation31_spill] sm:$0xff] %v5890_v5  ;;  %v5896_v50 = vadd.f32 %v1867_v62, %v8060_v9  ;;  %v1869_v30 = vpop.f32.mrb[51].mxu1 }
 0x2bf   : > { %8059 = vst [vmem:[#allocation32_spill] sm:$0xff] %v5893_v38  ;;  %v5899_v53 = vadd.f32 %v1869_v30, %v8062_v56  ;;  %2625 = vadd.xlane.f32.xlu1 %v2624_v15  ;;  %v2478_v56 = vmul.f32 %v5851_v40, %v5851_v40 }
 0x2c0   : > { %8061 = vst [vmem:[#allocation33_spill] sm:$0xff] %v5896_v50 }
 0x2c1   : > { %8063 = vst [vmem:[#allocation34_spill] sm:$0xff] %v5899_v53  ;;  %2243 = vadd.xlane.f32.xlu0 %v2242_v46  ;;  %v2630_v9 = vadd.f32 %v2478_v56, %v2477_v36  ;;  %v8068_v46 = vld [vmem:[#allocation37_spill] sm:$0xff]  ;;  %v2251_v36 = vadd.f32 %v5875_v4, %v5872_v27  ;;  %v2481_v56 = vmul.f32 %v5872_v27, %v5872_v27 }
 0x2c3   : > { %v1873_v30 = vpop.f32.mrb[52].mxu1  ;;  %2246 = vadd.xlane.f32.xlu1 %v2245_v26  ;;  %v2480_v26 = vmul.f32 %v5869_v20, %v5869_v20 }
 0x2c4   : > { %v5914_v52 = vadd.f32 %v1873_v30, %v8064_v55  ;;  %v1875_v28 = vpop.f32.mrb[53].mxu1 }
 0x2c5   : > { %v5917_v62 = vadd.f32 %v1875_v28, %v8066_v6  ;;  %v1877_v15 = vpop.f32.mrb[54].mxu1  ;;  %2628 = vadd.xlane.f32.xlu0 %v2627_v58  ;;  %v2633_v30 = vadd.f32 %v2480_v26, %v2479_v34  ;;  %v8072_v58 = vld [vmem:[#allocation39_spill] sm:$0xff]  ;;  %v8074_v6 = vld [vmem:[#allocation40_spill] sm:$0xff]  ;;  %v2254_v34 = vadd.f32 %v5893_v38, %v5890_v5  ;;  %v2483_v26 = vmul.f32 %v5890_v5, %v5890_v5  ;;  %v8086_v5 = vld [vmem:[#allocation46_spill] sm:$0xff] }
 0x2c6   : > { %8065 = vst [vmem:[#allocation35_spill] sm:$0xff] %v5914_v52  ;;  %v5920_v57 = vadd.f32 %v1877_v15, %v8068_v46  ;;  %v1879_v45 = vpop.f32.mrb[55].mxu1 }
 0x2c7   : > { %8067 = vst [vmem:[#allocation36_spill] sm:$0xff] %v5917_v62  ;;  %v5923_v0 = vadd.f32 %v1879_v45, %v8070_v10  ;;  %2631 = vadd.xlane.f32.xlu1 %v2630_v9  ;;  %v2482_v45 = vmul.f32 %v5875_v4, %v5875_v4 }
 0x2c8   : > { %8069 = vst [vmem:[#allocation37_spill] sm:$0xff] %v5920_v57 }
 0x2c9   : > { %8071 = vst [vmem:[#allocation38_spill] sm:$0xff] %v5923_v0  ;;  %2249 = vadd.xlane.f32.xlu0 %v2248_v32  ;;  %v2636_v46 = vadd.f32 %v2482_v45, %v2481_v56  ;;  %v8076_v32 = vld [vmem:[#allocation41_spill] sm:$0xff]  ;;  %v2257_v56 = vadd.f32 %v5899_v53, %v5896_v50  ;;  %v2485_v45 = vmul.f32 %v5896_v50, %v5896_v50 }
 0x2cb   : > { %v1883_v10 = vpop.f32.mrb[56].mxu1  ;;  %2252 = vadd.xlane.f32.xlu1 %v2251_v36  ;;  %v2484_v36 = vmul.f32 %v5893_v38, %v5893_v38 }
 0x2cc   : > { %v5938_v55 = vadd.f32 %v1883_v10, %v8072_v58  ;;  %v1885_v28 = vpop.f32.mrb[57].mxu1 }
 0x2cd   : > { %v5941_v15 = vadd.f32 %v1885_v28, %v8074_v6  ;;  %v1887_v9 = vpop.f32.mrb[58].mxu1  ;;  %2634 = vadd.xlane.f32.xlu0 %v2633_v30  ;;  %v2639_v10 = vadd.f32 %v2484_v36, %v2483_v26  ;;  %v8080_v30 = vld [vmem:[#allocation43_spill] sm:$0xff]  ;;  %v8082_v6 = vld [vmem:[#allocation44_spill] sm:$0xff]  ;;  %v2260_v26 = vadd.f32 %v5917_v62, %v5914_v52  ;;  %v2487_v36 = vmul.f32 %v5914_v52, %v5914_v52  ;;  %v8094_v52 = vld [vmem:[#allocation50_spill] sm:$0xff] }
 0x2ce   : > { %8073 = vst [vmem:[#allocation39_spill] sm:$0xff] %v5938_v55  ;;  %v5944_v20 = vadd.f32 %v1887_v9, %v8076_v32  ;;  %v1889_v27 = vpop.f32.mrb[59].mxu1 }
 0x2cf   : > { %8075 = vst [vmem:[#allocation40_spill] sm:$0xff] %v5941_v15  ;;  %v5947_v40 = vadd.f32 %v1889_v27, %v8078_v33  ;;  %2637 = vadd.xlane.f32.xlu1 %v2636_v46  ;;  %v2486_v27 = vmul.f32 %v5899_v53, %v5899_v53 }
 0x2d0   : > { %8077 = vst [vmem:[#allocation41_spill] sm:$0xff] %v5944_v20 }
 0x2d1   : > { %8079 = vst [vmem:[#allocation42_spill] sm:$0xff] %v5947_v40  ;;  %2255 = vadd.xlane.f32.xlu0 %v2254_v34  ;;  %v2642_v32 = vadd.f32 %v2486_v27, %v2485_v45  ;;  %v8084_v34 = vld [vmem:[#allocation45_spill] sm:$0xff]  ;;  %v2263_v45 = vadd.f32 %v5923_v0, %v5920_v57  ;;  %v2489_v27 = vmul.f32 %v5920_v57, %v5920_v57 }
 0x2d3   : > { %v1893_v33 = vpop.f32.mrb[60].mxu1  ;;  %2258 = vadd.xlane.f32.xlu1 %v2257_v56  ;;  %v2488_v56 = vmul.f32 %v5917_v62, %v5917_v62 }
 0x2d4   : > { %v5962_v58 = vadd.f32 %v1893_v33, %v8080_v30  ;;  %v1895_v28 = vpop.f32.mrb[61].mxu1 }
 0x2d5   : > { %v5965_v9 = vadd.f32 %v1895_v28, %v8082_v6  ;;  %v1897_v46 = vpop.f32.mrb[62].mxu1  ;;  %2640 = vadd.xlane.f32.xlu0 %v2639_v10  ;;  %v2645_v33 = vadd.f32 %v2488_v56, %v2487_v36  ;;  %v8088_v10 = vld [vmem:[#allocation47_spill] sm:$0xff]  ;;  %v8090_v6 = vld [vmem:[#allocation48_spill] sm:$0xff]  ;;  %v2266_v36 = vadd.f32 %v5941_v15, %v5938_v55  ;;  %v2491_v56 = vmul.f32 %v5938_v55, %v5938_v55  ;;  %v8100_v55 = vld [vmem:[#allocation53_spill] sm:$0xff] }
 0x2d6   : > { %8081 = vst [vmem:[#allocation43_spill] sm:$0xff] %v5962_v58  ;;  %v5968_v38 = vadd.f32 %v1897_v46, %v8084_v34  ;;  %v1899_v50 = vpop.f32.mrb[63].mxu1 }
 0x2d7   : > { %8083 = vst [vmem:[#allocation44_spill] sm:$0xff] %v5965_v9  ;;  %v5971_v4 = vadd.f32 %v1899_v50, %v8086_v5  ;;  %2643 = vadd.xlane.f32.xlu1 %v2642_v32  ;;  %v2490_v50 = vmul.f32 %v5923_v0, %v5923_v0 }
 0x2d8   : > { %8085 = vst [vmem:[#allocation45_spill] sm:$0xff] %v5968_v38 }
 0x2d9   : > { %8087 = vst [vmem:[#allocation46_spill] sm:$0xff] %v5971_v4  ;;  %2261 = vadd.xlane.f32.xlu0 %v2260_v26  ;;  %v2648_v34 = vadd.f32 %v2490_v50, %v2489_v27  ;;  %v8092_v26 = vld [vmem:[#allocation49_spill] sm:$0xff]  ;;  %v2269_v27 = vadd.f32 %v5947_v40, %v5944_v20  ;;  %v2493_v50 = vmul.f32 %v5944_v20, %v5944_v20 }
 0x2db   : > { %v1903_v5 = vpop.f32.mrb[64].mxu1  ;;  %2264 = vadd.xlane.f32.xlu1 %v2263_v45  ;;  %v2492_v45 = vmul.f32 %v5941_v15, %v5941_v15 }
 0x2dc   : > { %v5986_v30 = vadd.f32 %v1903_v5, %v8088_v10  ;;  %v1905_v28 = vpop.f32.mrb[65].mxu1  ;;  %v3389_v5 = vlaneseq  ;;  %v8096_v10 = vld [vmem:[#allocation51_spill] sm:$0xff] }
 0x2dd   : > { %v5989_v46 = vadd.f32 %v1905_v28, %v8090_v6  ;;  %v1907_v32 = vpop.f32.mrb[66].mxu1  ;;  %2646 = vadd.xlane.f32.xlu0 %v2645_v33  ;;  %v2651_v33 = vadd.f32 %v2492_v45, %v2491_v56  ;;  %v2272_v56 = vadd.f32 %v5965_v9, %v5962_v58  ;;  %v2495_v45 = vmul.f32 %v5962_v58, %v5962_v58 }
 0x2de   : > { %8089 = vst [vmem:[#allocation47_spill] sm:$0xff] %v5986_v30  ;;  %v5992_v62 = vadd.f32 %v1907_v32, %v8092_v26  ;;  %v1909_v57 = vpop.f32.mrb[67].mxu1  ;;  %v3390_v32 = vshrl.u32 %v3389_v5, 7  ;;  %v2496_v5 = vmul.f32 %v5965_v9, %v5965_v9 }
 0x2df   : > { %8091 = vst [vmem:[#allocation48_spill] sm:$0xff] %v5989_v46  ;;  %v5995_v53 = vadd.f32 %v1909_v57, %v8094_v52  ;;  %2649 = vadd.xlane.f32.xlu1 %v2648_v34  ;;  %v2494_v57 = vmul.f32 %v5947_v40, %v5947_v40  ;;  %v8098_v34 = vld [vmem:[#allocation52_spill] sm:$0xff] }
 0x2e0   : > { %8093 = vst [vmem:[#allocation49_spill] sm:$0xff] %v5992_v62 }
 0x2e1   : > { %8095 = vst [vmem:[#allocation50_spill] sm:$0xff] %v5995_v53  ;;  %2267 = vadd.xlane.f32.xlu0 %v2266_v36  ;;  %v2654_v15 = vadd.f32 %v2494_v57, %v2493_v50  ;;  %v2497_v50 = vmul.f32 %v5968_v38, %v5968_v38 }
 0x2e3   : > { %v1913_v52 = vpop.f32.mrb[68].mxu1  ;;  %2270 = vadd.xlane.f32.xlu1 %v2269_v27  ;;  %v3391_v27 = vsub.s32 0, %v3390_v32 }
 0x2e4   : > { %v6010_v28 = vadd.f32 %v1913_v52, %v8096_v10  ;;  %v1915_v6 = vpop.f32.mrb[69].mxu1  ;;  %v2657_v52 = vadd.f32 %v2496_v5, %v2495_v45  ;;  %v2278_v45 = vadd.f32 %v5989_v46, %v5986_v30  ;;  %v2499_v5 = vmul.f32 %v5986_v30, %v5986_v30 }
 0x2e5   : > { %v6013_v26 = vadd.f32 %v1915_v6, %v8098_v34  ;;  %v1917_v36 = vpop.f32.mrb[70].mxu1  ;;  %2652 = vadd.xlane.f32.xlu0 %v2651_v33  ;;  %v8104_v33 = vld [vmem:[#allocation55_spill] sm:$0xff]  ;;  %v3537_v34 = vsub.s32 1, %v3390_v32 }
 0x2e6   : > { %8097 = vst [vmem:[#allocation51_spill] sm:$0xff] %v6010_v28  ;;  %v6016_v0 = vadd.f32 %v1917_v36, %v8100_v55  ;;  %v1919_v20 = vpop.f32.mrb[71].mxu1  ;;  %v2275_v55 = vadd.f32 %v5971_v4, %v5968_v38  ;;  %v3541_v36 = vsub.s32 3, %v3390_v32 }
 0x2e7   : > { %8099 = vst [vmem:[#allocation52_spill] sm:$0xff] %v6013_v26  ;;  %v6019_v40 = vadd.f32 %v1919_v20, %v8102_v47  ;;  %2655 = vadd.xlane.f32.xlu1 %v2654_v15  ;;  %v2498_v47 = vmul.f32 %v5971_v4, %v5971_v4  ;;  %v3395_v20 = vsub.s32 2, %v3390_v32  ;;  %v3131_v15 = vld [vmem:[%s7707_s3] sm:$0xf]  ;;  %v2500_v32 = vmul.f32 %v5989_v46, %v5989_v46 }
 0x2e8   : > { %8101 = vst [vmem:[#allocation53_spill] sm:$0xff] %v6016_v0  ;;  %v3392_v58 = vrot.slane %v3131_v15, %v3391_v27 }
 0x2e9   : > { %8103 = vst [vmem:[#allocation54_spill] sm:$0xff] %v6019_v40  ;;  %2273 = vadd.xlane.f32.xlu0 %v2272_v56  ;;  %v8106_v56 = vld [vmem:[#allocation56_spill] sm:$0xff]  ;;  %v2660_v4 = vadd.f32 %v2498_v47, %v2497_v50  ;;  %v3396_v7 = vrot.slane %v3131_v15, %v3395_v20 }
 0x2eb   : > { %v1923_v57 = vpop.f32.mrb[72].mxu1  ;;  %2276 = vadd.xlane.f32.xlu1 %v2275_v55 }
 0x2ec   : > { %v6037_v10 = vadd.f32 %v1923_v57, %v8104_v33  ;;  %v1925_v6 = vpop.f32.mrb[73].mxu1  ;;  %v3538_v33 = vrot.slane %v3131_v15, %v3537_v34 }
 0x2ed   : > { %v6040_v9 = vadd.f32 %v1925_v6, %v8106_v56  ;;  %v1927_v38 = vpop.f32.mrb[74].mxu1  ;;  %2658 = vadd.xlane.f32.xlu0 %v2657_v52  ;;  %v8110_v52 = vld [vmem:[#allocation58_spill] sm:$0xff]  ;;  %v2281_v6 = vadd.f32 %v5995_v53, %v5992_v62  ;;  %v6066_v56 = vrot.slane %v3396_v7, %v3391_v27  ;;  %v2504_v7 = vmul.f32 %v6013_v26, %v6013_v26 }
 0x2ee   : > { %8105 = vst [vmem:[#allocation55_spill] sm:$0xff] %v6037_v10  ;;  %v6043_v23 = vadd.f32 %v1927_v38, %v8108_v21  ;;  %v2184_v18 = vpop.xlane.xlu0 %2183  ;;  %v1929_v55 = vpop.f32.mrb[75].mxu1  ;;  %v2501_v21 = vmul.f32 %v5992_v62, %v5992_v62  ;;  %v2502_v38 = vmul.f32 %v5995_v53, %v5995_v53  ;;  %v2507_v59 = vmul.f32 %v6037_v10, %v6037_v10 }
 0x2ef   : > { %8107 = vst [vmem:[#allocation56_spill] sm:$0xff] %v6040_v9  ;;  %v6051_v57 = vmul.f32 0.00390625, %v2184_v18  ;;  %v6054_v50 = vadd.f32 %v1929_v55, %v8110_v52  ;;  %2661 = vadd.xlane.f32.xlu1 %v2660_v4  ;;  %v6064_v18 = vrot.slane %v3392_v58, %v3391_v27  ;;  %v3542_v55 = vrot.slane %v3131_v15, %v3541_v36 }
 0x2f0   : > { %8109 = vst [vmem:[#allocation57_spill] sm:$0xff] %v6043_v23  ;;  %v2187_v47 = vpop.xlane.xlu1 %2186  ;;  %v2663_v52 = vadd.f32 %v2500_v32, %v2499_v5  ;;  %v2505_v27 = vmul.f32 %v6016_v0, %v6016_v0  ;;  %v2506_v15 = vmul.f32 %v6019_v40, %v6019_v40 }
 0x2f1   : > { %8111 = vst [vmem:[#allocation58_spill] sm:$0xff] %v6054_v50  ;;  %v6060_v20 = vmul.f32 0.00390625, %v2187_v47  ;;  %2279 = vadd.xlane.f32.xlu0 %v2278_v45  ;;  %v2815_v46 = vmul.f32 %v6051_v57, %v6051_v57  ;;  %v2666_v47 = vadd.f32 %v2502_v38, %v2501_v21  ;;  %v2503_v45 = vmul.f32 %v6010_v28, %v6010_v28  ;;  %v8114_v21 = vld [vmem:[#allocation60_spill] sm:$0xff] }
 0x2f2   : > { %v2569_v4 = vpop.xlane.xlu0 %2568  ;;  %v2672_v41 = vadd.f32 %v2506_v15, %v2505_v27 }
 0x2f3   : > { %v2751_v30 = vmul.f32 0.00390625, %v2569_v4  ;;  %v1933_v12 = vpop.f32.mrb[76].mxu1  ;;  %2282 = vadd.xlane.f32.xlu1 %v2281_v6  ;;  %v2816_v5 = vmul.f32 %v6060_v20, %v6060_v20  ;;  %v8116_v6 = vld [vmem:[#allocation61_spill] sm:$0xff] }
 0x2f4   : > { %v6073_v17 = vadd.f32 %v1933_v12, %v8112_v49  ;;  %v2572_v58 = vpop.xlane.xlu1 %2571  ;;  %v1935_v53 = vpop.f32.mrb[77].mxu1  ;;  %v6086_v12 = vrot.slane %v3538_v33, %v3537_v34  ;;  %v2284_v33 = vadd.f32 %v6013_v26, %v6010_v28 }
 0x2f5   : > { %v2879_v36 = vsub.f32 %v2751_v30, %v2815_v46  ;;  %v2752_v32 = vmul.f32 0.00390625, %v2572_v58  ;;  %v6084_v38 = vadd.f32 %v1935_v53, %v8114_v21  ;;  %v1937_v49 = vpop.f32.mrb[78].mxu1  ;;  %2664 = vadd.xlane.f32.xlu0 %v2663_v52  ;;  %v2508_v30 = vmul.f32 %v6040_v9, %v6040_v9 }
 0x2f6   : > { %8113 = vst [vmem:[#allocation59_spill] sm:$0xff] %v6073_v17  ;;  %v6089_v4 = vadd.f32 %v1937_v49, %v8116_v6  ;;  %v1939_v62 = vpop.f32.mrb[79].mxu1  ;;  %v2172_v35 = vpop.xlane.xlu0 %2171  ;;  %v6100_v52 = vrot.slane %v3542_v55, %v3537_v34  ;;  %v2287_v49 = vadd.f32 %v6019_v40, %v6016_v0  ;;  %v2669_v6 = vadd.f32 %v2504_v7, %v2503_v45  ;;  %v8120_v34 = vld [vmem:[#allocation103_spill] sm:$0xff] }
 0x2f7   : > { %8115 = vst [vmem:[#allocation60_spill] sm:$0xff] %v6084_v38  ;;  %v2943_v46 = vmax.f32 %v2879_v36, 0.0  ;;  %v2880_v58 = vsub.f32 %v2752_v32, %v2816_v5  ;;  %v6096_v53 = vadd.f32 %v1939_v62, %v8118_v54  ;;  %2667 = vadd.xlane.f32.xlu1 %v2666_v47  ;;  %v2290_v36 = vadd.f32 %v6040_v9, %v6037_v10  ;;  %v8122_v55 = vld [vmem:[#allocation63_spill] sm:$0xff]  ;;  %v8128_v10 = vld [vmem:[#allocation66_spill] sm:$0xff] }
 0x2f8   : > { %8117 = vst [vmem:[#allocation61_spill] sm:$0xff] %v6089_v4  ;;  %v2560_v21 = vpop.xlane.xlu1 %2559  ;;  %v2509_v54 = vmul.f32 %v6043_v23, %v6043_v23  ;;  %v2293_v45 = vadd.f32 %v6054_v50, %v6043_v23  ;;  %v2675_v7 = vadd.f32 %v2508_v30, %v2507_v59  ;;  %v6114_v15 = vmul.f32 0.00390625, %v2172_v35 }
 0x2f9   : > { %8119 = vst [vmem:[#allocation62_spill] sm:$0xff] %v6096_v53  ;;  %v3007_v2 = vadd.f32 1e-05, %v2943_v46  ;;  %v2944_v31 = vmax.f32 %v2880_v58, 0.0  ;;  %2285 = vadd.xlane.f32.xlu0 %v2284_v33  ;;  %v8121_v46 = vld [vmem:[#allocation104_spill] sm:$0xff]  ;;  %v2511_v30 = vmul.f32 %v6073_v17, %v6073_v17 }
 0x2fa   : > { %v2175_v47 = vpop.xlane.xlu0 %2174 }
 0x2fb   : > { %4418 = vrsqrt.f32 %v3007_v2  ;;  %v3008_v27 = vadd.f32 1e-05, %v2944_v31  ;;  %v6116_v5 = vmul.f32 0.00390625, %v2175_v47  ;;  %v1943_v32 = vpop.f32.mrb[80].mxu1  ;;  %2288 = vadd.xlane.f32.xlu1 %v2287_v49  ;;  %v2510_v31 = vmul.f32 %v6054_v50, %v6054_v50  ;;  %v8124_v49 = vld [vmem:[#allocation64_spill] sm:$0xff] }
 0x2fc   : > { %v6123_v62 = vadd.f32 %v1943_v32, %v8122_v55  ;;  %v1945_v9 = vpop.f32.mrb[81].mxu1  ;;  %v2193_v23 = vpop.xlane.xlu1 %2192  ;;  %v2748_v2 = vmul.f32 0.00390625, %v2560_v21  ;;  %v8126_v32 = vld [vmem:[#allocation65_spill] sm:$0xff]  ;;  %v2512_v21 = vmul.f32 %v6084_v38, %v6084_v38 }
 0x2fd   : > { %4420 = vrsqrt.f32 %v3008_v27  ;;  %v2812_v59 = vmul.f32 %v6116_v5, %v6116_v5  ;;  %v1947_v35 = vpop.f32.mrb[82].mxu1  ;;  %2670 = vadd.xlane.f32.xlu0 %v2669_v6  ;;  %v6132_v47 = vadd.f32 %v1945_v9, %v8124_v49  ;;  %v6134_v55 = vmul.f32 0.00390625, %v2193_v23 }
 0x2fe   : > { %8123 = vst [vmem:[#allocation103_spill] sm:$0xff] %v6123_v62  ;;  %v6137_v33 = vadd.f32 %v1947_v35, %v8126_v32  ;;  %v1949_v58 = vpop.f32.mrb[83].mxu1  ;;  %v2557_v50 = vpop.xlane.xlu0 %2556  ;;  %v2811_v6 = vmul.f32 %v6114_v15, %v6114_v15  ;;  %v2678_v23 = vadd.f32 %v2510_v31, %v2509_v54  ;;  %v2296_v35 = vadd.f32 %v6084_v38, %v6073_v17 }
 0x2ff   : > { %8125 = vst [vmem:[#allocation104_spill] sm:$0xff] %v6132_v47  ;;  %v2876_v27 = vsub.f32 %v2748_v2, %v2812_v59  ;;  %v6142_v40 = vadd.f32 %v1949_v58, %v8128_v10  ;;  %v2747_v0 = vmul.f32 0.00390625, %v2557_v50  ;;  %2673 = vadd.xlane.f32.xlu1 %v2672_v41  ;;  %v2513_v49 = vmul.f32 %v6089_v4, %v6089_v4  ;;  %v8130_v41 = vld [vmem:[#allocation67_spill] sm:$0xff] }
 0x300   : > { %8127 = vst [vmem:[#allocation63_spill] sm:$0xff] %v6137_v33  ;;  %v2578_v9 = vpop.xlane.xlu1 %2577  ;;  %v2514_v32 = vmul.f32 %v6096_v53, %v6096_v53  ;;  %v2818_v10 = vmul.f32 %v6134_v55, %v6134_v55  ;;  %v2299_v31 = vadd.f32 %v6096_v53, %v6089_v4  ;;  %v6160_v38 = vadd.f32 %v2512_v21, %v2511_v30  ;;  %v8136_v4 = vld [vmem:[#allocation69_spill] sm:$0xff] }
 0x301   : > { %8129 = vst [vmem:[#allocation64_spill] sm:$0xff] %v6142_v40  ;;  %v2940_v2 = vmax.f32 %v2876_v27, 0.0  ;;  %v2875_v59 = vsub.f32 %v2747_v0, %v2811_v6  ;;  %v2754_v58 = vmul.f32 0.00390625, %v2578_v9  ;;  %2291 = vadd.xlane.f32.xlu0 %v2290_v36  ;;  %v6173_v30 = vmul.f32 %v6123_v62, %v6123_v62  ;;  %v8134_v9 = vld [vmem:[#allocation68_spill] sm:$0xff] }
 0x302   : > { %v2190_v54 = vpop.xlane.xlu0 %2189  ;;  %v6169_v53 = vadd.f32 %v2514_v32, %v2513_v49  ;;  %v8133_v49 = vsub.f32 %v8120_v34, %v6051_v57  ;;  %v8138_v34 = vsub.f32 %v8121_v46, %v6060_v20 }
 0x303   : > { %v3004_v17 = vadd.f32 1e-05, %v2940_v2  ;;  %v2939_v27 = vmax.f32 %v2875_v59, 0.0  ;;  %v2882_v6 = vsub.f32 %v2754_v58, %v2818_v10  ;;  %v1953_v36 = vpop.f32.mrb[84].mxu1  ;;  %2294 = vadd.xlane.f32.xlu1 %v2293_v45  ;;  %v8132_v58 = vsub.f32 %v5571_v63, %v6051_v57 }
 0x304   : > { %v6167_v50 = vadd.f32 %v1953_v36, %v8130_v41  ;;  %v1955_v26 = vpop.f32.mrb[85].mxu1  ;;  %v2178_v28 = vpop.xlane.xlu1 %2177  ;;  %v6184_v36 = vmul.f32 0.00390625, %v2190_v54  ;;  %v8139_v54 = vsub.f32 %v5582_v48, %v6060_v20 }
 0x305   : > { %v4419_v21 = vpop.eup %4418  ;;  %4422 = vrsqrt.f32 %v3004_v17  ;;  %v3003_v45 = vadd.f32 1e-05, %v2939_v27  ;;  %v2946_v59 = vmax.f32 %v2882_v6, 0.0  ;;  %v1957_v10 = vpop.f32.mrb[86].mxu1  ;;  %2676 = vadd.xlane.f32.xlu0 %v2675_v7  ;;  %v6187_v17 = vadd.f32 %v1955_v26, %v8134_v9 }
 0x306   : > { %8131 = vst [vmem:[#allocation65_spill] sm:$0xff] %v6167_v50  ;;  %v3268_v41 = vmul.f32 %v4419_v21, %v8132_v58  ;;  %v3269_v32 = vmul.f32 %v4419_v21, %v8133_v49  ;;  %v1959_v0 = vpop.f32.mrb[87].mxu1  ;;  %v2575_v2 = vpop.xlane.xlu0 %2574  ;;  %v6189_v7 = vmul.f32 0.00390625, %v2178_v28  ;;  %v6192_v37 = vadd.f32 %v1957_v10, %v8136_v4  ;;  %v8140_v4 = vld [vmem:[#allocation70_spill] sm:$0xff] }
 0x307   : > { %8135 = vst [vmem:[#allocation66_spill] sm:$0xff] %v6187_v17  ;;  %v4421_v27 = vpop.eup %4420  ;;  %4424 = vrsqrt.f32 %v3003_v45  ;;  %v3010_v6 = vadd.f32 1e-05, %v2946_v59  ;;  %2679 = vadd.xlane.f32.xlu1 %v2678_v23  ;;  %v6205_v23 = vadd.f32 %v1959_v0, %v8140_v4  ;;  %v2516_v45 = vmul.f32 %v6132_v47, %v6132_v47 }
 0x308   : > { %8137 = vst [vmem:[#allocation67_spill] sm:$0xff] %v6192_v37  ;;  %v3415_v63 = vmul.f32 %v6064_v18, %v3268_v41  ;;  %v3416_v57 = vmul.f32 %v6066_v56, %v3269_v32  ;;  %v3270_v26 = vmul.f32 %v4421_v27, %v8138_v34  ;;  %v3271_v9 = vmul.f32 %v4421_v27, %v8139_v54  ;;  %v2181_v21 = vpop.xlane.xlu1 %2180 }
 0x309   : > { %4426 = vrsqrt.f32 %v3010_v6  ;;  %8141 = vst [vmem:[#allocation68_spill] sm:$0xff] %v6205_v23  ;;  %2297 = vadd.xlane.f32.xlu0 %v2296_v35  ;;  %v2817_v58 = vmul.f32 %v6184_v36, %v6184_v36  ;;  %v2753_v41 = vmul.f32 0.00390625, %v2575_v2  ;;  %v6215_v49 = vmul.f32 0.00390625, %v2181_v21  ;;  %v8142_v6 = vld [vmem:[#allocation71_spill] sm:$0xff] }
 0x30a   : > { %v3561_v46 = vadd.f32 %v6086_v12, %v3415_v63  ;;  %v3562_v59 = vadd.f32 %v6100_v52, %v3416_v57  ;;  %v3417_v48 = vmul.f32 %v6064_v18, %v3270_v26  ;;  %v3418_v20 = vmul.f32 %v6066_v56, %v3271_v9  ;;  %v2563_v10 = vpop.xlane.xlu0 %2562  ;;  %v8144_v26 = vld [vmem:[#allocation72_spill] sm:$0xff] }
 0x30b   : > { %v2749_v0 = vmul.f32 0.00390625, %v2563_v10  ;;  %v1963_v35 = vpop.f32.mrb[88].mxu1  ;;  %2300 = vadd.xlane.f32.xlu1 %v2299_v31  ;;  %v2813_v2 = vmul.f32 %v6189_v7, %v6189_v7  ;;  %v2881_v34 = vsub.f32 %v2753_v41, %v2817_v58  ;;  %v2517_v21 = vmul.f32 %v6137_v33, %v6137_v33 }
 0x30c   : > { %3689 = vst [vmem:[%s6219_s12 + $0x40] sm:$0xff] %v3561_v46  ;;  %3690 = vst [vmem:[%s6219_s12 + $0x48] sm:$0xff] %v3562_v59  ;;  %v3563_v32 = vadd.f32 %v6086_v12, %v3417_v48  ;;  %v3564_v27 = vadd.f32 %v6100_v52, %v3418_v20  ;;  %v6228_v63 = vadd.f32 %v1963_v35, %v8142_v6  ;;  %v1965_v31 = vpop.f32.mrb[89].mxu1  ;;  %v2566_v57 = vpop.xlane.xlu1 %2565  ;;  %v8146_v35 = vld [vmem:[#allocation73_spill] sm:$0xff] }
 0x30d   : > { %v6231_v54 = vadd.f32 %v1965_v31, %v8144_v26  ;;  %v1967_v9 = vpop.f32.mrb[90].mxu1  ;;  %2682 = vadd.xlane.f32.xlu0 %v6160_v38  ;;  %v2518_v4 = vmul.f32 %v6142_v40, %v6142_v40  ;;  %v2877_v46 = vsub.f32 %v2749_v0, %v2813_v2  ;;  %v2814_v59 = vmul.f32 %v6215_v49, %v6215_v49  ;;  %v8148_v31 = vld [vmem:[#allocation74_spill] sm:$0xff] }
 0x30e   : > { %8143 = vst [vmem:[#allocation69_spill] sm:$0xff] %v6228_v63  ;;  %3691 = vst [vmem:[%s6219_s12 + $0x50] sm:$0xff] %v3563_v32  ;;  %v2750_v48 = vmul.f32 0.00390625, %v2566_v57  ;;  %v1969_v20 = vpop.f32.mrb[91].mxu1  ;;  %v2196_v10 = vpop.xlane.xlu0 %2195  ;;  %v2302_v58 = vadd.f32 %v6132_v47, %v6123_v62  ;;  %v2945_v38 = vmax.f32 %v2881_v34, 0.0  ;;  %v6245_v6 = vadd.f32 %v1967_v9, %v8146_v35  ;;  %v8196_v47 = vld [vmem:[#allocation111_spill] sm:$0xff] }
 0x30f   : > { %8145 = vst [vmem:[#allocation70_spill] sm:$0xff] %v6231_v54  ;;  %3692 = vst [vmem:[%s6219_s12 + $0x58] sm:$0xff] %v3564_v27  ;;  %v4423_v41 = vpop.eup %4422  ;;  %v6248_v26 = vadd.f32 %v1969_v20, %v8148_v31  ;;  %2685 = vadd.xlane.f32.xlu1 %v6169_v53  ;;  %v2305_v0 = vadd.f32 %v6142_v40, %v6137_v33  ;;  %v8150_v32 = vsub.f32 %v5604_v43, %v6116_v5 }
 0x310   : > { %8147 = vst [vmem:[#allocation71_spill] sm:$0xff] %v6245_v6  ;;  %v8151_v2 = vsub.f32 %v5607_v29, %v6116_v5  ;;  %v2941_v34 = vmax.f32 %v2877_v46, 0.0  ;;  %v2878_v28 = vsub.f32 %v2750_v48, %v2814_v59  ;;  %v2199_v9 = vpop.xlane.xlu1 %2198  ;;  %v3144_v20 = vsub.f32 %v5610_v39, %v6184_v36 }
 0x311   : > { %8149 = vst [vmem:[#allocation72_spill] sm:$0xff] %v6248_v26  ;;  %v3262_v27 = vmul.f32 %v4423_v41, %v8150_v32  ;;  %v4425_v35 = vpop.eup %4424  ;;  %v3009_v31 = vadd.f32 1e-05, %v2945_v38  ;;  %2303 = vadd.xlane.f32.xlu0 %v2302_v58  ;;  %v2687_v53 = vadd.f32 %v2516_v45, %v6173_v30  ;;  %v2690_v40 = vadd.f32 %v2518_v4, %v2517_v21 }
 0x312   : > { %v3263_v57 = vmul.f32 %v4423_v41, %v8151_v2  ;;  %v8152_v29 = vsub.f32 %v5592_v51, %v6114_v15  ;;  %v8153_v46 = vsub.f32 %v5599_v44, %v6114_v15  ;;  %v2581_v48 = vpop.xlane.xlu0 %2580  ;;  %v3005_v38 = vadd.f32 1e-05, %v2941_v34 }
 0x313   : > { %v3409_v33 = vmul.f32 %v6064_v18, %v3262_v27  ;;  %v4427_v41 = vpop.eup %4426  ;;  %4428 = vrsqrt.f32 %v3009_v31  ;;  %v2942_v58 = vmax.f32 %v2878_v28, 0.0  ;;  %v6270_v30 = vmul.f32 0.00390625, %v2196_v10  ;;  %v1973_v45 = vpop.f32.mrb[92].mxu1  ;;  %2306 = vadd.xlane.f32.xlu1 %v2305_v0 }
 0x314   : > { %v3410_v43 = vmul.f32 %v6066_v56, %v3263_v57  ;;  %v3260_v5 = vmul.f32 %v4425_v35, %v8152_v29  ;;  %v3261_v59 = vmul.f32 %v4425_v35, %v8153_v46  ;;  %v1975_v15 = vpop.f32.mrb[93].mxu1  ;;  %v2584_v32 = vpop.xlane.xlu1 %2583  ;;  %v8154_v27 = vsub.f32 %v5618_v13, %v6134_v55 }
 0x315   : > { %v3555_v21 = vadd.f32 %v6086_v12, %v3409_v33  ;;  %v8155_v10 = vsub.f32 %v5624_v60, %v6134_v55  ;;  %4430 = vrsqrt.f32 %v3005_v38  ;;  %v3006_v0 = vadd.f32 1e-05, %v2942_v58  ;;  %v1977_v33 = vpop.f32.mrb[94].mxu1  ;;  %2688 = vadd.xlane.f32.xlu0 %v2687_v53  ;;  %v8158_v38 = vld [vmem:[#allocation76_spill] sm:$0xff] }
 0x316   : > { %v3556_v51 = vadd.f32 %v6100_v52, %v3410_v43  ;;  %v3407_v4 = vmul.f32 %v6064_v18, %v3260_v5  ;;  %v3408_v44 = vmul.f32 %v6066_v56, %v3261_v59  ;;  %v3274_v28 = vmul.f32 %v4427_v41, %v8154_v27  ;;  %v1979_v31 = vpop.f32.mrb[95].mxu1  ;;  %v2202_v60 = vpop.xlane.xlu0 %2201  ;;  %v8156_v5 = vld [vmem:[#allocation75_spill] sm:$0xff] }
 0x317   : > { %v3275_v2 = vmul.f32 %v4427_v41, %v8155_v10  ;;  %3683 = vst [vmem:[%s6219_s12 + $0x10] sm:$0xff] %v3555_v21  ;;  %v3145_v13 = vsub.f32 %v5613_v42, %v6184_v36  ;;  %v6288_v35 = vmul.f32 0.00390625, %v2199_v9  ;;  %v3136_v53 = vsub.f32 %v5632_v25, %v6189_v7  ;;  %2691 = vadd.xlane.f32.xlu1 %v2690_v40 }
 0x318   : > { %3684 = vst [vmem:[%s6219_s12 + $0x18] sm:$0xff] %v3556_v51  ;;  %v3553_v57 = vadd.f32 %v6086_v12, %v3407_v4  ;;  %v3554_v34 = vadd.f32 %v6100_v52, %v3408_v44  ;;  %v3421_v55 = vmul.f32 %v6064_v18, %v3274_v28  ;;  %4432 = vrsqrt.f32 %v3006_v0  ;;  %v2205_v59 = vpop.xlane.xlu1 %2204  ;;  %v8162_v44 = vld [vmem:[#allocation78_spill] sm:$0xff] }
 0x319   : > { %v3422_v43 = vmul.f32 %v6066_v56, %v3275_v2  ;;  %v3137_v42 = vsub.f32 %v5637_v11, %v6189_v7  ;;  %v2819_v9 = vmul.f32 %v6270_v30, %v6270_v30  ;;  %v2755_v29 = vmul.f32 0.00390625, %v2581_v48  ;;  %v8160_v48 = vld [vmem:[#allocation77_spill] sm:$0xff] }
 0x31a   : > { %3681 = vst [vmem:[%s6219_s12] sm:$0xff] %v3553_v57  ;;  %3682 = vst [vmem:[%s6219_s12 + $0x8] sm:$0xff] %v3554_v34  ;;  %v6301_v46 = vadd.f32 %v1973_v45, %v8156_v5  ;;  %v3567_v41 = vadd.f32 %v6086_v12, %v3421_v55  ;;  %v3138_v40 = vsub.f32 %v5642_v3, %v6215_v49  ;;  %v2756_v7 = vmul.f32 0.00390625, %v2584_v32  ;;  %v2587_v45 = vpop.xlane.xlu0 %2586 }
 0x31b   : > { %v3568_v25 = vadd.f32 %v6100_v52, %v3422_v43  ;;  %v6308_v58 = vadd.f32 %v1975_v15, %v8158_v38  ;;  %v2883_v21 = vsub.f32 %v2755_v29, %v2819_v9  ;;  %v2820_v11 = vmul.f32 %v6288_v35, %v6288_v35  ;;  %v1983_v28 = vpop.f32.mrb[96].mxu1 }
 0x31c   : > { %8157 = vst [vmem:[#allocation73_spill] sm:$0xff] %v6301_v46  ;;  %v6313_v51 = vadd.f32 %v1977_v33, %v8160_v48  ;;  %3695 = vst [vmem:[%s6219_s12 + $0x70] sm:$0xff] %v3567_v41  ;;  %v3139_v4 = vsub.f32 %v5650_v19, %v6215_v49  ;;  %v6321_v3 = vmul.f32 %v6228_v63, %v6228_v63  ;;  %v6326_v27 = vmul.f32 0.00390625, %v2202_v60  ;;  %v1985_v19 = vpop.f32.mrb[97].mxu1  ;;  %v2590_v49 = vpop.xlane.xlu1 %2589  ;;  %v8164_v48 = vld [vmem:[#allocation79_spill] sm:$0xff] }
 0x31d   : > { %8159 = vst [vmem:[#allocation74_spill] sm:$0xff] %v6308_v58  ;;  %3696 = vst [vmem:[%s6219_s12 + $0x78] sm:$0xff] %v3568_v25  ;;  %v6324_v15 = vadd.f32 %v1979_v31, %v8162_v44  ;;  %v6330_v32 = vmul.f32 %v6231_v54, %v6231_v54  ;;  %v2947_v10 = vmax.f32 %v2883_v21, 0.0  ;;  %v2884_v2 = vsub.f32 %v2756_v7, %v2820_v11  ;;  %v4429_v33 = vpop.eup %4428  ;;  %v1987_v55 = vpop.f32.mrb[98].mxu1 }
 0x31e   : > { %8161 = vst [vmem:[#allocation75_spill] sm:$0xff] %v6313_v51  ;;  %v2308_v0 = vadd.f32 %v6187_v17, %v6167_v50  ;;  %v6336_v57 = vmul.f32 %v6245_v6, %v6245_v6  ;;  %v6340_v34 = vmul.f32 %v6248_v26, %v6248_v26  ;;  %v3272_v43 = vmul.f32 %v4429_v33, %v3144_v20  ;;  %v1989_v41 = vpop.f32.mrb[99].mxu1  ;;  %v2208_v25 = vpop.xlane.xlu0 %2207 }
 0x31f   : > { %8163 = vst [vmem:[#allocation76_spill] sm:$0xff] %v6324_v15  ;;  %v3273_v9 = vmul.f32 %v4429_v33, %v3145_v13  ;;  %v3011_v29 = vadd.f32 1e-05, %v2947_v10  ;;  %v2948_v5 = vmax.f32 %v2884_v2, 0.0  ;;  %v4431_v38 = vpop.eup %4430  ;;  %v2821_v11 = vmul.f32 %v6326_v27, %v6326_v27 }
 0x320   : > { %2309 = vadd.xlane.f32.xlu0 %v2308_v0  ;;  %v2757_v7 = vmul.f32 0.00390625, %v2587_v45  ;;  %v6354_v44 = vadd.f32 %v1983_v28, %v8164_v48  ;;  %v3419_v39 = vmul.f32 %v6064_v18, %v3272_v43  ;;  %v3264_v20 = vmul.f32 %v4431_v38, %v3136_v53  ;;  %v6358_v10 = vpop.xlane.xlu1 %2210 }
 0x321   : > { %v3420_v36 = vmul.f32 %v6066_v56, %v3273_v9  ;;  %v3265_v13 = vmul.f32 %v4431_v38, %v3137_v42  ;;  %4434 = vrsqrt.f32 %v3011_v29  ;;  %v3012_v0 = vadd.f32 1e-05, %v2948_v5 }
 0x322   : > { %8165 = vst [vmem:[#allocation77_spill] sm:$0xff] %v6354_v44  ;;  %v4433_v2 = vpop.eup %4432  ;;  %v6360_v33 = vmul.f32 0.00390625, %v2205_v59  ;;  %v2885_v21 = vsub.f32 %v2757_v7, %v2821_v11  ;;  %v3565_v45 = vadd.f32 %v6086_v12, %v3419_v39  ;;  %v3411_v43 = vmul.f32 %v6064_v18, %v3264_v20  ;;  %v6366_v53 = vpop.xlane.xlu0 %2592  ;;  %v8166_v7 = vld [vmem:[#allocation80_spill] sm:$0xff] }
 0x323   : > { %v3566_v28 = vadd.f32 %v6100_v52, %v3420_v36  ;;  %v3412_v9 = vmul.f32 %v6066_v56, %v3265_v13  ;;  %v3266_v42 = vmul.f32 %v4433_v2, %v3138_v40  ;;  %v3267_v38 = vmul.f32 %v4433_v2, %v3139_v4  ;;  %v1993_v29 = vpop.f32.mrb[100].mxu1 }
 0x324   : > { %4436 = vrsqrt.f32 %v3012_v0  ;;  %v2949_v48 = vmax.f32 %v2885_v21, 0.0  ;;  %3693 = vst [vmem:[%s6219_s12 + $0x60] sm:$0xff] %v3565_v45  ;;  %v3557_v59 = vadd.f32 %v6086_v12, %v3411_v43  ;;  %v2311_v11 = vadd.f32 %v6205_v23, %v6192_v37  ;;  %v1995_v36 = vpop.f32.mrb[101].mxu1  ;;  %v6377_v40 = vpop.xlane.xlu1 %2595  ;;  %v8168_v45 = vld [vmem:[#allocation81_spill] sm:$0xff] }
 0x325   : > { %3694 = vst [vmem:[%s6219_s12 + $0x68] sm:$0xff] %v3566_v28  ;;  %v3558_v5 = vadd.f32 %v6100_v52, %v3412_v9  ;;  %v6375_v39 = vadd.f32 %v1985_v19, %v8166_v7  ;;  %v3413_v4 = vmul.f32 %v6064_v18, %v3266_v42  ;;  %v3414_v21 = vmul.f32 %v6066_v56, %v3267_v38  ;;  %v6383_v2 = vpop.f32.mrb[102].mxu1 }
 0x326   : > { %v3151_v20 = vsub.f32 %v5665_v16, %v6288_v35  ;;  %v3013_v13 = vadd.f32 1e-05, %v2949_v48  ;;  %3685 = vst [vmem:[%s6219_s12 + $0x20] sm:$0xff] %v3557_v59  ;;  %2312 = vadd.xlane.f32.xlu1 %v2311_v11  ;;  %v2822_v19 = vmul.f32 %v6360_v33, %v6360_v33  ;;  %v2758_v0 = vmul.f32 0.00390625, %v2590_v49  ;;  %v6394_v9 = vpop.f32.mrb[103].mxu1  ;;  %v6396_v16 = vpop.xlane.xlu0 %2213 }
 0x327   : > { %8167 = vst [vmem:[#allocation78_spill] sm:$0xff] %v6375_v39  ;;  %3686 = vst [vmem:[%s6219_s12 + $0x28] sm:$0xff] %v3558_v5  ;;  %v6390_v28 = vadd.f32 %v1987_v55, %v8168_v45  ;;  %v2519_v43 = vmul.f32 %v6167_v50, %v6167_v50  ;;  %v3559_v42 = vadd.f32 %v6086_v12, %v3413_v4  ;;  %v8170_v5 = vld [vmem:[#allocation82_spill] sm:$0xff] }
 0x328   : > { %v3560_v38 = vadd.f32 %v6100_v52, %v3414_v21  ;;  %4438 = vrsqrt.f32 %v3013_v13  ;;  %v2520_v48 = vmul.f32 %v6187_v17, %v6187_v17  ;;  %v6404_v49 = vmul.f32 %v6301_v46, %v6301_v46  ;;  %v6413_v7 = vpop.xlane.xlu1 %2216 }
 0x329   : > { %8169 = vst [vmem:[#allocation79_spill] sm:$0xff] %v6390_v28  ;;  %v6408_v55 = vmul.f32 %v6308_v58, %v6308_v58  ;;  %v2886_v59 = vsub.f32 %v2758_v0, %v2822_v19  ;;  %v6411_v11 = vadd.f32 %v1989_v41, %v8170_v5  ;;  %3687 = vst [vmem:[%s6219_s12 + $0x30] sm:$0xff] %v3559_v42  ;;  %v6417_v21 = vmul.f32 0.00390625, %v2208_v25 }
 0x32a   : > { %3688 = vst [vmem:[%s6219_s12 + $0x38] sm:$0xff] %v3560_v38  ;;  %v2693_v4 = vadd.f32 %v2520_v48, %v2519_v43  ;;  %v2521_v13 = vmul.f32 %v6192_v37, %v6192_v37  ;;  %v2522_v45 = vmul.f32 %v6205_v23, %v6205_v23  ;;  %v6425_v60 = vmul.f32 %v6313_v51, %v6313_v51  ;;  %v6433_v25 = vpop.xlane.xlu0 %2598 }
 0x32b   : > { %8171 = vst [vmem:[#allocation80_spill] sm:$0xff] %v6411_v11  ;;  %v6429_v41 = vmul.f32 %v6324_v15, %v6324_v15  ;;  %v3152_v19 = vsub.f32 %v5674_v61, %v6326_v27  ;;  %v2950_v0 = vmax.f32 %v2886_v59, 0.0  ;;  %v4435_v43 = vpop.eup %4434  ;;  %v3153_v42 = vsub.f32 %v5677_v8, %v6326_v27  ;;  %v6442_v31 = vpop.f32.mrb[104].mxu1 }
 0x32c   : > { %2694 = vadd.xlane.f32.xlu0 %v2693_v4  ;;  %v2696_v48 = vadd.f32 %v2522_v45, %v2521_v13  ;;  %v6440_v5 = vmul.f32 0.00390625, %v6358_v10  ;;  %v8172_v61 = vsub.f32 %v5647_v14, %v6270_v30  ;;  %v8173_v23 = vsub.f32 %v5655_v22, %v6270_v30  ;;  %v6452_v27 = vpop.f32.mrb[105].mxu1  ;;  %v6454_v4 = vpop.xlane.xlu1 %2601  ;;  %v8174_v45 = vld [vmem:[#allocation83_spill] sm:$0xff]  ;;  %v8176_v22 = vld [vmem:[#allocation84_spill] sm:$0xff] }
 0x32d   : > { %v3014_v17 = vadd.f32 1e-05, %v2950_v0  ;;  %v2314_v8 = vadd.f32 %v6231_v54, %v6228_v63  ;;  %v2823_v13 = vmul.f32 %v6417_v21, %v6417_v21  ;;  %v2759_v14 = vmul.f32 0.00390625, %v6366_v53  ;;  %v6465_v30 = vpop.f32.mrb[106].mxu1 }
 0x32e   : > { %v3276_v59 = vmul.f32 %v4435_v43, %v8172_v61  ;;  %v3277_v37 = vmul.f32 %v4435_v43, %v8173_v23  ;;  %v4437_v10 = vpop.eup %4436  ;;  %2697 = vadd.xlane.f32.xlu1 %v2696_v48  ;;  %v6460_v61 = vadd.f32 %v1993_v29, %v8174_v45  ;;  %v6463_v23 = vadd.f32 %v1995_v36, %v8176_v22  ;;  %v6472_v63 = vpop.f32.mrb[107].mxu1  ;;  %v8179_v29 = vld [vmem:[#allocation105_spill] sm:$0xff] }
 0x32f   : > { %v8178_v48 = vsub.f32 %v5662_v24, %v6288_v35  ;;  %v3279_v54 = vmul.f32 %v4437_v10, %v3151_v20  ;;  %v6474_v53 = vpop.xlane.xlu0 %2219  ;;  %4440 = vrsqrt.f32 %v3014_v17  ;;  %v2887_v36 = vsub.f32 %v2759_v14, %v2823_v13  ;;  %v8180_v13 = vld [vmem:[#allocation85_spill] sm:$0xff] }
 0x330   : > { %8175 = vst [vmem:[#allocation81_spill] sm:$0xff] %v6460_v61  ;;  %8177 = vst [vmem:[#allocation82_spill] sm:$0xff] %v6463_v23  ;;  %v3423_v0 = vmul.f32 %v6064_v18, %v3276_v59  ;;  %v3424_v43 = vmul.f32 %v6066_v56, %v3277_v37  ;;  %2315 = vadd.xlane.f32.xlu0 %v2314_v8  ;;  %v2317_v37 = vadd.f32 %v6248_v26, %v6245_v6  ;;  %v8184_v26 = vld [vmem:[#allocation87_spill] sm:$0xff] }
 0x331   : > { %v3278_v38 = vmul.f32 %v4437_v10, %v8178_v48  ;;  %v3426_v20 = vmul.f32 %v6066_v56, %v3279_v54  ;;  %v6484_v10 = vpop.xlane.xlu1 %2222  ;;  %v2951_v48 = vmax.f32 %v2887_v36, 0.0  ;;  %v2824_v17 = vmul.f32 %v6440_v5, %v6440_v5 }
 0x332   : > { %v3569_v59 = vadd.f32 %v6086_v12, %v3423_v0  ;;  %v3570_v24 = vadd.f32 %v6100_v52, %v3424_v43  ;;  %v4439_v22 = vpop.eup %4438  ;;  %2318 = vadd.xlane.f32.xlu1 %v2317_v37  ;;  %v2760_v8 = vmul.f32 0.00390625, %v6377_v40  ;;  %v6491_v14 = vadd.f32 %v6383_v2, %v8180_v13 }
 0x333   : > { %v3425_v35 = vmul.f32 %v6064_v18, %v3278_v38  ;;  %v3572_v38 = vadd.f32 %v6100_v52, %v3426_v20  ;;  %v3280_v0 = vmul.f32 %v4439_v22, %v3152_v19  ;;  %v3281_v43 = vmul.f32 %v4439_v22, %v3153_v42  ;;  %v6497_v36 = vpop.xlane.xlu0 %2604  ;;  %v6505_v13 = vpop.f32.mrb[108].mxu1  ;;  %v8181_v42 = vld [vmem:[#allocation86_spill] sm:$0xff] }
 0x334   : > { %3697 = vst [vmem:[%s6219_s12 + $0x80] sm:$0xff] %v3569_v59  ;;  %3698 = vst [vmem:[%s6219_s12 + $0x88] sm:$0xff] %v3570_v24  ;;  %v6501_v37 = vmul.f32 %v6354_v44, %v6354_v44  ;;  %v3015_v45 = vadd.f32 1e-05, %v2951_v48  ;;  %v2888_v40 = vsub.f32 %v2760_v8, %v2824_v17  ;;  %v2699_v2 = vadd.f32 %v6330_v32, %v6321_v3  ;;  %v6518_v20 = vpop.f32.mrb[109].mxu1 }
 0x335   : > { %v3571_v54 = vadd.f32 %v6086_v12, %v3425_v35  ;;  %3700 = vst [vmem:[%s6219_s12 + $0x98] sm:$0xff] %v3572_v38  ;;  %v3427_v59 = vmul.f32 %v6064_v18, %v3280_v0  ;;  %v3428_v19 = vmul.f32 %v6066_v56, %v3281_v43  ;;  %v6513_v24 = vadd.f32 %v6394_v9, %v8181_v42  ;;  %v6520_v22 = vpop.xlane.xlu1 %2607  ;;  %v6528_v48 = vpop.f32.mrb[110].mxu1  ;;  %v8183_v0 = vld [vmem:[#allocation107_spill] sm:$0xff] }
 0x336   : > { %v6516_v35 = vmul.f32 0.00390625, %v6396_v16  ;;  %v6524_v3 = vmul.f32 %v6375_v39, %v6375_v39  ;;  %4442 = vrsqrt.f32 %v3015_v45  ;;  %v2952_v32 = vmax.f32 %v2888_v40, 0.0  ;;  %2700 = vadd.xlane.f32.xlu0 %v2699_v2 }
 0x337   : > { %3699 = vst [vmem:[%s6219_s12 + $0x90] sm:$0xff] %v3571_v54  ;;  %v2702_v9 = vadd.f32 %v6340_v34, %v6336_v57  ;;  %v3573_v16 = vadd.f32 %v6086_v12, %v3427_v59  ;;  %v3574_v17 = vadd.f32 %v6100_v52, %v3428_v19  ;;  %v6534_v8 = vmul.f32 %v6390_v28, %v6390_v28  ;;  %v6540_v54 = vpop.f32.mrb[111].mxu1  ;;  %v6542_v38 = vpop.xlane.xlu0 %2225  ;;  %v8182_v57 = vld [vmem:[#allocation106_spill] sm:$0xff] }
 0x338   : > { %v6538_v45 = vmul.f32 %v6411_v11, %v6411_v11  ;;  %v3156_v34 = vsub.f32 %v8182_v57, %v6417_v21  ;;  %v3157_v43 = vsub.f32 %v8183_v0, %v6417_v21  ;;  %v3016_v40 = vadd.f32 1e-05, %v2952_v32 }
 0x339   : > { %2703 = vadd.xlane.f32.xlu1 %v2702_v9  ;;  %v6549_v2 = vmul.f32 0.00390625, %v6413_v7  ;;  %3701 = vst [vmem:[%s6219_s12 + $0xa0] sm:$0xff] %v3573_v16  ;;  %3702 = vst [vmem:[%s6219_s12 + $0xa8] sm:$0xff] %v3574_v17  ;;  %v2320_v59 = vadd.f32 %v6308_v58, %v6301_v46  ;;  %v2825_v19 = vmul.f32 %v6516_v35, %v6516_v35  ;;  %v2761_v42 = vmul.f32 0.00390625, %v6433_v25  ;;  %v6562_v21 = vpop.xlane.xlu1 %2228  ;;  %v4441_v32 = vpop.eup %4440  ;;  %v8186_v7 = vld [vmem:[#allocation108_spill] sm:$0xff]  ;;  %v8191_v46 = vld [vmem:[#allocation109_spill] sm:$0xff] }
 0x33a   : > { %v6560_v57 = vadd.f32 %v6442_v31, %v8184_v26  ;;  %4444 = vrsqrt.f32 %v3016_v40  ;;  %v2323_v16 = vadd.f32 %v6324_v15, %v6313_v51  ;;  %v8187_v17 = vld [vmem:[#allocation88_spill] sm:$0xff]  ;;  %v8189_v25 = vsub.f32 %v5682_v1, %v6360_v33  ;;  %v8192_v15 = vld [vmem:[#allocation89_spill] sm:$0xff] }
 0x33b   : > { %v6570_v0 = vadd.f32 %v6452_v27, %v8187_v17  ;;  %v8190_v26 = vsub.f32 %v8179_v29, %v6360_v33  ;;  %v3159_v6 = vsub.f32 %v8191_v46, %v6440_v5  ;;  %2321 = vadd.xlane.f32.xlu0 %v2320_v59  ;;  %v2889_v40 = vsub.f32 %v2761_v42, %v2825_v19  ;;  %v6580_v9 = vpop.xlane.xlu0 %2610  ;;  %v6591_v29 = vpop.f32.mrb[112].mxu1  ;;  %v8193_v42 = vld [vmem:[#allocation90_spill] sm:$0xff] }
 0x33c   : > { %8185 = vst [vmem:[#allocation83_spill] sm:$0xff] %v6560_v57  ;;  %v3282_v58 = vmul.f32 %v4441_v32, %v8189_v25  ;;  %v2826_v27 = vmul.f32 %v6549_v2, %v6549_v2  ;;  %v2762_v17 = vmul.f32 0.00390625, %v6454_v4  ;;  %v6587_v1 = vadd.f32 %v6465_v30, %v8192_v15 }
 0x33d   : > { %8188 = vst [vmem:[#allocation84_spill] sm:$0xff] %v6570_v0  ;;  %v3283_v31 = vmul.f32 %v4441_v32, %v8190_v26  ;;  %2324 = vadd.xlane.f32.xlu1 %v2323_v16  ;;  %v2705_v33 = vadd.f32 %v6408_v55, %v6404_v49  ;;  %v2953_v19 = vmax.f32 %v2889_v40, 0.0  ;;  %v6597_v32 = vadd.f32 %v6472_v63, %v8193_v42  ;;  %v6599_v16 = vpop.f32.mrb[113].mxu1  ;;  %v6601_v4 = vpop.xlane.xlu1 %2613 }
 0x33e   : > { %v3429_v46 = vmul.f32 %v6064_v18, %v3282_v58  ;;  %v6605_v15 = vmul.f32 %v6460_v61, %v6460_v61  ;;  %v6609_v49 = vmul.f32 %v6463_v23, %v6463_v23  ;;  %v2890_v58 = vsub.f32 %v2762_v17, %v2826_v27  ;;  %v6613_v63 = vpop.f32.mrb[114].mxu1 }
 0x33f   : > { %v3430_v59 = vmul.f32 %v6066_v56, %v3283_v31  ;;  %v2708_v55 = vadd.f32 %v6429_v41, %v6425_v60  ;;  %v6619_v26 = vmul.f32 %v6491_v14, %v6491_v14  ;;  %v3017_v31 = vadd.f32 1e-05, %v2953_v19  ;;  %2706 = vadd.xlane.f32.xlu0 %v2705_v33  ;;  %v6621_v40 = vpop.f32.mrb[115].mxu1  ;;  %v6623_v27 = vpop.xlane.xlu0 %2231  ;;  %v8195_v41 = vld [vmem:[#allocation110_spill] sm:$0xff] }
 0x340   : > { %v3575_v30 = vadd.f32 %v6086_v12, %v3429_v46  ;;  %v4443_v17 = vpop.eup %4442  ;;  %v6627_v60 = vmul.f32 %v6513_v24, %v6513_v24  ;;  %v2954_v42 = vmax.f32 %v2890_v58, 0.0  ;;  %v2326_v51 = vadd.f32 %v6375_v39, %v6354_v44  ;;  %v8197_v46 = vld [vmem:[#allocation112_spill] sm:$0xff] }
 0x341   : > { %v3576_v25 = vadd.f32 %v6100_v52, %v3430_v59  ;;  %v6632_v59 = vmul.f32 0.00390625, %v6474_v53  ;;  %2709 = vadd.xlane.f32.xlu1 %v2708_v55  ;;  %v3284_v33 = vmul.f32 %v4443_v17, %v3156_v34  ;;  %v3285_v19 = vmul.f32 %v4443_v17, %v3157_v43  ;;  %v6638_v50 = vpop.xlane.xlu1 %2234 }
 0x342   : > { %8194 = vst [vmem:[#allocation105_spill] sm:$0xff] %v6627_v60  ;;  %3703 = vst [vmem:[%s6219_s12 + $0xb0] sm:$0xff] %v3575_v30  ;;  %4446 = vrsqrt.f32 %v3017_v31  ;;  %v3161_v62 = vsub.f32 %v8196_v47, %v6516_v35  ;;  %v3018_v60 = vadd.f32 1e-05, %v2954_v42  ;;  %v6645_v53 = vmul.f32 0.00390625, %v6484_v10  ;;  %v8198_v30 = vld [vmem:[#allocation91_spill] sm:$0xff] }
 0x343   : > { %3704 = vst [vmem:[%s6219_s12 + $0xb8] sm:$0xff] %v3576_v25  ;;  %v3431_v55 = vmul.f32 %v6064_v18, %v3284_v33  ;;  %v3432_v34 = vmul.f32 %v6066_v56, %v3285_v19  ;;  %2327 = vadd.xlane.f32.xlu0 %v2326_v51  ;;  %v2763_v43 = vmul.f32 0.00390625, %v6497_v36  ;;  %v6652_v25 = vadd.f32 %v6505_v13, %v8198_v30  ;;  %v6654_v31 = vpop.xlane.xlu0 %2616  ;;  %v8199_v42 = vld [vmem:[#allocation92_spill] sm:$0xff]  ;;  %v6664_v36 = vpop.f32.mrb[116].mxu1 }
 0x344   : > { %v4445_v47 = vpop.eup %4444  ;;  %4448 = vrsqrt.f32 %v3018_v60  ;;  %v2827_v17 = vmul.f32 %v6632_v59, %v6632_v59  ;;  %v2329_v10 = vadd.f32 %v6411_v11, %v6390_v28  ;;  %v6662_v51 = vadd.f32 %v6518_v20, %v8199_v42  ;;  %v6673_v39 = vpop.f32.mrb[117].mxu1  ;;  %v8201_v11 = vld [vmem:[#allocation113_spill] sm:$0xff] }
 0x345   : > { %v3577_v13 = vadd.f32 %v6086_v12, %v3431_v55  ;;  %v3578_v33 = vadd.f32 %v6100_v52, %v3432_v34  ;;  %v8200_v60 = vsub.f32 %v8186_v7, %v6440_v5  ;;  %v3287_v30 = vmul.f32 %v4445_v47, %v3159_v6  ;;  %v6671_v58 = vpop.xlane.xlu1 %2619  ;;  %v6680_v34 = vpop.f32.mrb[118].mxu1  ;;  %v8202_v7 = vld [vmem:[#allocation93_spill] sm:$0xff] }
 0x346   : > { %v3163_v28 = vsub.f32 %v8201_v11, %v6549_v2  ;;  %v2891_v20 = vsub.f32 %v2763_v43, %v2827_v17  ;;  %2330 = vadd.xlane.f32.xlu1 %v2329_v10  ;;  %v2828_v42 = vmul.f32 %v6645_v53, %v6645_v53  ;;  %v2764_v55 = vmul.f32 0.00390625, %v6520_v22  ;;  %v6694_v17 = vpop.f32.mrb[119].mxu1 }
 0x347   : > { %v3286_v19 = vmul.f32 %v4445_v47, %v8200_v60  ;;  %3705 = vst [vmem:[%s6219_s12 + $0xc0] sm:$0xff] %v3577_v13  ;;  %3706 = vst [vmem:[%s6219_s12 + $0xc8] sm:$0xff] %v3578_v33  ;;  %v3434_v5 = vmul.f32 %v6066_v56, %v3287_v30  ;;  %v6688_v47 = vadd.f32 %v6528_v48, %v8202_v7  ;;  %v6692_v43 = vpop.xlane.xlu0 %2237  ;;  %v8203_v33 = vld [vmem:[#allocation94_spill] sm:$0xff] }
 0x348   : > { %v2711_v11 = vadd.f32 %v6524_v3, %v6501_v37  ;;  %v6698_v22 = vmul.f32 %v6560_v57, %v6560_v57  ;;  %v2955_v10 = vmax.f32 %v2891_v20, 0.0  ;;  %v2892_v13 = vsub.f32 %v2764_v55, %v2828_v42 }
 0x349   : > { %v3433_v6 = vmul.f32 %v6064_v18, %v3286_v19  ;;  %v6702_v60 = vadd.f32 %v6540_v54, %v8203_v33  ;;  %v3580_v37 = vadd.f32 %v6100_v52, %v3434_v5  ;;  %v6707_v3 = vmul.f32 0.00390625, %v6542_v38  ;;  %v6711_v30 = vpop.xlane.xlu1 %2240 }
 0x34a   : > { %2712 = vadd.xlane.f32.xlu0 %v2711_v11  ;;  %v2714_v19 = vadd.f32 %v6538_v45, %v6534_v8  ;;  %v6715_v20 = vmul.f32 %v6570_v0, %v6570_v0  ;;  %v6719_v54 = vmul.f32 %v6587_v1, %v6587_v1  ;;  %v3019_v42 = vadd.f32 1e-05, %v2955_v10  ;;  %v8204_v8 = vld [vmem:[#allocation114_spill] sm:$0xff]  ;;  %v8207_v45 = vld [vmem:[#allocation95_spill] sm:$0xff] }
 0x34b   : > { %v3579_v48 = vadd.f32 %v6086_v12, %v3433_v6  ;;  %v2956_v55 = vmax.f32 %v2892_v13, 0.0  ;;  %3708 = vst [vmem:[%s6219_s12 + $0xd8] sm:$0xff] %v3580_v37  ;;  %v6725_v38 = vmul.f32 %v6597_v32, %v6597_v32  ;;  %v6730_v5 = vmul.f32 0.00390625, %v6562_v21  ;;  %v6734_v11 = vpop.xlane.xlu0 %2622  ;;  %v8206_v37 = vld [vmem:[#allocation115_spill] sm:$0xff] }
 0x34c   : > { %v4447_v6 = vpop.eup %4446  ;;  %2715 = vadd.xlane.f32.xlu1 %v2714_v19  ;;  %v2332_v7 = vadd.f32 %v6463_v23, %v6460_v61  ;;  %v8205_v10 = vsub.f32 %v8195_v41, %v6516_v35  ;;  %4450 = vrsqrt.f32 %v3019_v42  ;;  %v3165_v44 = vsub.f32 %v8206_v37, %v6632_v59 }
 0x34d   : > { %3707 = vst [vmem:[%s6219_s12 + $0xd0] sm:$0xff] %v3579_v48  ;;  %v3289_v33 = vmul.f32 %v4447_v6, %v3161_v62  ;;  %v3020_v48 = vadd.f32 1e-05, %v2956_v55  ;;  %v2829_v21 = vmul.f32 %v6707_v3, %v6707_v3  ;;  %v2765_v19 = vmul.f32 0.00390625, %v6580_v9  ;;  %v6748_v61 = vpop.xlane.xlu1 %2625 }
 0x34e   : > { %v3288_v13 = vmul.f32 %v4447_v6, %v8205_v10  ;;  %2333 = vadd.xlane.f32.xlu0 %v2332_v7  ;;  %v6746_v23 = vadd.f32 %v6591_v29, %v8207_v45  ;;  %v4449_v35 = vpop.eup %4448  ;;  %v2335_v42 = vadd.f32 %v6513_v24, %v6491_v14  ;;  %v8208_v55 = vsub.f32 %v8197_v46, %v6549_v2  ;;  %v8209_v29 = vld [vmem:[#allocation116_spill] sm:$0xff] }
 0x34f   : > { %v3436_v41 = vmul.f32 %v6066_v56, %v3289_v33  ;;  %4452 = vrsqrt.f32 %v3020_v48  ;;  %v3291_v6 = vmul.f32 %v4449_v35, %v3163_v28  ;;  %v3166_v45 = vsub.f32 %v8209_v29, %v6645_v53  ;;  %v6759_v10 = vpop.xlane.xlu0 %2243  ;;  %v8210_v48 = vld [vmem:[#allocation96_spill] sm:$0xff] }
 0x350   : > { %v3435_v62 = vmul.f32 %v6064_v18, %v3288_v13  ;;  %v3290_v9 = vmul.f32 %v4449_v35, %v8208_v55  ;;  %v2893_v7 = vsub.f32 %v2765_v19, %v2829_v21  ;;  %2336 = vadd.xlane.f32.xlu1 %v2335_v42  ;;  %v6765_v37 = vadd.f32 %v6599_v16, %v8210_v48 }
 0x351   : > { %v3582_v33 = vadd.f32 %v6100_v52, %v3436_v41  ;;  %v2830_v2 = vmul.f32 %v6730_v5, %v6730_v5  ;;  %v3438_v46 = vmul.f32 %v6066_v56, %v3291_v6  ;;  %v2766_v21 = vmul.f32 0.00390625, %v6601_v4  ;;  %v6772_v19 = vpop.xlane.xlu1 %2246  ;;  %v8212_v41 = vld [vmem:[#allocation97_spill] sm:$0xff] }
 0x352   : > { %v3581_v13 = vadd.f32 %v6086_v12, %v3435_v62  ;;  %v3437_v28 = vmul.f32 %v6064_v18, %v3290_v9  ;;  %v2957_v35 = vmax.f32 %v2893_v7, 0.0  ;;  %v8211_v62 = vld [vmem:[#allocation117_spill] sm:$0xff]  ;;  %v6780_v42 = vadd.f32 %v6613_v63, %v8212_v41  ;;  %v8213_v9 = vld [vmem:[#allocation98_spill] sm:$0xff] }
 0x353   : > { %3710 = vst [vmem:[%s6219_s12 + $0xe8] sm:$0xff] %v3582_v33  ;;  %v3167_v16 = vsub.f32 %v8211_v62, %v6645_v53  ;;  %v2717_v55 = vadd.f32 %v6609_v49, %v6605_v15  ;;  %v6786_v6 = vadd.f32 %v6621_v40, %v8213_v9  ;;  %v3584_v29 = vadd.f32 %v6100_v52, %v3438_v46  ;;  %v6790_v33 = vpop.xlane.xlu0 %2628  ;;  %v8214_v49 = vld [vmem:[#allocation105_spill] sm:$0xff] }
 0x354   : > { %3709 = vst [vmem:[%s6219_s12 + $0xe0] sm:$0xff] %v3581_v13  ;;  %v3583_v4 = vadd.f32 %v6086_v12, %v3437_v28  ;;  %v3021_v7 = vadd.f32 1e-05, %v2957_v35  ;;  %v2894_v13 = vsub.f32 %v2766_v21, %v2830_v2  ;;  %v6794_v53 = vmul.f32 %v6652_v25, %v6652_v25 }
 0x355   : > { %v6798_v63 = vmul.f32 %v6662_v51, %v6662_v51  ;;  %2718 = vadd.xlane.f32.xlu0 %v2717_v55  ;;  %v6801_v15 = vmul.f32 0.00390625, %v6623_v27  ;;  %v2720_v40 = vadd.f32 %v8214_v49, %v6619_v26  ;;  %3712 = vst [vmem:[%s6219_s12 + $0xf8] sm:$0xff] %v3584_v29  ;;  %v6809_v48 = vmul.f32 %v6688_v47, %v6688_v47  ;;  %v6815_v46 = vpop.xlane.xlu1 %2631  ;;  %v8217_v49 = vld [vmem:[#allocation12_spill] sm:$0xff] }
 0x356   : > { %3711 = vst [vmem:[%s6219_s12 + $0xf0] sm:$0xff] %v3583_v4  ;;  %v6813_v2 = vmul.f32 %v6702_v60, %v6702_v60  ;;  %4454 = vrsqrt.f32 %v3021_v7  ;;  %v2958_v28 = vmax.f32 %v2894_v13, 0.0  ;;  %v4451_v35 = vpop.eup %4450  ;;  %v6818_v27 = vmul.f32 0.00390625, %v6638_v50  ;;  %v8216_v4 = vld [vmem:[#allocation118_spill] sm:$0xff] }
 0x357   : > { %2721 = vadd.xlane.f32.xlu1 %v2720_v40  ;;  %v2338_v26 = vadd.f32 %v6570_v0, %v6560_v57  ;;  %v2831_v21 = vmul.f32 %v6801_v15, %v6801_v15  ;;  %v2767_v62 = vmul.f32 0.00390625, %v6654_v31  ;;  %v8215_v41 = vsub.f32 %v8204_v8, %v6632_v59  ;;  %v6830_v13 = vpop.xlane.xlu0 %2249  ;;  %v8218_v57 = vld [vmem:[#allocation99_spill] sm:$0xff] }
 0x358   : > { %v3293_v9 = vmul.f32 %v4451_v35, %v3165_v44  ;;  %v3168_v29 = vsub.f32 %v8216_v4, %v6707_v3  ;;  %v3022_v7 = vadd.f32 1e-05, %v2958_v28  ;;  %v3169_v40 = vsub.f32 %v8217_v49, %v6707_v3  ;;  %v8219_v3 = vld [vmem:[#allocation13_spill] sm:$0xff] }
 0x359   : > { %v3292_v55 = vmul.f32 %v4451_v35, %v8215_v41  ;;  %v4453_v50 = vpop.eup %4452  ;;  %2339 = vadd.xlane.f32.xlu0 %v2338_v26  ;;  %v2895_v0 = vsub.f32 %v2767_v62, %v2831_v21  ;;  %v2341_v31 = vadd.f32 %v6597_v32, %v6587_v1  ;;  %v6838_v59 = vadd.f32 %v6664_v36, %v8218_v57  ;;  %v6842_v41 = vpop.xlane.xlu1 %2252 }
 0x35a   : > { %v3440_v8 = vmul.f32 %v6066_v56, %v3293_v9  ;;  %v3294_v28 = vmul.f32 %v4453_v50, %v3166_v45  ;;  %v3295_v35 = vmul.f32 %v4453_v50, %v3167_v16  ;;  %v3170_v26 = vsub.f32 %v8219_v3, %v6730_v5  ;;  %v8220_v50 = vld [vmem:[#allocation100_spill] sm:$0xff] }
 0x35b   : > { %v3439_v44 = vmul.f32 %v6064_v18, %v3292_v55  ;;  %4456 = vrsqrt.f32 %v3022_v7  ;;  %v2959_v21 = vmax.f32 %v2895_v0, 0.0  ;;  %2342 = vadd.xlane.f32.xlu1 %v2341_v31  ;;  %v2832_v57 = vmul.f32 %v6818_v27, %v6818_v27  ;;  %v6852_v55 = vpop.xlane.xlu0 %2634 }
 0x35c   : > { %v3586_v62 = vadd.f32 %v6100_v52, %v3440_v8  ;;  %v3441_v45 = vmul.f32 %v6064_v18, %v3294_v28  ;;  %v3442_v16 = vmul.f32 %v6066_v56, %v3295_v35  ;;  %v2768_v4 = vmul.f32 0.00390625, %v6671_v58 }
 0x35d   : > { %v3585_v36 = vadd.f32 %v6086_v12, %v3439_v44  ;;  %v3023_v9 = vadd.f32 1e-05, %v2959_v21  ;;  %v6857_v0 = vadd.f32 %v6673_v39, %v8220_v50  ;;  %v2723_v7 = vadd.f32 %v6715_v20, %v6698_v22  ;;  %v8221_v44 = vld [vmem:[#allocation101_spill] sm:$0xff]  ;;  %v6872_v28 = vpop.xlane.xlu1 %2637  ;;  %v8222_v39 = vld [vmem:[#allocation14_spill] sm:$0xff] }
 0x35e   : > { %3714 = vst [vmem:[%s6219_s12 + $0x108] sm:$0xff] %v3586_v62  ;;  %v3587_v49 = vadd.f32 %v6086_v12, %v3441_v45  ;;  %v3588_v31 = vadd.f32 %v6100_v52, %v3442_v16  ;;  %v6867_v8 = vadd.f32 %v6680_v34, %v8221_v44  ;;  %v6870_v58 = vmul.f32 0.00390625, %v6692_v43  ;;  %v8223_v20 = vld [vmem:[#allocation102_spill] sm:$0xff] }
 0x35f   : > { %3713 = vst [vmem:[%s6219_s12 + $0x100] sm:$0xff] %v3585_v36  ;;  %v3171_v35 = vsub.f32 %v8222_v39, %v6730_v5  ;;  %4458 = vrsqrt.f32 %v3023_v9  ;;  %v2896_v22 = vsub.f32 %v2768_v4, %v2832_v57  ;;  %2724 = vadd.xlane.f32.xlu0 %v2723_v7  ;;  %v6878_v3 = vadd.f32 %v6694_v17, %v8223_v20  ;;  %v6896_v17 = vpop.xlane.xlu0 %2255  ;;  %v8224_v7 = vld [vmem:[#allocation15_spill] sm:$0xff] }
 0x360   : > { %v4455_v21 = vpop.eup %4454  ;;  %3715 = vst [vmem:[%s6219_s12 + $0x110] sm:$0xff] %v3587_v49  ;;  %3716 = vst [vmem:[%s6219_s12 + $0x118] sm:$0xff] %v3588_v31  ;;  %v6884_v34 = vmul.f32 %v6746_v23, %v6746_v23  ;;  %v6888_v43 = vmul.f32 %v6765_v37, %v6765_v37  ;;  %v6892_v5 = vmul.f32 %v6780_v42, %v6780_v42  ;;  %v6903_v9 = vmul.f32 0.00390625, %v6711_v30  ;;  %v8225_v30 = vld [vmem:[#allocation16_spill] sm:$0xff] }
 0x361   : > { %v2726_v57 = vadd.f32 %v6725_v38, %v6719_v54  ;;  %v3296_v36 = vmul.f32 %v4455_v21, %v3168_v29  ;;  %v3297_v62 = vmul.f32 %v4455_v21, %v3169_v40  ;;  %v6900_v45 = vmul.f32 %v6786_v6, %v6786_v6  ;;  %v6910_v38 = vpop.xlane.xlu1 %2258 }
 0x362   : > { %v2960_v16 = vmax.f32 %v2896_v22, 0.0  ;;  %v2344_v4 = vadd.f32 %v6662_v51, %v6652_v25  ;;  %v2833_v50 = vmul.f32 %v6870_v58, %v6870_v58  ;;  %v2769_v54 = vmul.f32 0.00390625, %v6734_v11 }
 0x363   : > { %2727 = vadd.xlane.f32.xlu1 %v2726_v57  ;;  %v3443_v29 = vmul.f32 %v6064_v18, %v3296_v36  ;;  %v3444_v40 = vmul.f32 %v6066_v56, %v3297_v62  ;;  %v3172_v49 = vsub.f32 %v8224_v7, %v6801_v15  ;;  %v3173_v44 = vsub.f32 %v8225_v30, %v6801_v15  ;;  %v6922_v20 = vpop.xlane.xlu0 %2640  ;;  %v8226_v7 = vld [vmem:[#allocation17_spill] sm:$0xff] }
 0x364   : > { %v3024_v31 = vadd.f32 1e-05, %v2960_v16  ;;  %2345 = vadd.xlane.f32.xlu0 %v2344_v4  ;;  %v2897_v39 = vsub.f32 %v2769_v54, %v2833_v50  ;;  %v2347_v11 = vadd.f32 %v6702_v60, %v6688_v47  ;;  %v2834_v22 = vmul.f32 %v6903_v9, %v6903_v9 }
 0x365   : > { %v4457_v21 = vpop.eup %4456  ;;  %v3589_v57 = vadd.f32 %v6086_v12, %v3443_v29  ;;  %v3590_v36 = vadd.f32 %v6100_v52, %v3444_v40  ;;  %v2770_v15 = vmul.f32 0.00390625, %v6748_v61  ;;  %v2729_v50 = vadd.f32 %v6798_v63, %v6794_v53  ;;  %v6929_v54 = vpop.xlane.xlu1 %2643  ;;  %v8227_v29 = vld [vmem:[#allocation18_spill] sm:$0xff] }
 0x366   : > { %4460 = vrsqrt.f32 %v3024_v31  ;;  %v3298_v62 = vmul.f32 %v4457_v21, %v3170_v26  ;;  %v3299_v16 = vmul.f32 %v4457_v21, %v3171_v35  ;;  %v2961_v4 = vmax.f32 %v2897_v39, 0.0 }
 0x367   : > { %2348 = vadd.xlane.f32.xlu1 %v2347_v11  ;;  %3717 = vst [vmem:[%s6219_s12 + $0x120] sm:$0xff] %v3589_v57  ;;  %3718 = vst [vmem:[%s6219_s12 + $0x128] sm:$0xff] %v3590_v36  ;;  %v3174_v30 = vsub.f32 %v8226_v7, %v6818_v27  ;;  %v3175_v40 = vsub.f32 %v8227_v29, %v6818_v27  ;;  %v2898_v31 = vsub.f32 %v2770_v15, %v2834_v22  ;;  %v6944_v63 = vpop.xlane.xlu0 %2261 }
 0x368   : > { %v6938_v61 = vmul.f32 0.00390625, %v6759_v10  ;;  %v3445_v26 = vmul.f32 %v6064_v18, %v3298_v62  ;;  %v3446_v35 = vmul.f32 %v6066_v56, %v3299_v16  ;;  %v3025_v39 = vadd.f32 1e-05, %v2961_v4  ;;  %2730 = vadd.xlane.f32.xlu0 %v2729_v50 }
 0x369   : > { %v2732_v53 = vadd.f32 %v6813_v2, %v6809_v48  ;;  %v4459_v11 = vpop.eup %4458  ;;  %v6948_v27 = vmul.f32 %v6838_v59, %v6838_v59  ;;  %v2962_v10 = vmax.f32 %v2898_v31, 0.0  ;;  %v6951_v22 = vmul.f32 0.00390625, %v6772_v19  ;;  %v6957_v15 = vpop.xlane.xlu1 %2264 }
 0x36a   : > { %v2350_v21 = vadd.f32 %v6765_v37, %v6746_v23  ;;  %v3591_v57 = vadd.f32 %v6086_v12, %v3445_v26  ;;  %v3592_v48 = vadd.f32 %v6100_v52, %v3446_v35  ;;  %v3300_v2 = vmul.f32 %v4459_v11, %v3172_v49 }
 0x36b   : > { %v3301_v36 = vmul.f32 %v4459_v11, %v3173_v44  ;;  %2733 = vadd.xlane.f32.xlu1 %v2732_v53  ;;  %v6961_v62 = vmul.f32 %v6857_v0, %v6857_v0  ;;  %4462 = vrsqrt.f32 %v3025_v39  ;;  %v3026_v16 = vadd.f32 1e-05, %v2962_v10  ;;  %v6972_v7 = vpop.xlane.xlu0 %2646 }
 0x36c   : > { %v2835_v19 = vmul.f32 %v6938_v61, %v6938_v61  ;;  %3719 = vst [vmem:[%s6219_s12 + $0x130] sm:$0xff] %v3591_v57  ;;  %3720 = vst [vmem:[%s6219_s12 + $0x138] sm:$0xff] %v3592_v48  ;;  %v3447_v4 = vmul.f32 %v6064_v18, %v3300_v2  ;;  %2351 = vadd.xlane.f32.xlu0 %v2350_v21  ;;  %v2771_v49 = vmul.f32 0.00390625, %v6790_v33  ;;  %v2772_v31 = vmul.f32 0.00390625, %v6815_v46  ;;  %v8228_v46 = vld [vmem:[#allocation19_spill] sm:$0xff] }
 0x36d   : > { %v3448_v50 = vmul.f32 %v6066_v56, %v3301_v36  ;;  %v2353_v44 = vadd.f32 %v6786_v6, %v6780_v42  ;;  %4464 = vrsqrt.f32 %v3026_v16  ;;  %v2836_v29 = vmul.f32 %v6951_v22, %v6951_v22  ;;  %v6984_v11 = vpop.xlane.xlu1 %2649 }
 0x36e   : > { %v2735_v26 = vadd.f32 %v6888_v43, %v6884_v34  ;;  %v3593_v35 = vadd.f32 %v6086_v12, %v3447_v4  ;;  %v2899_v39 = vsub.f32 %v2771_v49, %v2835_v19  ;;  %v6982_v53 = vmul.f32 0.00390625, %v6830_v13  ;;  %v8229_v19 = vld [vmem:[#allocation20_spill] sm:$0xff] }
 0x36f   : > { %v3594_v33 = vadd.f32 %v6100_v52, %v3448_v50  ;;  %2354 = vadd.xlane.f32.xlu1 %v2353_v44  ;;  %v2553_v21 = vmul.f32 %v6867_v8, %v6867_v8  ;;  %v3176_v57 = vsub.f32 %v8228_v46, %v6870_v58  ;;  %v2900_v48 = vsub.f32 %v2772_v31, %v2836_v29  ;;  %v6997_v16 = vpop.xlane.xlu0 %2267 }
 0x370   : > { %v4461_v10 = vpop.eup %4460  ;;  %v6991_v34 = vmul.f32 0.00390625, %v6842_v41  ;;  %3721 = vst [vmem:[%s6219_s12 + $0x140] sm:$0xff] %v3593_v35  ;;  %v2963_v36 = vmax.f32 %v2899_v39, 0.0  ;;  %2736 = vadd.xlane.f32.xlu0 %v2735_v26  ;;  %v2738_v13 = vadd.f32 %v6900_v45, %v6892_v5  ;;  %v3177_v4 = vsub.f32 %v8229_v19, %v6870_v58 }
 0x371   : > { %3722 = vst [vmem:[%s6219_s12 + $0x148] sm:$0xff] %v3594_v33  ;;  %v3302_v43 = vmul.f32 %v4461_v10, %v3174_v30  ;;  %v3303_v2 = vmul.f32 %v4461_v10, %v3175_v40  ;;  %v2554_v50 = vmul.f32 %v6878_v3, %v6878_v3  ;;  %v2964_v49 = vmax.f32 %v2900_v48, 0.0  ;;  %v7009_v45 = vpop.xlane.xlu1 %2270  ;;  %v8230_v48 = vld [vmem:[#allocation21_spill] sm:$0xff] }
 0x372   : > { %v2356_v41 = vadd.f32 %v6857_v0, %v6838_v59  ;;  %v3027_v44 = vadd.f32 1e-05, %v2963_v36  ;;  %v2837_v5 = vmul.f32 %v6982_v53, %v6982_v53  ;;  %v2773_v29 = vmul.f32 0.00390625, %v6852_v55 }
 0x373   : > { %v3449_v30 = vmul.f32 %v6064_v18, %v3302_v43  ;;  %v3450_v40 = vmul.f32 %v6066_v56, %v3303_v2  ;;  %2739 = vadd.xlane.f32.xlu1 %v2738_v13  ;;  %v3028_v58 = vadd.f32 1e-05, %v2964_v49  ;;  %v2359_v31 = vadd.f32 %v6878_v3, %v6867_v8  ;;  %v7019_v10 = vpop.xlane.xlu0 %2652  ;;  %v8231_v43 = vld [vmem:[#allocation22_spill] sm:$0xff] }
 0x374   : > { %v2838_v26 = vmul.f32 %v6991_v34, %v6991_v34  ;;  %4466 = vrsqrt.f32 %v3027_v44  ;;  %2357 = vadd.xlane.f32.xlu0 %v2356_v41  ;;  %v2774_v39 = vmul.f32 0.00390625, %v6872_v28  ;;  %v3178_v55 = vsub.f32 %v8230_v48, %v6903_v9 }
 0x375   : > { %v3595_v35 = vadd.f32 %v6086_v12, %v3449_v30  ;;  %v3596_v33 = vadd.f32 %v6100_v52, %v3450_v40  ;;  %v4463_v46 = vpop.eup %4462  ;;  %v3179_v2 = vsub.f32 %v8231_v43, %v6903_v9  ;;  %4468 = vrsqrt.f32 %v3028_v58  ;;  %v7029_v41 = vpop.xlane.xlu1 %2655 }
 0x376   : > { %v2901_v36 = vsub.f32 %v2773_v29, %v2837_v5  ;;  %v3304_v13 = vmul.f32 %v4463_v46, %v3176_v57  ;;  %v3305_v19 = vmul.f32 %v4463_v46, %v3177_v4  ;;  %v2902_v49 = vsub.f32 %v2774_v39, %v2838_v26 }
 0x377   : > { %3723 = vst [vmem:[%s6219_s12 + $0x150] sm:$0xff] %v3595_v35  ;;  %3724 = vst [vmem:[%s6219_s12 + $0x158] sm:$0xff] %v3596_v33  ;;  %2360 = vadd.xlane.f32.xlu1 %v2359_v31  ;;  %v2741_v28 = vadd.f32 %v6961_v62, %v6948_v27  ;;  %v4465_v30 = vpop.eup %4464  ;;  %v7032_v44 = vmul.f32 0.00390625, %v6896_v17  ;;  %v2744_v48 = vadd.f32 %v2554_v50, %v2553_v21  ;;  %v7035_v9 = vmul.f32 0.00390625, %v6910_v38  ;;  %v7039_v27 = vpop.xlane.xlu0 %2273  ;;  %v8232_v62 = vld [vmem:[#allocation23_spill] sm:$0xff]  ;;  %v8233_v17 = vld [vmem:[#allocation24_spill] sm:$0xff] }
 0x378   : > { %v2965_v40 = vmax.f32 %v2901_v36, 0.0  ;;  %v3451_v5 = vmul.f32 %v6064_v18, %v3304_v13  ;;  %v3452_v57 = vmul.f32 %v6066_v56, %v3305_v19  ;;  %v3306_v4 = vmul.f32 %v4465_v30, %v3178_v55 }
 0x379   : > { %v3307_v58 = vmul.f32 %v4465_v30, %v3179_v2  ;;  %2742 = vadd.xlane.f32.xlu0 %v2741_v28  ;;  %v3180_v29 = vsub.f32 %v8232_v62, %v6938_v61  ;;  %v3181_v21 = vsub.f32 %v8233_v17, %v6938_v61  ;;  %v2966_v38 = vmax.f32 %v2902_v49, 0.0  ;;  %v7049_v39 = vpop.xlane.xlu1 %2276  ;;  %v8234_v49 = vld [vmem:[#allocation25_spill] sm:$0xff]  ;;  %v8235_v30 = vld [vmem:[#allocation26_spill] sm:$0xff] }
 0x37a   : > { %v3029_v50 = vadd.f32 1e-05, %v2965_v40  ;;  %v3597_v31 = vadd.f32 %v6086_v12, %v3451_v5  ;;  %v3598_v26 = vadd.f32 %v6100_v52, %v3452_v57  ;;  %v3453_v35 = vmul.f32 %v6064_v18, %v3306_v4  ;;  %v8236_v5 = vld [vmem:[#allocation27_spill] sm:$0xff]  ;;  %v8237_v4 = vld [vmem:[#allocation28_spill] sm:$0xff] }
 0x37b   : > { %v3454_v33 = vmul.f32 %v6066_v56, %v3307_v58  ;;  %2745 = vadd.xlane.f32.xlu1 %v2744_v48  ;;  %v3030_v46 = vadd.f32 1e-05, %v2966_v38  ;;  %v2839_v61 = vmul.f32 %v7032_v44, %v7032_v44  ;;  %v2775_v55 = vmul.f32 0.00390625, %v6922_v20  ;;  %v7061_v19 = vpop.xlane.xlu0 %2658 }
 0x37c   : > { %4470 = vrsqrt.f32 %v3029_v50  ;;  %3725 = vst [vmem:[%s6219_s12 + $0x160] sm:$0xff] %v3597_v31  ;;  %3726 = vst [vmem:[%s6219_s12 + $0x168] sm:$0xff] %v3598_v26  ;;  %v3599_v43 = vadd.f32 %v6086_v12, %v3453_v35  ;;  %v2840_v36 = vmul.f32 %v7035_v9, %v7035_v9  ;;  %v2776_v13 = vmul.f32 0.00390625, %v6929_v54 }
 0x37d   : > { %v3600_v2 = vadd.f32 %v6100_v52, %v3454_v33  ;;  %v3182_v28 = vsub.f32 %v8234_v49, %v6951_v22  ;;  %v3183_v40 = vsub.f32 %v8235_v30, %v6951_v22  ;;  %4472 = vrsqrt.f32 %v3030_v46  ;;  %v7076_v17 = vpop.xlane.xlu1 %2661 }
 0x37e   : > { %v2903_v20 = vsub.f32 %v2775_v55, %v2839_v61  ;;  %v4467_v48 = vpop.eup %4466  ;;  %3727 = vst [vmem:[%s6219_s12 + $0x170] sm:$0xff] %v3599_v43  ;;  %v3184_v57 = vsub.f32 %v8236_v5, %v6982_v53  ;;  %v3185_v58 = vsub.f32 %v8237_v4, %v6982_v53  ;;  %v2904_v54 = vsub.f32 %v2776_v13, %v2840_v36  ;;  %v8239_v4 = vld [vmem:[#allocation30_spill] sm:$0xff] }
 0x37f   : > { %3728 = vst [vmem:[%s6219_s12 + $0x178] sm:$0xff] %v3600_v2  ;;  %v7074_v62 = vmul.f32 0.00390625, %v6944_v63  ;;  %v4469_v50 = vpop.eup %4468  ;;  %v3308_v38 = vmul.f32 %v4467_v48, %v3180_v29  ;;  %v3309_v22 = vmul.f32 %v4467_v48, %v3181_v21  ;;  %v7079_v26 = vmul.f32 0.00390625, %v6957_v15  ;;  %v7082_v55 = vpop.xlane.xlu0 %2279  ;;  %v8238_v48 = vld [vmem:[#allocation29_spill] sm:$0xff] }
 0x380   : > { %v2967_v31 = vmax.f32 %v2903_v20, 0.0  ;;  %v3310_v35 = vmul.f32 %v4469_v50, %v3182_v28  ;;  %v3311_v33 = vmul.f32 %v4469_v50, %v3183_v40  ;;  %v2968_v46 = vmax.f32 %v2904_v54, 0.0 }
 0x381   : > { %v2777_v61 = vmul.f32 0.00390625, %v6972_v7  ;;  %v3455_v53 = vmul.f32 %v6064_v18, %v3308_v38  ;;  %v3456_v63 = vmul.f32 %v6066_v56, %v3309_v22  ;;  %v2778_v2 = vmul.f32 0.00390625, %v6984_v11  ;;  %v7092_v7 = vpop.xlane.xlu1 %2282 }
 0x382   : > { %v3031_v43 = vadd.f32 1e-05, %v2967_v31  ;;  %v3457_v29 = vmul.f32 %v6064_v18, %v3310_v35  ;;  %v3458_v15 = vmul.f32 %v6066_v56, %v3311_v33  ;;  %v3032_v21 = vadd.f32 1e-05, %v2968_v46  ;;  %v8240_v35 = vld [vmem:[#allocation31_spill] sm:$0xff] }
 0x383   : > { %v7090_v36 = vmul.f32 0.00390625, %v6997_v16  ;;  %v3601_v13 = vadd.f32 %v6086_v12, %v3455_v53  ;;  %v3602_v49 = vadd.f32 %v6100_v52, %v3456_v63  ;;  %v2841_v11 = vmul.f32 %v7074_v62, %v7074_v62  ;;  %v7102_v40 = vpop.xlane.xlu0 %2664 }
 0x384   : > { %4474 = vrsqrt.f32 %v3031_v43  ;;  %v3603_v28 = vadd.f32 %v6086_v12, %v3457_v29  ;;  %v3604_v30 = vadd.f32 %v6100_v52, %v3458_v15  ;;  %v2842_v16 = vmul.f32 %v7079_v26, %v7079_v26  ;;  %v8241_v43 = vld [vmem:[#allocation32_spill] sm:$0xff] }
 0x385   : > { %4476 = vrsqrt.f32 %v3032_v21  ;;  %3729 = vst [vmem:[%s6219_s12 + $0x180] sm:$0xff] %v3601_v13  ;;  %3730 = vst [vmem:[%s6219_s12 + $0x188] sm:$0xff] %v3602_v49  ;;  %v3186_v5 = vsub.f32 %v8238_v48, %v6991_v34  ;;  %v3187_v54 = vsub.f32 %v8239_v4, %v6991_v34  ;;  %v2905_v50 = vsub.f32 %v2777_v61, %v2841_v11  ;;  %v7117_v53 = vpop.xlane.xlu1 %2667 }
 0x386   : > { %v4471_v20 = vpop.eup %4470  ;;  %v7111_v38 = vmul.f32 0.00390625, %v7009_v45  ;;  %3731 = vst [vmem:[%s6219_s12 + $0x190] sm:$0xff] %v3603_v28  ;;  %3732 = vst [vmem:[%s6219_s12 + $0x198] sm:$0xff] %v3604_v30  ;;  %v3188_v33 = vsub.f32 %v8240_v35, %v7032_v44  ;;  %v2906_v46 = vsub.f32 %v2778_v2, %v2842_v16  ;;  %v3189_v29 = vsub.f32 %v8241_v43, %v7032_v44  ;;  %v8243_v35 = vld [vmem:[#allocation34_spill] sm:$0xff] }
 0x387   : > { %v3312_v22 = vmul.f32 %v4471_v20, %v3184_v57  ;;  %v3313_v31 = vmul.f32 %v4471_v20, %v3185_v58  ;;  %v4473_v63 = vpop.eup %4472  ;;  %v2969_v15 = vmax.f32 %v2905_v50, 0.0  ;;  %v2843_v34 = vmul.f32 %v7090_v36, %v7090_v36  ;;  %v7126_v2 = vpop.xlane.xlu0 %2285 }
 0x388   : > { %v2779_v45 = vmul.f32 0.00390625, %v7019_v10  ;;  %v3314_v58 = vmul.f32 %v4473_v63, %v3186_v5  ;;  %v3315_v21 = vmul.f32 %v4473_v63, %v3187_v54  ;;  %v2970_v49 = vmax.f32 %v2906_v46, 0.0 }
 0x389   : > { %v3459_v61 = vmul.f32 %v6064_v18, %v3312_v22  ;;  %v3460_v57 = vmul.f32 %v6066_v56, %v3313_v31  ;;  %v3033_v13 = vadd.f32 1e-05, %v2969_v15  ;;  %v2844_v44 = vmul.f32 %v7111_v38, %v7111_v38  ;;  %v7134_v20 = vpop.xlane.xlu1 %2288  ;;  %v8242_v22 = vld [vmem:[#allocation33_spill] sm:$0xff] }
 0x38a   : > { %v2907_v11 = vsub.f32 %v2779_v45, %v2843_v34  ;;  %v3461_v30 = vmul.f32 %v6064_v18, %v3314_v58  ;;  %v3462_v16 = vmul.f32 %v6066_v56, %v3315_v21  ;;  %v3034_v48 = vadd.f32 1e-05, %v2970_v49 }
 0x38b   : > { %v3605_v28 = vadd.f32 %v6086_v12, %v3459_v61  ;;  %v3606_v10 = vadd.f32 %v6100_v52, %v3460_v57  ;;  %4478 = vrsqrt.f32 %v3033_v13  ;;  %v2780_v4 = vmul.f32 0.00390625, %v7029_v41  ;;  %v7145_v63 = vpop.xlane.xlu0 %2670 }
 0x38c   : > { %v2971_v5 = vmax.f32 %v2907_v11, 0.0  ;;  %v3607_v54 = vadd.f32 %v6086_v12, %v3461_v30  ;;  %v3608_v50 = vadd.f32 %v6100_v52, %v3462_v16  ;;  %v3190_v31 = vsub.f32 %v8242_v22, %v7035_v9 }
 0x38d   : > { %3733 = vst [vmem:[%s6219_s12 + $0x1a0] sm:$0xff] %v3605_v28  ;;  %3734 = vst [vmem:[%s6219_s12 + $0x1a8] sm:$0xff] %v3606_v10  ;;  %v3191_v46 = vsub.f32 %v8243_v35, %v7035_v9  ;;  %4480 = vrsqrt.f32 %v3034_v48  ;;  %v2908_v34 = vsub.f32 %v2780_v4, %v2844_v44  ;;  %v7148_v41 = vmul.f32 0.00390625, %v7039_v27  ;;  %v7156_v9 = vpop.xlane.xlu1 %2673  ;;  %v8244_v28 = vld [vmem:[#allocation35_spill] sm:$0xff] }
 0x38e   : > { %v4475_v43 = vpop.eup %4474  ;;  %v3035_v15 = vadd.f32 1e-05, %v2971_v5  ;;  %3735 = vst [vmem:[%s6219_s12 + $0x1b0] sm:$0xff] %v3607_v54  ;;  %3736 = vst [vmem:[%s6219_s12 + $0x1b8] sm:$0xff] %v3608_v50  ;;  %v7153_v58 = vmul.f32 0.00390625, %v7049_v39  ;;  %v2781_v21 = vmul.f32 0.00390625, %v7061_v19  ;;  %v3192_v10 = vsub.f32 %v8244_v28, %v7074_v62 }
 0x38f   : > { %v4477_v45 = vpop.eup %4476  ;;  %v3316_v61 = vmul.f32 %v4475_v43, %v3188_v33  ;;  %v3317_v57 = vmul.f32 %v4475_v43, %v3189_v29  ;;  %v2972_v11 = vmax.f32 %v2908_v34, 0.0  ;;  %v8245_v33 = vld [vmem:[#allocation36_spill] sm:$0xff]  ;;  %v7164_v29 = vpop.xlane.xlu0 %2291  ;;  %v2845_v48 = vmul.f32 %v7148_v41, %v7148_v41 }
 0x390   : > { %v3318_v13 = vmul.f32 %v4477_v45, %v3190_v31  ;;  %v3319_v49 = vmul.f32 %v4477_v45, %v3191_v46  ;;  %4482 = vrsqrt.f32 %v3035_v15  ;;  %v3193_v39 = vsub.f32 %v8245_v33, %v7074_v62  ;;  %v8246_v46 = vld [vmem:[#allocation37_spill] sm:$0xff]  ;;  %v8247_v15 = vld [vmem:[#allocation38_spill] sm:$0xff]  ;;  %v8248_v45 = vld [vmem:[#allocation39_spill] sm:$0xff] }
 0x391   : > { %v3463_v44 = vmul.f32 %v6064_v18, %v3316_v61  ;;  %v3464_v27 = vmul.f32 %v6066_v56, %v3317_v57  ;;  %v3036_v16 = vadd.f32 1e-05, %v2972_v11  ;;  %v2846_v62 = vmul.f32 %v7153_v58, %v7153_v58  ;;  %v7175_v50 = vpop.xlane.xlu1 %2294 }
 0x392   : > { %v3465_v19 = vmul.f32 %v6064_v18, %v3318_v13  ;;  %v3466_v30 = vmul.f32 %v6066_v56, %v3319_v49  ;;  %v2782_v54 = vmul.f32 0.00390625, %v7076_v17  ;;  %v2909_v35 = vsub.f32 %v2781_v21, %v2845_v48  ;;  %v8249_v13 = vld [vmem:[#allocation40_spill] sm:$0xff]  ;;  %v8251_v48 = vld [vmem:[#allocation42_spill] sm:$0xff] }
 0x393   : > { %v3609_v5 = vadd.f32 %v6086_v12, %v3463_v44  ;;  %v3610_v4 = vadd.f32 %v6100_v52, %v3464_v27  ;;  %4484 = vrsqrt.f32 %v3036_v16  ;;  %v3194_v43 = vsub.f32 %v8246_v46, %v7079_v26 }
 0x394   : > { %v3611_v22 = vadd.f32 %v6086_v12, %v3465_v19  ;;  %v3612_v31 = vadd.f32 %v6100_v52, %v3466_v30  ;;  %v3195_v34 = vsub.f32 %v8247_v15, %v7079_v26  ;;  %v3196_v61 = vsub.f32 %v8248_v45, %v7090_v36  ;;  %v8250_v26 = vld [vmem:[#allocation41_spill] sm:$0xff]  ;;  %v7199_v30 = vpop.xlane.xlu0 %2676 }
 0x395   : > { %3737 = vst [vmem:[%s6219_s12 + $0x1c0] sm:$0xff] %v3609_v5  ;;  %3738 = vst [vmem:[%s6219_s12 + $0x1c8] sm:$0xff] %v3610_v4  ;;  %v2910_v17 = vsub.f32 %v2782_v54, %v2846_v62  ;;  %v4479_v57 = vpop.eup %4478  ;;  %v3197_v49 = vsub.f32 %v8249_v13, %v7090_v36  ;;  %v2973_v11 = vmax.f32 %v2909_v35, 0.0  ;;  %v7192_v21 = vmul.f32 0.00390625, %v7082_v55  ;;  %v7207_v54 = vpop.xlane.xlu1 %2679 }
 0x396   : > { %3739 = vst [vmem:[%s6219_s12 + $0x1d0] sm:$0xff] %v3611_v22  ;;  %3740 = vst [vmem:[%s6219_s12 + $0x1d8] sm:$0xff] %v3612_v31  ;;  %v7195_v44 = vmul.f32 0.00390625, %v7092_v7  ;;  %v3320_v27 = vmul.f32 %v4479_v57, %v3192_v10  ;;  %v3321_v28 = vmul.f32 %v4479_v57, %v3193_v39  ;;  %v3198_v33 = vsub.f32 %v8250_v26, %v7111_v38 }
 0x397   : > { %v2974_v19 = vmax.f32 %v2910_v17, 0.0  ;;  %v4481_v16 = vpop.eup %4480  ;;  %v3199_v5 = vsub.f32 %v8251_v48, %v7111_v38  ;;  %v3037_v36 = vadd.f32 1e-05, %v2973_v11  ;;  %v2783_v4 = vmul.f32 0.00390625, %v7102_v40 }
 0x398   : > { %v2784_v55 = vmul.f32 0.00390625, %v7117_v53  ;;  %v3467_v7 = vmul.f32 %v6064_v18, %v3320_v27  ;;  %v3468_v10 = vmul.f32 %v6066_v56, %v3321_v28  ;;  %v3322_v39 = vmul.f32 %v4481_v16, %v3194_v43  ;;  %v7224_v27 = vpop.xlane.xlu0 %2297 }
 0x399   : > { %v3323_v62 = vmul.f32 %v4481_v16, %v3195_v34  ;;  %4486 = vrsqrt.f32 %v3037_v36  ;;  %v3038_v31 = vadd.f32 1e-05, %v2974_v19  ;;  %v2847_v38 = vmul.f32 %v7192_v21, %v7192_v21 }
 0x39a   : > { %v4483_v22 = vpop.eup %4482  ;;  %v2848_v40 = vmul.f32 %v7195_v44, %v7195_v44  ;;  %v3613_v53 = vadd.f32 %v6086_v12, %v3467_v7  ;;  %v3614_v35 = vadd.f32 %v6100_v52, %v3468_v10  ;;  %v3469_v46 = vmul.f32 %v6064_v18, %v3322_v39  ;;  %v8253_v39 = vld [vmem:[#allocation44_spill] sm:$0xff] }
 0x39b   : > { %v3470_v43 = vmul.f32 %v6066_v56, %v3323_v62  ;;  %v3324_v15 = vmul.f32 %v4483_v22, %v3196_v61  ;;  %v3325_v34 = vmul.f32 %v4483_v22, %v3197_v49  ;;  %4488 = vrsqrt.f32 %v3038_v31 }
 0x39c   : > { %v2911_v45 = vsub.f32 %v2783_v4, %v2847_v38  ;;  %3741 = vst [vmem:[%s6219_s12 + $0x1e0] sm:$0xff] %v3613_v53  ;;  %3742 = vst [vmem:[%s6219_s12 + $0x1e8] sm:$0xff] %v3614_v35  ;;  %v3615_v17 = vadd.f32 %v6086_v12, %v3469_v46  ;;  %v2912_v13 = vsub.f32 %v2784_v55, %v2848_v40  ;;  %v7222_v11 = vmul.f32 0.00390625, %v7126_v2  ;;  %v8252_v2 = vld [vmem:[#allocation43_spill] sm:$0xff]  ;;  %v7235_v55 = vpop.xlane.xlu1 %2300  ;;  %v8254_v46 = vld [vmem:[#allocation45_spill] sm:$0xff] }
 0x39d   : > { %v3616_v57 = vadd.f32 %v6100_v52, %v3470_v43  ;;  %v4485_v28 = vpop.eup %4484  ;;  %v3471_v61 = vmul.f32 %v6064_v18, %v3324_v15  ;;  %v3472_v49 = vmul.f32 %v6066_v56, %v3325_v34  ;;  %v7229_v19 = vmul.f32 0.00390625, %v7134_v20  ;;  %v2683_v15 = vpop.xlane.xlu0 %2682 }
 0x39e   : > { %v2975_v26 = vmax.f32 %v2911_v45, 0.0  ;;  %3743 = vst [vmem:[%s6219_s12 + $0x1f0] sm:$0xff] %v3615_v17  ;;  %v3326_v16 = vmul.f32 %v4485_v28, %v3198_v33  ;;  %v3327_v48 = vmul.f32 %v4485_v28, %v3199_v5  ;;  %v3200_v36 = vsub.f32 %v8252_v2, %v7148_v41  ;;  %v8255_v45 = vld [vmem:[#allocation46_spill] sm:$0xff] }
 0x39f   : > { %3744 = vst [vmem:[%s6219_s12 + $0x1f8] sm:$0xff] %v3616_v57  ;;  %v2976_v4 = vmax.f32 %v2912_v13, 0.0  ;;  %v3617_v7 = vadd.f32 %v6086_v12, %v3471_v61  ;;  %v3618_v10 = vadd.f32 %v6100_v52, %v3472_v49  ;;  %v3201_v20 = vsub.f32 %v8253_v39, %v7148_v41  ;;  %v8256_v61 = vld [vmem:[#allocation47_spill] sm:$0xff] }
 0x3a0   : > { %v3039_v62 = vadd.f32 1e-05, %v2975_v26  ;;  %v3473_v22 = vmul.f32 %v6064_v18, %v3326_v16  ;;  %v3474_v31 = vmul.f32 %v6066_v56, %v3327_v48  ;;  %v2849_v5 = vmul.f32 %v7222_v11, %v7222_v11  ;;  %v8257_v26 = vld [vmem:[#allocation48_spill] sm:$0xff]  ;;  %v2686_v48 = vpop.xlane.xlu1 %2685 }
 0x3a1   : > { %v3040_v33 = vadd.f32 1e-05, %v2976_v4  ;;  %3745 = vst [vmem:[%s6219_s12 + $0x200] sm:$0xff] %v3617_v7  ;;  %3746 = vst [vmem:[%s6219_s12 + $0x208] sm:$0xff] %v3618_v10  ;;  %v2785_v38 = vmul.f32 0.00390625, %v7145_v63  ;;  %v2850_v40 = vmul.f32 %v7229_v19, %v7229_v19  ;;  %v2786_v41 = vmul.f32 0.00390625, %v7156_v9 }
 0x3a2   : > { %4490 = vrsqrt.f32 %v3039_v62  ;;  %v3619_v53 = vadd.f32 %v6086_v12, %v3473_v22  ;;  %v3620_v35 = vadd.f32 %v6100_v52, %v3474_v31  ;;  %v3202_v43 = vsub.f32 %v8254_v46, %v7153_v58  ;;  %v8258_v62 = vld [vmem:[#allocation49_spill] sm:$0xff] }
 0x3a3   : > { %4492 = vrsqrt.f32 %v3040_v33  ;;  %v4487_v34 = vpop.eup %4486  ;;  %v3203_v17 = vsub.f32 %v8255_v45, %v7153_v58  ;;  %v2913_v57 = vsub.f32 %v2785_v38, %v2849_v5  ;;  %v2914_v63 = vsub.f32 %v2786_v41, %v2850_v40  ;;  %v2304_v40 = vpop.xlane.xlu0 %2303 }
 0x3a4   : > { %v7258_v13 = vmul.f32 0.00390625, %v7164_v29  ;;  %3747 = vst [vmem:[%s6219_s12 + $0x210] sm:$0xff] %v3619_v53  ;;  %3748 = vst [vmem:[%s6219_s12 + $0x218] sm:$0xff] %v3620_v35  ;;  %v3328_v9 = vmul.f32 %v4487_v34, %v3200_v36  ;;  %v3329_v28 = vmul.f32 %v4487_v34, %v3201_v20  ;;  %v3204_v49 = vsub.f32 %v8256_v61, %v7192_v21  ;;  %v2307_v45 = vpop.xlane.xlu1 %2306 }
 0x3a5   : > { %v3205_v16 = vsub.f32 %v8257_v26, %v7192_v21  ;;  %v4489_v2 = vpop.eup %4488  ;;  %v2977_v4 = vmax.f32 %v2913_v57, 0.0  ;;  %v2978_v7 = vmax.f32 %v2914_v63, 0.0  ;;  %v7267_v58 = vmul.f32 0.00390625, %v7175_v50  ;;  %v8259_v57 = vld [vmem:[#allocation50_spill] sm:$0xff] }
 0x3a6   : > { %v2787_v29 = vmul.f32 0.00390625, %v7199_v30  ;;  %v3475_v10 = vmul.f32 %v6064_v18, %v3328_v9  ;;  %v3476_v36 = vmul.f32 %v6066_v56, %v3329_v28  ;;  %v3330_v39 = vmul.f32 %v4489_v2, %v3202_v43  ;;  %v8260_v9 = vld [vmem:[#allocation51_spill] sm:$0xff] }
 0x3a7   : > { %v3331_v20 = vmul.f32 %v4489_v2, %v3203_v17  ;;  %v3206_v21 = vsub.f32 %v8258_v62, %v7195_v44  ;;  %v3041_v22 = vadd.f32 1e-05, %v2977_v4  ;;  %v3042_v31 = vadd.f32 1e-05, %v2978_v7  ;;  %v8261_v7 = vld [vmem:[#allocation52_spill] sm:$0xff] }
 0x3a8   : > { %v2851_v33 = vmul.f32 %v7258_v13, %v7258_v13  ;;  %v3621_v50 = vadd.f32 %v6086_v12, %v3475_v10  ;;  %v3622_v30 = vadd.f32 %v6100_v52, %v3476_v36  ;;  %v3477_v5 = vmul.f32 %v6064_v18, %v3330_v39 }
 0x3a9   : > { %v3478_v38 = vmul.f32 %v6066_v56, %v3331_v20  ;;  %4494 = vrsqrt.f32 %v3041_v22  ;;  %v2852_v53 = vmul.f32 %v7267_v58, %v7267_v58  ;;  %v2788_v35 = vmul.f32 0.00390625, %v7207_v54 }
 0x3aa   : > { %v2915_v41 = vsub.f32 %v2787_v29, %v2851_v33  ;;  %3749 = vst [vmem:[%s6219_s12 + $0x220] sm:$0xff] %v3621_v50  ;;  %3750 = vst [vmem:[%s6219_s12 + $0x228] sm:$0xff] %v3622_v30  ;;  %v3623_v46 = vadd.f32 %v6086_v12, %v3477_v5  ;;  %4496 = vrsqrt.f32 %v3042_v31  ;;  %v7288_v34 = vmul.f32 0.00390625, %v7224_v27  ;;  %v2692_v5 = vpop.xlane.xlu1 %2691 }
 0x3ab   : > { %v3624_v43 = vadd.f32 %v6100_v52, %v3478_v38  ;;  %v3207_v63 = vsub.f32 %v8259_v57, %v7195_v44  ;;  %v3208_v28 = vsub.f32 %v8260_v9, %v7222_v11  ;;  %v2916_v54 = vsub.f32 %v2788_v35, %v2852_v53  ;;  %v8262_v53 = vld [vmem:[#allocation53_spill] sm:$0xff] }
 0x3ac   : > { %v4491_v17 = vpop.eup %4490  ;;  %v2979_v61 = vmax.f32 %v2915_v41, 0.0  ;;  %3751 = vst [vmem:[%s6219_s12 + $0x230] sm:$0xff] %v3623_v46  ;;  %v3209_v29 = vsub.f32 %v8261_v7, %v7222_v11  ;;  %v7299_v27 = vmul.f32 0.00390625, %v7235_v55  ;;  %v2853_v22 = vmul.f32 %v7288_v34, %v7288_v34  ;;  %v8263_v46 = vld [vmem:[#allocation54_spill] sm:$0xff] }
 0x3ad   : > { %v4493_v26 = vpop.eup %4492  ;;  %3752 = vst [vmem:[%s6219_s12 + $0x238] sm:$0xff] %v3624_v43  ;;  %v3332_v2 = vmul.f32 %v4491_v17, %v3204_v49  ;;  %v3333_v4 = vmul.f32 %v4491_v17, %v3205_v16  ;;  %v2980_v44 = vmax.f32 %v2916_v54, 0.0  ;;  %v2789_v49 = vmul.f32 0.00390625, %v2683_v15  ;;  %v2689_v16 = vpop.xlane.xlu0 %2688  ;;  %v8264_v17 = vld [vmem:[#allocation55_spill] sm:$0xff] }
 0x3ae   : > { %v3334_v10 = vmul.f32 %v4493_v26, %v3206_v21  ;;  %v3335_v36 = vmul.f32 %v4493_v26, %v3207_v63  ;;  %v3043_v39 = vadd.f32 1e-05, %v2979_v61  ;;  %v2854_v30 = vmul.f32 %v7299_v27, %v7299_v27  ;;  %v8265_v61 = vld [vmem:[#allocation56_spill] sm:$0xff] }
 0x3af   : > { %v3479_v20 = vmul.f32 %v6064_v18, %v3332_v2  ;;  %v3480_v62 = vmul.f32 %v6066_v56, %v3333_v4  ;;  %v3044_v21 = vadd.f32 1e-05, %v2980_v44  ;;  %v2917_v50 = vsub.f32 %v2789_v49, %v2853_v22 }
 0x3b0   : > { %v3481_v11 = vmul.f32 %v6064_v18, %v3334_v10  ;;  %v3482_v55 = vmul.f32 %v6066_v56, %v3335_v36  ;;  %4498 = vrsqrt.f32 %v3043_v39  ;;  %v2790_v41 = vmul.f32 0.00390625, %v2686_v48  ;;  %v8266_v48 = vld [vmem:[#allocation57_spill] sm:$0xff] }
 0x3b1   : > { %v3625_v31 = vadd.f32 %v6086_v12, %v3479_v20  ;;  %v3626_v33 = vadd.f32 %v6100_v52, %v3480_v62  ;;  %4500 = vrsqrt.f32 %v3044_v21  ;;  %v3210_v35 = vsub.f32 %v8262_v53, %v7229_v19  ;;  %v2310_v44 = vpop.xlane.xlu0 %2309 }
 0x3b2   : > { %v3627_v15 = vadd.f32 %v6086_v12, %v3481_v11  ;;  %v3628_v38 = vadd.f32 %v6100_v52, %v3482_v55  ;;  %v3211_v43 = vsub.f32 %v8263_v46, %v7229_v19  ;;  %v3212_v57 = vsub.f32 %v8264_v17, %v7258_v13 }
 0x3b3   : > { %3753 = vst [vmem:[%s6219_s12 + $0x240] sm:$0xff] %v3625_v31  ;;  %3754 = vst [vmem:[%s6219_s12 + $0x248] sm:$0xff] %v3626_v33  ;;  %v2981_v63 = vmax.f32 %v2917_v50, 0.0  ;;  %v4495_v9 = vpop.eup %4494  ;;  %v3213_v54 = vsub.f32 %v8265_v61, %v7258_v13  ;;  %v3214_v26 = vsub.f32 %v8266_v48, %v7267_v58  ;;  %v2918_v2 = vsub.f32 %v2790_v41, %v2854_v30 }
 0x3b4   : > { %3755 = vst [vmem:[%s6219_s12 + $0x250] sm:$0xff] %v3627_v15  ;;  %3756 = vst [vmem:[%s6219_s12 + $0x258] sm:$0xff] %v3628_v38  ;;  %v7327_v4 = vmul.f32 0.00390625, %v2304_v40  ;;  %v4497_v7 = vpop.eup %4496  ;;  %v3336_v10 = vmul.f32 %v4495_v9, %v3208_v28  ;;  %v3337_v36 = vmul.f32 %v4495_v9, %v3209_v29  ;;  %v7329_v39 = vmul.f32 0.00390625, %v2307_v45  ;;  %v2313_v40 = vpop.xlane.xlu1 %2312  ;;  %v8267_v45 = vld [vmem:[#allocation58_spill] sm:$0xff] }
 0x3b5   : > { %v3045_v19 = vadd.f32 1e-05, %v2981_v63  ;;  %v3338_v20 = vmul.f32 %v4497_v7, %v3210_v35  ;;  %v3339_v62 = vmul.f32 %v4497_v7, %v3211_v43  ;;  %v2982_v22 = vmax.f32 %v2918_v2, 0.0  ;;  %v8268_v63 = vld [vmem:[#allocation59_spill] sm:$0xff] }
 0x3b6   : > { %v2791_v49 = vmul.f32 0.00390625, %v2689_v16  ;;  %v3483_v11 = vmul.f32 %v6064_v18, %v3336_v10  ;;  %v3484_v13 = vmul.f32 %v6066_v56, %v3337_v36  ;;  %v2792_v55 = vmul.f32 0.00390625, %v2692_v5 }
 0x3b7   : > { %4502 = vrsqrt.f32 %v3045_v19  ;;  %v3485_v28 = vmul.f32 %v6064_v18, %v3338_v20  ;;  %v3486_v29 = vmul.f32 %v6066_v56, %v3339_v62  ;;  %v3215_v21 = vsub.f32 %v8267_v45, %v7267_v58 }
 0x3b8   : > { %v3046_v31 = vadd.f32 1e-05, %v2982_v22  ;;  %v3629_v33 = vadd.f32 %v6086_v12, %v3483_v11  ;;  %v3630_v16 = vadd.f32 %v6100_v52, %v3484_v13  ;;  %v2855_v50 = vmul.f32 %v7327_v4, %v7327_v4 }
 0x3b9   : > { %v2856_v30 = vmul.f32 %v7329_v39, %v7329_v39  ;;  %v3631_v15 = vadd.f32 %v6086_v12, %v3485_v28  ;;  %v3632_v38 = vadd.f32 %v6100_v52, %v3486_v29  ;;  %v7345_v58 = vmul.f32 0.00390625, %v2310_v44  ;;  %v2695_v43 = vpop.xlane.xlu0 %2694 }
 0x3ba   : > { %v4499_v5 = vpop.eup %4498  ;;  %4504 = vrsqrt.f32 %v3046_v31  ;;  %3757 = vst [vmem:[%s6219_s12 + $0x260] sm:$0xff] %v3629_v33  ;;  %3758 = vst [vmem:[%s6219_s12 + $0x268] sm:$0xff] %v3630_v16  ;;  %v2919_v35 = vsub.f32 %v2791_v49, %v2855_v50  ;;  %v3216_v9 = vsub.f32 %v8268_v63, %v7288_v34  ;;  %v7353_v61 = vmul.f32 0.00390625, %v2313_v40 }
 0x3bb   : > { %v3340_v41 = vmul.f32 %v4499_v5, %v3212_v57  ;;  %v3341_v53 = vmul.f32 %v4499_v5, %v3213_v54  ;;  %v2920_v46 = vsub.f32 %v2792_v55, %v2856_v30  ;;  %v4501_v17 = vpop.eup %4500  ;;  %3759 = vst [vmem:[%s6219_s12 + $0x270] sm:$0xff] %v3631_v15  ;;  %3760 = vst [vmem:[%s6219_s12 + $0x278] sm:$0xff] %v3632_v38  ;;  %v2793_v48 = vmul.f32 0.00390625, %v2695_v43  ;;  %v2698_v57 = vpop.xlane.xlu1 %2697  ;;  %v8269_v54 = vld [vmem:[#allocation60_spill] sm:$0xff]  ;;  %v8270_v55 = vld [vmem:[#allocation61_spill] sm:$0xff] }
 0x3bc   : > { %v3342_v10 = vmul.f32 %v4501_v17, %v3214_v26  ;;  %v3343_v36 = vmul.f32 %v4501_v17, %v3215_v21  ;;  %v3217_v19 = vsub.f32 %v8269_v54, %v7288_v34  ;;  %v2983_v44 = vmax.f32 %v2919_v35, 0.0  ;;  %v8271_v38 = vld [vmem:[#allocation62_spill] sm:$0xff] }
 0x3bd   : > { %v3487_v2 = vmul.f32 %v6064_v18, %v3340_v41  ;;  %v3488_v7 = vmul.f32 %v6066_v56, %v3341_v53  ;;  %v2984_v20 = vmax.f32 %v2920_v46, 0.0  ;;  %v2857_v62 = vmul.f32 %v7345_v58, %v7345_v58  ;;  %v2316_v13 = vpop.xlane.xlu0 %2315 }
 0x3be   : > { %v3489_v11 = vmul.f32 %v6064_v18, %v3342_v10  ;;  %v3490_v26 = vmul.f32 %v6066_v56, %v3343_v36  ;;  %v3218_v40 = vsub.f32 %v8270_v55, %v7299_v27  ;;  %v3047_v28 = vadd.f32 1e-05, %v2983_v44 }
 0x3bf   : > { %v3633_v22 = vadd.f32 %v6086_v12, %v3487_v2  ;;  %v3634_v49 = vadd.f32 %v6100_v52, %v3488_v7  ;;  %v3048_v34 = vadd.f32 1e-05, %v2984_v20  ;;  %v2921_v29 = vsub.f32 %v2793_v48, %v2857_v62  ;;  %v2319_v50 = vpop.xlane.xlu1 %2318 }
 0x3c0   : > { %v3635_v21 = vadd.f32 %v6086_v12, %v3489_v11  ;;  %v3636_v31 = vadd.f32 %v6100_v52, %v3490_v26  ;;  %v2858_v33 = vmul.f32 %v7353_v61, %v7353_v61  ;;  %v2794_v16 = vmul.f32 0.00390625, %v2698_v57 }
 0x3c1   : > { %v4503_v45 = vpop.eup %4502  ;;  %3761 = vst [vmem:[%s6219_s12 + $0x280] sm:$0xff] %v3633_v22  ;;  %3762 = vst [vmem:[%s6219_s12 + $0x288] sm:$0xff] %v3634_v49  ;;  %4506 = vrsqrt.f32 %v3047_v28  ;;  %v2985_v15 = vmax.f32 %v2921_v29, 0.0  ;;  %v3219_v41 = vsub.f32 %v8271_v38, %v7299_v27  ;;  %v7377_v35 = vmul.f32 0.00390625, %v2316_v13  ;;  %v8272_v28 = vld [vmem:[#allocation103_spill] sm:$0xff]  ;;  %v8273_v29 = vld [vmem:[#allocation104_spill] sm:$0xff] }
 0x3c2   : > { %v3344_v30 = vmul.f32 %v4503_v45, %v3216_v9  ;;  %v3345_v5 = vmul.f32 %v4503_v45, %v3217_v19  ;;  %3763 = vst [vmem:[%s6219_s12 + $0x290] sm:$0xff] %v3635_v21  ;;  %3764 = vst [vmem:[%s6219_s12 + $0x298] sm:$0xff] %v3636_v31  ;;  %4508 = vrsqrt.f32 %v3048_v34  ;;  %v2922_v53 = vsub.f32 %v2794_v16, %v2858_v33  ;;  %v8274_v21 = vld [vmem:[#allocation63_spill] sm:$0xff]  ;;  %v8275_v33 = vld [vmem:[#allocation64_spill] sm:$0xff] }
 0x3c3   : > { %v3049_v63 = vadd.f32 1e-05, %v2985_v15  ;;  %v7381_v9 = vmul.f32 0.00390625, %v2319_v50  ;;  %v2701_v10 = vpop.xlane.xlu0 %2700  ;;  %v2859_v20 = vmul.f32 %v7377_v35, %v7377_v35  ;;  %v3220_v34 = vsub.f32 %v8272_v28, %v7327_v4 }
 0x3c4   : > { %v4505_v46 = vpop.eup %4504  ;;  %v3491_v43 = vmul.f32 %v6064_v18, %v3344_v30  ;;  %v3492_v17 = vmul.f32 %v6066_v56, %v3345_v5  ;;  %v2986_v7 = vmax.f32 %v2922_v53, 0.0  ;;  %v2795_v62 = vmul.f32 0.00390625, %v2701_v10  ;;  %v8276_v5 = vld [vmem:[#allocation65_spill] sm:$0xff] }
 0x3c5   : > { %v3346_v48 = vmul.f32 %v4505_v46, %v3218_v40  ;;  %v3347_v2 = vmul.f32 %v4505_v46, %v3219_v41  ;;  %4510 = vrsqrt.f32 %v3049_v63  ;;  %v2860_v22 = vmul.f32 %v7381_v9, %v7381_v9 }
 0x3c6   : > { %v3637_v27 = vadd.f32 %v6086_v12, %v3491_v43  ;;  %v3638_v36 = vadd.f32 %v6100_v52, %v3492_v17  ;;  %v3050_v19 = vadd.f32 1e-05, %v2986_v7  ;;  %v2704_v44 = vpop.xlane.xlu1 %2703  ;;  %v2923_v13 = vsub.f32 %v2795_v62, %v2859_v20 }
 0x3c7   : > { %v3493_v57 = vmul.f32 %v6064_v18, %v3346_v48  ;;  %v3494_v54 = vmul.f32 %v6066_v56, %v3347_v2  ;;  %v2796_v49 = vmul.f32 0.00390625, %v2704_v44  ;;  %v3221_v45 = vsub.f32 %v8273_v29, %v7327_v4  ;;  %v8277_v4 = vld [vmem:[#allocation66_spill] sm:$0xff]  ;;  %v8278_v48 = vld [vmem:[#allocation67_spill] sm:$0xff] }
 0x3c8   : > { %3765 = vst [vmem:[%s6219_s12 + $0x2a0] sm:$0xff] %v3637_v27  ;;  %3766 = vst [vmem:[%s6219_s12 + $0x2a8] sm:$0xff] %v3638_v36  ;;  %4512 = vrsqrt.f32 %v3050_v19  ;;  %v2322_v40 = vpop.xlane.xlu0 %2321  ;;  %v3222_v31 = vsub.f32 %v8274_v21, %v7329_v39  ;;  %v3223_v16 = vsub.f32 %v8275_v33, %v7329_v39  ;;  %v3224_v15 = vsub.f32 %v8276_v5, %v7345_v58  ;;  %v8279_v19 = vld [vmem:[#allocation68_spill] sm:$0xff] }
 0x3c9   : > { %v3639_v11 = vadd.f32 %v6086_v12, %v3493_v57  ;;  %v3640_v26 = vadd.f32 %v6100_v52, %v3494_v54  ;;  %v2924_v55 = vsub.f32 %v2796_v49, %v2860_v22  ;;  %v2987_v38 = vmax.f32 %v2923_v13, 0.0 }
 0x3ca   : > { %v2325_v50 = vpop.xlane.xlu1 %2324  ;;  %v7407_v53 = vmul.f32 0.00390625, %v2322_v40  ;;  %v3225_v63 = vsub.f32 %v8277_v4, %v7345_v58  ;;  %v3226_v2 = vsub.f32 %v8278_v48, %v7353_v61  ;;  %v3227_v44 = vsub.f32 %v8279_v19, %v7353_v61  ;;  %v8280_v48 = vld [vmem:[#allocation69_spill] sm:$0xff] }
 0x3cb   : > { %3767 = vst [vmem:[%s6219_s12 + $0x2b0] sm:$0xff] %v3639_v11  ;;  %3768 = vst [vmem:[%s6219_s12 + $0x2b8] sm:$0xff] %v3640_v26  ;;  %v4507_v30 = vpop.eup %4506  ;;  %v2988_v41 = vmax.f32 %v2924_v55, 0.0  ;;  %v3051_v10 = vadd.f32 1e-05, %v2987_v38  ;;  %v7417_v20 = vmul.f32 0.00390625, %v2325_v50 }
 0x3cc   : > { %v4509_v46 = vpop.eup %4508  ;;  %v3348_v43 = vmul.f32 %v4507_v30, %v3220_v34  ;;  %v3349_v17 = vmul.f32 %v4507_v30, %v3221_v45  ;;  %v2707_v36 = vpop.xlane.xlu0 %2706  ;;  %v2861_v11 = vmul.f32 %v7407_v53, %v7407_v53 }
 0x3cd   : > { %v3350_v7 = vmul.f32 %v4509_v46, %v3222_v31  ;;  %v3351_v39 = vmul.f32 %v4509_v46, %v3223_v16  ;;  %v3052_v27 = vadd.f32 1e-05, %v2988_v41  ;;  %4514 = vrsqrt.f32 %v3051_v10 }
 0x3ce   : > { %v3495_v57 = vmul.f32 %v6064_v18, %v3348_v43  ;;  %v3496_v54 = vmul.f32 %v6066_v56, %v3349_v17  ;;  %v2710_v62 = vpop.xlane.xlu1 %2709  ;;  %v2797_v34 = vmul.f32 0.00390625, %v2707_v36  ;;  %v2862_v33 = vmul.f32 %v7417_v20, %v7417_v20 }
 0x3cf   : > { %v4511_v58 = vpop.eup %4510  ;;  %v3497_v22 = vmul.f32 %v6064_v18, %v3350_v7  ;;  %v3498_v49 = vmul.f32 %v6066_v56, %v3351_v39  ;;  %4516 = vrsqrt.f32 %v3052_v27  ;;  %v2798_v16 = vmul.f32 0.00390625, %v2710_v62 }
 0x3d0   : > { %v3641_v26 = vadd.f32 %v6086_v12, %v3495_v57  ;;  %v3642_v13 = vadd.f32 %v6100_v52, %v3496_v54  ;;  %v3352_v61 = vmul.f32 %v4511_v58, %v3224_v15  ;;  %v3353_v55 = vmul.f32 %v4511_v58, %v3225_v63  ;;  %v2328_v29 = vpop.xlane.xlu0 %2327  ;;  %v8281_v54 = vld [vmem:[#allocation70_spill] sm:$0xff] }
 0x3d1   : > { %v3643_v40 = vadd.f32 %v6086_v12, %v3497_v22  ;;  %v3644_v28 = vadd.f32 %v6100_v52, %v3498_v49  ;;  %v2925_v5 = vsub.f32 %v2797_v34, %v2861_v11  ;;  %v2926_v41 = vsub.f32 %v2798_v16, %v2862_v33  ;;  %v8282_v49 = vld [vmem:[#allocation71_spill] sm:$0xff] }
 0x3d2   : > { %v4513_v45 = vpop.eup %4512  ;;  %3769 = vst [vmem:[%s6219_s12 + $0x2c0] sm:$0xff] %v3641_v26  ;;  %3770 = vst [vmem:[%s6219_s12 + $0x2c8] sm:$0xff] %v3642_v13  ;;  %v3499_v21 = vmul.f32 %v6064_v18, %v3352_v61  ;;  %v3500_v31 = vmul.f32 %v6066_v56, %v3353_v55  ;;  %v7437_v46 = vmul.f32 0.00390625, %v2328_v29  ;;  %v3229_v19 = vsub.f32 %v8281_v54, %v7377_v35  ;;  %v8283_v26 = vld [vmem:[#allocation72_spill] sm:$0xff]  ;;  %v8286_v54 = vld [vmem:[#allocation75_spill] sm:$0xff] }
 0x3d3   : > { %3771 = vst [vmem:[%s6219_s12 + $0x2d0] sm:$0xff] %v3643_v40  ;;  %3772 = vst [vmem:[%s6219_s12 + $0x2d8] sm:$0xff] %v3644_v28  ;;  %v3354_v50 = vmul.f32 %v4513_v45, %v3226_v2  ;;  %v3355_v30 = vmul.f32 %v4513_v45, %v3227_v44  ;;  %v2331_v43 = vpop.xlane.xlu1 %2330  ;;  %v2989_v63 = vmax.f32 %v2925_v5, 0.0  ;;  %v3228_v2 = vsub.f32 %v8280_v48, %v7377_v35 }
 0x3d4   : > { %v3645_v15 = vadd.f32 %v6086_v12, %v3499_v21  ;;  %v3646_v38 = vadd.f32 %v6100_v52, %v3500_v31  ;;  %v2990_v7 = vmax.f32 %v2926_v41, 0.0  ;;  %v7447_v36 = vmul.f32 0.00390625, %v2331_v43 }
 0x3d5   : > { %v3501_v17 = vmul.f32 %v6064_v18, %v3354_v50  ;;  %v3502_v4 = vmul.f32 %v6066_v56, %v3355_v30  ;;  %v3053_v27 = vadd.f32 1e-05, %v2989_v63  ;;  %v2863_v62 = vmul.f32 %v7437_v46, %v7437_v46 }
 0x3d6   : > { %3773 = vst [vmem:[%s6219_s12 + $0x2e0] sm:$0xff] %v3645_v15  ;;  %3774 = vst [vmem:[%s6219_s12 + $0x2e8] sm:$0xff] %v3646_v38  ;;  %v3054_v44 = vadd.f32 1e-05, %v2990_v7  ;;  %v3230_v11 = vsub.f32 %v8282_v49, %v7381_v9  ;;  %v3231_v13 = vsub.f32 %v8283_v26, %v7381_v9  ;;  %v2864_v34 = vmul.f32 %v7447_v36, %v7447_v36 }
 0x3d7   : > { %v3647_v39 = vadd.f32 %v6086_v12, %v3501_v17  ;;  %v3648_v10 = vadd.f32 %v6100_v52, %v3502_v4  ;;  %v2713_v57 = vpop.xlane.xlu0 %2712  ;;  %v4515_v22 = vpop.eup %4514  ;;  %4518 = vrsqrt.f32 %v3053_v27  ;;  %v8285_v27 = vld [vmem:[#allocation74_spill] sm:$0xff] }
 0x3d8   : > { %v2799_v58 = vmul.f32 0.00390625, %v2713_v57  ;;  %v3356_v55 = vmul.f32 %v4515_v22, %v3228_v2  ;;  %v3357_v40 = vmul.f32 %v4515_v22, %v3229_v19  ;;  %4520 = vrsqrt.f32 %v3054_v44 }
 0x3d9   : > { %3775 = vst [vmem:[%s6219_s12 + $0x2f0] sm:$0xff] %v3647_v39  ;;  %3776 = vst [vmem:[%s6219_s12 + $0x2f8] sm:$0xff] %v3648_v10  ;;  %v2716_v61 = vpop.xlane.xlu1 %2715  ;;  %v4517_v28 = vpop.eup %4516  ;;  %v8284_v39 = vld [vmem:[#allocation73_spill] sm:$0xff]  ;;  %v3233_v57 = vsub.f32 %v8285_v27, %v7407_v53  ;;  %v3234_v19 = vsub.f32 %v8286_v54, %v7417_v20  ;;  %v8290_v27 = vld [vmem:[#allocation79_spill] sm:$0xff] }
 0x3da   : > { %v2927_v35 = vsub.f32 %v2799_v58, %v2863_v62  ;;  %v2800_v29 = vmul.f32 0.00390625, %v2716_v61  ;;  %v3503_v45 = vmul.f32 %v6064_v18, %v3356_v55  ;;  %v3504_v21 = vmul.f32 %v6066_v56, %v3357_v40  ;;  %v8287_v58 = vld [vmem:[#allocation76_spill] sm:$0xff] }
 0x3db   : > { %v3358_v31 = vmul.f32 %v4517_v28, %v3230_v11  ;;  %v3359_v33 = vmul.f32 %v4517_v28, %v3231_v13  ;;  %v2334_v9 = vpop.xlane.xlu0 %2333  ;;  %v3232_v10 = vsub.f32 %v8284_v39, %v7407_v53  ;;  %v3235_v22 = vsub.f32 %v8287_v58, %v7417_v20  ;;  %v8291_v54 = vld [vmem:[#allocation80_spill] sm:$0xff] }
 0x3dc   : > { %v2991_v16 = vmax.f32 %v2927_v35, 0.0  ;;  %v2928_v50 = vsub.f32 %v2800_v29, %v2864_v34  ;;  %v3649_v30 = vadd.f32 %v6086_v12, %v3503_v45  ;;  %v3650_v5 = vadd.f32 %v6100_v52, %v3504_v21 }
 0x3dd   : > { %v3505_v15 = vmul.f32 %v6064_v18, %v3358_v31  ;;  %v3506_v38 = vmul.f32 %v6066_v56, %v3359_v33  ;;  %v2337_v41 = vpop.xlane.xlu1 %2336  ;;  %v7467_v4 = vmul.f32 0.00390625, %v2334_v9 }
 0x3de   : > { %v3055_v43 = vadd.f32 1e-05, %v2991_v16  ;;  %v2992_v17 = vmax.f32 %v2928_v50, 0.0  ;;  %3777 = vst [vmem:[%s6219_s12 + $0x300] sm:$0xff] %v3649_v30  ;;  %3778 = vst [vmem:[%s6219_s12 + $0x308] sm:$0xff] %v3650_v5  ;;  %v7473_v2 = vmul.f32 0.00390625, %v2337_v41 }
 0x3df   : > { %v3651_v63 = vadd.f32 %v6086_v12, %v3505_v15  ;;  %v3652_v48 = vadd.f32 %v6100_v52, %v3506_v38  ;;  %v2865_v49 = vmul.f32 %v7467_v4, %v7467_v4 }
 0x3e0   : > { %4522 = vrsqrt.f32 %v3055_v43  ;;  %v3056_v7 = vadd.f32 1e-05, %v2992_v17  ;;  %v2866_v55 = vmul.f32 %v7473_v2, %v7473_v2  ;;  %v8288_v17 = vld [vmem:[#allocation77_spill] sm:$0xff] }
 0x3e1   : > { %3779 = vst [vmem:[%s6219_s12 + $0x310] sm:$0xff] %v3651_v63  ;;  %3780 = vst [vmem:[%s6219_s12 + $0x318] sm:$0xff] %v3652_v48  ;;  %v4519_v62 = vpop.eup %4518  ;;  %v3236_v63 = vsub.f32 %v8288_v17, %v7437_v46  ;;  %v8289_v48 = vld [vmem:[#allocation78_spill] sm:$0xff] }
 0x3e2   : > { %v2719_v44 = vpop.xlane.xlu0 %2718  ;;  %4524 = vrsqrt.f32 %v3056_v7  ;;  %v4521_v26 = vpop.eup %4520  ;;  %v3360_v13 = vmul.f32 %v4519_v62, %v3232_v10  ;;  %v3361_v61 = vmul.f32 %v4519_v62, %v3233_v57  ;;  %v3237_v7 = vsub.f32 %v8289_v48, %v7437_v46 }
 0x3e3   : > { %v2801_v11 = vmul.f32 0.00390625, %v2719_v44  ;;  %v3362_v40 = vmul.f32 %v4521_v26, %v3234_v19  ;;  %v3363_v35 = vmul.f32 %v4521_v26, %v3235_v22  ;;  %v3238_v57 = vsub.f32 %v8290_v27, %v7447_v36 }
 0x3e4   : > { %v2722_v53 = vpop.xlane.xlu1 %2721  ;;  %v3507_v29 = vmul.f32 %v6064_v18, %v3360_v13  ;;  %v3508_v20 = vmul.f32 %v6066_v56, %v3361_v61  ;;  %v3239_v19 = vsub.f32 %v8291_v54, %v7447_v36 }
 0x3e5   : > { %v2929_v28 = vsub.f32 %v2801_v11, %v2865_v49  ;;  %v2802_v34 = vmul.f32 0.00390625, %v2722_v53  ;;  %v3509_v21 = vmul.f32 %v6064_v18, %v3362_v40  ;;  %v3510_v31 = vmul.f32 %v6066_v56, %v3363_v35 }
 0x3e6   : > { %v2340_v45 = vpop.xlane.xlu0 %2339  ;;  %v3653_v16 = vadd.f32 %v6086_v12, %v3507_v29  ;;  %v3654_v50 = vadd.f32 %v6100_v52, %v3508_v20 }
 0x3e7   : > { %v2993_v33 = vmax.f32 %v2929_v28, 0.0  ;;  %v2930_v9 = vsub.f32 %v2802_v34, %v2866_v55  ;;  %v7495_v30 = vmul.f32 0.00390625, %v2340_v45  ;;  %v3655_v5 = vadd.f32 %v6086_v12, %v3509_v21 }
 0x3e8   : > { %v3656_v15 = vadd.f32 %v6100_v52, %v3510_v31  ;;  %v2343_v43 = vpop.xlane.xlu1 %2342  ;;  %3781 = vst [vmem:[%s6219_s12 + $0x320] sm:$0xff] %v3653_v16  ;;  %3782 = vst [vmem:[%s6219_s12 + $0x328] sm:$0xff] %v3654_v50 }
 0x3e9   : > { %v3057_v38 = vadd.f32 1e-05, %v2993_v33  ;;  %v2994_v41 = vmax.f32 %v2930_v9, 0.0  ;;  %3783 = vst [vmem:[%s6219_s12 + $0x330] sm:$0xff] %v3655_v5  ;;  %v7511_v49 = vmul.f32 0.00390625, %v2343_v43  ;;  %v2867_v46 = vmul.f32 %v7495_v30, %v7495_v30 }
 0x3ea   : > { %v4523_v39 = vpop.eup %4522  ;;  %3784 = vst [vmem:[%s6219_s12 + $0x338] sm:$0xff] %v3656_v15  ;;  %v8292_v15 = vld [vmem:[#allocation81_spill] sm:$0xff] }
 0x3eb   : > { %4526 = vrsqrt.f32 %v3057_v38  ;;  %v3058_v10 = vadd.f32 1e-05, %v2994_v41  ;;  %v3364_v44 = vmul.f32 %v4523_v39, %v3236_v63  ;;  %v3365_v62 = vmul.f32 %v4523_v39, %v3237_v7  ;;  %v8293_v41 = vld [vmem:[#allocation82_spill] sm:$0xff] }
 0x3ec   : > { %v2725_v58 = vpop.xlane.xlu0 %2724  ;;  %v4525_v22 = vpop.eup %4524  ;;  %v2868_v20 = vmul.f32 %v7511_v49, %v7511_v49  ;;  %v3240_v38 = vsub.f32 %v8292_v15, %v7467_v4  ;;  %v3241_v43 = vsub.f32 %v8293_v41, %v7467_v4  ;;  %v3242_v39 = vsub.f32 %v6491_v14, %v7473_v2 }
 0x3ed   : > { %4528 = vrsqrt.f32 %v3058_v10  ;;  %v2803_v11 = vmul.f32 0.00390625, %v2725_v58  ;;  %v3511_v26 = vmul.f32 %v6064_v18, %v3364_v44  ;;  %v3512_v13 = vmul.f32 %v6066_v56, %v3365_v62 }
 0x3ee   : > { %v3366_v61 = vmul.f32 %v4525_v22, %v3238_v57  ;;  %v3367_v55 = vmul.f32 %v4525_v22, %v3239_v19  ;;  %v3243_v10 = vsub.f32 %v6513_v24, %v7473_v2 }
 0x3ef   : > { %v2931_v36 = vsub.f32 %v2803_v11, %v2867_v46  ;;  %v3657_v40 = vadd.f32 %v6086_v12, %v3511_v26  ;;  %v3658_v35 = vadd.f32 %v6100_v52, %v3512_v13 }
 0x3f0   : > { %v2728_v53 = vpop.xlane.xlu1 %2727  ;;  %v3513_v28 = vmul.f32 %v6064_v18, %v3366_v61  ;;  %v3514_v34 = vmul.f32 %v6066_v56, %v3367_v55 }
 0x3f1   : > { %v2995_v29 = vmax.f32 %v2931_v36, 0.0  ;;  %v2804_v45 = vmul.f32 0.00390625, %v2728_v53  ;;  %v2346_v21 = vpop.xlane.xlu0 %2345  ;;  %3785 = vst [vmem:[%s6219_s12 + $0x340] sm:$0xff] %v3657_v40  ;;  %3786 = vst [vmem:[%s6219_s12 + $0x348] sm:$0xff] %v3658_v35 }
 0x3f2   : > { %v3659_v31 = vadd.f32 %v6086_v12, %v3513_v28  ;;  %v3660_v33 = vadd.f32 %v6100_v52, %v3514_v34  ;;  %v7527_v50 = vmul.f32 0.00390625, %v2346_v21 }
 0x3f3   : > { %v3059_v9 = vadd.f32 1e-05, %v2995_v29  ;;  %v2932_v16 = vsub.f32 %v2804_v45, %v2868_v20 }
 0x3f4   : > { %v2349_v5 = vpop.xlane.xlu1 %2348  ;;  %3787 = vst [vmem:[%s6219_s12 + $0x350] sm:$0xff] %v3659_v31  ;;  %3788 = vst [vmem:[%s6219_s12 + $0x358] sm:$0xff] %v3660_v33  ;;  %v2869_v44 = vmul.f32 %v7527_v50, %v7527_v50  ;;  %v8294_v33 = vld [vmem:[#allocation83_spill] sm:$0xff] }
 0x3f5   : > { %v4527_v17 = vpop.eup %4526  ;;  %4530 = vrsqrt.f32 %v3059_v9  ;;  %v2996_v63 = vmax.f32 %v2932_v16, 0.0  ;;  %v7535_v48 = vmul.f32 0.00390625, %v2349_v5  ;;  %v2731_v7 = vpop.xlane.xlu0 %2730  ;;  %v3244_v9 = vsub.f32 %v8294_v33, %v7495_v30  ;;  %v8295_v16 = vld [vmem:[#allocation84_spill] sm:$0xff] }
 0x3f6   : > { %v3368_v27 = vmul.f32 %v4527_v17, %v3240_v38  ;;  %v3369_v57 = vmul.f32 %v4527_v17, %v3241_v43  ;;  %v2805_v4 = vmul.f32 0.00390625, %v2731_v7  ;;  %v3245_v5 = vsub.f32 %v8295_v16, %v7495_v30 }
 0x3f7   : > { %v4529_v54 = vpop.eup %4528  ;;  %v3060_v19 = vadd.f32 1e-05, %v2996_v63  ;;  %v2870_v24 = vmul.f32 %v7535_v48, %v7535_v48  ;;  %v3247_v30 = vsub.f32 %v6597_v32, %v7511_v49  ;;  %v3250_v16 = vsub.f32 %v6688_v47, %v7535_v48 }
 0x3f8   : > { %v2734_v62 = vpop.xlane.xlu1 %2733  ;;  %v3515_v58 = vmul.f32 %v6064_v18, %v3368_v27  ;;  %v3516_v22 = vmul.f32 %v6066_v56, %v3369_v57  ;;  %v3370_v46 = vmul.f32 %v4529_v54, %v3242_v39  ;;  %v3371_v14 = vmul.f32 %v4529_v54, %v3243_v10 }
 0x3f9   : > { %4532 = vrsqrt.f32 %v3060_v19  ;;  %v2933_v11 = vsub.f32 %v2805_v4, %v2869_v44  ;;  %v2806_v2 = vmul.f32 0.00390625, %v2734_v62  ;;  %v2352_v26 = vpop.xlane.xlu0 %2351  ;;  %v3246_v57 = vsub.f32 %v6587_v1, %v7511_v49 }
 0x3fa   : > { %v3661_v13 = vadd.f32 %v6086_v12, %v3515_v58  ;;  %v3662_v61 = vadd.f32 %v6100_v52, %v3516_v22  ;;  %v3517_v55 = vmul.f32 %v6064_v18, %v3370_v46  ;;  %v3518_v36 = vmul.f32 %v6066_v56, %v3371_v14 }
 0x3fb   : > { %v2997_v53 = vmax.f32 %v2933_v11, 0.0  ;;  %v2934_v40 = vsub.f32 %v2806_v2, %v2870_v24  ;;  %v7551_v35 = vmul.f32 0.00390625, %v2352_v26 }
 0x3fc   : > { %v2355_v28 = vpop.xlane.xlu1 %2354  ;;  %3789 = vst [vmem:[%s6219_s12 + $0x360] sm:$0xff] %v3661_v13  ;;  %3790 = vst [vmem:[%s6219_s12 + $0x368] sm:$0xff] %v3662_v61  ;;  %v3663_v34 = vadd.f32 %v6086_v12, %v3517_v55  ;;  %v3664_v29 = vadd.f32 %v6100_v52, %v3518_v36 }
 0x3fd   : > { %v7557_v20 = vmul.f32 0.00390625, %v2355_v28  ;;  %v3061_v45 = vadd.f32 1e-05, %v2997_v53  ;;  %v2998_v21 = vmax.f32 %v2934_v40, 0.0  ;;  %v2737_v31 = vpop.xlane.xlu0 %2736  ;;  %v2871_v15 = vmul.f32 %v7551_v35, %v7551_v35 }
 0x3fe   : > { %3791 = vst [vmem:[%s6219_s12 + $0x370] sm:$0xff] %v3663_v34  ;;  %3792 = vst [vmem:[%s6219_s12 + $0x378] sm:$0xff] %v3664_v29  ;;  %v2807_v38 = vmul.f32 0.00390625, %v2737_v31  ;;  %v3248_v29 = vsub.f32 %v6652_v25, %v7527_v50 }
 0x3ff   : > { %v4531_v41 = vpop.eup %4530  ;;  %4534 = vrsqrt.f32 %v3061_v45  ;;  %v3062_v43 = vadd.f32 1e-05, %v2998_v21  ;;  %v2872_v17 = vmul.f32 %v7557_v20, %v7557_v20  ;;  %v3249_v45 = vsub.f32 %v6662_v51, %v7527_v50 }
 0x400   : > { %v2740_v63 = vpop.xlane.xlu1 %2739  ;;  %v3372_v7 = vmul.f32 %v4531_v41, %v3244_v9  ;;  %v3373_v39 = vmul.f32 %v4531_v41, %v3245_v5  ;;  %v2935_v10 = vsub.f32 %v2807_v38, %v2871_v15  ;;  %v3251_v5 = vsub.f32 %v6702_v60, %v7535_v48 }
 0x401   : > { %v2808_v27 = vmul.f32 0.00390625, %v2740_v63  ;;  %4536 = vrsqrt.f32 %v3062_v43  ;;  %v2358_v54 = vpop.xlane.xlu0 %2357 }
 0x402   : > { %v3519_v19 = vmul.f32 %v6064_v18, %v3372_v7  ;;  %v3520_v44 = vmul.f32 %v6066_v56, %v3373_v39  ;;  %v2999_v4 = vmax.f32 %v2935_v10, 0.0  ;;  %v7575_v22 = vmul.f32 0.00390625, %v2358_v54 }
 0x403   : > { %v2936_v62 = vsub.f32 %v2808_v27, %v2872_v17  ;;  %v4533_v58 = vpop.eup %4532  ;;  %v3252_v54 = vsub.f32 %v6746_v23, %v7551_v35 }
 0x404   : > { %v2361_v46 = vpop.xlane.xlu1 %2360  ;;  %v3665_v14 = vadd.f32 %v6086_v12, %v3519_v19  ;;  %v3666_v1 = vadd.f32 %v6100_v52, %v3520_v44  ;;  %v3374_v11 = vmul.f32 %v4533_v58, %v3246_v57  ;;  %v3375_v32 = vmul.f32 %v4533_v58, %v3247_v30 }
 0x405   : > { %v3063_v49 = vadd.f32 1e-05, %v2999_v4  ;;  %v3000_v24 = vmax.f32 %v2936_v62, 0.0  ;;  %v7583_v61 = vmul.f32 0.00390625, %v2361_v46  ;;  %v2873_v36 = vmul.f32 %v7575_v22, %v7575_v22 }
 0x406   : > { %v2743_v2 = vpop.xlane.xlu0 %2742  ;;  %3793 = vst [vmem:[%s6219_s12 + $0x380] sm:$0xff] %v3665_v14  ;;  %3794 = vst [vmem:[%s6219_s12 + $0x388] sm:$0xff] %v3666_v1  ;;  %v3521_v26 = vmul.f32 %v6064_v18, %v3374_v11  ;;  %v3522_v13 = vmul.f32 %v6066_v56, %v3375_v32  ;;  %v3253_v19 = vsub.f32 %v6765_v37, %v7551_v35 }
 0x407   : > { %4538 = vrsqrt.f32 %v3063_v49  ;;  %v3064_v55 = vadd.f32 1e-05, %v3000_v24  ;;  %v2809_v53 = vmul.f32 0.00390625, %v2743_v2  ;;  %v2874_v33 = vmul.f32 %v7583_v61, %v7583_v61 }
 0x408   : > { %v2746_v40 = vpop.xlane.xlu1 %2745  ;;  %v3667_v28 = vadd.f32 %v6086_v12, %v3521_v26  ;;  %v3668_v34 = vadd.f32 %v6100_v52, %v3522_v13  ;;  %v3254_v4 = vsub.f32 %v6780_v42, %v7557_v20  ;;  %v3255_v62 = vsub.f32 %v6786_v6, %v7557_v20 }
 0x409   : > { %v4535_v21 = vpop.eup %4534  ;;  %4540 = vrsqrt.f32 %v3064_v55  ;;  %v2937_v31 = vsub.f32 %v2809_v53, %v2873_v36  ;;  %v2810_v9 = vmul.f32 0.00390625, %v2746_v40  ;;  %v3256_v24 = vsub.f32 %v6838_v59, %v7575_v22 }
 0x40a   : > { %3795 = vst [vmem:[%s6219_s12 + $0x390] sm:$0xff] %v3667_v28  ;;  %3796 = vst [vmem:[%s6219_s12 + $0x398] sm:$0xff] %v3668_v34  ;;  %v3376_v15 = vmul.f32 %v4535_v21, %v3248_v29  ;;  %v3377_v25 = vmul.f32 %v4535_v21, %v3249_v45  ;;  %v3257_v2 = vsub.f32 %v6857_v0, %v7575_v22 }
 0x40b   : > { %v4537_v38 = vpop.eup %4536  ;;  %v3001_v51 = vmax.f32 %v2937_v31, 0.0  ;;  %v2938_v50 = vsub.f32 %v2810_v9, %v2874_v33  ;;  %v3258_v13 = vsub.f32 %v6867_v8, %v7583_v61  ;;  %v3259_v55 = vsub.f32 %v6878_v3, %v7583_v61 }
 0x40c   : > { %v3523_v41 = vmul.f32 %v6064_v18, %v3376_v15  ;;  %v3524_v43 = vmul.f32 %v6066_v56, %v3377_v25  ;;  %v3378_v17 = vmul.f32 %v4537_v38, %v3250_v16  ;;  %v3379_v63 = vmul.f32 %v4537_v38, %v3251_v5 }
 0x40d   : > { %v3065_v7 = vadd.f32 1e-05, %v3001_v51  ;;  %v3002_v39 = vmax.f32 %v2938_v50, 0.0 }
 0x40e   : > { %v3669_v47 = vadd.f32 %v6086_v12, %v3523_v41  ;;  %v3670_v60 = vadd.f32 %v6100_v52, %v3524_v43  ;;  %v3525_v48 = vmul.f32 %v6064_v18, %v3378_v17  ;;  %v3526_v10 = vmul.f32 %v6066_v56, %v3379_v63 }
 0x40f   : > { %4542 = vrsqrt.f32 %v3065_v7  ;;  %v3066_v27 = vadd.f32 1e-05, %v3002_v39 }
 0x410   : > { %3797 = vst [vmem:[%s6219_s12 + $0x3a0] sm:$0xff] %v3669_v47  ;;  %3798 = vst [vmem:[%s6219_s12 + $0x3a8] sm:$0xff] %v3670_v60  ;;  %v3671_v57 = vadd.f32 %v6086_v12, %v3525_v48  ;;  %v3672_v30 = vadd.f32 %v6100_v52, %v3526_v10 }
 0x411   : > { %v4539_v44 = vpop.eup %4538  ;;  %4544 = vrsqrt.f32 %v3066_v27 }
 0x412   : > { %3799 = vst [vmem:[%s6219_s12 + $0x3b0] sm:$0xff] %v3671_v57  ;;  %3800 = vst [vmem:[%s6219_s12 + $0x3b8] sm:$0xff] %v3672_v30  ;;  %v3380_v58 = vmul.f32 %v4539_v44, %v3252_v54  ;;  %v3381_v46 = vmul.f32 %v4539_v44, %v3253_v19 }
 0x413   : > { %v4541_v14 = vpop.eup %4540 }
 0x414   : > { %v3527_v23 = vmul.f32 %v6064_v18, %v3380_v58  ;;  %v3528_v37 = vmul.f32 %v6066_v56, %v3381_v46  ;;  %v3382_v35 = vmul.f32 %v4541_v14, %v3254_v4  ;;  %v3383_v1 = vmul.f32 %v4541_v14, %v3255_v62 }
 0x416   : > { %v3673_v11 = vadd.f32 %v6086_v12, %v3527_v23  ;;  %v3674_v32 = vadd.f32 %v6100_v52, %v3528_v37  ;;  %v3529_v42 = vmul.f32 %v6064_v18, %v3382_v35  ;;  %v3530_v49 = vmul.f32 %v6066_v56, %v3383_v1 }
 0x418   : > { %3801 = vst [vmem:[%s6219_s12 + $0x3c0] sm:$0xff] %v3673_v11  ;;  %3802 = vst [vmem:[%s6219_s12 + $0x3c8] sm:$0xff] %v3674_v32  ;;  %v3675_v6 = vadd.f32 %v6086_v12, %v3529_v42  ;;  %v3676_v20 = vadd.f32 %v6100_v52, %v3530_v49 }
 0x419   : > { %v4543_v26 = vpop.eup %4542 }
 0x41a   : > { %3803 = vst [vmem:[%s6219_s12 + $0x3d0] sm:$0xff] %v3675_v6  ;;  %3804 = vst [vmem:[%s6219_s12 + $0x3d8] sm:$0xff] %v3676_v20  ;;  %v3384_v36 = vmul.f32 %v4543_v26, %v3256_v24  ;;  %v3385_v53 = vmul.f32 %v4543_v26, %v3257_v2 }
 0x41b   : > { %v4545_v40 = vpop.eup %4544 }
 0x41c   : > { %v3531_v28 = vmul.f32 %v6064_v18, %v3384_v36  ;;  %v3532_v59 = vmul.f32 %v6066_v56, %v3385_v53  ;;  %v3386_v0 = vmul.f32 %v4545_v40, %v3258_v13  ;;  %v3387_v22 = vmul.f32 %v4545_v40, %v3259_v55 }
 0x41e   : > { %v3677_v8 = vadd.f32 %v6086_v12, %v3531_v28  ;;  %v3678_v3 = vadd.f32 %v6100_v52, %v3532_v59  ;;  %v3533_v61 = vmul.f32 %v6064_v18, %v3386_v0  ;;  %v3534_v34 = vmul.f32 %v6066_v56, %v3387_v22 }
 0x420   : > { %3805 = vst [vmem:[%s6219_s12 + $0x3e0] sm:$0xff] %v3677_v8  ;;  %3806 = vst [vmem:[%s6219_s12 + $0x3e8] sm:$0xff] %v3678_v3  ;;  %v3679_v29 = vadd.f32 %v6086_v12, %v3533_v61  ;;  %v3680_v45 = vadd.f32 %v6100_v52, %v3534_v34 }
 0x422   : > { %3807 = vst [vmem:[%s6219_s12 + $0x3f0] sm:$0xff] %v3679_v29  ;;  %3808 = vst [vmem:[%s6219_s12 + $0x3f8] sm:$0xff] %v3680_v45 }
 0x423   : > { %4645 = shalt.err (!%p4642_p1)
}
 0x424   : > { %s4646_s10 = scalar_lea.hbm %s7652_s27, 16384  ;;  %s4650_s21 = scalar_lea.hbm %s7708_s4, 32768 }
 0x425   : > { %p4647_p13 = scmp.ne.s32.totalorder %s7652_s27, %s4646_s10  ;;  %p4651_p4 = scmp.lt.u32.totalorder %s7652_s27, %s7708_s4 }
 0x426   : > { %p4652_p5 = scmp.lt.u32.totalorder %s4650_s21, %s4646_s10  ;;  %p4654_p11 = scmp.lt.u32.totalorder %s4646_s10, %s7652_s27 }
 0x427   : > { %p4648_p6 = pnand %p4647_p13, %p8296_p0 }
 0x428   : > { %p4653_p8 = por %p4652_p5, %p4651_p4 }
 0x429   : > { %p4649_p10 = pneg %p4648_p6 }
 0x42a   : > { %p4655_p2 = por %p4654_p11, %p4653_p8 }
 0x42c   : > { %p4656_p3 = pnand %p4655_p2, %p4649_p10 }
 0x42e   : > { %4659 = shalt.err (!%p4656_p3)
}
 0x42f   : > { %s4711_s12 = smov 256   ;;  %s4712_s30 = smov 16  }
 0x430   : > { %4028 = dma.vmem_to_hbm [thread:$0]  (%p8296_p0), %s7654_s6, 16384, %s7652_s27, %s3810_s19, %s4711_s12, %s4711_s12, %s4712_s30  }
 0x431 PF: > { %s3839_s25 = sand.u32 1, %s4690_s15   ;;  %p8297_p7 = scmp.ne.s32.totalorder %s7902_s22, 0 }
 0x432   : > { %p8298_p9 = scmp.ge.s32.totalorder %s4702_s18, 2  ;;  %s3840_s7 = scalar_lea.sflag [#allocation4], %s3839_s25 }
 0x434   : > { %p4042_p12 = pnand %p8298_p9, %p8297_p7 }
 0x436   : > { %4685 = dma.done.wait (!%p4042_p12), %s3840_s7, 16384  }
 0x437   : > { %4687 = vsyncadd (!%p4042_p12), %s3840_s7, 4294950912  ;;  %p18_p1 = scmp.ge.s32.totalorder %s4854_s26, 4   ;;  %s8299_s15 = smov %s4694_s16 }
 0x438   : > { %s8300_s16 = smov %s4698_s17  ;;  %s8301_s17 = smov %s4870_s14 }
 0x439   : > { %s8302_s18 = smov %s4854_s26  ;;  %20 = sbr.rel (!%p18_p1) target bundleno = 6 (0x6), region = 89 }
 0x440   :  { %3845 = vsyncpa [#allocation3], 1 }
 0x441   :  { %3847 = vsyncpa [#allocation3 + $0x1], 1 }
 0x442   :  { %3848 = vsyncpa [#allocation6], 1 }
 0x443   :  { %3849 = vsyncpa [#allocation4], 1 }
 0x444   :  { %3851 = vsyncpa [#allocation4 + $0x1], 1 }

</bundles_post_ra>
